<compile_context>
chip_gen: v7x
topology: tpu7x:2x2x1
jax: 0.10.0
libtpu: 0.0.40
codegen_flags: <defaults>
</compile_context>

<pallas_src>
import functools

import jax
import jax.numpy as jnp
from jax.experimental import pallas as pl
from jax.experimental.pallas import tpu as pltpu


def _round_up(x, m):
    return ((x + m - 1) // m) * m


def _pick_row_tile(m, target=512, multiple=16):
    """Row-tile size: multiple of 16 (bf16 sublane packing), <= target, and
    >= 2 grid blocks whenever possible (v7x has 2 TensorCores)."""
    if m <= multiple:
        return multiple
    return min(_round_up(target, multiple), _round_up(pl.cdiv(m, 2), multiple))


# ----------------------------- Pallas kernel ------------------------------- #
def _fused_matmul_kernel(x_ref, w_ref, scale_ref, shift_ref, o_ref, acc_ref, *,
                         apply_relu):
    """out = max_q relu((x[q] @ w) * scale + shift), K-tiled, f32 accumulator.

    x_ref:       (Q, tm, tk) bf16   Q = 1 (no pool) or 4 (2x2 pool-window taps)
    w_ref:       (tk, N)     bf16
    scale/shift: (1, N)      f32    per-output-channel affine (bias / folded BN)
    o_ref:       (tm, N)     f32
    acc_ref:     (Q, tm, N)  f32    VMEM scratch accumulator
    """
    k = pl.program_id(1)

    @pl.when(k == 0)
    def _init():
        acc_ref[...] = jnp.zeros_like(acc_ref)

    q_taps = x_ref.shape[0]
    for q in range(q_taps):                       # static unroll (1 or 4)
        acc_ref[q] += jnp.dot(x_ref[q], w_ref[...],
                              preferred_element_type=jnp.float32)

    @pl.when(k == pl.num_programs(1) - 1)
    def _finalize():
        s = scale_ref[...]
        t = shift_ref[...]
        out = None
        for q in range(q_taps):
            a = acc_ref[q] * s + t
            if apply_relu:
                a = jnp.maximum(a, 0.0)           # ReLU before pool == PyTorch order
            out = a if out is None else jnp.maximum(out, a)
        o_ref[...] = out.astype(o_ref.dtype)


def fused_matmul(x_q, w_mat, scale, shift, *, relu, row_target=512, k_tile=1024):
    """x_q: (Q, M, K); w_mat: (K, N).  Returns (M, N) f32 = max over Q of the
    fused affine(+ReLU) matmul.  Pooled conv layers pass Q=4 window members,
    everything else passes Q=1."""
    Q, M, K = x_q.shape
    Kw, N = w_mat.shape
    assert K == Kw

    # --- K tiling: accumulate tk-sized chunks for large K (the real head has
    #     K = 128*56*56 = 401408); small K runs as a single full-K block. ---
    if K > k_tile:
        tk = k_tile
        Kp = _round_up(K, tk)
        if Kp != K:
            x_q = jnp.pad(x_q, ((0, 0), (0, 0), (0, Kp - K)))
            w_mat = jnp.pad(w_mat, ((0, Kp - K), (0, 0)))
        nk = Kp // tk
    else:
        tk, nk = K, 1

    # --- M tiling: pad rows, aim for >= 2 parallel blocks. ---
    tm = _pick_row_tile(M, row_target)
    Mp = _round_up(M, tm)
    if Mp != M:
        x_q = jnp.pad(x_q, ((0, 0), (0, Mp - M), (0, 0)))
    nm = Mp // tm

    # bf16 operands (MXU peak rate, half the DMA bytes), f32 accumulation.
    x_q = x_q.astype(jnp.bfloat16)
    w_mat = w_mat.astype(jnp.bfloat16)
    scale = scale.reshape(1, N).astype(jnp.float32)
    shift = shift.reshape(1, N).astype(jnp.float32)

    out = pl.pallas_call(
        functools.partial(_fused_matmul_kernel, apply_relu=relu),
        out_shape=jax.ShapeDtypeStruct((Mp, N), jnp.float32),
        grid_spec=pltpu.PrefetchScalarGridSpec(
            num_scalar_prefetch=0,
            grid=(nm, nk),                          # reduction axis last
            in_specs=[
                pl.BlockSpec((Q, tm, tk), lambda i, k: (0, i, k)),
                pl.BlockSpec((tk, N), lambda i, k: (k, 0)),
                pl.BlockSpec((1, N), lambda i, k: (0, 0)),
                pl.BlockSpec((1, N), lambda i, k: (0, 0)),
            ],
            out_specs=pl.BlockSpec((tm, N), lambda i, k: (i, 0)),
            scratch_shapes=[pltpu.VMEM((Q, tm, N), jnp.float32)],
        ),
        compiler_params=pltpu.CompilerParams(
            dimension_semantics=("parallel", "arbitrary"),
            vmem_limit_bytes=48 * 1024 * 1024,      # safe on v7x (64 MiB/TC)
        ),
    )(x_q, w_mat, scale, shift)
    return out[:M]


# ------------------------------ JAX glue ----------------------------------- #
def conv_layer(x_nhwc, w_oihw, scale, shift, *, k, pad, relu=True, pool=False):
    """Conv2d(stride=1, padding=pad) fused with per-channel affine, ReLU and
    (optionally) MaxPool2d(2).  The patch gather (im2col) is plain-JAX glue;
    all arithmetic runs inside the Pallas kernel."""
    # TODO(synk): replace im2col with an in-kernel tap loop over shifted NHWC
    # windows to avoid the k^2 HBM expansion of the patch matrix at real sizes.
    cout, cin = w_oihw.shape[0], w_oihw.shape[1]
    N, H, W, C = x_nhwc.shape
    assert C == cin
    xp = jnp.pad(x_nhwc, ((0, 0), (pad, pad), (pad, pad), (0, 0)))
    Ho = H + 2 * pad - k + 1
    Wo = W + 2 * pad - k + 1
    Kf = k * k * cin
    cols = [xp[:, di:di + Ho, dj:dj + Wo, :]
            for di in range(k) for dj in range(k)]
    patches = jnp.concatenate(cols, axis=-1)         # (N, Ho, Wo, k*k*C)
    w_mat = jnp.transpose(w_oihw, (2, 3, 1, 0)).reshape(Kf, cout)

    if pool:
        # Put the 4 members of every 2x2 pool window on a leading axis so
        # conv + ReLU + MaxPool2d(2) fuse into a single kernel (only the
        # pooled activations hit HBM).  Odd trailing rows/cols are floored,
        # matching PyTorch's MaxPool2d.
        H2, W2 = Ho // 2, Wo // 2
        pw = (patches[:, :2 * H2, :2 * W2, :]
              .reshape(N, H2, 2, W2, 2, Kf)
              .transpose(2, 4, 0, 1, 3, 5)
              .reshape(4, N * H2 * W2, Kf))
        out = fused_matmul(pw, w_mat, scale, shift, relu=relu)
        return out.reshape(N, H2, W2, cout)

    pw = patches.reshape(1, N * Ho * Wo, Kf)
    out = fused_matmul(pw, w_mat, scale, shift, relu=relu)
    return out.reshape(N, Ho, Wo, cout)


def init_params(key, in_hw):
    """Deterministic synthetic parameters with the module's shapes, plus the
    one-time offline folds (head-weight flatten-order permutation, lane pad)."""
    ks = jax.random.split(key, 10)

    def normal(k, shape, s=0.05):
        return (s * jax.random.normal(k, shape)).astype(jnp.float32)

    # spatial trace: H -> H+2 (conv1 k3 p2) -> same (conv2) -> /2 -> same -> /2
    hw1 = in_hw + 2
    hw_out = (hw1 // 2) // 2
    flat = 128 * hw_out * hw_out
    # TODO(synk): the PyTorch module hardcodes Linear(128*56*56, 136) (implies
    # a 222x222 input); here in_features follows the same 128*H'*W' formula at
    # the small demo size.

    # PyTorch-layout head weight (136, C*H*W): fold the NCHW-flatten ->
    # NHWC-flatten permutation into its rows once at init (no runtime
    # transpose in forward) and pad out-features 136 -> 256 so the kernel's
    # output store is lane dense.
    w_out_torch = normal(ks[8], (136, flat), s=0.01)
    w_out_nhwc = (w_out_torch.reshape(136, 128, hw_out, hw_out)
                  .transpose(2, 3, 1, 0)             # (H, W, C, 136)
                  .reshape(flat, 136))
    n_pad = 256
    b_out = normal(ks[9], (136,))

    return {
        "w1": normal(ks[0], (32, 1, 3, 3)),
        "b1": normal(ks[1], (32,)),
        "bn_gamma": 1.0 + normal(ks[2], (32,)),
        "bn_beta": normal(ks[3], (32,)),
        "bn_mean": jnp.zeros((32,), jnp.float32),    # eval-mode BatchNorm stats
        "bn_var": jnp.ones((32,), jnp.float32),
        "w2": normal(ks[4], (32, 32, 5, 5)),
        "b2": normal(ks[5], (32,)),
        "w3": normal(ks[6], (128, 32, 5, 5)),
        "b3": normal(ks[7], (128,)),
        "w_out_p": jnp.pad(w_out_nhwc, ((0, 0), (0, n_pad - 136))),
        "b_out_p": jnp.pad(b_out, ((0, n_pad - 136),)),
    }


def net_forward(params, x_nchw):
    x = jnp.transpose(x_nchw, (0, 2, 3, 1))          # NCHW -> NHWC (C on lanes)
    eps = 1e-5

    # conv1 (k=3, pad=2, as in the module) + eval-mode BatchNorm + ReLU; the
    # BN is folded into a per-channel scale/shift applied inside the kernel.
    scale1 = params["bn_gamma"] / jnp.sqrt(params["bn_var"] + eps)
    shift1 = params["bn_beta"] + (params["b1"] - params["bn_mean"]) * scale1
    x = conv_layer(x, params["w1"], scale1, shift1, k=3, pad=2, relu=True)

    # conv2 + ReLU + MaxPool2d(2): pool fused into the conv epilogue.
    x = conv_layer(x, params["w2"], jnp.ones((32,), jnp.float32), params["b2"],
                   k=5, pad=2, relu=True, pool=True)

    # conv3 + ReLU + MaxPool2d(2): fused likewise (cout=128 is lane dense).
    x = conv_layer(x, params["w3"], jnp.ones((128,), jnp.float32), params["b3"],
                   k=5, pad=2, relu=True, pool=True)

    # Flatten directly in NHWC order (head weight rows were pre-permuted at
    # init), run the K-tiled fused matmul, slice the 136 real out-features.
    N = x.shape[0]
    xf = x.reshape(1, N, -1)
    n_pad = params["w_out_p"].shape[1]
    out = fused_matmul(xf, params["w_out_p"],
                       jnp.ones((n_pad,), jnp.float32), params["b_out_p"],
                       relu=False)
    return out[:, :136]


if __name__ == "__main__":
    key = jax.random.PRNGKey(0)
    kx, kp = jax.random.split(key)
    # Small demo input (NCHW grayscale): 16x16 -> conv1 18x18 -> conv2 18x18
    # -> pool 9x9 -> conv3 9x9 -> pool 4x4 (floor, like PyTorch) -> flatten
    # 128*4*4 = 2048 -> Linear -> 136.
    x = jax.random.normal(kx, (2, 1, 16, 16), dtype=jnp.float32)
    params = init_params(kp, in_hw=16)
    out = jax.jit(net_forward)(params, x)
    jax.block_until_ready(out)
    assert out.shape == (2, 136) and out.dtype == jnp.float32
    print("KERNEL_OK")
</pallas_src>

<mosaic_0001>
module attributes {stable_mosaic.version = 11 : i64} {
  func.func @_fused_matmul_kernel(%arg0: i32, %arg1: i32, %arg2: memref<1x336x9xbf16, #tpu.memory_space<vmem>>, %arg3: memref<9x32xbf16, #tpu.memory_space<vmem>>, %arg4: memref<1x32xf32, #tpu.memory_space<vmem>>, %arg5: memref<1x32xf32, #tpu.memory_space<vmem>>, %arg6: memref<336x32xf32, #tpu.memory_space<vmem>>, %arg7: memref<1x336x32xf32, #tpu.memory_space<vmem>>) attributes {dimension_semantics = [#tpu.dimension_semantics<parallel>, #tpu.dimension_semantics<arbitrary>], iteration_bounds = array<i64: 2, 1>, scalar_prefetch = 0 : i64, scratch_operands = 1 : i64, tpu.core_type = #tpu.core_type<tc>, window_params = [{transform_indices = @transform_0, window_bounds = array<i64: 1, 336, 9>}, {transform_indices = @transform_1, window_bounds = array<i64: 9, 32>}, {pipeline_mode = #tpu.pipeline_mode<synchronous>, transform_indices = @transform_2, window_bounds = array<i64: 1, 32>}, {pipeline_mode = #tpu.pipeline_mode<synchronous>, transform_indices = @transform_3, window_bounds = array<i64: 1, 32>}, {transform_indices = @transform_4, window_bounds = array<i64: 336, 32>}]} {
    %c0_i32 = arith.constant 0 : i32
    %0 = arith.cmpi eq, %arg1, %c0_i32 : i32
    %1 = arith.extui %0 : i1 to i32
    %c0_i32_0 = arith.constant 0 : i32
    %2 = arith.cmpi ne, %1, %c0_i32_0 : i32
    scf.if %2 {
      %cst_13 = arith.constant 0.000000e+00 : f32
      %16 = vector.broadcast %cst_13 : f32 to vector<1x336x32xf32>
      %c0_14 = arith.constant 0 : index
      %c0_15 = arith.constant 0 : index
      %c0_16 = arith.constant 0 : index
      %17 = vector.load %arg7[%c0_14, %c0_15, %c0_16] : memref<1x336x32xf32, #tpu.memory_space<vmem>>, vector<1x336x32xf32>
      tpu.vector_store %arg7[%c0_14, %c0_15, %c0_16], %16 {strides = array<i32>} : memref<1x336x32xf32, #tpu.memory_space<vmem>>, vector<1x336x32xf32>,
    } else {
    }
    %c0 = arith.constant 0 : index
    %c0_1 = arith.constant 0 : index
    %c0_2 = arith.constant 0 : index
    %3 = vector.load %arg7[%c0, %c0_1, %c0_2] : memref<1x336x32xf32, #tpu.memory_space<vmem>>, vector<1x336x32xf32>
    %4 = vector.shape_cast %3 : vector<1x336x32xf32> to vector<336x32xf32>
    %c0_3 = arith.constant 0 : index
    %c0_4 = arith.constant 0 : index
    %c0_5 = arith.constant 0 : index
    %5 = vector.load %arg2[%c0_3, %c0_4, %c0_5] : memref<1x336x9xbf16, #tpu.memory_space<vmem>>, vector<1x336x9xbf16>
    %6 = vector.shape_cast %5 : vector<1x336x9xbf16> to vector<336x9xbf16>
    %c0_6 = arith.constant 0 : index
    %c0_7 = arith.constant 0 : index
    %7 = vector.load %arg3[%c0_6, %c0_7] : memref<9x32xbf16, #tpu.memory_space<vmem>>, vector<9x32xbf16>
    %cst = arith.constant dense<0.000000e+00> : vector<336x32xf32>
    %8 = tpu.matmul %6, %7, %cst {dimension_numbers = #tpu.dot_dimension_numbers<[1], [0], [0], [1], [0, 0, 1, 1], [], []>} : vector<336x9xbf16>, vector<9x32xbf16>, vector<336x32xf32> -> vector<336x32xf32>
    %9 = arith.addf %4, %8 : vector<336x32xf32>
    %c0_8 = arith.constant 0 : index
    %c0_9 = arith.constant 0 : index
    %c0_10 = arith.constant 0 : index
    %10 = vector.load %arg7[%c0_8, %c0_9, %c0_10] : memref<1x336x32xf32, #tpu.memory_space<vmem>>, vector<1x336x32xf32>
    %11 = vector.shape_cast %10 : vector<1x336x32xf32> to vector<336x32xf32>
    %12 = vector.shape_cast %9 : vector<336x32xf32> to vector<1x336x32xf32>
    tpu.vector_store %arg7[%c0_8, %c0_9, %c0_10], %12 {strides = array<i32>} : memref<1x336x32xf32, #tpu.memory_space<vmem>>, vector<1x336x32xf32>,
    %c0_i32_11 = arith.constant 0 : i32
    %13 = arith.cmpi eq, %arg1, %c0_i32_11 : i32
    %14 = arith.extui %13 : i1 to i32
    %c0_i32_12 = arith.constant 0 : i32
    %15 = arith.cmpi ne, %14, %c0_i32_12 : i32
    scf.if %15 {
      %c0_13 = arith.constant 0 : index
      %c0_14 = arith.constant 0 : index
      %16 = vector.load %arg4[%c0_13, %c0_14] : memref<1x32xf32, #tpu.memory_space<vmem>>, vector<1x32xf32>
      %c0_15 = arith.constant 0 : index
      %c0_16 = arith.constant 0 : index
      %17 = vector.load %arg5[%c0_15, %c0_16] : memref<1x32xf32, #tpu.memory_space<vmem>>, vector<1x32xf32>
      %c0_17 = arith.constant 0 : index
      %c0_18 = arith.constant 0 : index
      %c0_19 = arith.constant 0 : index
      %18 = vector.load %arg7[%c0_17, %c0_18, %c0_19] : memref<1x336x32xf32, #tpu.memory_space<vmem>>, vector<1x336x32xf32>
      %19 = vector.shape_cast %18 : vector<1x336x32xf32> to vector<336x32xf32>
      %20 = vector.broadcast %16 : vector<1x32xf32> to vector<336x32xf32>
      %21 = arith.mulf %19, %20 : vector<336x32xf32>
      %22 = vector.broadcast %17 : vector<1x32xf32> to vector<336x32xf32>
      %23 = arith.addf %21, %22 : vector<336x32xf32>
      %cst_20 = arith.constant 0.000000e+00 : f32
      %24 = vector.broadcast %cst_20 : f32 to vector<336x32xf32>
      %25 = arith.maximumf %23, %24 : vector<336x32xf32>
      %c0_21 = arith.constant 0 : index
      %c0_22 = arith.constant 0 : index
      %26 = vector.load %arg6[%c0_21, %c0_22] : memref<336x32xf32, #tpu.memory_space<vmem>>, vector<336x32xf32>
      tpu.vector_store %arg6[%c0_21, %c0_22], %25 {strides = array<i32>} : memref<336x32xf32, #tpu.memory_space<vmem>>, vector<336x32xf32>,
    } else {
    }
    return
  }
  func.func @transform_0(%arg0: i32, %arg1: i32) -> (i32, i32, i32) {
    %c0_i32 = arith.constant 0 : i32
    %c0_i32_0 = arith.constant 0 : i32
    return %c0_i32, %arg0, %arg1 : i32, i32, i32
  }
  func.func @transform_1(%arg0: i32, %arg1: i32) -> (i32, i32) {
    %c0_i32 = arith.constant 0 : i32
    %c0_i32_0 = arith.constant 0 : i32
    return %arg1, %c0_i32 : i32, i32
  }
  func.func @transform_2(%arg0: i32, %arg1: i32) -> (i32, i32) {
    %c0_i32 = arith.constant 0 : i32
    %c0_i32_0 = arith.constant 0 : i32
    %c0_i32_1 = arith.constant 0 : i32
    return %c0_i32, %c0_i32_0 : i32, i32
  }
  func.func @transform_3(%arg0: i32, %arg1: i32) -> (i32, i32) {
    %c0_i32 = arith.constant 0 : i32
    %c0_i32_0 = arith.constant 0 : i32
    %c0_i32_1 = arith.constant 0 : i32
    return %c0_i32, %c0_i32_0 : i32, i32
  }
  func.func @transform_4(%arg0: i32, %arg1: i32) -> (i32, i32) {
    %c0_i32 = arith.constant 0 : i32
    %c0_i32_0 = arith.constant 0 : i32
    return %arg0, %c0_i32 : i32, i32
  }
}

module attributes {stable_mosaic.version = 11 : i64} {
  func.func @_fused_matmul_kernel(%arg0: i32, %arg1: i32, %arg2: memref<4x96x800xbf16, #tpu.memory_space<vmem>>, %arg3: memref<800x32xbf16, #tpu.memory_space<vmem>>, %arg4: memref<1x32xf32, #tpu.memory_space<vmem>>, %arg5: memref<1x32xf32, #tpu.memory_space<vmem>>, %arg6: memref<96x32xf32, #tpu.memory_space<vmem>>, %arg7: memref<4x96x32xf32, #tpu.memory_space<vmem>>) attributes {dimension_semantics = [#tpu.dimension_semantics<parallel>, #tpu.dimension_semantics<arbitrary>], iteration_bounds = array<i64: 2, 1>, scalar_prefetch = 0 : i64, scratch_operands = 1 : i64, tpu.core_type = #tpu.core_type<tc>, window_params = [{transform_indices = @transform_0, window_bounds = array<i64: 4, 96, 800>}, {transform_indices = @transform_1, window_bounds = array<i64: 800, 32>}, {pipeline_mode = #tpu.pipeline_mode<synchronous>, transform_indices = @transform_2, window_bounds = array<i64: 1, 32>}, {pipeline_mode = #tpu.pipeline_mode<synchronous>, transform_indices = @transform_3, window_bounds = array<i64: 1, 32>}, {transform_indices = @transform_4, window_bounds = array<i64: 96, 32>}]} {
    %c0_i32 = arith.constant 0 : i32
    %0 = arith.cmpi eq, %arg1, %c0_i32 : i32
    %1 = arith.extui %0 : i1 to i32
    %c0_i32_0 = arith.constant 0 : i32
    %2 = arith.cmpi ne, %1, %c0_i32_0 : i32
    scf.if %2 {
      %cst_46 = arith.constant 0.000000e+00 : f32
      %46 = vector.broadcast %cst_46 : f32 to vector<4x96x32xf32>
      %c0_47 = arith.constant 0 : index
      %c0_48 = arith.constant 0 : index
      %c0_49 = arith.constant 0 : index
      %47 = vector.load %arg7[%c0_47, %c0_48, %c0_49] : memref<4x96x32xf32, #tpu.memory_space<vmem>>, vector<4x96x32xf32>
      tpu.vector_store %arg7[%c0_47, %c0_48, %c0_49], %46 {strides = array<i32>} : memref<4x96x32xf32, #tpu.memory_space<vmem>>, vector<4x96x32xf32>,
    } else {
    }
    %c0 = arith.constant 0 : index
    %c0_1 = arith.constant 0 : index
    %c0_2 = arith.constant 0 : index
    %3 = vector.load %arg7[%c0, %c0_1, %c0_2] : memref<4x96x32xf32, #tpu.memory_space<vmem>>, vector<1x96x32xf32>
    %4 = vector.shape_cast %3 : vector<1x96x32xf32> to vector<96x32xf32>
    %c0_3 = arith.constant 0 : index
    %c0_4 = arith.constant 0 : index
    %c0_5 = arith.constant 0 : index
    %5 = vector.load %arg2[%c0_3, %c0_4, %c0_5] : memref<4x96x800xbf16, #tpu.memory_space<vmem>>, vector<1x96x800xbf16>
    %6 = vector.shape_cast %5 : vector<1x96x800xbf16> to vector<96x800xbf16>
    %c0_6 = arith.constant 0 : index
    %c0_7 = arith.constant 0 : index
    %7 = vector.load %arg3[%c0_6, %c0_7] : memref<800x32xbf16, #tpu.memory_space<vmem>>, vector<800x32xbf16>
    %cst = arith.constant dense<0.000000e+00> : vector<96x32xf32>
    %8 = tpu.matmul %6, %7, %cst {dimension_numbers = #tpu.dot_dimension_numbers<[1], [0], [0], [1], [0, 0, 1, 1], [], []>} : vector<96x800xbf16>, vector<800x32xbf16>, vector<96x32xf32> -> vector<96x32xf32>
    %9 = arith.addf %4, %8 : vector<96x32xf32>
    %c0_8 = arith.constant 0 : index
    %c0_9 = arith.constant 0 : index
    %c0_10 = arith.constant 0 : index
    %10 = vector.load %arg7[%c0_8, %c0_9, %c0_10] : memref<4x96x32xf32, #tpu.memory_space<vmem>>, vector<1x96x32xf32>
    %11 = vector.shape_cast %10 : vector<1x96x32xf32> to vector<96x32xf32>
    %12 = vector.shape_cast %9 : vector<96x32xf32> to vector<1x96x32xf32>
    tpu.vector_store %arg7[%c0_8, %c0_9, %c0_10], %12 {strides = array<i32>} : memref<4x96x32xf32, #tpu.memory_space<vmem>>, vector<1x96x32xf32>,
    %c1 = arith.constant 1 : index
    %c0_11 = arith.constant 0 : index
    %c0_12 = arith.constant 0 : index
    %13 = vector.load %arg7[%c1, %c0_11, %c0_12] : memref<4x96x32xf32, #tpu.memory_space<vmem>>, vector<1x96x32xf32>
    %14 = vector.shape_cast %13 : vector<1x96x32xf32> to vector<96x32xf32>
    %c1_13 = arith.constant 1 : index
    %c0_14 = arith.constant 0 : index
    %c0_15 = arith.constant 0 : index
    %15 = vector.load %arg2[%c1_13, %c0_14, %c0_15] : memref<4x96x800xbf16, #tpu.memory_space<vmem>>, vector<1x96x800xbf16>
    %16 = vector.shape_cast %15 : vector<1x96x800xbf16> to vector<96x800xbf16>
    %c0_16 = arith.constant 0 : index
    %c0_17 = arith.constant 0 : index
    %17 = vector.load %arg3[%c0_16, %c0_17] : memref<800x32xbf16, #tpu.memory_space<vmem>>, vector<800x32xbf16>
    %cst_18 = arith.constant dense<0.000000e+00> : vector<96x32xf32>
    %18 = tpu.matmul %16, %17, %cst_18 {dimension_numbers = #tpu.dot_dimension_numbers<[1], [0], [0], [1], [0, 0, 1, 1], [], []>} : vector<96x800xbf16>, vector<800x32xbf16>, vector<96x32xf32> -> vector<96x32xf32>
    %19 = arith.addf %14, %18 : vector<96x32xf32>
    %c1_19 = arith.constant 1 : index
    %c0_20 = arith.constant 0 : index
    %c0_21 = arith.constant 0 : index
    %20 = vector.load %arg7[%c1_19, %c0_20, %c0_21] : memref<4x96x32xf32, #tpu.memory_space<vmem>>, vector<1x96x32xf32>
    %21 = vector.shape_cast %20 : vector<1x96x32xf32> to vector<96x32xf32>
    %22 = vector.shape_cast %19 : vector<96x32xf32> to vector<1x96x32xf32>
    tpu.vector_store %arg7[%c1_19, %c0_20, %c0_21], %22 {strides = array<i32>} : memref<4x96x32xf32, #tpu.memory_space<vmem>>, vector<1x96x32xf32>,
    %c2 = arith.constant 2 : index
    %c0_22 = arith.constant 0 : index
    %c0_23 = arith.constant 0 : index
    %23 = vector.load %arg7[%c2, %c0_22, %c0_23] : memref<4x96x32xf32, #tpu.memory_space<vmem>>, vector<1x96x32xf32>
    %24 = vector.shape_cast %23 : vector<1x96x32xf32> to vector<96x32xf32>
    %c2_24 = arith.constant 2 : index
    %c0_25 = arith.constant 0 : index
    %c0_26 = arith.constant 0 : index
    %25 = vector.load %arg2[%c2_24, %c0_25, %c0_26] : memref<4x96x800xbf16, #tpu.memory_space<vmem>>, vector<1x96x800xbf16>
    %26 = vector.shape_cast %25 : vector<1x96x800xbf16> to vector<96x800xbf16>
    %c0_27 = arith.constant 0 : index
    %c0_28 = arith.constant 0 : index
    %27 = vector.load %arg3[%c0_27, %c0_28] : memref<800x32xbf16, #tpu.memory_space<vmem>>, vector<800x32xbf16>
    %cst_29 = arith.constant dense<0.000000e+00> : vector<96x32xf32>
    %28 = tpu.matmul %26, %27, %cst_29 {dimension_numbers = #tpu.dot_dimension_numbers<[1], [0], [0], [1], [0, 0, 1, 1], [], []>} : vector<96x800xbf16>, vector<800x32xbf16>, vector<96x32xf32> -> vector<96x32xf32>
    %29 = arith.addf %24, %28 : vector<96x32xf32>
    %c2_30 = arith.constant 2 : index
    %c0_31 = arith.constant 0 : index
    %c0_32 = arith.constant 0 : index
    %30 = vector.load %arg7[%c2_30, %c0_31, %c0_32] : memref<4x96x32xf32, #tpu.memory_space<vmem>>, vector<1x96x32xf32>
    %31 = vector.shape_cast %30 : vector<1x96x32xf32> to vector<96x32xf32>
    %32 = vector.shape_cast %29 : vector<96x32xf32> to vector<1x96x32xf32>
    tpu.vector_store %arg7[%c2_30, %c0_31, %c0_32], %32 {strides = array<i32>} : memref<4x96x32xf32, #tpu.memory_space<vmem>>, vector<1x96x32xf32>,
    %c3 = arith.constant 3 : index
    %c0_33 = arith.constant 0 : index
    %c0_34 = arith.constant 0 : index
    %33 = vector.load %arg7[%c3, %c0_33, %c0_34] : memref<4x96x32xf32, #tpu.memory_space<vmem>>, vector<1x96x32xf32>
    %34 = vector.shape_cast %33 : vector<1x96x32xf32> to vector<96x32xf32>
    %c3_35 = arith.constant 3 : index
    %c0_36 = arith.constant 0 : index
    %c0_37 = arith.constant 0 : index
    %35 = vector.load %arg2[%c3_35, %c0_36, %c0_37] : memref<4x96x800xbf16, #tpu.memory_space<vmem>>, vector<1x96x800xbf16>
    %36 = vector.shape_cast %35 : vector<1x96x800xbf16> to vector<96x800xbf16>
    %c0_38 = arith.constant 0 : index
    %c0_39 = arith.constant 0 : index
    %37 = vector.load %arg3[%c0_38, %c0_39] : memref<800x32xbf16, #tpu.memory_space<vmem>>, vector<800x32xbf16>
    %cst_40 = arith.constant dense<0.000000e+00> : vector<96x32xf32>
    %38 = tpu.matmul %36, %37, %cst_40 {dimension_numbers = #tpu.dot_dimension_numbers<[1], [0], [0], [1], [0, 0, 1, 1], [], []>} : vector<96x800xbf16>, vector<800x32xbf16>, vector<96x32xf32> -> vector<96x32xf32>
    %39 = arith.addf %34, %38 : vector<96x32xf32>
    %c3_41 = arith.constant 3 : index
    %c0_42 = arith.constant 0 : index
    %c0_43 = arith.constant 0 : index
    %40 = vector.load %arg7[%c3_41, %c0_42, %c0_43] : memref<4x96x32xf32, #tpu.memory_space<vmem>>, vector<1x96x32xf32>
    %41 = vector.shape_cast %40 : vector<1x96x32xf32> to vector<96x32xf32>
    %42 = vector.shape_cast %39 : vector<96x32xf32> to vector<1x96x32xf32>
    tpu.vector_store %arg7[%c3_41, %c0_42, %c0_43], %42 {strides = array<i32>} : memref<4x96x32xf32, #tpu.memory_space<vmem>>, vector<1x96x32xf32>,
    %c0_i32_44 = arith.constant 0 : i32
    %43 = arith.cmpi eq, %arg1, %c0_i32_44 : i32
    %44 = arith.extui %43 : i1 to i32
    %c0_i32_45 = arith.constant 0 : i32
    %45 = arith.cmpi ne, %44, %c0_i32_45 : i32
    scf.if %45 {
      %c0_46 = arith.constant 0 : index
      %c0_47 = arith.constant 0 : index
      %46 = vector.load %arg4[%c0_46, %c0_47] : memref<1x32xf32, #tpu.memory_space<vmem>>, vector<1x32xf32>
      %c0_48 = arith.constant 0 : index
      %c0_49 = arith.constant 0 : index
      %47 = vector.load %arg5[%c0_48, %c0_49] : memref<1x32xf32, #tpu.memory_space<vmem>>, vector<1x32xf32>
      %c0_50 = arith.constant 0 : index
      %c0_51 = arith.constant 0 : index
      %c0_52 = arith.constant 0 : index
      %48 = vector.load %arg7[%c0_50, %c0_51, %c0_52] : memref<4x96x32xf32, #tpu.memory_space<vmem>>, vector<1x96x32xf32>
      %49 = vector.shape_cast %48 : vector<1x96x32xf32> to vector<96x32xf32>
      %50 = vector.broadcast %46 : vector<1x32xf32> to vector<96x32xf32>
      %51 = arith.mulf %49, %50 : vector<96x32xf32>
      %52 = vector.broadcast %47 : vector<1x32xf32> to vector<96x32xf32>
      %53 = arith.addf %51, %52 : vector<96x32xf32>
      %cst_53 = arith.constant 0.000000e+00 : f32
      %54 = vector.broadcast %cst_53 : f32 to vector<96x32xf32>
      %55 = arith.maximumf %53, %54 : vector<96x32xf32>
      %c1_54 = arith.constant 1 : index
      %c0_55 = arith.constant 0 : index
      %c0_56 = arith.constant 0 : index
      %56 = vector.load %arg7[%c1_54, %c0_55, %c0_56] : memref<4x96x32xf32, #tpu.memory_space<vmem>>, vector<1x96x32xf32>
      %57 = vector.shape_cast %56 : vector<1x96x32xf32> to vector<96x32xf32>
      %58 = vector.broadcast %46 : vector<1x32xf32> to vector<96x32xf32>
      %59 = arith.mulf %57, %58 : vector<96x32xf32>
      %60 = vector.broadcast %47 : vector<1x32xf32> to vector<96x32xf32>
      %61 = arith.addf %59, %60 : vector<96x32xf32>
      %cst_57 = arith.constant 0.000000e+00 : f32
      %62 = vector.broadcast %cst_57 : f32 to vector<96x32xf32>
      %63 = arith.maximumf %61, %62 : vector<96x32xf32>
      %64 = arith.maximumf %55, %63 : vector<96x32xf32>
      %c2_58 = arith.constant 2 : index
      %c0_59 = arith.constant 0 : index
      %c0_60 = arith.constant 0 : index
      %65 = vector.load %arg7[%c2_58, %c0_59, %c0_60] : memref<4x96x32xf32, #tpu.memory_space<vmem>>, vector<1x96x32xf32>
      %66 = vector.shape_cast %65 : vector<1x96x32xf32> to vector<96x32xf32>
      %67 = vector.broadcast %46 : vector<1x32xf32> to vector<96x32xf32>
      %68 = arith.mulf %66, %67 : vector<96x32xf32>
      %69 = vector.broadcast %47 : vector<1x32xf32> to vector<96x32xf32>
      %70 = arith.addf %68, %69 : vector<96x32xf32>
      %cst_61 = arith.constant 0.000000e+00 : f32
      %71 = vector.broadcast %cst_61 : f32 to vector<96x32xf32>
      %72 = arith.maximumf %70, %71 : vector<96x32xf32>
      %73 = arith.maximumf %64, %72 : vector<96x32xf32>
      %c3_62 = arith.constant 3 : index
      %c0_63 = arith.constant 0 : index
      %c0_64 = arith.constant 0 : index
      %74 = vector.load %arg7[%c3_62, %c0_63, %c0_64] : memref<4x96x32xf32, #tpu.memory_space<vmem>>, vector<1x96x32xf32>
      %75 = vector.shape_cast %74 : vector<1x96x32xf32> to vector<96x32xf32>
      %76 = vector.broadcast %46 : vector<1x32xf32> to vector<96x32xf32>
      %77 = arith.mulf %75, %76 : vector<96x32xf32>
      %78 = vector.broadcast %47 : vector<1x32xf32> to vector<96x32xf32>
      %79 = arith.addf %77, %78 : vector<96x32xf32>
      %cst_65 = arith.constant 0.000000e+00 : f32
      %80 = vector.broadcast %cst_65 : f32 to vector<96x32xf32>
      %81 = arith.maximumf %79, %80 : vector<96x32xf32>
      %82 = arith.maximumf %73, %81 : vector<96x32xf32>
      %c0_66 = arith.constant 0 : index
      %c0_67 = arith.constant 0 : index
      %83 = vector.load %arg6[%c0_66, %c0_67] : memref<96x32xf32, #tpu.memory_space<vmem>>, vector<96x32xf32>
      tpu.vector_store %arg6[%c0_66, %c0_67], %82 {strides = array<i32>} : memref<96x32xf32, #tpu.memory_space<vmem>>, vector<96x32xf32>,
    } else {
    }
    return
  }
  func.func @transform_0(%arg0: i32, %arg1: i32) -> (i32, i32, i32) {
    %c0_i32 = arith.constant 0 : i32
    %c0_i32_0 = arith.constant 0 : i32
    return %c0_i32, %arg0, %arg1 : i32, i32, i32
  }
  func.func @transform_1(%arg0: i32, %arg1: i32) -> (i32, i32) {
    %c0_i32 = arith.constant 0 : i32
    %c0_i32_0 = arith.constant 0 : i32
    return %arg1, %c0_i32 : i32, i32
  }
  func.func @transform_2(%arg0: i32, %arg1: i32) -> (i32, i32) {
    %c0_i32 = arith.constant 0 : i32
    %c0_i32_0 = arith.constant 0 : i32
    %c0_i32_1 = arith.constant 0 : i32
    return %c0_i32, %c0_i32_0 : i32, i32
  }
  func.func @transform_3(%arg0: i32, %arg1: i32) -> (i32, i32) {
    %c0_i32 = arith.constant 0 : i32
    %c0_i32_0 = arith.constant 0 : i32
    %c0_i32_1 = arith.constant 0 : i32
    return %c0_i32, %c0_i32_0 : i32, i32
  }
  func.func @transform_4(%arg0: i32, %arg1: i32) -> (i32, i32) {
    %c0_i32 = arith.constant 0 : i32
    %c0_i32_0 = arith.constant 0 : i32
    return %arg0, %c0_i32 : i32, i32
  }
}

module attributes {stable_mosaic.version = 11 : i64} {
  func.func @_fused_matmul_kernel(%arg0: i32, %arg1: i32, %arg2: memref<4x16x800xbf16, #tpu.memory_space<vmem>>, %arg3: memref<800x128xbf16, #tpu.memory_space<vmem>>, %arg4: memref<1x128xf32, #tpu.memory_space<vmem>>, %arg5: memref<1x128xf32, #tpu.memory_space<vmem>>, %arg6: memref<16x128xf32, #tpu.memory_space<vmem>>, %arg7: memref<4x16x128xf32, #tpu.memory_space<vmem>>) attributes {dimension_semantics = [#tpu.dimension_semantics<parallel>, #tpu.dimension_semantics<arbitrary>], iteration_bounds = array<i64: 2, 1>, scalar_prefetch = 0 : i64, scratch_operands = 1 : i64, tpu.core_type = #tpu.core_type<tc>, window_params = [{transform_indices = @transform_0, window_bounds = array<i64: 4, 16, 800>}, {transform_indices = @transform_1, window_bounds = array<i64: 800, 128>}, {pipeline_mode = #tpu.pipeline_mode<synchronous>, transform_indices = @transform_2, window_bounds = array<i64: 1, 128>}, {pipeline_mode = #tpu.pipeline_mode<synchronous>, transform_indices = @transform_3, window_bounds = array<i64: 1, 128>}, {transform_indices = @transform_4, window_bounds = array<i64: 16, 128>}]} {
    %c0_i32 = arith.constant 0 : i32
    %0 = arith.cmpi eq, %arg1, %c0_i32 : i32
    %1 = arith.extui %0 : i1 to i32
    %c0_i32_0 = arith.constant 0 : i32
    %2 = arith.cmpi ne, %1, %c0_i32_0 : i32
    scf.if %2 {
      %cst_46 = arith.constant 0.000000e+00 : f32
      %46 = vector.broadcast %cst_46 : f32 to vector<4x16x128xf32>
      %c0_47 = arith.constant 0 : index
      %c0_48 = arith.constant 0 : index
      %c0_49 = arith.constant 0 : index
      %47 = vector.load %arg7[%c0_47, %c0_48, %c0_49] : memref<4x16x128xf32, #tpu.memory_space<vmem>>, vector<4x16x128xf32>
      tpu.vector_store %arg7[%c0_47, %c0_48, %c0_49], %46 {strides = array<i32>} : memref<4x16x128xf32, #tpu.memory_space<vmem>>, vector<4x16x128xf32>,
    } else {
    }
    %c0 = arith.constant 0 : index
    %c0_1 = arith.constant 0 : index
    %c0_2 = arith.constant 0 : index
    %3 = vector.load %arg7[%c0, %c0_1, %c0_2] : memref<4x16x128xf32, #tpu.memory_space<vmem>>, vector<1x16x128xf32>
    %4 = vector.shape_cast %3 : vector<1x16x128xf32> to vector<16x128xf32>
    %c0_3 = arith.constant 0 : index
    %c0_4 = arith.constant 0 : index
    %c0_5 = arith.constant 0 : index
    %5 = vector.load %arg2[%c0_3, %c0_4, %c0_5] : memref<4x16x800xbf16, #tpu.memory_space<vmem>>, vector<1x16x800xbf16>
    %6 = vector.shape_cast %5 : vector<1x16x800xbf16> to vector<16x800xbf16>
    %c0_6 = arith.constant 0 : index
    %c0_7 = arith.constant 0 : index
    %7 = vector.load %arg3[%c0_6, %c0_7] : memref<800x128xbf16, #tpu.memory_space<vmem>>, vector<800x128xbf16>
    %cst = arith.constant dense<0.000000e+00> : vector<16x128xf32>
    %8 = tpu.matmul %6, %7, %cst {dimension_numbers = #tpu.dot_dimension_numbers<[1], [0], [0], [1], [0, 0, 1, 1], [], []>} : vector<16x800xbf16>, vector<800x128xbf16>, vector<16x128xf32> -> vector<16x128xf32>
    %9 = arith.addf %4, %8 : vector<16x128xf32>
    %c0_8 = arith.constant 0 : index
    %c0_9 = arith.constant 0 : index
    %c0_10 = arith.constant 0 : index
    %10 = vector.load %arg7[%c0_8, %c0_9, %c0_10] : memref<4x16x128xf32, #tpu.memory_space<vmem>>, vector<1x16x128xf32>
    %11 = vector.shape_cast %10 : vector<1x16x128xf32> to vector<16x128xf32>
    %12 = vector.shape_cast %9 : vector<16x128xf32> to vector<1x16x128xf32>
    tpu.vector_store %arg7[%c0_8, %c0_9, %c0_10], %12 {strides = array<i32>} : memref<4x16x128xf32, #tpu.memory_space<vmem>>, vector<1x16x128xf32>,
    %c1 = arith.constant 1 : index
    %c0_11 = arith.constant 0 : index
    %c0_12 = arith.constant 0 : index
    %13 = vector.load %arg7[%c1, %c0_11, %c0_12] : memref<4x16x128xf32, #tpu.memory_space<vmem>>, vector<1x16x128xf32>
    %14 = vector.shape_cast %13 : vector<1x16x128xf32> to vector<16x128xf32>
    %c1_13 = arith.constant 1 : index
    %c0_14 = arith.constant 0 : index
    %c0_15 = arith.constant 0 : index
    %15 = vector.load %arg2[%c1_13, %c0_14, %c0_15] : memref<4x16x800xbf16, #tpu.memory_space<vmem>>, vector<1x16x800xbf16>
    %16 = vector.shape_cast %15 : vector<1x16x800xbf16> to vector<16x800xbf16>
    %c0_16 = arith.constant 0 : index
    %c0_17 = arith.constant 0 : index
    %17 = vector.load %arg3[%c0_16, %c0_17] : memref<800x128xbf16, #tpu.memory_space<vmem>>, vector<800x128xbf16>
    %cst_18 = arith.constant dense<0.000000e+00> : vector<16x128xf32>
    %18 = tpu.matmul %16, %17, %cst_18 {dimension_numbers = #tpu.dot_dimension_numbers<[1], [0], [0], [1], [0, 0, 1, 1], [], []>} : vector<16x800xbf16>, vector<800x128xbf16>, vector<16x128xf32> -> vector<16x128xf32>
    %19 = arith.addf %14, %18 : vector<16x128xf32>
    %c1_19 = arith.constant 1 : index
    %c0_20 = arith.constant 0 : index
    %c0_21 = arith.constant 0 : index
    %20 = vector.load %arg7[%c1_19, %c0_20, %c0_21] : memref<4x16x128xf32, #tpu.memory_space<vmem>>, vector<1x16x128xf32>
    %21 = vector.shape_cast %20 : vector<1x16x128xf32> to vector<16x128xf32>
    %22 = vector.shape_cast %19 : vector<16x128xf32> to vector<1x16x128xf32>
    tpu.vector_store %arg7[%c1_19, %c0_20, %c0_21], %22 {strides = array<i32>} : memref<4x16x128xf32, #tpu.memory_space<vmem>>, vector<1x16x128xf32>,
    %c2 = arith.constant 2 : index
    %c0_22 = arith.constant 0 : index
    %c0_23 = arith.constant 0 : index
    %23 = vector.load %arg7[%c2, %c0_22, %c0_23] : memref<4x16x128xf32, #tpu.memory_space<vmem>>, vector<1x16x128xf32>
    %24 = vector.shape_cast %23 : vector<1x16x128xf32> to vector<16x128xf32>
    %c2_24 = arith.constant 2 : index
    %c0_25 = arith.constant 0 : index
    %c0_26 = arith.constant 0 : index
    %25 = vector.load %arg2[%c2_24, %c0_25, %c0_26] : memref<4x16x800xbf16, #tpu.memory_space<vmem>>, vector<1x16x800xbf16>
    %26 = vector.shape_cast %25 : vector<1x16x800xbf16> to vector<16x800xbf16>
    %c0_27 = arith.constant 0 : index
    %c0_28 = arith.constant 0 : index
    %27 = vector.load %arg3[%c0_27, %c0_28] : memref<800x128xbf16, #tpu.memory_space<vmem>>, vector<800x128xbf16>
    %cst_29 = arith.constant dense<0.000000e+00> : vector<16x128xf32>
    %28 = tpu.matmul %26, %27, %cst_29 {dimension_numbers = #tpu.dot_dimension_numbers<[1], [0], [0], [1], [0, 0, 1, 1], [], []>} : vector<16x800xbf16>, vector<800x128xbf16>, vector<16x128xf32> -> vector<16x128xf32>
    %29 = arith.addf %24, %28 : vector<16x128xf32>
    %c2_30 = arith.constant 2 : index
    %c0_31 = arith.constant 0 : index
    %c0_32 = arith.constant 0 : index
    %30 = vector.load %arg7[%c2_30, %c0_31, %c0_32] : memref<4x16x128xf32, #tpu.memory_space<vmem>>, vector<1x16x128xf32>
    %31 = vector.shape_cast %30 : vector<1x16x128xf32> to vector<16x128xf32>
    %32 = vector.shape_cast %29 : vector<16x128xf32> to vector<1x16x128xf32>
    tpu.vector_store %arg7[%c2_30, %c0_31, %c0_32], %32 {strides = array<i32>} : memref<4x16x128xf32, #tpu.memory_space<vmem>>, vector<1x16x128xf32>,
    %c3 = arith.constant 3 : index
    %c0_33 = arith.constant 0 : index
    %c0_34 = arith.constant 0 : index
    %33 = vector.load %arg7[%c3, %c0_33, %c0_34] : memref<4x16x128xf32, #tpu.memory_space<vmem>>, vector<1x16x128xf32>
    %34 = vector.shape_cast %33 : vector<1x16x128xf32> to vector<16x128xf32>
    %c3_35 = arith.constant 3 : index
    %c0_36 = arith.constant 0 : index
    %c0_37 = arith.constant 0 : index
    %35 = vector.load %arg2[%c3_35, %c0_36, %c0_37] : memref<4x16x800xbf16, #tpu.memory_space<vmem>>, vector<1x16x800xbf16>
    %36 = vector.shape_cast %35 : vector<1x16x800xbf16> to vector<16x800xbf16>
    %c0_38 = arith.constant 0 : index
    %c0_39 = arith.constant 0 : index
    %37 = vector.load %arg3[%c0_38, %c0_39] : memref<800x128xbf16, #tpu.memory_space<vmem>>, vector<800x128xbf16>
    %cst_40 = arith.constant dense<0.000000e+00> : vector<16x128xf32>
    %38 = tpu.matmul %36, %37, %cst_40 {dimension_numbers = #tpu.dot_dimension_numbers<[1], [0], [0], [1], [0, 0, 1, 1], [], []>} : vector<16x800xbf16>, vector<800x128xbf16>, vector<16x128xf32> -> vector<16x128xf32>
    %39 = arith.addf %34, %38 : vector<16x128xf32>
    %c3_41 = arith.constant 3 : index
    %c0_42 = arith.constant 0 : index
    %c0_43 = arith.constant 0 : index
    %40 = vector.load %arg7[%c3_41, %c0_42, %c0_43] : memref<4x16x128xf32, #tpu.memory_space<vmem>>, vector<1x16x128xf32>
    %41 = vector.shape_cast %40 : vector<1x16x128xf32> to vector<16x128xf32>
    %42 = vector.shape_cast %39 : vector<16x128xf32> to vector<1x16x128xf32>
    tpu.vector_store %arg7[%c3_41, %c0_42, %c0_43], %42 {strides = array<i32>} : memref<4x16x128xf32, #tpu.memory_space<vmem>>, vector<1x16x128xf32>,
    %c0_i32_44 = arith.constant 0 : i32
    %43 = arith.cmpi eq, %arg1, %c0_i32_44 : i32
    %44 = arith.extui %43 : i1 to i32
    %c0_i32_45 = arith.constant 0 : i32
    %45 = arith.cmpi ne, %44, %c0_i32_45 : i32
    scf.if %45 {
      %c0_46 = arith.constant 0 : index
      %c0_47 = arith.constant 0 : index
      %46 = vector.load %arg4[%c0_46, %c0_47] : memref<1x128xf32, #tpu.memory_space<vmem>>, vector<1x128xf32>
      %c0_48 = arith.constant 0 : index
      %c0_49 = arith.constant 0 : index
      %47 = vector.load %arg5[%c0_48, %c0_49] : memref<1x128xf32, #tpu.memory_space<vmem>>, vector<1x128xf32>
      %c0_50 = arith.constant 0 : index
      %c0_51 = arith.constant 0 : index
      %c0_52 = arith.constant 0 : index
      %48 = vector.load %arg7[%c0_50, %c0_51, %c0_52] : memref<4x16x128xf32, #tpu.memory_space<vmem>>, vector<1x16x128xf32>
      %49 = vector.shape_cast %48 : vector<1x16x128xf32> to vector<16x128xf32>
      %50 = vector.broadcast %46 : vector<1x128xf32> to vector<16x128xf32>
      %51 = arith.mulf %49, %50 : vector<16x128xf32>
      %52 = vector.broadcast %47 : vector<1x128xf32> to vector<16x128xf32>
      %53 = arith.addf %51, %52 : vector<16x128xf32>
      %cst_53 = arith.constant 0.000000e+00 : f32
      %54 = vector.broadcast %cst_53 : f32 to vector<16x128xf32>
      %55 = arith.maximumf %53, %54 : vector<16x128xf32>
      %c1_54 = arith.constant 1 : index
      %c0_55 = arith.constant 0 : index
      %c0_56 = arith.constant 0 : index
      %56 = vector.load %arg7[%c1_54, %c0_55, %c0_56] : memref<4x16x128xf32, #tpu.memory_space<vmem>>, vector<1x16x128xf32>
      %57 = vector.shape_cast %56 : vector<1x16x128xf32> to vector<16x128xf32>
      %58 = vector.broadcast %46 : vector<1x128xf32> to vector<16x128xf32>
      %59 = arith.mulf %57, %58 : vector<16x128xf32>
      %60 = vector.broadcast %47 : vector<1x128xf32> to vector<16x128xf32>
      %61 = arith.addf %59, %60 : vector<16x128xf32>
      %cst_57 = arith.constant 0.000000e+00 : f32
      %62 = vector.broadcast %cst_57 : f32 to vector<16x128xf32>
      %63 = arith.maximumf %61, %62 : vector<16x128xf32>
      %64 = arith.maximumf %55, %63 : vector<16x128xf32>
      %c2_58 = arith.constant 2 : index
      %c0_59 = arith.constant 0 : index
      %c0_60 = arith.constant 0 : index
      %65 = vector.load %arg7[%c2_58, %c0_59, %c0_60] : memref<4x16x128xf32, #tpu.memory_space<vmem>>, vector<1x16x128xf32>
      %66 = vector.shape_cast %65 : vector<1x16x128xf32> to vector<16x128xf32>
      %67 = vector.broadcast %46 : vector<1x128xf32> to vector<16x128xf32>
      %68 = arith.mulf %66, %67 : vector<16x128xf32>
      %69 = vector.broadcast %47 : vector<1x128xf32> to vector<16x128xf32>
      %70 = arith.addf %68, %69 : vector<16x128xf32>
      %cst_61 = arith.constant 0.000000e+00 : f32
      %71 = vector.broadcast %cst_61 : f32 to vector<16x128xf32>
      %72 = arith.maximumf %70, %71 : vector<16x128xf32>
      %73 = arith.maximumf %64, %72 : vector<16x128xf32>
      %c3_62 = arith.constant 3 : index
      %c0_63 = arith.constant 0 : index
      %c0_64 = arith.constant 0 : index
      %74 = vector.load %arg7[%c3_62, %c0_63, %c0_64] : memref<4x16x128xf32, #tpu.memory_space<vmem>>, vector<1x16x128xf32>
      %75 = vector.shape_cast %74 : vector<1x16x128xf32> to vector<16x128xf32>
      %76 = vector.broadcast %46 : vector<1x128xf32> to vector<16x128xf32>
      %77 = arith.mulf %75, %76 : vector<16x128xf32>
      %78 = vector.broadcast %47 : vector<1x128xf32> to vector<16x128xf32>
      %79 = arith.addf %77, %78 : vector<16x128xf32>
      %cst_65 = arith.constant 0.000000e+00 : f32
      %80 = vector.broadcast %cst_65 : f32 to vector<16x128xf32>
      %81 = arith.maximumf %79, %80 : vector<16x128xf32>
      %82 = arith.maximumf %73, %81 : vector<16x128xf32>
      %c0_66 = arith.constant 0 : index
      %c0_67 = arith.constant 0 : index
      %83 = vector.load %arg6[%c0_66, %c0_67] : memref<16x128xf32, #tpu.memory_space<vmem>>, vector<16x128xf32>
      tpu.vector_store %arg6[%c0_66, %c0_67], %82 {strides = array<i32>} : memref<16x128xf32, #tpu.memory_space<vmem>>, vector<16x128xf32>,
    } else {
    }
    return
  }
  func.func @transform_0(%arg0: i32, %arg1: i32) -> (i32, i32, i32) {
    %c0_i32 = arith.constant 0 : i32
    %c0_i32_0 = arith.constant 0 : i32
    return %c0_i32, %arg0, %arg1 : i32, i32, i32
  }
  func.func @transform_1(%arg0: i32, %arg1: i32) -> (i32, i32) {
    %c0_i32 = arith.constant 0 : i32
    %c0_i32_0 = arith.constant 0 : i32
    return %arg1, %c0_i32 : i32, i32
  }
  func.func @transform_2(%arg0: i32, %arg1: i32) -> (i32, i32) {
    %c0_i32 = arith.constant 0 : i32
    %c0_i32_0 = arith.constant 0 : i32
    %c0_i32_1 = arith.constant 0 : i32
    return %c0_i32, %c0_i32_0 : i32, i32
  }
  func.func @transform_3(%arg0: i32, %arg1: i32) -> (i32, i32) {
    %c0_i32 = arith.constant 0 : i32
    %c0_i32_0 = arith.constant 0 : i32
    %c0_i32_1 = arith.constant 0 : i32
    return %c0_i32, %c0_i32_0 : i32, i32
  }
  func.func @transform_4(%arg0: i32, %arg1: i32) -> (i32, i32) {
    %c0_i32 = arith.constant 0 : i32
    %c0_i32_0 = arith.constant 0 : i32
    return %arg0, %c0_i32 : i32, i32
  }
}

module attributes {stable_mosaic.version = 11 : i64} {
  func.func @_fused_matmul_kernel(%arg0: i32, %arg1: i32, %arg2: memref<1x16x1024xbf16, #tpu.memory_space<vmem>>, %arg3: memref<1024x256xbf16, #tpu.memory_space<vmem>>, %arg4: memref<1x256xf32, #tpu.memory_space<vmem>>, %arg5: memref<1x256xf32, #tpu.memory_space<vmem>>, %arg6: memref<16x256xf32, #tpu.memory_space<vmem>>, %arg7: memref<1x16x256xf32, #tpu.memory_space<vmem>>) attributes {dimension_semantics = [#tpu.dimension_semantics<parallel>, #tpu.dimension_semantics<arbitrary>], iteration_bounds = array<i64: 1, 2>, scalar_prefetch = 0 : i64, scratch_operands = 1 : i64, tpu.core_type = #tpu.core_type<tc>, window_params = [{transform_indices = @transform_0, window_bounds = array<i64: 1, 16, 1024>}, {transform_indices = @transform_1, window_bounds = array<i64: 1024, 256>}, {pipeline_mode = #tpu.pipeline_mode<synchronous>, transform_indices = @transform_2, window_bounds = array<i64: 1, 256>}, {pipeline_mode = #tpu.pipeline_mode<synchronous>, transform_indices = @transform_3, window_bounds = array<i64: 1, 256>}, {transform_indices = @transform_4, window_bounds = array<i64: 16, 256>}]} {
    %c0_i32 = arith.constant 0 : i32
    %0 = arith.cmpi eq, %arg1, %c0_i32 : i32
    %1 = arith.extui %0 : i1 to i32
    %c0_i32_0 = arith.constant 0 : i32
    %2 = arith.cmpi ne, %1, %c0_i32_0 : i32
    scf.if %2 {
      %cst_12 = arith.constant 0.000000e+00 : f32
      %16 = vector.broadcast %cst_12 : f32 to vector<1x16x256xf32>
      %c0_13 = arith.constant 0 : index
      %c0_14 = arith.constant 0 : index
      %c0_15 = arith.constant 0 : index
      %17 = vector.load %arg7[%c0_13, %c0_14, %c0_15] : memref<1x16x256xf32, #tpu.memory_space<vmem>>, vector<1x16x256xf32>
      tpu.vector_store %arg7[%c0_13, %c0_14, %c0_15], %16 {strides = array<i32>} : memref<1x16x256xf32, #tpu.memory_space<vmem>>, vector<1x16x256xf32>,
    } else {
    }
    %c0 = arith.constant 0 : index
    %c0_1 = arith.constant 0 : index
    %c0_2 = arith.constant 0 : index
    %3 = vector.load %arg7[%c0, %c0_1, %c0_2] : memref<1x16x256xf32, #tpu.memory_space<vmem>>, vector<1x16x256xf32>
    %4 = vector.shape_cast %3 : vector<1x16x256xf32> to vector<16x256xf32>
    %c0_3 = arith.constant 0 : index
    %c0_4 = arith.constant 0 : index
    %c0_5 = arith.constant 0 : index
    %5 = vector.load %arg2[%c0_3, %c0_4, %c0_5] : memref<1x16x1024xbf16, #tpu.memory_space<vmem>>, vector<1x16x1024xbf16>
    %6 = vector.shape_cast %5 : vector<1x16x1024xbf16> to vector<16x1024xbf16>
    %c0_6 = arith.constant 0 : index
    %c0_7 = arith.constant 0 : index
    %7 = vector.load %arg3[%c0_6, %c0_7] : memref<1024x256xbf16, #tpu.memory_space<vmem>>, vector<1024x256xbf16>
    %cst = arith.constant dense<0.000000e+00> : vector<16x256xf32>
    %8 = tpu.matmul %6, %7, %cst {dimension_numbers = #tpu.dot_dimension_numbers<[1], [0], [0], [1], [0, 0, 1, 1], [], []>} : vector<16x1024xbf16>, vector<1024x256xbf16>, vector<16x256xf32> -> vector<16x256xf32>
    %9 = arith.addf %4, %8 : vector<16x256xf32>
    %c0_8 = arith.constant 0 : index
    %c0_9 = arith.constant 0 : index
    %c0_10 = arith.constant 0 : index
    %10 = vector.load %arg7[%c0_8, %c0_9, %c0_10] : memref<1x16x256xf32, #tpu.memory_space<vmem>>, vector<1x16x256xf32>
    %11 = vector.shape_cast %10 : vector<1x16x256xf32> to vector<16x256xf32>
    %12 = vector.shape_cast %9 : vector<16x256xf32> to vector<1x16x256xf32>
    tpu.vector_store %arg7[%c0_8, %c0_9, %c0_10], %12 {strides = array<i32>} : memref<1x16x256xf32, #tpu.memory_space<vmem>>, vector<1x16x256xf32>,
    %c1_i32 = arith.constant 1 : i32
    %13 = arith.cmpi eq, %arg1, %c1_i32 : i32
    %14 = arith.extui %13 : i1 to i32
    %c0_i32_11 = arith.constant 0 : i32
    %15 = arith.cmpi ne, %14, %c0_i32_11 : i32
    scf.if %15 {
      %c0_12 = arith.constant 0 : index
      %c0_13 = arith.constant 0 : index
      %16 = vector.load %arg4[%c0_12, %c0_13] : memref<1x256xf32, #tpu.memory_space<vmem>>, vector<1x256xf32>
      %c0_14 = arith.constant 0 : index
      %c0_15 = arith.constant 0 : index
      %17 = vector.load %arg5[%c0_14, %c0_15] : memref<1x256xf32, #tpu.memory_space<vmem>>, vector<1x256xf32>
      %c0_16 = arith.constant 0 : index
      %c0_17 = arith.constant 0 : index
      %c0_18 = arith.constant 0 : index
      %18 = vector.load %arg7[%c0_16, %c0_17, %c0_18] : memref<1x16x256xf32, #tpu.memory_space<vmem>>, vector<1x16x256xf32>
      %19 = vector.shape_cast %18 : vector<1x16x256xf32> to vector<16x256xf32>
      %20 = vector.broadcast %16 : vector<1x256xf32> to vector<16x256xf32>
      %21 = arith.mulf %19, %20 : vector<16x256xf32>
      %22 = vector.broadcast %17 : vector<1x256xf32> to vector<16x256xf32>
      %23 = arith.addf %21, %22 : vector<16x256xf32>
      %c0_19 = arith.constant 0 : index
      %c0_20 = arith.constant 0 : index
      %24 = vector.load %arg6[%c0_19, %c0_20] : memref<16x256xf32, #tpu.memory_space<vmem>>, vector<16x256xf32>
      tpu.vector_store %arg6[%c0_19, %c0_20], %23 {strides = array<i32>} : memref<16x256xf32, #tpu.memory_space<vmem>>, vector<16x256xf32>,
    } else {
    }
    return
  }
  func.func @transform_0(%arg0: i32, %arg1: i32) -> (i32, i32, i32) {
    %c0_i32 = arith.constant 0 : i32
    %c0_i32_0 = arith.constant 0 : i32
    return %c0_i32, %arg0, %arg1 : i32, i32, i32
  }
  func.func @transform_1(%arg0: i32, %arg1: i32) -> (i32, i32) {
    %c0_i32 = arith.constant 0 : i32
    %c0_i32_0 = arith.constant 0 : i32
    return %arg1, %c0_i32 : i32, i32
  }
  func.func @transform_2(%arg0: i32, %arg1: i32) -> (i32, i32) {
    %c0_i32 = arith.constant 0 : i32
    %c0_i32_0 = arith.constant 0 : i32
    %c0_i32_1 = arith.constant 0 : i32
    return %c0_i32, %c0_i32_0 : i32, i32
  }
  func.func @transform_3(%arg0: i32, %arg1: i32) -> (i32, i32) {
    %c0_i32 = arith.constant 0 : i32
    %c0_i32_0 = arith.constant 0 : i32
    %c0_i32_1 = arith.constant 0 : i32
    return %c0_i32, %c0_i32_0 : i32, i32
  }
  func.func @transform_4(%arg0: i32, %arg1: i32) -> (i32, i32) {
    %c0_i32 = arith.constant 0 : i32
    %c0_i32_0 = arith.constant 0 : i32
    return %arg0, %c0_i32 : i32, i32
  }
}

</mosaic_0001>

<bundles_post_ra>
// kernel: net_forward.4
= control target key start
LH: loop header
LB: loop body
LE: loop exit
PB: predicated region body
PF: predicated region fallthrough
CT: control target
= control target key end

     0   :  { %s1423_s15 = smov 0   ;;  %s1425_s16 = smov 0   ;;  %s1870_s0 = inlined_call_operand.vmem [shape: bf16[1,672,9], index: 0, kind: input, shape index: {}]   ;;  %s1871_s1 = inlined_call_operand.vmem [shape: bf16[9,32], index: 1, kind: input, shape index: {}]   ;;  %s1872_s2 = inlined_call_operand.vmem [shape: f32[1,32], index: 2, kind: input, shape index: {}]   ;;  %s1873_s3 = inlined_call_operand.vmem [shape: f32[1,32], index: 3, kind: input, shape index: {}]   ;;  %s1874_s4 = inlined_call_operand.vmem [shape: f32[672,32], index: 4, kind: output, shape index: {}]  }
   0x1   :  { %s1427_s17 = smov 0  }
   0x2 LB: > { %s26_s18 = sadd.s32 1, %s1389_s16  ;;  %p1162_p0 = scmp.ge.s32.totalorder %s1393_s17, 1  ;;  %s1393_s17 = sphi %s1427_s17, %s14_s17   ;;  %s1389_s16 = sphi %s1425_s16, %s1877_s16   ;;  %s1385_s15 = sphi %s1423_s15, %s1876_s15  }
   0x3   : > { %p28_p1 = scmp.ge.s32.totalorder %s26_s18, 2  ;;  %p191_p2 = scmp.lt.s32.totalorder %s1393_s17, 3 }
   0x5   : > { %s1879_s18 = smov (%p28_p1, %s26_s18), 0  ;;  %p192_p3 = pnand %p1162_p0, %p191_p2 }
   0x6   : > { %vm554_vm0 = vcmask (!%p192_p3), 1043456   ;;  %v1395_v0 = vmov (!%p192_p3), 0.0   ;;  %v1349_v1 = vld [vmem:[%s1871_s1] sm:$0x1f] (!%p192_p3)   ;;  %vm555_vm1 = vcmask (!%p192_p3), 1044480   ;;  %s225_s21 = smul.u32 (!%p192_p3), 42, %s1385_s15 }
   0x7   : > { %195 = sbr.rel (%p192_p3) target bundleno = 329 (0x149), region = 36  ;;  %1234 = vmatprep.subr.bf16.mxu0 (!%p192_p3), %v1395_v0  ;;  %1320 = vmatprep.subr.bf16.mxu1 (!%p192_p3), %v1395_v0  ;;  %v1396_v2 = vmov (!%p192_p3), 65535   ;;  %vm1397_vm2 = vmmov (!%p192_p3), 0   ;;  %vm251_vm3 = vcmask (!%p192_p3), 261120   ;;  %vm490_vm4 = vcmask (!%p192_p3), 72704  }
   0x8   : > { %v556_v3 = vsel (!%p192_p3), %vm554_vm0, 4294967295, %v1396_v2  ;;  %1236 = vmatprep.mubr.msk.bf16.mxu0 (!%p192_p3), %vm1397_vm2, %v1395_v0  ;;  %1280 = vmatprep.mubr.msk.bf16.mxu1 (!%p192_p3), %vm1397_vm2, %v1395_v0  ;;  %p1455_p4 = scmp.lt.s32.totalorder (!%p192_p3), %s225_s21, 83  ;;  %252 = vst.msk [vmem:[#allocation2] sm:$0xff] (!%p192_p3), %vm251_vm3, %v1395_v0  ;;  %253 = vst.msk [vmem:[#allocation2 + $0x8] sm:$0xff] (!%p192_p3), %vm251_vm3, %v1395_v0  ;;  %v1642_v45 = vld [vmem:[%s1872_s2] ss:$0 sm:$0xff] (!%p192_p3) }
   0x9   : > { %v557_v4 = vsel (!%p192_p3), %vm555_vm1, %v556_v3, 0  ;;  %254 = vst.msk [vmem:[#allocation2 + $0x10] sm:$0xff] (!%p192_p3), %vm251_vm3, %v1395_v0  ;;  %255 = vst.msk [vmem:[#allocation2 + $0x18] sm:$0xff] (!%p192_p3), %vm251_vm3, %v1395_v0  ;;  %v1647_v52 = vld [vmem:[%s1873_s3] ss:$0 sm:$0xff] (!%p192_p3) }
   0xa   : > { %256 = vst.msk [vmem:[#allocation2 + $0x20] sm:$0xff] (!%p192_p3), %vm251_vm3, %v1395_v0  ;;  %257 = vst.msk [vmem:[#allocation2 + $0x28] sm:$0xff] (!%p192_p3), %vm251_vm3, %v1395_v0  ;;  %v559_v5 = vand.u32 (!%p192_p3), %v1349_v1, %v557_v4 }
   0xb   : > { %258 = vst.msk [vmem:[#allocation2 + $0x30] sm:$0xff] (!%p192_p3), %vm251_vm3, %v1395_v0  ;;  %259 = vst.msk [vmem:[#allocation2 + $0x38] sm:$0xff] (!%p192_p3), %vm251_vm3, %v1395_v0 }
   0xc   : > { %260 = vst.msk [vmem:[#allocation2 + $0x40] sm:$0xff] (!%p192_p3), %vm251_vm3, %v1395_v0  ;;  %261 = vst.msk [vmem:[#allocation2 + $0x48] sm:$0xff] (!%p192_p3), %vm251_vm3, %v1395_v0  ;;  %1235 = vmatpush3.bf16.msra.mxu0 (!%p192_p3), %v559_v5  ;;  %1321 = vmatpush3.bf16.msra.mxu1 (!%p192_p3), %v559_v5 }
   0xd   : > { %262 = vst.msk [vmem:[#allocation2 + $0x50] sm:$0xff] (!%p192_p3), %vm251_vm3, %v1395_v0  ;;  %263 = vst.msk [vmem:[#allocation2 + $0x58] sm:$0xff] (!%p192_p3), %vm251_vm3, %v1395_v0 }
   0xe   : > { %264 = vst.msk [vmem:[#allocation2 + $0x60] sm:$0xff] %vm251_vm3, %v1395_v0  ;;  %265 = vst.msk [vmem:[#allocation2 + $0x68] sm:$0xff] %vm251_vm3, %v1395_v0  ;;  %s1881_s21 = smov (!%p1455_p4, %s225_s21), 83 }
   0xf   : > { %266 = vst.msk [vmem:[#allocation2 + $0x70] sm:$0xff] %vm251_vm3, %v1395_v0  ;;  %267 = vst.msk [vmem:[#allocation2 + $0x78] sm:$0xff] %vm251_vm3, %v1395_v0  ;;  %s1163_s23 = sshll.u32 %s1881_s21, 2  ;;  %v294_v27 = vld [vmem:[#allocation2] sm:$0xff]  ;;  %v295_v30 = vld [vmem:[#allocation2 + $0x8] sm:$0xff]  ;;  %s1164_s5 = sshll.u32 %s1881_s21, 3 }
  0x10   : > { %268 = vst.msk [vmem:[#allocation2 + $0x80] sm:$0xff] %vm251_vm3, %v1395_v0  ;;  %269 = vst.msk [vmem:[#allocation2 + $0x88] sm:$0xff] %vm251_vm3, %v1395_v0  ;;  %s1553_s26 = scalar_lea.vmem %s1870_s0, %s1163_s23  ;;  %v296_v43 = vld [vmem:[#allocation2 + $0x10] sm:$0xff]  ;;  %v297_v47 = vld [vmem:[#allocation2 + $0x18] sm:$0xff]  ;;  %s1660_s8 = scalar_lea.vmem %s1874_s4, %s1164_s5 }
  0x11   : > { %270 = vst.msk [vmem:[#allocation2 + $0x90] sm:$0xff] %vm251_vm3, %v1395_v0  ;;  %271 = vst.msk [vmem:[#allocation2 + $0x98] sm:$0xff] %vm251_vm3, %v1395_v0  ;;  %v1350_v6 = vld [vmem:[%s1553_s26] sm:$0xff]   ;;  %v1351_v7 = vld [vmem:[%s1553_s26 + $0x58] sm:$0xff]  }
  0x12   : > { %272 = vst.msk [vmem:[#allocation2 + $0xa0] sm:$0xff] %vm251_vm3, %v1395_v0  ;;  %273 = vst.msk [vmem:[#allocation2 + $0xa8] sm:$0xff] %vm251_vm3, %v1395_v0  ;;  %1237 = vmatmul.mubr.msk.bf16.vlgmr.msra.gmra.mrb[0].mxu0 %vm490_vm4, %v1350_v6  ;;  %1281 = vmatmul.mubr.msk.bf16.vlgmr.msra.gmra.mrb[0].mxu1 %vm490_vm4, %v1351_v7  ;;  %v1352_v8 = vld [vmem:[%s1553_s26 + $0x8] sm:$0xff]   ;;  %v1353_v9 = vld [vmem:[%s1553_s26 + $0x60] sm:$0xff]  }
  0x13   : > { %274 = vst.msk [vmem:[#allocation2 + $0xb0] sm:$0xff] %vm251_vm3, %v1395_v0  ;;  %275 = vst.msk [vmem:[#allocation2 + $0xb8] sm:$0xff] %vm251_vm3, %v1395_v0  ;;  %1240 = vmatprep.mubr.msk.bf16.mxu0 %vm1397_vm2, %v1395_v0  ;;  %1284 = vmatprep.mubr.msk.bf16.mxu1 %vm1397_vm2, %v1395_v0  ;;  %v1354_v10 = vld [vmem:[%s1553_s26 + $0x10] sm:$0xff]   ;;  %v1355_v11 = vld [vmem:[%s1553_s26 + $0x68] sm:$0xff]  }
  0x14   : > { %276 = vst.msk [vmem:[#allocation2 + $0xc0] sm:$0xff] %vm251_vm3, %v1395_v0  ;;  %277 = vst.msk [vmem:[#allocation2 + $0xc8] sm:$0xff] %vm251_vm3, %v1395_v0  ;;  %v1356_v12 = vld [vmem:[%s1553_s26 + $0x18] sm:$0xff]   ;;  %v1357_v13 = vld [vmem:[%s1553_s26 + $0x70] sm:$0xff]  }
  0x15   : > { %278 = vst.msk [vmem:[#allocation2 + $0xd0] sm:$0xff] %vm251_vm3, %v1395_v0  ;;  %279 = vst.msk [vmem:[#allocation2 + $0xd8] sm:$0xff] %vm251_vm3, %v1395_v0  ;;  %v1358_v14 = vld [vmem:[%s1553_s26 + $0x20] sm:$0xff]   ;;  %v1359_v15 = vld [vmem:[%s1553_s26 + $0x78] sm:$0xff]  }
  0x16   : > { %280 = vst.msk [vmem:[#allocation2 + $0xe0] sm:$0xff] %vm251_vm3, %v1395_v0  ;;  %281 = vst.msk [vmem:[#allocation2 + $0xe8] sm:$0xff] %vm251_vm3, %v1395_v0  ;;  %v1360_v16 = vld [vmem:[%s1553_s26 + $0x28] sm:$0xff]   ;;  %v1361_v17 = vld [vmem:[%s1553_s26 + $0x80] sm:$0xff]  }
  0x17   : > { %282 = vst.msk [vmem:[#allocation2 + $0xf0] sm:$0xff] %vm251_vm3, %v1395_v0  ;;  %283 = vst.msk [vmem:[#allocation2 + $0xf8] sm:$0xff] %vm251_vm3, %v1395_v0  ;;  %v1362_v18 = vld [vmem:[%s1553_s26 + $0x30] sm:$0xff]   ;;  %v1363_v19 = vld [vmem:[%s1553_s26 + $0x88] sm:$0xff]  }
  0x18   : > { %284 = vst.msk [vmem:[#allocation2 + $0x100] sm:$0xff] %vm251_vm3, %v1395_v0  ;;  %285 = vst.msk [vmem:[#allocation2 + $0x108] sm:$0xff] %vm251_vm3, %v1395_v0  ;;  %v1364_v20 = vld [vmem:[%s1553_s26 + $0x38] sm:$0xff]   ;;  %v1365_v21 = vld [vmem:[%s1553_s26 + $0x90] sm:$0xff]  }
  0x19   : > { %286 = vst.msk [vmem:[#allocation2 + $0x110] sm:$0xff] %vm251_vm3, %v1395_v0  ;;  %287 = vst.msk [vmem:[#allocation2 + $0x118] sm:$0xff] %vm251_vm3, %v1395_v0  ;;  %v1366_v22 = vld [vmem:[%s1553_s26 + $0x40] sm:$0xff]   ;;  %v1367_v23 = vld [vmem:[%s1553_s26 + $0x98] sm:$0xff]  }
  0x1a   : > { %288 = vst.msk [vmem:[#allocation2 + $0x120] sm:$0xff] %vm251_vm3, %v1395_v0  ;;  %289 = vst.msk [vmem:[#allocation2 + $0x128] sm:$0xff] %vm251_vm3, %v1395_v0  ;;  %1241 = vmatmul.mubr.msk.bf16.gmra.mrb[4].mxu0 %vm490_vm4, %v1352_v8  ;;  %1285 = vmatmul.mubr.msk.bf16.gmra.mrb[4].mxu1 %vm490_vm4, %v1353_v9  ;;  %v1368_v24 = vld [vmem:[%s1553_s26 + $0x48] sm:$0xff]   ;;  %v1369_v25 = vld [vmem:[%s1553_s26 + $0xa0] sm:$0xff]  }
  0x1b   : > { %290 = vst.msk [vmem:[#allocation2 + $0x130] sm:$0xff] %vm251_vm3, %v1395_v0  ;;  %291 = vst.msk [vmem:[#allocation2 + $0x138] sm:$0xff] %vm251_vm3, %v1395_v0  ;;  %1244 = vmatprep.mubr.msk.bf16.mxu0 %vm1397_vm2, %v1395_v0  ;;  %1288 = vmatprep.mubr.msk.bf16.mxu1 %vm1397_vm2, %v1395_v0  ;;  %v1370_v26 = vld [vmem:[%s1553_s26 + $0x50] sm:$0xff]   ;;  %v317_v34 = vld [vmem:[#allocation2 + $0xb8] sm:$0xff] }
  0x1c   : > { %292 = vst.msk [vmem:[#allocation2 + $0x140] sm:$0xff] %vm251_vm3, %v1395_v0  ;;  %293 = vst.msk [vmem:[#allocation2 + $0x148] sm:$0xff] %vm251_vm3, %v1395_v0  ;;  %v316_v28 = vld [vmem:[#allocation2 + $0xb0] sm:$0xff]  ;;  %v318_v44 = vld [vmem:[#allocation2 + $0xc0] sm:$0xff] }
  0x1d   : > { %v319_v51 = vld [vmem:[#allocation2 + $0xc8] sm:$0xff]  ;;  %v298_v7 = vld [vmem:[#allocation2 + $0x20] sm:$0xff] }
  0x22   : > { %1245 = vmatmul.mubr.msk.bf16.gmra.mrb[8].mxu0 %vm490_vm4, %v1354_v10  ;;  %1289 = vmatmul.mubr.msk.bf16.gmra.mrb[8].mxu1 %vm490_vm4, %v1355_v11  ;;  %v320_v10 = vld [vmem:[#allocation2 + $0xd0] sm:$0xff] }
  0x23   : > { %1248 = vmatprep.mubr.msk.bf16.mxu0 %vm1397_vm2, %v1395_v0  ;;  %1292 = vmatprep.mubr.msk.bf16.mxu1 %vm1397_vm2, %v1395_v0 }
  0x2a   : > { %1249 = vmatmul.mubr.msk.bf16.gmra.mrb[12].mxu0 %vm490_vm4, %v1356_v12  ;;  %1293 = vmatmul.mubr.msk.bf16.gmra.mrb[12].mxu1 %vm490_vm4, %v1357_v13 }
  0x2b   : > { %1252 = vmatprep.mubr.msk.bf16.mxu0 %vm1397_vm2, %v1395_v0  ;;  %1296 = vmatprep.mubr.msk.bf16.mxu1 %vm1397_vm2, %v1395_v0 }
  0x32   : > { %1253 = vmatmul.mubr.msk.bf16.gmra.mrb[16].mxu0 %vm490_vm4, %v1358_v14  ;;  %1297 = vmatmul.mubr.msk.bf16.gmra.mrb[16].mxu1 %vm490_vm4, %v1359_v15  ;;  %v299_v14 = vld [vmem:[#allocation2 + $0x28] sm:$0xff] }
  0x33   : > { %1256 = vmatprep.mubr.msk.bf16.mxu0 %vm1397_vm2, %v1395_v0  ;;  %1300 = vmatprep.mubr.msk.bf16.mxu1 %vm1397_vm2, %v1395_v0 }
  0x3a   : > { %1257 = vmatmul.mubr.msk.bf16.gmra.mrb[20].mxu0 %vm490_vm4, %v1360_v16  ;;  %1301 = vmatmul.mubr.msk.bf16.gmra.mrb[20].mxu1 %vm490_vm4, %v1361_v17 }
  0x3b   : > { %1260 = vmatprep.mubr.msk.bf16.mxu0 %vm1397_vm2, %v1395_v0  ;;  %1304 = vmatprep.mubr.msk.bf16.mxu1 %vm1397_vm2, %v1395_v0 }
  0x42   : > { %1261 = vmatmul.mubr.msk.bf16.gmra.mrb[24].mxu0 %vm490_vm4, %v1362_v18  ;;  %1305 = vmatmul.mubr.msk.bf16.gmra.mrb[24].mxu1 %vm490_vm4, %v1363_v19  ;;  %v321_v19 = vld [vmem:[#allocation2 + $0xd8] sm:$0xff] }
  0x43   : > { %1264 = vmatprep.mubr.msk.bf16.mxu0 %vm1397_vm2, %v1395_v0  ;;  %1308 = vmatprep.mubr.msk.bf16.mxu1 %vm1397_vm2, %v1395_v0 }
  0x4a   : > { %1265 = vmatmul.mubr.msk.bf16.gmra.mrb[28].mxu0 %vm490_vm4, %v1364_v20  ;;  %1309 = vmatmul.mubr.msk.bf16.gmra.mrb[28].mxu1 %vm490_vm4, %v1365_v21 }
  0x4b   : > { %1268 = vmatprep.mubr.msk.bf16.mxu0 %vm1397_vm2, %v1395_v0  ;;  %1312 = vmatprep.mubr.msk.bf16.mxu1 %vm1397_vm2, %v1395_v0 }
  0x52   : > { %1269 = vmatmul.mubr.msk.bf16.gmra.mrb[32].mxu0 %vm490_vm4, %v1366_v22  ;;  %1313 = vmatmul.mubr.msk.bf16.gmra.mrb[32].mxu1 %vm490_vm4, %v1367_v23 }
  0x53   : > { %1272 = vmatprep.mubr.msk.bf16.mxu0 %vm1397_vm2, %v1395_v0  ;;  %1316 = vmatprep.mubr.msk.bf16.mxu1 %vm1397_vm2, %v1395_v0 }
  0x5a   : > { %1273 = vmatmul.mubr.msk.bf16.gmra.mrb[36].mxu0 %vm490_vm4, %v1368_v24  ;;  %1317 = vmatmul.mubr.msk.bf16.gmra.mrb[36].mxu1 %vm490_vm4, %v1369_v25 }
  0x5b   : > { %1276 = vmatprep.mubr.msk.bf16.mxu0 %vm1397_vm2, %v1395_v0 }
  0x62   : > { %1277 = vmatmul.mubr.msk.bf16.gmra.mrb[40].mxu0 %vm490_vm4, %v1370_v26 }
  0xe5   : > { %v595_v29 = vpop.f32.mrb[0].mxu0  ;;  %v683_v33 = vpop.f32.mrb[0].mxu1 }
  0xe6   : > { %v762_v31 = vadd.f32 %v595_v29, %v294_v27  ;;  %v1238_v32 = vpop.f32.mrb[1].mxu0  ;;  %v784_v36 = vadd.f32 %v683_v33, %v316_v28  ;;  %v1282_v37 = vpop.f32.mrb[1].mxu1 }
  0xe7   : > { %v598_v35 = vpop.f32.mrb[2].mxu0  ;;  %v686_v40 = vpop.f32.mrb[2].mxu1 }
  0xe8   : > { %805 = vst.msk [vmem:[#allocation2] sm:$0xff] %vm251_vm3, %v762_v31  ;;  %v763_v38 = vadd.f32 %v598_v35, %v295_v30  ;;  %v1239_v39 = vpop.f32.mrb[3].mxu0  ;;  %827 = vst.msk [vmem:[#allocation2 + $0xb0] sm:$0xff] %vm251_vm3, %v784_v36  ;;  %v785_v41 = vadd.f32 %v686_v40, %v317_v34  ;;  %v1283_v42 = vpop.f32.mrb[3].mxu1 }
  0xe9   : > { %v300_v39 = vld [vmem:[#allocation2 + $0x30] sm:$0xff]  ;;  %v322_v42 = vld [vmem:[#allocation2 + $0xe0] sm:$0xff] }
  0xea   : > { %806 = vst.msk [vmem:[#allocation2 + $0x8] sm:$0xff] %vm251_vm3, %v763_v38  ;;  %828 = vst.msk [vmem:[#allocation2 + $0xb8] sm:$0xff] %vm251_vm3, %v785_v41 }
  0xed   : > { %v603_v46 = vpop.f32.mrb[4].mxu0  ;;  %v691_v50 = vpop.f32.mrb[4].mxu1 }
  0xee   : > { %v764_v48 = vadd.f32 %v603_v46, %v296_v43  ;;  %v1242_v49 = vpop.f32.mrb[5].mxu0  ;;  %v786_v55 = vadd.f32 %v691_v50, %v318_v44  ;;  %v1286_v56 = vpop.f32.mrb[5].mxu1 }
  0xef   : > { %v852_v53 = vld [vmem:[#allocation2] sm:$0xff]  ;;  %v606_v54 = vpop.f32.mrb[6].mxu0  ;;  %v874_v58 = vld [vmem:[#allocation2 + $0xb0] sm:$0xff]  ;;  %v694_v61 = vpop.f32.mrb[6].mxu1 }
  0xf0   : > { %v900_v57 = vmul.f32 %v1642_v45, %v852_v53  ;;  %807 = vst.msk [vmem:[#allocation2 + $0x10] sm:$0xff] %vm251_vm3, %v764_v48  ;;  %v765_v59 = vadd.f32 %v606_v54, %v297_v47  ;;  %v1243_v60 = vpop.f32.mrb[7].mxu0  ;;  %v922_v63 = vmul.f32 %v1642_v45, %v874_v58  ;;  %829 = vst.msk [vmem:[#allocation2 + $0xc0] sm:$0xff] %vm251_vm3, %v786_v55  ;;  %v1287_v1 = vpop.f32.mrb[7].mxu1  ;;  %v301_v47 = vld [vmem:[#allocation2 + $0x38] sm:$0xff]  ;;  %v323_v53 = vld [vmem:[#allocation2 + $0xe8] sm:$0xff] }
  0xf1   : > { %v853_v62 = vld [vmem:[#allocation2 + $0x8] sm:$0xff]  ;;  %v787_v0 = vadd.f32 %v694_v61, %v319_v51  ;;  %v875_v4 = vld [vmem:[#allocation2 + $0xb8] sm:$0xff] }
  0xf2   : > { %v948_v2 = vadd.f32 %v1647_v52, %v900_v57  ;;  %v901_v3 = vmul.f32 %v1642_v45, %v853_v62  ;;  %808 = vst.msk [vmem:[#allocation2 + $0x18] sm:$0xff] %vm251_vm3, %v765_v59  ;;  %v970_v5 = vadd.f32 %v1647_v52, %v922_v63  ;;  %v923_v6 = vmul.f32 %v1642_v45, %v875_v4 }
  0xf3   : > { %830 = vst.msk [vmem:[#allocation2 + $0xc8] sm:$0xff] %vm251_vm3, %v787_v0 }
  0xf4   : > { %v990_v8 = vmax.f32 %v948_v2, 0.0  ;;  %v949_v9 = vadd.f32 %v1647_v52, %v901_v3  ;;  %v1012_v11 = vmax.f32 %v970_v5, 0.0  ;;  %v971_v12 = vadd.f32 %v1647_v52, %v923_v6 }
  0xf5   : > { %v611_v13 = vpop.f32.mrb[8].mxu0  ;;  %v699_v18 = vpop.f32.mrb[8].mxu1 }
  0xf6   : > { %1032 = vst.msk [vmem:[%s1660_s8] sm:$0xff] %vm251_vm3, %v990_v8  ;;  %v991_v15 = vmax.f32 %v949_v9, 0.0  ;;  %v766_v16 = vadd.f32 %v611_v13, %v298_v7  ;;  %v1246_v17 = vpop.f32.mrb[9].mxu0  ;;  %1054 = vst.msk [vmem:[%s1660_s8 + $0xb0] sm:$0xff] %vm251_vm3, %v1012_v11  ;;  %v1013_v20 = vmax.f32 %v971_v12, 0.0  ;;  %v788_v23 = vadd.f32 %v699_v18, %v320_v10  ;;  %v1290_v24 = vpop.f32.mrb[9].mxu1 }
  0xf7   : > { %v854_v21 = vld [vmem:[#allocation2 + $0x10] sm:$0xff]  ;;  %v614_v22 = vpop.f32.mrb[10].mxu0  ;;  %v876_v26 = vld [vmem:[#allocation2 + $0xc0] sm:$0xff]  ;;  %v702_v29 = vpop.f32.mrb[10].mxu1 }
  0xf8   : > { %1033 = vst.msk [vmem:[%s1660_s8 + $0x8] sm:$0xff] %vm251_vm3, %v991_v15  ;;  %v902_v25 = vmul.f32 %v1642_v45, %v854_v21  ;;  %809 = vst.msk [vmem:[#allocation2 + $0x20] sm:$0xff] %vm251_vm3, %v766_v16  ;;  %v767_v27 = vadd.f32 %v614_v22, %v299_v14  ;;  %v1247_v28 = vpop.f32.mrb[11].mxu0  ;;  %v924_v31 = vmul.f32 %v1642_v45, %v876_v26  ;;  %v1291_v33 = vpop.f32.mrb[11].mxu1  ;;  %v302_v9 = vld [vmem:[#allocation2 + $0x40] sm:$0xff]  ;;  %v324_v12 = vld [vmem:[#allocation2 + $0xf0] sm:$0xff] }
  0xf9   : > { %1055 = vst.msk [vmem:[%s1660_s8 + $0xb8] sm:$0xff] %vm251_vm3, %v1013_v20  ;;  %v855_v30 = vld [vmem:[#allocation2 + $0x18] sm:$0xff]  ;;  %831 = vst.msk [vmem:[#allocation2 + $0xd0] sm:$0xff] %vm251_vm3, %v788_v23  ;;  %v789_v32 = vadd.f32 %v702_v29, %v321_v19  ;;  %v303_v16 = vld [vmem:[#allocation2 + $0x48] sm:$0xff] }
  0xfa   : > { %v950_v34 = vadd.f32 %v1647_v52, %v902_v25  ;;  %v903_v35 = vmul.f32 %v1642_v45, %v855_v30  ;;  %v877_v36 = vld [vmem:[#allocation2 + $0xc8] sm:$0xff]  ;;  %810 = vst.msk [vmem:[#allocation2 + $0x28] sm:$0xff] %vm251_vm3, %v767_v27  ;;  %v972_v37 = vadd.f32 %v1647_v52, %v924_v31  ;;  %v325_v21 = vld [vmem:[#allocation2 + $0xf8] sm:$0xff] }
  0xfb   : > { %v925_v38 = vmul.f32 %v1642_v45, %v877_v36  ;;  %832 = vst.msk [vmem:[#allocation2 + $0xd8] sm:$0xff] %vm251_vm3, %v789_v32 }
  0xfc   : > { %v992_v40 = vmax.f32 %v950_v34, 0.0  ;;  %v951_v41 = vadd.f32 %v1647_v52, %v903_v35  ;;  %v1014_v43 = vmax.f32 %v972_v37, 0.0 }
  0xfd   : > { %v973_v44 = vadd.f32 %v1647_v52, %v925_v38  ;;  %v619_v46 = vpop.f32.mrb[12].mxu0  ;;  %v707_v51 = vpop.f32.mrb[12].mxu1 }
  0xfe   : > { %1034 = vst.msk [vmem:[%s1660_s8 + $0x10] sm:$0xff] %vm251_vm3, %v992_v40  ;;  %v993_v48 = vmax.f32 %v951_v41, 0.0  ;;  %v768_v49 = vadd.f32 %v619_v46, %v300_v39  ;;  %v1250_v50 = vpop.f32.mrb[13].mxu0  ;;  %1056 = vst.msk [vmem:[%s1660_s8 + $0xc0] sm:$0xff] %vm251_vm3, %v1014_v43  ;;  %v790_v57 = vadd.f32 %v707_v51, %v322_v42  ;;  %v1294_v58 = vpop.f32.mrb[13].mxu1  ;;  %v304_v41 = vld [vmem:[#allocation2 + $0x50] sm:$0xff] }
  0xff   : > { %v1015_v54 = vmax.f32 %v973_v44, 0.0  ;;  %v856_v55 = vld [vmem:[#allocation2 + $0x20] sm:$0xff]  ;;  %v622_v56 = vpop.f32.mrb[14].mxu0  ;;  %v710_v63 = vpop.f32.mrb[14].mxu1 }
 0x100   : > { %1035 = vst.msk [vmem:[%s1660_s8 + $0x18] sm:$0xff] %vm251_vm3, %v993_v48  ;;  %v904_v59 = vmul.f32 %v1642_v45, %v856_v55  ;;  %v878_v60 = vld [vmem:[#allocation2 + $0xd0] sm:$0xff]  ;;  %811 = vst.msk [vmem:[#allocation2 + $0x30] sm:$0xff] %vm251_vm3, %v768_v49  ;;  %v769_v61 = vadd.f32 %v622_v56, %v301_v47  ;;  %v1251_v62 = vpop.f32.mrb[15].mxu0  ;;  %v791_v2 = vadd.f32 %v710_v63, %v323_v53  ;;  %v1295_v3 = vpop.f32.mrb[15].mxu1  ;;  %v326_v44 = vld [vmem:[#allocation2 + $0x100] sm:$0xff] }
 0x101   : > { %1057 = vst.msk [vmem:[%s1660_s8 + $0xc8] sm:$0xff] %vm251_vm3, %v1015_v54  ;;  %v857_v0 = vld [vmem:[#allocation2 + $0x28] sm:$0xff]  ;;  %v926_v1 = vmul.f32 %v1642_v45, %v878_v60  ;;  %833 = vst.msk [vmem:[#allocation2 + $0xe0] sm:$0xff] %vm251_vm3, %v790_v57  ;;  %v305_v49 = vld [vmem:[#allocation2 + $0x58] sm:$0xff] }
 0x102   : > { %v952_v4 = vadd.f32 %v1647_v52, %v904_v59  ;;  %v905_v5 = vmul.f32 %v1642_v45, %v857_v0  ;;  %v879_v6 = vld [vmem:[#allocation2 + $0xd8] sm:$0xff]  ;;  %812 = vst.msk [vmem:[#allocation2 + $0x38] sm:$0xff] %vm251_vm3, %v769_v61  ;;  %834 = vst.msk [vmem:[#allocation2 + $0xe8] sm:$0xff] %vm251_vm3, %v791_v2  ;;  %v327_v55 = vld [vmem:[#allocation2 + $0x108] sm:$0xff] }
 0x103   : > { %v974_v7 = vadd.f32 %v1647_v52, %v926_v1  ;;  %v927_v8 = vmul.f32 %v1642_v45, %v879_v6 }
 0x104   : > { %v994_v10 = vmax.f32 %v952_v4, 0.0  ;;  %v953_v11 = vadd.f32 %v1647_v52, %v905_v5 }
 0x105   : > { %v1016_v13 = vmax.f32 %v974_v7, 0.0  ;;  %v975_v14 = vadd.f32 %v1647_v52, %v927_v8  ;;  %v627_v15 = vpop.f32.mrb[16].mxu0  ;;  %v715_v20 = vpop.f32.mrb[16].mxu1 }
 0x106   : > { %1036 = vst.msk [vmem:[%s1660_s8 + $0x20] sm:$0xff] %vm251_vm3, %v994_v10  ;;  %v995_v17 = vmax.f32 %v953_v11, 0.0  ;;  %v770_v18 = vadd.f32 %v627_v15, %v302_v9  ;;  %v1254_v19 = vpop.f32.mrb[17].mxu0  ;;  %v792_v25 = vadd.f32 %v715_v20, %v324_v12  ;;  %v1298_v26 = vpop.f32.mrb[17].mxu1  ;;  %v306_v11 = vld [vmem:[#allocation2 + $0x60] sm:$0xff] }
 0x107   : > { %1058 = vst.msk [vmem:[%s1660_s8 + $0xd0] sm:$0xff] %vm251_vm3, %v1016_v13  ;;  %v1017_v22 = vmax.f32 %v975_v14, 0.0  ;;  %v858_v23 = vld [vmem:[#allocation2 + $0x30] sm:$0xff]  ;;  %v630_v24 = vpop.f32.mrb[18].mxu0  ;;  %v718_v31 = vpop.f32.mrb[18].mxu1 }
 0x108   : > { %1037 = vst.msk [vmem:[%s1660_s8 + $0x28] sm:$0xff] %vm251_vm3, %v995_v17  ;;  %v906_v27 = vmul.f32 %v1642_v45, %v858_v23  ;;  %v880_v28 = vld [vmem:[#allocation2 + $0xe0] sm:$0xff]  ;;  %813 = vst.msk [vmem:[#allocation2 + $0x40] sm:$0xff] %vm251_vm3, %v770_v18  ;;  %v771_v29 = vadd.f32 %v630_v24, %v303_v16  ;;  %v1255_v30 = vpop.f32.mrb[19].mxu0  ;;  %v793_v34 = vadd.f32 %v718_v31, %v325_v21  ;;  %v1299_v35 = vpop.f32.mrb[19].mxu1  ;;  %v328_v14 = vld [vmem:[#allocation2 + $0x110] sm:$0xff] }
 0x109   : > { %1059 = vst.msk [vmem:[%s1660_s8 + $0xd8] sm:$0xff] %vm251_vm3, %v1017_v22  ;;  %v859_v32 = vld [vmem:[#allocation2 + $0x38] sm:$0xff]  ;;  %v928_v33 = vmul.f32 %v1642_v45, %v880_v28  ;;  %835 = vst.msk [vmem:[#allocation2 + $0xf0] sm:$0xff] %vm251_vm3, %v792_v25  ;;  %v881_v38 = vld [vmem:[#allocation2 + $0xe8] sm:$0xff] }
 0x10a   : > { %v954_v36 = vadd.f32 %v1647_v52, %v906_v27  ;;  %v907_v37 = vmul.f32 %v1642_v45, %v859_v32  ;;  %814 = vst.msk [vmem:[#allocation2 + $0x48] sm:$0xff] %vm251_vm3, %v771_v29  ;;  %v929_v40 = vmul.f32 %v1642_v45, %v881_v38  ;;  %836 = vst.msk [vmem:[#allocation2 + $0xf8] sm:$0xff] %vm251_vm3, %v793_v34  ;;  %v307_v18 = vld [vmem:[#allocation2 + $0x68] sm:$0xff]  ;;  %v329_v23 = vld [vmem:[#allocation2 + $0x118] sm:$0xff] }
 0x10b   : > { %v976_v39 = vadd.f32 %v1647_v52, %v928_v33 }
 0x10c   : > { %v996_v42 = vmax.f32 %v954_v36, 0.0  ;;  %v955_v43 = vadd.f32 %v1647_v52, %v907_v37  ;;  %v977_v47 = vadd.f32 %v1647_v52, %v929_v40 }
 0x10d   : > { %v1018_v46 = vmax.f32 %v976_v39, 0.0  ;;  %v635_v48 = vpop.f32.mrb[20].mxu0  ;;  %v723_v54 = vpop.f32.mrb[20].mxu1 }
 0x10e   : > { %1038 = vst.msk [vmem:[%s1660_s8 + $0x30] sm:$0xff] %vm251_vm3, %v996_v42  ;;  %v997_v50 = vmax.f32 %v955_v43, 0.0  ;;  %v772_v51 = vadd.f32 %v635_v48, %v304_v41  ;;  %v1258_v53 = vpop.f32.mrb[21].mxu0  ;;  %v1019_v56 = vmax.f32 %v977_v47, 0.0  ;;  %v794_v59 = vadd.f32 %v723_v54, %v326_v44  ;;  %v1302_v60 = vpop.f32.mrb[21].mxu1  ;;  %v308_v43 = vld [vmem:[#allocation2 + $0x70] sm:$0xff] }
 0x10f   : > { %1060 = vst.msk [vmem:[%s1660_s8 + $0xe0] sm:$0xff] %vm251_vm3, %v1018_v46  ;;  %v860_v57 = vld [vmem:[#allocation2 + $0x40] sm:$0xff]  ;;  %v638_v58 = vpop.f32.mrb[22].mxu0  ;;  %v726_v1 = vpop.f32.mrb[22].mxu1 }
 0x110   : > { %1039 = vst.msk [vmem:[%s1660_s8 + $0x38] sm:$0xff] %vm251_vm3, %v997_v50  ;;  %v908_v61 = vmul.f32 %v1642_v45, %v860_v57  ;;  %v882_v62 = vld [vmem:[#allocation2 + $0xf0] sm:$0xff]  ;;  %815 = vst.msk [vmem:[#allocation2 + $0x50] sm:$0xff] %vm251_vm3, %v772_v51  ;;  %v773_v63 = vadd.f32 %v638_v58, %v305_v49  ;;  %v1259_v0 = vpop.f32.mrb[23].mxu0  ;;  %v795_v4 = vadd.f32 %v726_v1, %v327_v55  ;;  %v1303_v5 = vpop.f32.mrb[23].mxu1  ;;  %v330_v47 = vld [vmem:[#allocation2 + $0x120] sm:$0xff] }
 0x111   : > { %1061 = vst.msk [vmem:[%s1660_s8 + $0xe8] sm:$0xff] %vm251_vm3, %v1019_v56  ;;  %v861_v2 = vld [vmem:[#allocation2 + $0x48] sm:$0xff]  ;;  %v930_v3 = vmul.f32 %v1642_v45, %v882_v62  ;;  %837 = vst.msk [vmem:[#allocation2 + $0x100] sm:$0xff] %vm251_vm3, %v794_v59  ;;  %v883_v8 = vld [vmem:[#allocation2 + $0xf8] sm:$0xff] }
 0x112   : > { %v956_v6 = vadd.f32 %v1647_v52, %v908_v61  ;;  %v909_v7 = vmul.f32 %v1642_v45, %v861_v2  ;;  %816 = vst.msk [vmem:[#allocation2 + $0x58] sm:$0xff] %vm251_vm3, %v773_v63  ;;  %v931_v10 = vmul.f32 %v1642_v45, %v883_v8  ;;  %838 = vst.msk [vmem:[#allocation2 + $0x108] sm:$0xff] %vm251_vm3, %v795_v4  ;;  %v309_v51 = vld [vmem:[#allocation2 + $0x78] sm:$0xff]  ;;  %v331_v57 = vld [vmem:[#allocation2 + $0x128] sm:$0xff] }
 0x113   : > { %v978_v9 = vadd.f32 %v1647_v52, %v930_v3 }
 0x114   : > { %v998_v12 = vmax.f32 %v956_v6, 0.0  ;;  %v957_v13 = vadd.f32 %v1647_v52, %v909_v7  ;;  %v979_v16 = vadd.f32 %v1647_v52, %v931_v10 }
 0x115   : > { %v1020_v15 = vmax.f32 %v978_v9, 0.0  ;;  %v643_v17 = vpop.f32.mrb[24].mxu0  ;;  %v731_v22 = vpop.f32.mrb[24].mxu1 }
 0x116   : > { %1040 = vst.msk [vmem:[%s1660_s8 + $0x40] sm:$0xff] %vm251_vm3, %v998_v12  ;;  %v999_v19 = vmax.f32 %v957_v13, 0.0  ;;  %v774_v20 = vadd.f32 %v643_v17, %v306_v11  ;;  %v1262_v21 = vpop.f32.mrb[25].mxu0  ;;  %v1021_v24 = vmax.f32 %v979_v16, 0.0  ;;  %v796_v27 = vadd.f32 %v731_v22, %v328_v14  ;;  %v1306_v28 = vpop.f32.mrb[25].mxu1  ;;  %v310_v13 = vld [vmem:[#allocation2 + $0x80] sm:$0xff] }
 0x117   : > { %1062 = vst.msk [vmem:[%s1660_s8 + $0xf0] sm:$0xff] %vm251_vm3, %v1020_v15  ;;  %v862_v25 = vld [vmem:[#allocation2 + $0x50] sm:$0xff]  ;;  %v646_v26 = vpop.f32.mrb[26].mxu0  ;;  %v734_v33 = vpop.f32.mrb[26].mxu1 }
 0x118   : > { %1041 = vst.msk [vmem:[%s1660_s8 + $0x48] sm:$0xff] %vm251_vm3, %v999_v19  ;;  %v910_v29 = vmul.f32 %v1642_v45, %v862_v25  ;;  %v884_v30 = vld [vmem:[#allocation2 + $0x100] sm:$0xff]  ;;  %817 = vst.msk [vmem:[#allocation2 + $0x60] sm:$0xff] %vm251_vm3, %v774_v20  ;;  %v775_v31 = vadd.f32 %v646_v26, %v307_v18  ;;  %v1263_v32 = vpop.f32.mrb[27].mxu0  ;;  %v797_v36 = vadd.f32 %v734_v33, %v329_v23  ;;  %v1307_v37 = vpop.f32.mrb[27].mxu1  ;;  %v332_v16 = vld [vmem:[#allocation2 + $0x130] sm:$0xff] }
 0x119   : > { %1063 = vst.msk [vmem:[%s1660_s8 + $0xf8] sm:$0xff] %vm251_vm3, %v1021_v24  ;;  %v863_v34 = vld [vmem:[#allocation2 + $0x58] sm:$0xff]  ;;  %v932_v35 = vmul.f32 %v1642_v45, %v884_v30  ;;  %839 = vst.msk [vmem:[#allocation2 + $0x110] sm:$0xff] %vm251_vm3, %v796_v27  ;;  %v885_v40 = vld [vmem:[#allocation2 + $0x108] sm:$0xff] }
 0x11a   : > { %v958_v38 = vadd.f32 %v1647_v52, %v910_v29  ;;  %v911_v39 = vmul.f32 %v1642_v45, %v863_v34  ;;  %818 = vst.msk [vmem:[#allocation2 + $0x68] sm:$0xff] %vm251_vm3, %v775_v31  ;;  %v933_v42 = vmul.f32 %v1642_v45, %v885_v40  ;;  %840 = vst.msk [vmem:[#allocation2 + $0x118] sm:$0xff] %vm251_vm3, %v797_v36  ;;  %v311_v20 = vld [vmem:[#allocation2 + $0x88] sm:$0xff]  ;;  %v333_v25 = vld [vmem:[#allocation2 + $0x138] sm:$0xff] }
 0x11b   : > { %v980_v41 = vadd.f32 %v1647_v52, %v932_v35 }
 0x11c   : > { %v1000_v44 = vmax.f32 %v958_v38, 0.0  ;;  %v959_v46 = vadd.f32 %v1647_v52, %v911_v39  ;;  %v981_v49 = vadd.f32 %v1647_v52, %v933_v42 }
 0x11d   : > { %v1022_v48 = vmax.f32 %v980_v41, 0.0  ;;  %v651_v50 = vpop.f32.mrb[28].mxu0  ;;  %v739_v56 = vpop.f32.mrb[28].mxu1 }
 0x11e   : > { %1042 = vst.msk [vmem:[%s1660_s8 + $0x50] sm:$0xff] %vm251_vm3, %v1000_v44  ;;  %v1001_v53 = vmax.f32 %v959_v46, 0.0  ;;  %v776_v54 = vadd.f32 %v651_v50, %v308_v43  ;;  %v1266_v55 = vpop.f32.mrb[29].mxu0  ;;  %v1023_v58 = vmax.f32 %v981_v49, 0.0  ;;  %v798_v61 = vadd.f32 %v739_v56, %v330_v47  ;;  %v1310_v62 = vpop.f32.mrb[29].mxu1  ;;  %v312_v46 = vld [vmem:[#allocation2 + $0x90] sm:$0xff] }
 0x11f   : > { %1064 = vst.msk [vmem:[%s1660_s8 + $0x100] sm:$0xff] %vm251_vm3, %v1022_v48  ;;  %v864_v59 = vld [vmem:[#allocation2 + $0x60] sm:$0xff]  ;;  %v654_v60 = vpop.f32.mrb[30].mxu0  ;;  %v742_v3 = vpop.f32.mrb[30].mxu1 }
 0x120   : > { %1043 = vst.msk [vmem:[%s1660_s8 + $0x58] sm:$0xff] %vm251_vm3, %v1001_v53  ;;  %v912_v63 = vmul.f32 %v1642_v45, %v864_v59  ;;  %v886_v0 = vld [vmem:[#allocation2 + $0x110] sm:$0xff]  ;;  %819 = vst.msk [vmem:[#allocation2 + $0x70] sm:$0xff] %vm251_vm3, %v776_v54  ;;  %v777_v1 = vadd.f32 %v654_v60, %v309_v51  ;;  %v1267_v2 = vpop.f32.mrb[31].mxu0  ;;  %v799_v6 = vadd.f32 %v742_v3, %v331_v57  ;;  %v1311_v7 = vpop.f32.mrb[31].mxu1  ;;  %v334_v49 = vld [vmem:[#allocation2 + $0x140] sm:$0xff] }
 0x121   : > { %1065 = vst.msk [vmem:[%s1660_s8 + $0x108] sm:$0xff] %vm251_vm3, %v1023_v58  ;;  %v865_v4 = vld [vmem:[#allocation2 + $0x68] sm:$0xff]  ;;  %v934_v5 = vmul.f32 %v1642_v45, %v886_v0  ;;  %841 = vst.msk [vmem:[#allocation2 + $0x120] sm:$0xff] %vm251_vm3, %v798_v61  ;;  %v887_v10 = vld [vmem:[#allocation2 + $0x118] sm:$0xff] }
 0x122   : > { %v960_v8 = vadd.f32 %v1647_v52, %v912_v63  ;;  %v913_v9 = vmul.f32 %v1642_v45, %v865_v4  ;;  %820 = vst.msk [vmem:[#allocation2 + $0x78] sm:$0xff] %vm251_vm3, %v777_v1  ;;  %v935_v12 = vmul.f32 %v1642_v45, %v887_v10  ;;  %842 = vst.msk [vmem:[#allocation2 + $0x128] sm:$0xff] %vm251_vm3, %v799_v6  ;;  %v313_v54 = vld [vmem:[#allocation2 + $0x98] sm:$0xff]  ;;  %v335_v59 = vld [vmem:[#allocation2 + $0x148] sm:$0xff] }
 0x123   : > { %v982_v11 = vadd.f32 %v1647_v52, %v934_v5 }
 0x124   : > { %v1002_v14 = vmax.f32 %v960_v8, 0.0  ;;  %v961_v15 = vadd.f32 %v1647_v52, %v913_v9  ;;  %v983_v18 = vadd.f32 %v1647_v52, %v935_v12 }
 0x125   : > { %v1024_v17 = vmax.f32 %v982_v11, 0.0  ;;  %v659_v19 = vpop.f32.mrb[32].mxu0  ;;  %v747_v24 = vpop.f32.mrb[32].mxu1 }
 0x126   : > { %1044 = vst.msk [vmem:[%s1660_s8 + $0x60] sm:$0xff] %vm251_vm3, %v1002_v14  ;;  %v1003_v21 = vmax.f32 %v961_v15, 0.0  ;;  %v778_v22 = vadd.f32 %v659_v19, %v310_v13  ;;  %v1270_v23 = vpop.f32.mrb[33].mxu0  ;;  %v1025_v26 = vmax.f32 %v983_v18, 0.0  ;;  %v800_v29 = vadd.f32 %v747_v24, %v332_v16  ;;  %v1314_v30 = vpop.f32.mrb[33].mxu1  ;;  %v314_v15 = vld [vmem:[#allocation2 + $0xa0] sm:$0xff] }
 0x127   : > { %1066 = vst.msk [vmem:[%s1660_s8 + $0x110] sm:$0xff] %vm251_vm3, %v1024_v17  ;;  %v866_v27 = vld [vmem:[#allocation2 + $0x70] sm:$0xff]  ;;  %v662_v28 = vpop.f32.mrb[34].mxu0  ;;  %v750_v35 = vpop.f32.mrb[34].mxu1 }
 0x128   : > { %1045 = vst.msk [vmem:[%s1660_s8 + $0x68] sm:$0xff] %vm251_vm3, %v1003_v21  ;;  %v914_v31 = vmul.f32 %v1642_v45, %v866_v27  ;;  %v888_v32 = vld [vmem:[#allocation2 + $0x120] sm:$0xff]  ;;  %821 = vst.msk [vmem:[#allocation2 + $0x80] sm:$0xff] %vm251_vm3, %v778_v22  ;;  %v779_v33 = vadd.f32 %v662_v28, %v311_v20  ;;  %v1271_v34 = vpop.f32.mrb[35].mxu0  ;;  %v801_v38 = vadd.f32 %v750_v35, %v333_v25  ;;  %v1315_v39 = vpop.f32.mrb[35].mxu1  ;;  %v315_v21 = vld [vmem:[#allocation2 + $0xa8] sm:$0xff] }
 0x129   : > { %1067 = vst.msk [vmem:[%s1660_s8 + $0x118] sm:$0xff] %vm251_vm3, %v1025_v26  ;;  %v867_v36 = vld [vmem:[#allocation2 + $0x78] sm:$0xff]  ;;  %v936_v37 = vmul.f32 %v1642_v45, %v888_v32  ;;  %843 = vst.msk [vmem:[#allocation2 + $0x130] sm:$0xff] %vm251_vm3, %v800_v29  ;;  %v889_v42 = vld [vmem:[#allocation2 + $0x128] sm:$0xff] }
 0x12a   : > { %v962_v40 = vadd.f32 %v1647_v52, %v914_v31  ;;  %v915_v41 = vmul.f32 %v1642_v45, %v867_v36  ;;  %822 = vst.msk [vmem:[#allocation2 + $0x88] sm:$0xff] %vm251_vm3, %v779_v33  ;;  %v937_v44 = vmul.f32 %v1642_v45, %v889_v42  ;;  %844 = vst.msk [vmem:[#allocation2 + $0x138] sm:$0xff] %vm251_vm3, %v801_v38 }
 0x12b   : > { %v984_v43 = vadd.f32 %v1647_v52, %v936_v37 }
 0x12c   : > { %v1004_v47 = vmax.f32 %v962_v40, 0.0  ;;  %v963_v48 = vadd.f32 %v1647_v52, %v915_v41  ;;  %v985_v51 = vadd.f32 %v1647_v52, %v937_v44 }
 0x12d   : > { %v1026_v50 = vmax.f32 %v984_v43, 0.0  ;;  %v667_v53 = vpop.f32.mrb[36].mxu0  ;;  %v755_v58 = vpop.f32.mrb[36].mxu1 }
 0x12e   : > { %1046 = vst.msk [vmem:[%s1660_s8 + $0x70] sm:$0xff] %vm251_vm3, %v1004_v47  ;;  %v1005_v55 = vmax.f32 %v963_v48, 0.0  ;;  %v780_v56 = vadd.f32 %v667_v53, %v312_v46  ;;  %v1274_v57 = vpop.f32.mrb[37].mxu0  ;;  %v1027_v60 = vmax.f32 %v985_v51, 0.0  ;;  %v802_v63 = vadd.f32 %v755_v58, %v334_v49  ;;  %v1318_v0 = vpop.f32.mrb[37].mxu1 }
 0x12f   : > { %1068 = vst.msk [vmem:[%s1660_s8 + $0x120] sm:$0xff] %vm251_vm3, %v1026_v50  ;;  %v868_v61 = vld [vmem:[#allocation2 + $0x80] sm:$0xff]  ;;  %v670_v62 = vpop.f32.mrb[38].mxu0  ;;  %v758_v5 = vpop.f32.mrb[38].mxu1 }
 0x130   : > { %1047 = vst.msk [vmem:[%s1660_s8 + $0x78] sm:$0xff] %vm251_vm3, %v1005_v55  ;;  %v916_v1 = vmul.f32 %v1642_v45, %v868_v61  ;;  %v890_v2 = vld [vmem:[#allocation2 + $0x130] sm:$0xff]  ;;  %823 = vst.msk [vmem:[#allocation2 + $0x90] sm:$0xff] %vm251_vm3, %v780_v56  ;;  %v781_v3 = vadd.f32 %v670_v62, %v313_v54  ;;  %v1275_v4 = vpop.f32.mrb[39].mxu0  ;;  %v803_v8 = vadd.f32 %v758_v5, %v335_v59  ;;  %v1319_v9 = vpop.f32.mrb[39].mxu1 }
 0x131   : > { %1069 = vst.msk [vmem:[%s1660_s8 + $0x128] sm:$0xff] %vm251_vm3, %v1027_v60  ;;  %v869_v6 = vld [vmem:[#allocation2 + $0x88] sm:$0xff]  ;;  %v938_v7 = vmul.f32 %v1642_v45, %v890_v2  ;;  %845 = vst.msk [vmem:[#allocation2 + $0x140] sm:$0xff] %vm251_vm3, %v802_v63  ;;  %v891_v12 = vld [vmem:[#allocation2 + $0x138] sm:$0xff] }
 0x132   : > { %v964_v10 = vadd.f32 %v1647_v52, %v916_v1  ;;  %v917_v11 = vmul.f32 %v1642_v45, %v869_v6  ;;  %824 = vst.msk [vmem:[#allocation2 + $0x98] sm:$0xff] %vm251_vm3, %v781_v3  ;;  %v939_v14 = vmul.f32 %v1642_v45, %v891_v12  ;;  %846 = vst.msk [vmem:[#allocation2 + $0x148] sm:$0xff] %vm251_vm3, %v803_v8 }
 0x133   : > { %v986_v13 = vadd.f32 %v1647_v52, %v938_v7 }
 0x134   : > { %v1006_v16 = vmax.f32 %v964_v10, 0.0  ;;  %v965_v17 = vadd.f32 %v1647_v52, %v917_v11  ;;  %v987_v19 = vadd.f32 %v1647_v52, %v939_v14 }
 0x135   : > { %v1028_v18 = vmax.f32 %v986_v13, 0.0  ;;  %v675_v20 = vpop.f32.mrb[40].mxu0 }
 0x136   : > { %1048 = vst.msk [vmem:[%s1660_s8 + $0x80] sm:$0xff] %vm251_vm3, %v1006_v16  ;;  %v1007_v22 = vmax.f32 %v965_v17, 0.0  ;;  %v782_v23 = vadd.f32 %v675_v20, %v314_v15  ;;  %v1278_v24 = vpop.f32.mrb[41].mxu0  ;;  %v1029_v25 = vmax.f32 %v987_v19, 0.0 }
 0x137   : > { %1070 = vst.msk [vmem:[%s1660_s8 + $0x130] sm:$0xff] %vm251_vm3, %v1028_v18  ;;  %v870_v26 = vld [vmem:[#allocation2 + $0x90] sm:$0xff]  ;;  %v678_v27 = vpop.f32.mrb[42].mxu0 }
 0x138   : > { %1049 = vst.msk [vmem:[%s1660_s8 + $0x88] sm:$0xff] %vm251_vm3, %v1007_v22  ;;  %v918_v28 = vmul.f32 %v1642_v45, %v870_v26  ;;  %v892_v29 = vld [vmem:[#allocation2 + $0x140] sm:$0xff]  ;;  %825 = vst.msk [vmem:[#allocation2 + $0xa0] sm:$0xff] %vm251_vm3, %v782_v23  ;;  %v783_v30 = vadd.f32 %v678_v27, %v315_v21  ;;  %v1279_v31 = vpop.f32.mrb[43].mxu0 }
 0x139   : > { %1071 = vst.msk [vmem:[%s1660_s8 + $0x138] sm:$0xff] %vm251_vm3, %v1029_v25  ;;  %v871_v32 = vld [vmem:[#allocation2 + $0x98] sm:$0xff]  ;;  %v940_v33 = vmul.f32 %v1642_v45, %v892_v29  ;;  %v893_v36 = vld [vmem:[#allocation2 + $0x148] sm:$0xff] }
 0x13a   : > { %v966_v34 = vadd.f32 %v1647_v52, %v918_v28  ;;  %v919_v35 = vmul.f32 %v1642_v45, %v871_v32  ;;  %826 = vst.msk [vmem:[#allocation2 + $0xa8] sm:$0xff] %vm251_vm3, %v783_v30  ;;  %v941_v38 = vmul.f32 %v1642_v45, %v893_v36 }
 0x13b   : > { %v988_v37 = vadd.f32 %v1647_v52, %v940_v33 }
 0x13c   : > { %v1008_v39 = vmax.f32 %v966_v34, 0.0  ;;  %v967_v40 = vadd.f32 %v1647_v52, %v919_v35  ;;  %v989_v42 = vadd.f32 %v1647_v52, %v941_v38 }
 0x13d   : > { %v1030_v41 = vmax.f32 %v988_v37, 0.0 }
 0x13e   : > { %1050 = vst.msk [vmem:[%s1660_s8 + $0x90] sm:$0xff] %vm251_vm3, %v1008_v39  ;;  %v1009_v43 = vmax.f32 %v967_v40, 0.0  ;;  %v1031_v44 = vmax.f32 %v989_v42, 0.0 }
 0x13f   : > { %1072 = vst.msk [vmem:[%s1660_s8 + $0x140] sm:$0xff] %vm251_vm3, %v1030_v41  ;;  %v872_v46 = vld [vmem:[#allocation2 + $0xa0] sm:$0xff] }
 0x140   : > { %1051 = vst.msk [vmem:[%s1660_s8 + $0x98] sm:$0xff] %vm251_vm3, %v1009_v43  ;;  %v920_v47 = vmul.f32 %v1642_v45, %v872_v46  ;;  %1073 = vst.msk [vmem:[%s1660_s8 + $0x148] sm:$0xff] %vm251_vm3, %v1031_v44 }
 0x141   : > { %v873_v48 = vld [vmem:[#allocation2 + $0xa8] sm:$0xff] }
 0x142   : > { %v968_v49 = vadd.f32 %v1647_v52, %v920_v47  ;;  %v921_v50 = vmul.f32 %v1642_v45, %v873_v48 }
 0x144   : > { %v1010_v51 = vmax.f32 %v968_v49, 0.0  ;;  %v969_v53 = vadd.f32 %v1647_v52, %v921_v50 }
 0x146   : > { %1052 = vst.msk [vmem:[%s1660_s8 + $0xa0] sm:$0xff] %vm251_vm3, %v1010_v51  ;;  %v1011_v54 = vmax.f32 %v969_v53, 0.0 }
 0x148   : > { %1053 = vst.msk [vmem:[%s1660_s8 + $0xa8] sm:$0xff] %vm251_vm3, %v1011_v54 }
 0x149 PF: > { %s14_s17 = sadd.s32 1, %s1393_s17   ;;  %s1876_s15 = smov %s1389_s16 }
 0x14a   : > { %p11_p5 = scmp.ge.s32.totalorder %s14_s17, 4   ;;  %s1877_s16 = smov %s1879_s18 }
 0x14c   :  { %13 = sbr.rel (!%p11_p5) target bundleno = 2 (0x2), region = 77 }

// kernel: net_forward.5
= control target key start
LH: loop header
LB: loop body
LE: loop exit
PB: predicated region body
PF: predicated region fallthrough
CT: control target
= control target key end

     0   :  { %s7116_s15 = smov 0   ;;  %s7118_s16 = smov 0   ;;  %s8893_s0 = inlined_call_operand.vmem [shape: bf16[4,192,800], index: 0, kind: input, shape index: {}]   ;;  %s8894_s1 = inlined_call_operand.vmem [shape: bf16[800,32], index: 1, kind: input, shape index: {}]   ;;  %s8895_s2 = inlined_call_operand.vmem [shape: f32[1,32], index: 2, kind: input, shape index: {}]   ;;  %s8896_s3 = inlined_call_operand.vmem [shape: f32[1,32], index: 3, kind: input, shape index: {}]   ;;  %s8897_s4 = inlined_call_operand.vmem [shape: f32[192,32], index: 4, kind: output, shape index: {}]  }
   0x1   :  { %s7120_s17 = smov 0   ;;  %s7122_s18 = smov 0  }
   0x2   :  { %s7124_s19 = smov 0  }
   0x3 LB: > { %s26_s20 = sadd.s32 1, %s7084_s18  ;;  %p42_p1 = scmp.ne.s32.totalorder %s7076_s16, %s7072_s15  ;;  %s7088_s19 = sphi %s7124_s19, %s14_s19   ;;  %s7084_s18 = sphi %s7122_s18, %s8902_s18   ;;  %s7080_s17 = sphi %s7120_s17, %s8901_s17   ;;  %s7076_s16 = sphi %s7118_s16, %s8900_s16   ;;  %s7072_s15 = sphi %s7116_s15, %s8899_s15  }
   0x4   : > { %p28_p0 = scmp.ge.s32.totalorder %s26_s20, 2  ;;  %p43_p2 = scmp.eq.s32.totalorder %s7088_s19, 0 }
   0x5   : > { %s35_s22 = sadd.s32 1, %s7076_s16  ;;  %p5210_p5 = scmp.ge.s32.totalorder %s7088_s19, 2 }
   0x6   : > { %s8904_s20 = smov (%p28_p0, %s26_s20), 0  ;;  %p44_p3 = por %p43_p2, %p42_p1 }
   0x7   : > { %s30_s21 = ssub.s32 %s7084_s18, %s8904_s20  ;;  %177 = sbr.rel (%p5210_p5) target bundleno = 124 (0x7c), region = 28 }
   0x8   : > { %p33_p4 = scmp.eq.s32.totalorder %s30_s21, 0 }
   0xa   : > { %s7151_s23 = scalar_select %p33_p4, %s7076_s16, %s35_s22  }
   0xe   : > { %180 = sbr.rel (!%p44_p3) target bundleno = 124 (0x7c), region = 32  ;;  %s182_s24 = sand.u32 (%p44_p3), 1, %s7076_s16  }
   0xf   : > { %s6570_s25 = smul.u32 (%p44_p3), 1344, %s182_s24 }
  0x10   : > { %s6573_s26 = smul.u32 (%p44_p3), 336, %s7084_s18 }
  0x11   : > { %s7164_s30 = scalar_lea.vmem (%p44_p3), [#allocation3], %s6570_s25 }
  0x12   : > { %s7159_s29 = scalar_lea.vmem (%p44_p3), %s8893_s0, %s6573_s26 }
  0x13   : > { %v205_v0 = vld [vmem:[%s7159_s29] sm:$0xff] (%p44_p3)  ;;  %v207_v1 = vld [vmem:[%s7159_s29 + $0x8] sm:$0xff] (%p44_p3)  ;;  %v209_v2 = vld [vmem:[%s7159_s29 + $0x10] sm:$0xff] (%p44_p3) }
  0x14   : > { %206 = vst [vmem:[%s7164_s30] sm:$0xff] (%p44_p3), %v205_v0  ;;  %208 = vst [vmem:[%s7164_s30 + $0x8] sm:$0xff] (%p44_p3), %v207_v1  ;;  %v211_v3 = vld [vmem:[%s7159_s29 + $0x1c] sm:$0xff] (%p44_p3)  ;;  %v213_v4 = vld [vmem:[%s7159_s29 + $0x24] sm:$0xff] (%p44_p3) }
  0x15   : > { %210 = vst [vmem:[%s7164_s30 + $0x10] sm:$0xff] %v209_v2  ;;  %v215_v5 = vld [vmem:[%s7159_s29 + $0x2c] sm:$0xff]  ;;  %212 = vst [vmem:[%s7164_s30 + $0x1c] sm:$0xff] %v211_v3  ;;  %v217_v6 = vld [vmem:[%s7159_s29 + $0x38] sm:$0xff] }
  0x16   : > { %214 = vst [vmem:[%s7164_s30 + $0x24] sm:$0xff] %v213_v4  ;;  %216 = vst [vmem:[%s7164_s30 + $0x2c] sm:$0xff] %v215_v5  ;;  %v219_v7 = vld [vmem:[%s7159_s29 + $0x40] sm:$0xff]  ;;  %v221_v8 = vld [vmem:[%s7159_s29 + $0x48] sm:$0xff] }
  0x17   : > { %218 = vst [vmem:[%s7164_s30 + $0x38] sm:$0xff] %v217_v6  ;;  %220 = vst [vmem:[%s7164_s30 + $0x40] sm:$0xff] %v219_v7  ;;  %v223_v9 = vld [vmem:[%s7159_s29 + $0x54] sm:$0xff]  ;;  %v225_v10 = vld [vmem:[%s7159_s29 + $0x5c] sm:$0xff] }
  0x18   : > { %222 = vst [vmem:[%s7164_s30 + $0x48] sm:$0xff] %v221_v8  ;;  %v227_v11 = vld [vmem:[%s7159_s29 + $0x64] sm:$0xff]  ;;  %224 = vst [vmem:[%s7164_s30 + $0x54] sm:$0xff] %v223_v9  ;;  %v229_v12 = vld [vmem:[%s7159_s29 + $0x70] sm:$0xff] }
  0x19   : > { %226 = vst [vmem:[%s7164_s30 + $0x5c] sm:$0xff] %v225_v10  ;;  %228 = vst [vmem:[%s7164_s30 + $0x64] sm:$0xff] %v227_v11  ;;  %v231_v13 = vld [vmem:[%s7159_s29 + $0x78] sm:$0xff]  ;;  %v233_v14 = vld [vmem:[%s7159_s29 + $0x80] sm:$0xff] }
  0x1a   : > { %230 = vst [vmem:[%s7164_s30 + $0x70] sm:$0xff] %v229_v12  ;;  %232 = vst [vmem:[%s7164_s30 + $0x78] sm:$0xff] %v231_v13  ;;  %v235_v15 = vld [vmem:[%s7159_s29 + $0x8c] sm:$0xff]  ;;  %v237_v16 = vld [vmem:[%s7159_s29 + $0x94] sm:$0xff] }
  0x1b   : > { %234 = vst [vmem:[%s7164_s30 + $0x80] sm:$0xff] %v233_v14  ;;  %v239_v17 = vld [vmem:[%s7159_s29 + $0x9c] sm:$0xff]  ;;  %236 = vst [vmem:[%s7164_s30 + $0x8c] sm:$0xff] %v235_v15  ;;  %v241_v18 = vld [vmem:[%s7159_s29 + $0xa8] sm:$0xff] }
  0x1c   : > { %238 = vst [vmem:[%s7164_s30 + $0x94] sm:$0xff] %v237_v16  ;;  %240 = vst [vmem:[%s7164_s30 + $0x9c] sm:$0xff] %v239_v17  ;;  %v243_v19 = vld [vmem:[%s7159_s29 + $0xb0] sm:$0xff]  ;;  %v245_v20 = vld [vmem:[%s7159_s29 + $0xb8] sm:$0xff] }
  0x1d   : > { %242 = vst [vmem:[%s7164_s30 + $0xa8] sm:$0xff] %v241_v18  ;;  %244 = vst [vmem:[%s7164_s30 + $0xb0] sm:$0xff] %v243_v19  ;;  %v247_v21 = vld [vmem:[%s7159_s29 + $0xc4] sm:$0xff]  ;;  %v249_v22 = vld [vmem:[%s7159_s29 + $0xcc] sm:$0xff] }
  0x1e   : > { %246 = vst [vmem:[%s7164_s30 + $0xb8] sm:$0xff] %v245_v20  ;;  %v251_v23 = vld [vmem:[%s7159_s29 + $0xd4] sm:$0xff]  ;;  %248 = vst [vmem:[%s7164_s30 + $0xc4] sm:$0xff] %v247_v21  ;;  %v253_v24 = vld [vmem:[%s7159_s29 + $0xe0] sm:$0xff] }
  0x1f   : > { %250 = vst [vmem:[%s7164_s30 + $0xcc] sm:$0xff] %v249_v22  ;;  %252 = vst [vmem:[%s7164_s30 + $0xd4] sm:$0xff] %v251_v23  ;;  %v255_v25 = vld [vmem:[%s7159_s29 + $0xe8] sm:$0xff]  ;;  %v257_v26 = vld [vmem:[%s7159_s29 + $0xf0] sm:$0xff] }
  0x20   : > { %254 = vst [vmem:[%s7164_s30 + $0xe0] sm:$0xff] %v253_v24  ;;  %256 = vst [vmem:[%s7164_s30 + $0xe8] sm:$0xff] %v255_v25  ;;  %v259_v27 = vld [vmem:[%s7159_s29 + $0xfc] sm:$0xff]  ;;  %v261_v28 = vld [vmem:[%s7159_s29 + $0x104] sm:$0xff] }
  0x21   : > { %258 = vst [vmem:[%s7164_s30 + $0xf0] sm:$0xff] %v257_v26  ;;  %v263_v29 = vld [vmem:[%s7159_s29 + $0x10c] sm:$0xff]  ;;  %260 = vst [vmem:[%s7164_s30 + $0xfc] sm:$0xff] %v259_v27  ;;  %v265_v30 = vld [vmem:[%s7159_s29 + $0x118] sm:$0xff] }
  0x22   : > { %262 = vst [vmem:[%s7164_s30 + $0x104] sm:$0xff] %v261_v28  ;;  %264 = vst [vmem:[%s7164_s30 + $0x10c] sm:$0xff] %v263_v29  ;;  %v267_v31 = vld [vmem:[%s7159_s29 + $0x120] sm:$0xff]  ;;  %v269_v32 = vld [vmem:[%s7159_s29 + $0x128] sm:$0xff] }
  0x23   : > { %266 = vst [vmem:[%s7164_s30 + $0x118] sm:$0xff] %v265_v30  ;;  %268 = vst [vmem:[%s7164_s30 + $0x120] sm:$0xff] %v267_v31  ;;  %v271_v33 = vld [vmem:[%s7159_s29 + $0x134] sm:$0xff]  ;;  %v273_v34 = vld [vmem:[%s7159_s29 + $0x13c] sm:$0xff] }
  0x24   : > { %270 = vst [vmem:[%s7164_s30 + $0x128] sm:$0xff] %v269_v32  ;;  %v275_v35 = vld [vmem:[%s7159_s29 + $0x144] sm:$0xff]  ;;  %272 = vst [vmem:[%s7164_s30 + $0x134] sm:$0xff] %v271_v33  ;;  %v281_v38 = vld [vmem:[%s7159_s29 + $0x2b0] sm:$0xff] }
  0x25   : > { %274 = vst [vmem:[%s7164_s30 + $0x13c] sm:$0xff] %v273_v34  ;;  %276 = vst [vmem:[%s7164_s30 + $0x144] sm:$0xff] %v275_v35  ;;  %v277_v36 = vld [vmem:[%s7159_s29 + $0x2a0] sm:$0xff]  ;;  %v279_v37 = vld [vmem:[%s7159_s29 + $0x2a8] sm:$0xff] }
  0x26   : > { %278 = vst [vmem:[%s7164_s30 + $0x150] sm:$0xff] %v277_v36  ;;  %280 = vst [vmem:[%s7164_s30 + $0x158] sm:$0xff] %v279_v37  ;;  %v283_v39 = vld [vmem:[%s7159_s29 + $0x2bc] sm:$0xff]  ;;  %v285_v40 = vld [vmem:[%s7159_s29 + $0x2c4] sm:$0xff] }
  0x27   : > { %282 = vst [vmem:[%s7164_s30 + $0x160] sm:$0xff] %v281_v38  ;;  %v287_v41 = vld [vmem:[%s7159_s29 + $0x2cc] sm:$0xff]  ;;  %284 = vst [vmem:[%s7164_s30 + $0x16c] sm:$0xff] %v283_v39  ;;  %v289_v42 = vld [vmem:[%s7159_s29 + $0x2d8] sm:$0xff] }
  0x28   : > { %286 = vst [vmem:[%s7164_s30 + $0x174] sm:$0xff] %v285_v40  ;;  %288 = vst [vmem:[%s7164_s30 + $0x17c] sm:$0xff] %v287_v41  ;;  %v291_v43 = vld [vmem:[%s7159_s29 + $0x2e0] sm:$0xff]  ;;  %v293_v44 = vld [vmem:[%s7159_s29 + $0x2e8] sm:$0xff] }
  0x29   : > { %290 = vst [vmem:[%s7164_s30 + $0x188] sm:$0xff] %v289_v42  ;;  %292 = vst [vmem:[%s7164_s30 + $0x190] sm:$0xff] %v291_v43  ;;  %v295_v45 = vld [vmem:[%s7159_s29 + $0x2f4] sm:$0xff]  ;;  %v297_v46 = vld [vmem:[%s7159_s29 + $0x2fc] sm:$0xff] }
  0x2a   : > { %294 = vst [vmem:[%s7164_s30 + $0x198] sm:$0xff] %v293_v44  ;;  %v299_v47 = vld [vmem:[%s7159_s29 + $0x304] sm:$0xff]  ;;  %296 = vst [vmem:[%s7164_s30 + $0x1a4] sm:$0xff] %v295_v45  ;;  %v301_v48 = vld [vmem:[%s7159_s29 + $0x310] sm:$0xff] }
  0x2b   : > { %298 = vst [vmem:[%s7164_s30 + $0x1ac] sm:$0xff] %v297_v46  ;;  %300 = vst [vmem:[%s7164_s30 + $0x1b4] sm:$0xff] %v299_v47  ;;  %v303_v49 = vld [vmem:[%s7159_s29 + $0x318] sm:$0xff]  ;;  %v305_v50 = vld [vmem:[%s7159_s29 + $0x320] sm:$0xff] }
  0x2c   : > { %302 = vst [vmem:[%s7164_s30 + $0x1c0] sm:$0xff] %v301_v48  ;;  %304 = vst [vmem:[%s7164_s30 + $0x1c8] sm:$0xff] %v303_v49  ;;  %v307_v51 = vld [vmem:[%s7159_s29 + $0x32c] sm:$0xff]  ;;  %v309_v52 = vld [vmem:[%s7159_s29 + $0x334] sm:$0xff] }
  0x2d   : > { %306 = vst [vmem:[%s7164_s30 + $0x1d0] sm:$0xff] %v305_v50  ;;  %v311_v53 = vld [vmem:[%s7159_s29 + $0x33c] sm:$0xff]  ;;  %308 = vst [vmem:[%s7164_s30 + $0x1dc] sm:$0xff] %v307_v51  ;;  %v313_v54 = vld [vmem:[%s7159_s29 + $0x348] sm:$0xff] }
  0x2e   : > { %310 = vst [vmem:[%s7164_s30 + $0x1e4] sm:$0xff] %v309_v52  ;;  %312 = vst [vmem:[%s7164_s30 + $0x1ec] sm:$0xff] %v311_v53  ;;  %v315_v55 = vld [vmem:[%s7159_s29 + $0x350] sm:$0xff]  ;;  %v317_v56 = vld [vmem:[%s7159_s29 + $0x358] sm:$0xff] }
  0x2f   : > { %314 = vst [vmem:[%s7164_s30 + $0x1f8] sm:$0xff] %v313_v54  ;;  %316 = vst [vmem:[%s7164_s30 + $0x200] sm:$0xff] %v315_v55  ;;  %v319_v57 = vld [vmem:[%s7159_s29 + $0x364] sm:$0xff]  ;;  %v321_v58 = vld [vmem:[%s7159_s29 + $0x36c] sm:$0xff] }
  0x30   : > { %318 = vst [vmem:[%s7164_s30 + $0x208] sm:$0xff] %v317_v56  ;;  %v323_v59 = vld [vmem:[%s7159_s29 + $0x374] sm:$0xff]  ;;  %320 = vst [vmem:[%s7164_s30 + $0x214] sm:$0xff] %v319_v57  ;;  %v325_v60 = vld [vmem:[%s7159_s29 + $0x380] sm:$0xff] }
  0x31   : > { %322 = vst [vmem:[%s7164_s30 + $0x21c] sm:$0xff] %v321_v58  ;;  %324 = vst [vmem:[%s7164_s30 + $0x224] sm:$0xff] %v323_v59  ;;  %v327_v61 = vld [vmem:[%s7159_s29 + $0x388] sm:$0xff]  ;;  %v329_v62 = vld [vmem:[%s7159_s29 + $0x390] sm:$0xff] }
  0x32   : > { %326 = vst [vmem:[%s7164_s30 + $0x230] sm:$0xff] %v325_v60  ;;  %328 = vst [vmem:[%s7164_s30 + $0x238] sm:$0xff] %v327_v61  ;;  %v331_v63 = vld [vmem:[%s7159_s29 + $0x39c] sm:$0xff]  ;;  %v333_v0 = vld [vmem:[%s7159_s29 + $0x3a4] sm:$0xff] }
  0x33   : > { %330 = vst [vmem:[%s7164_s30 + $0x240] sm:$0xff] %v329_v62  ;;  %v335_v1 = vld [vmem:[%s7159_s29 + $0x3ac] sm:$0xff]  ;;  %332 = vst [vmem:[%s7164_s30 + $0x24c] sm:$0xff] %v331_v63  ;;  %v337_v2 = vld [vmem:[%s7159_s29 + $0x3b8] sm:$0xff] }
  0x34   : > { %334 = vst [vmem:[%s7164_s30 + $0x254] sm:$0xff] %v333_v0  ;;  %336 = vst [vmem:[%s7164_s30 + $0x25c] sm:$0xff] %v335_v1  ;;  %v339_v3 = vld [vmem:[%s7159_s29 + $0x3c0] sm:$0xff]  ;;  %v341_v4 = vld [vmem:[%s7159_s29 + $0x3c8] sm:$0xff] }
  0x35   : > { %338 = vst [vmem:[%s7164_s30 + $0x268] sm:$0xff] %v337_v2  ;;  %340 = vst [vmem:[%s7164_s30 + $0x270] sm:$0xff] %v339_v3  ;;  %v343_v5 = vld [vmem:[%s7159_s29 + $0x3d4] sm:$0xff]  ;;  %v345_v6 = vld [vmem:[%s7159_s29 + $0x3dc] sm:$0xff] }
  0x36   : > { %342 = vst [vmem:[%s7164_s30 + $0x278] sm:$0xff] %v341_v4  ;;  %v347_v7 = vld [vmem:[%s7159_s29 + $0x3e4] sm:$0xff]  ;;  %344 = vst [vmem:[%s7164_s30 + $0x284] sm:$0xff] %v343_v5  ;;  %v353_v10 = vld [vmem:[%s7159_s29 + $0x550] sm:$0xff] }
  0x37   : > { %346 = vst [vmem:[%s7164_s30 + $0x28c] sm:$0xff] %v345_v6  ;;  %348 = vst [vmem:[%s7164_s30 + $0x294] sm:$0xff] %v347_v7  ;;  %v349_v8 = vld [vmem:[%s7159_s29 + $0x540] sm:$0xff]  ;;  %v351_v9 = vld [vmem:[%s7159_s29 + $0x548] sm:$0xff] }
  0x38   : > { %350 = vst [vmem:[%s7164_s30 + $0x2a0] sm:$0xff] %v349_v8  ;;  %352 = vst [vmem:[%s7164_s30 + $0x2a8] sm:$0xff] %v351_v9  ;;  %v355_v11 = vld [vmem:[%s7159_s29 + $0x55c] sm:$0xff]  ;;  %v357_v12 = vld [vmem:[%s7159_s29 + $0x564] sm:$0xff] }
  0x39   : > { %354 = vst [vmem:[%s7164_s30 + $0x2b0] sm:$0xff] %v353_v10  ;;  %v359_v13 = vld [vmem:[%s7159_s29 + $0x56c] sm:$0xff]  ;;  %356 = vst [vmem:[%s7164_s30 + $0x2bc] sm:$0xff] %v355_v11  ;;  %v361_v14 = vld [vmem:[%s7159_s29 + $0x578] sm:$0xff] }
  0x3a   : > { %358 = vst [vmem:[%s7164_s30 + $0x2c4] sm:$0xff] %v357_v12  ;;  %360 = vst [vmem:[%s7164_s30 + $0x2cc] sm:$0xff] %v359_v13  ;;  %v363_v15 = vld [vmem:[%s7159_s29 + $0x580] sm:$0xff]  ;;  %v365_v16 = vld [vmem:[%s7159_s29 + $0x588] sm:$0xff] }
  0x3b   : > { %362 = vst [vmem:[%s7164_s30 + $0x2d8] sm:$0xff] %v361_v14  ;;  %364 = vst [vmem:[%s7164_s30 + $0x2e0] sm:$0xff] %v363_v15  ;;  %v367_v17 = vld [vmem:[%s7159_s29 + $0x594] sm:$0xff]  ;;  %v369_v18 = vld [vmem:[%s7159_s29 + $0x59c] sm:$0xff] }
  0x3c   : > { %366 = vst [vmem:[%s7164_s30 + $0x2e8] sm:$0xff] %v365_v16  ;;  %v371_v19 = vld [vmem:[%s7159_s29 + $0x5a4] sm:$0xff]  ;;  %368 = vst [vmem:[%s7164_s30 + $0x2f4] sm:$0xff] %v367_v17  ;;  %v373_v20 = vld [vmem:[%s7159_s29 + $0x5b0] sm:$0xff] }
  0x3d   : > { %370 = vst [vmem:[%s7164_s30 + $0x2fc] sm:$0xff] %v369_v18  ;;  %372 = vst [vmem:[%s7164_s30 + $0x304] sm:$0xff] %v371_v19  ;;  %v375_v21 = vld [vmem:[%s7159_s29 + $0x5b8] sm:$0xff]  ;;  %v377_v22 = vld [vmem:[%s7159_s29 + $0x5c0] sm:$0xff] }
  0x3e   : > { %374 = vst [vmem:[%s7164_s30 + $0x310] sm:$0xff] %v373_v20  ;;  %376 = vst [vmem:[%s7164_s30 + $0x318] sm:$0xff] %v375_v21  ;;  %v379_v23 = vld [vmem:[%s7159_s29 + $0x5cc] sm:$0xff]  ;;  %v381_v24 = vld [vmem:[%s7159_s29 + $0x5d4] sm:$0xff] }
  0x3f   : > { %378 = vst [vmem:[%s7164_s30 + $0x320] sm:$0xff] %v377_v22  ;;  %v383_v25 = vld [vmem:[%s7159_s29 + $0x5dc] sm:$0xff]  ;;  %380 = vst [vmem:[%s7164_s30 + $0x32c] sm:$0xff] %v379_v23  ;;  %v385_v26 = vld [vmem:[%s7159_s29 + $0x5e8] sm:$0xff] }
  0x40   : > { %382 = vst [vmem:[%s7164_s30 + $0x334] sm:$0xff] %v381_v24  ;;  %384 = vst [vmem:[%s7164_s30 + $0x33c] sm:$0xff] %v383_v25  ;;  %v387_v27 = vld [vmem:[%s7159_s29 + $0x5f0] sm:$0xff]  ;;  %v389_v28 = vld [vmem:[%s7159_s29 + $0x5f8] sm:$0xff] }
  0x41   : > { %386 = vst [vmem:[%s7164_s30 + $0x348] sm:$0xff] %v385_v26  ;;  %388 = vst [vmem:[%s7164_s30 + $0x350] sm:$0xff] %v387_v27  ;;  %v391_v29 = vld [vmem:[%s7159_s29 + $0x604] sm:$0xff]  ;;  %v393_v30 = vld [vmem:[%s7159_s29 + $0x60c] sm:$0xff] }
  0x42   : > { %390 = vst [vmem:[%s7164_s30 + $0x358] sm:$0xff] %v389_v28  ;;  %v395_v31 = vld [vmem:[%s7159_s29 + $0x614] sm:$0xff]  ;;  %392 = vst [vmem:[%s7164_s30 + $0x364] sm:$0xff] %v391_v29  ;;  %v397_v32 = vld [vmem:[%s7159_s29 + $0x620] sm:$0xff] }
  0x43   : > { %394 = vst [vmem:[%s7164_s30 + $0x36c] sm:$0xff] %v393_v30  ;;  %396 = vst [vmem:[%s7164_s30 + $0x374] sm:$0xff] %v395_v31  ;;  %v399_v33 = vld [vmem:[%s7159_s29 + $0x628] sm:$0xff]  ;;  %v401_v34 = vld [vmem:[%s7159_s29 + $0x630] sm:$0xff] }
  0x44   : > { %398 = vst [vmem:[%s7164_s30 + $0x380] sm:$0xff] %v397_v32  ;;  %400 = vst [vmem:[%s7164_s30 + $0x388] sm:$0xff] %v399_v33  ;;  %v403_v35 = vld [vmem:[%s7159_s29 + $0x63c] sm:$0xff]  ;;  %v405_v36 = vld [vmem:[%s7159_s29 + $0x644] sm:$0xff] }
  0x45   : > { %402 = vst [vmem:[%s7164_s30 + $0x390] sm:$0xff] %v401_v34  ;;  %v407_v37 = vld [vmem:[%s7159_s29 + $0x64c] sm:$0xff]  ;;  %404 = vst [vmem:[%s7164_s30 + $0x39c] sm:$0xff] %v403_v35  ;;  %v409_v38 = vld [vmem:[%s7159_s29 + $0x658] sm:$0xff] }
  0x46   : > { %406 = vst [vmem:[%s7164_s30 + $0x3a4] sm:$0xff] %v405_v36  ;;  %408 = vst [vmem:[%s7164_s30 + $0x3ac] sm:$0xff] %v407_v37  ;;  %v411_v39 = vld [vmem:[%s7159_s29 + $0x660] sm:$0xff]  ;;  %v413_v40 = vld [vmem:[%s7159_s29 + $0x668] sm:$0xff] }
  0x47   : > { %410 = vst [vmem:[%s7164_s30 + $0x3b8] sm:$0xff] %v409_v38  ;;  %412 = vst [vmem:[%s7164_s30 + $0x3c0] sm:$0xff] %v411_v39  ;;  %v415_v41 = vld [vmem:[%s7159_s29 + $0x674] sm:$0xff]  ;;  %v417_v42 = vld [vmem:[%s7159_s29 + $0x67c] sm:$0xff] }
  0x48   : > { %414 = vst [vmem:[%s7164_s30 + $0x3c8] sm:$0xff] %v413_v40  ;;  %v419_v43 = vld [vmem:[%s7159_s29 + $0x684] sm:$0xff]  ;;  %416 = vst [vmem:[%s7164_s30 + $0x3d4] sm:$0xff] %v415_v41  ;;  %v425_v46 = vld [vmem:[%s7159_s29 + $0x7f0] sm:$0xff] }
  0x49   : > { %418 = vst [vmem:[%s7164_s30 + $0x3dc] sm:$0xff] %v417_v42  ;;  %420 = vst [vmem:[%s7164_s30 + $0x3e4] sm:$0xff] %v419_v43  ;;  %v421_v44 = vld [vmem:[%s7159_s29 + $0x7e0] sm:$0xff]  ;;  %v423_v45 = vld [vmem:[%s7159_s29 + $0x7e8] sm:$0xff] }
  0x4a   : > { %422 = vst [vmem:[%s7164_s30 + $0x3f0] sm:$0xff] %v421_v44  ;;  %424 = vst [vmem:[%s7164_s30 + $0x3f8] sm:$0xff] %v423_v45  ;;  %v427_v47 = vld [vmem:[%s7159_s29 + $0x7fc] sm:$0xff]  ;;  %v429_v48 = vld [vmem:[%s7159_s29 + $0x804] sm:$0xff] }
  0x4b   : > { %426 = vst [vmem:[%s7164_s30 + $0x400] sm:$0xff] %v425_v46  ;;  %v431_v49 = vld [vmem:[%s7159_s29 + $0x80c] sm:$0xff]  ;;  %428 = vst [vmem:[%s7164_s30 + $0x40c] sm:$0xff] %v427_v47  ;;  %v433_v50 = vld [vmem:[%s7159_s29 + $0x818] sm:$0xff] }
  0x4c   : > { %430 = vst [vmem:[%s7164_s30 + $0x414] sm:$0xff] %v429_v48  ;;  %432 = vst [vmem:[%s7164_s30 + $0x41c] sm:$0xff] %v431_v49  ;;  %v435_v51 = vld [vmem:[%s7159_s29 + $0x820] sm:$0xff]  ;;  %v437_v52 = vld [vmem:[%s7159_s29 + $0x828] sm:$0xff] }
  0x4d   : > { %434 = vst [vmem:[%s7164_s30 + $0x428] sm:$0xff] %v433_v50  ;;  %436 = vst [vmem:[%s7164_s30 + $0x430] sm:$0xff] %v435_v51  ;;  %v439_v53 = vld [vmem:[%s7159_s29 + $0x834] sm:$0xff]  ;;  %v441_v54 = vld [vmem:[%s7159_s29 + $0x83c] sm:$0xff] }
  0x4e   : > { %438 = vst [vmem:[%s7164_s30 + $0x438] sm:$0xff] %v437_v52  ;;  %v443_v55 = vld [vmem:[%s7159_s29 + $0x844] sm:$0xff]  ;;  %440 = vst [vmem:[%s7164_s30 + $0x444] sm:$0xff] %v439_v53  ;;  %v445_v56 = vld [vmem:[%s7159_s29 + $0x850] sm:$0xff] }
  0x4f   : > { %442 = vst [vmem:[%s7164_s30 + $0x44c] sm:$0xff] %v441_v54  ;;  %444 = vst [vmem:[%s7164_s30 + $0x454] sm:$0xff] %v443_v55  ;;  %v447_v57 = vld [vmem:[%s7159_s29 + $0x858] sm:$0xff]  ;;  %v449_v58 = vld [vmem:[%s7159_s29 + $0x860] sm:$0xff] }
  0x50   : > { %446 = vst [vmem:[%s7164_s30 + $0x460] sm:$0xff] %v445_v56  ;;  %448 = vst [vmem:[%s7164_s30 + $0x468] sm:$0xff] %v447_v57  ;;  %v451_v59 = vld [vmem:[%s7159_s29 + $0x86c] sm:$0xff]  ;;  %v453_v60 = vld [vmem:[%s7159_s29 + $0x874] sm:$0xff] }
  0x51   : > { %450 = vst [vmem:[%s7164_s30 + $0x470] sm:$0xff] %v449_v58  ;;  %v455_v61 = vld [vmem:[%s7159_s29 + $0x87c] sm:$0xff]  ;;  %452 = vst [vmem:[%s7164_s30 + $0x47c] sm:$0xff] %v451_v59  ;;  %v457_v62 = vld [vmem:[%s7159_s29 + $0x888] sm:$0xff] }
  0x52   : > { %454 = vst [vmem:[%s7164_s30 + $0x484] sm:$0xff] %v453_v60  ;;  %456 = vst [vmem:[%s7164_s30 + $0x48c] sm:$0xff] %v455_v61  ;;  %v459_v63 = vld [vmem:[%s7159_s29 + $0x890] sm:$0xff]  ;;  %v461_v0 = vld [vmem:[%s7159_s29 + $0x898] sm:$0xff] }
  0x53   : > { %458 = vst [vmem:[%s7164_s30 + $0x498] sm:$0xff] %v457_v62  ;;  %460 = vst [vmem:[%s7164_s30 + $0x4a0] sm:$0xff] %v459_v63  ;;  %v463_v1 = vld [vmem:[%s7159_s29 + $0x8a4] sm:$0xff]  ;;  %v465_v2 = vld [vmem:[%s7159_s29 + $0x8ac] sm:$0xff] }
  0x54   : > { %462 = vst [vmem:[%s7164_s30 + $0x4a8] sm:$0xff] %v461_v0  ;;  %v467_v3 = vld [vmem:[%s7159_s29 + $0x8b4] sm:$0xff]  ;;  %464 = vst [vmem:[%s7164_s30 + $0x4b4] sm:$0xff] %v463_v1  ;;  %v469_v4 = vld [vmem:[%s7159_s29 + $0x8c0] sm:$0xff] }
  0x55   : > { %466 = vst [vmem:[%s7164_s30 + $0x4bc] sm:$0xff] %v465_v2  ;;  %468 = vst [vmem:[%s7164_s30 + $0x4c4] sm:$0xff] %v467_v3  ;;  %v471_v5 = vld [vmem:[%s7159_s29 + $0x8c8] sm:$0xff]  ;;  %v473_v6 = vld [vmem:[%s7159_s29 + $0x8d0] sm:$0xff] }
  0x56   : > { %470 = vst [vmem:[%s7164_s30 + $0x4d0] sm:$0xff] %v469_v4  ;;  %472 = vst [vmem:[%s7164_s30 + $0x4d8] sm:$0xff] %v471_v5  ;;  %v475_v7 = vld [vmem:[%s7159_s29 + $0x8dc] sm:$0xff]  ;;  %v477_v8 = vld [vmem:[%s7159_s29 + $0x8e4] sm:$0xff] }
  0x57   : > { %474 = vst [vmem:[%s7164_s30 + $0x4e0] sm:$0xff] %v473_v6  ;;  %v479_v9 = vld [vmem:[%s7159_s29 + $0x8ec] sm:$0xff]  ;;  %476 = vst [vmem:[%s7164_s30 + $0x4ec] sm:$0xff] %v475_v7  ;;  %v481_v10 = vld [vmem:[%s7159_s29 + $0x8f8] sm:$0xff] }
  0x58   : > { %478 = vst [vmem:[%s7164_s30 + $0x4f4] sm:$0xff] %v477_v8  ;;  %480 = vst [vmem:[%s7164_s30 + $0x4fc] sm:$0xff] %v479_v9  ;;  %v483_v11 = vld [vmem:[%s7159_s29 + $0x900] sm:$0xff]  ;;  %v485_v12 = vld [vmem:[%s7159_s29 + $0x908] sm:$0xff] }
  0x59   : > { %482 = vst [vmem:[%s7164_s30 + $0x508] sm:$0xff] %v481_v10  ;;  %484 = vst [vmem:[%s7164_s30 + $0x510] sm:$0xff] %v483_v11  ;;  %v487_v13 = vld [vmem:[%s7159_s29 + $0x914] sm:$0xff]  ;;  %v489_v14 = vld [vmem:[%s7159_s29 + $0x91c] sm:$0xff] }
  0x5a   : > { %486 = vst [vmem:[%s7164_s30 + $0x518] sm:$0xff] %v485_v12  ;;  %v491_v15 = vld [vmem:[%s7159_s29 + $0x924] sm:$0xff]  ;;  %488 = vst [vmem:[%s7164_s30 + $0x524] sm:$0xff] %v487_v13  ;;  %v5212_v16 = vld [vmem:[%s7159_s29 + $0x18] sm:$0xf] }
  0x5b   : > { %490 = vst [vmem:[%s7164_s30 + $0x52c] sm:$0xff] %v489_v14  ;;  %492 = vst [vmem:[%s7164_s30 + $0x534] sm:$0xff] %v491_v15  ;;  %v5214_v17 = vld [vmem:[%s7159_s29 + $0x34] sm:$0xf]  ;;  %v5216_v18 = vld [vmem:[%s7159_s29 + $0x50] sm:$0xf] }
  0x5c   : > { %5213 = vst [vmem:[%s7164_s30 + $0x18] sm:$0xf] %v5212_v16  ;;  %5215 = vst [vmem:[%s7164_s30 + $0x34] sm:$0xf] %v5214_v17  ;;  %v5218_v19 = vld [vmem:[%s7159_s29 + $0x6c] sm:$0xf] }
  0x5d   : > { %5217 = vst [vmem:[%s7164_s30 + $0x50] sm:$0xf] %v5216_v18  ;;  %v5220_v20 = vld [vmem:[%s7159_s29 + $0x88] sm:$0xf]  ;;  %v5222_v21 = vld [vmem:[%s7159_s29 + $0xa4] sm:$0xf] }
  0x5e   : > { %5219 = vst [vmem:[%s7164_s30 + $0x6c] sm:$0xf] %v5218_v19  ;;  %5221 = vst [vmem:[%s7164_s30 + $0x88] sm:$0xf] %v5220_v20  ;;  %v5224_v22 = vld [vmem:[%s7159_s29 + $0xc0] sm:$0xf] }
  0x5f   : > { %5223 = vst [vmem:[%s7164_s30 + $0xa4] sm:$0xf] %v5222_v21  ;;  %v5226_v23 = vld [vmem:[%s7159_s29 + $0xdc] sm:$0xf]  ;;  %v5228_v24 = vld [vmem:[%s7159_s29 + $0xf8] sm:$0xf] }
  0x60   : > { %5225 = vst [vmem:[%s7164_s30 + $0xc0] sm:$0xf] %v5224_v22  ;;  %5227 = vst [vmem:[%s7164_s30 + $0xdc] sm:$0xf] %v5226_v23  ;;  %v5230_v25 = vld [vmem:[%s7159_s29 + $0x114] sm:$0xf] }
  0x61   : > { %5229 = vst [vmem:[%s7164_s30 + $0xf8] sm:$0xf] %v5228_v24  ;;  %v5232_v26 = vld [vmem:[%s7159_s29 + $0x130] sm:$0xf]  ;;  %v5234_v27 = vld [vmem:[%s7159_s29 + $0x14c] sm:$0xf] }
  0x62   : > { %5231 = vst [vmem:[%s7164_s30 + $0x114] sm:$0xf] %v5230_v25  ;;  %5233 = vst [vmem:[%s7164_s30 + $0x130] sm:$0xf] %v5232_v26  ;;  %v5236_v28 = vld [vmem:[%s7159_s29 + $0x2b8] sm:$0xf] }
  0x63   : > { %5235 = vst [vmem:[%s7164_s30 + $0x14c] sm:$0xf] %v5234_v27  ;;  %v5238_v29 = vld [vmem:[%s7159_s29 + $0x2d4] sm:$0xf]  ;;  %v5240_v30 = vld [vmem:[%s7159_s29 + $0x2f0] sm:$0xf] }
  0x64   : > { %5237 = vst [vmem:[%s7164_s30 + $0x168] sm:$0xf] %v5236_v28  ;;  %5239 = vst [vmem:[%s7164_s30 + $0x184] sm:$0xf] %v5238_v29  ;;  %v5242_v31 = vld [vmem:[%s7159_s29 + $0x30c] sm:$0xf] }
  0x65   : > { %5241 = vst [vmem:[%s7164_s30 + $0x1a0] sm:$0xf] %v5240_v30  ;;  %v5244_v32 = vld [vmem:[%s7159_s29 + $0x328] sm:$0xf]  ;;  %v5246_v33 = vld [vmem:[%s7159_s29 + $0x344] sm:$0xf] }
  0x66   : > { %5243 = vst [vmem:[%s7164_s30 + $0x1bc] sm:$0xf] %v5242_v31  ;;  %5245 = vst [vmem:[%s7164_s30 + $0x1d8] sm:$0xf] %v5244_v32  ;;  %v5248_v34 = vld [vmem:[%s7159_s29 + $0x360] sm:$0xf] }
  0x67   : > { %5247 = vst [vmem:[%s7164_s30 + $0x1f4] sm:$0xf] %v5246_v33  ;;  %v5250_v35 = vld [vmem:[%s7159_s29 + $0x37c] sm:$0xf]  ;;  %v5252_v36 = vld [vmem:[%s7159_s29 + $0x398] sm:$0xf] }
  0x68   : > { %5249 = vst [vmem:[%s7164_s30 + $0x210] sm:$0xf] %v5248_v34  ;;  %5251 = vst [vmem:[%s7164_s30 + $0x22c] sm:$0xf] %v5250_v35  ;;  %v5254_v37 = vld [vmem:[%s7159_s29 + $0x3b4] sm:$0xf] }
  0x69   : > { %5253 = vst [vmem:[%s7164_s30 + $0x248] sm:$0xf] %v5252_v36  ;;  %v5256_v38 = vld [vmem:[%s7159_s29 + $0x3d0] sm:$0xf]  ;;  %v5258_v39 = vld [vmem:[%s7159_s29 + $0x3ec] sm:$0xf] }
  0x6a   : > { %5255 = vst [vmem:[%s7164_s30 + $0x264] sm:$0xf] %v5254_v37  ;;  %5257 = vst [vmem:[%s7164_s30 + $0x280] sm:$0xf] %v5256_v38  ;;  %v5260_v40 = vld [vmem:[%s7159_s29 + $0x558] sm:$0xf] }
  0x6b   : > { %5259 = vst [vmem:[%s7164_s30 + $0x29c] sm:$0xf] %v5258_v39  ;;  %v5262_v41 = vld [vmem:[%s7159_s29 + $0x574] sm:$0xf]  ;;  %v5264_v42 = vld [vmem:[%s7159_s29 + $0x590] sm:$0xf] }
  0x6c   : > { %5261 = vst [vmem:[%s7164_s30 + $0x2b8] sm:$0xf] %v5260_v40  ;;  %5263 = vst [vmem:[%s7164_s30 + $0x2d4] sm:$0xf] %v5262_v41  ;;  %v5266_v43 = vld [vmem:[%s7159_s29 + $0x5ac] sm:$0xf] }
  0x6d   : > { %5265 = vst [vmem:[%s7164_s30 + $0x2f0] sm:$0xf] %v5264_v42  ;;  %v5268_v44 = vld [vmem:[%s7159_s29 + $0x5c8] sm:$0xf]  ;;  %v5270_v45 = vld [vmem:[%s7159_s29 + $0x5e4] sm:$0xf] }
  0x6e   : > { %5267 = vst [vmem:[%s7164_s30 + $0x30c] sm:$0xf] %v5266_v43  ;;  %5269 = vst [vmem:[%s7164_s30 + $0x328] sm:$0xf] %v5268_v44  ;;  %v5272_v46 = vld [vmem:[%s7159_s29 + $0x600] sm:$0xf] }
  0x6f   : > { %5271 = vst [vmem:[%s7164_s30 + $0x344] sm:$0xf] %v5270_v45  ;;  %v5274_v47 = vld [vmem:[%s7159_s29 + $0x61c] sm:$0xf]  ;;  %v5276_v48 = vld [vmem:[%s7159_s29 + $0x638] sm:$0xf] }
  0x70   : > { %5273 = vst [vmem:[%s7164_s30 + $0x360] sm:$0xf] %v5272_v46  ;;  %5275 = vst [vmem:[%s7164_s30 + $0x37c] sm:$0xf] %v5274_v47  ;;  %v5278_v49 = vld [vmem:[%s7159_s29 + $0x654] sm:$0xf] }
  0x71   : > { %5277 = vst [vmem:[%s7164_s30 + $0x398] sm:$0xf] %v5276_v48  ;;  %v5280_v50 = vld [vmem:[%s7159_s29 + $0x670] sm:$0xf]  ;;  %v5282_v51 = vld [vmem:[%s7159_s29 + $0x68c] sm:$0xf] }
  0x72   : > { %5279 = vst [vmem:[%s7164_s30 + $0x3b4] sm:$0xf] %v5278_v49  ;;  %5281 = vst [vmem:[%s7164_s30 + $0x3d0] sm:$0xf] %v5280_v50  ;;  %v5284_v52 = vld [vmem:[%s7159_s29 + $0x7f8] sm:$0xf] }
  0x73   : > { %5283 = vst [vmem:[%s7164_s30 + $0x3ec] sm:$0xf] %v5282_v51  ;;  %v5286_v53 = vld [vmem:[%s7159_s29 + $0x814] sm:$0xf]  ;;  %v5288_v54 = vld [vmem:[%s7159_s29 + $0x830] sm:$0xf] }
  0x74   : > { %5285 = vst [vmem:[%s7164_s30 + $0x408] sm:$0xf] %v5284_v52  ;;  %5287 = vst [vmem:[%s7164_s30 + $0x424] sm:$0xf] %v5286_v53  ;;  %v5290_v55 = vld [vmem:[%s7159_s29 + $0x84c] sm:$0xf] }
  0x75   : > { %5289 = vst [vmem:[%s7164_s30 + $0x440] sm:$0xf] %v5288_v54  ;;  %v5292_v56 = vld [vmem:[%s7159_s29 + $0x868] sm:$0xf]  ;;  %v5294_v57 = vld [vmem:[%s7159_s29 + $0x884] sm:$0xf] }
  0x76   : > { %5291 = vst [vmem:[%s7164_s30 + $0x45c] sm:$0xf] %v5290_v55  ;;  %5293 = vst [vmem:[%s7164_s30 + $0x478] sm:$0xf] %v5292_v56  ;;  %v5296_v58 = vld [vmem:[%s7159_s29 + $0x8a0] sm:$0xf] }
  0x77   : > { %5295 = vst [vmem:[%s7164_s30 + $0x494] sm:$0xf] %v5294_v57  ;;  %v5298_v59 = vld [vmem:[%s7159_s29 + $0x8bc] sm:$0xf]  ;;  %v5300_v60 = vld [vmem:[%s7159_s29 + $0x8d8] sm:$0xf] }
  0x78   : > { %5297 = vst [vmem:[%s7164_s30 + $0x4b0] sm:$0xf] %v5296_v58  ;;  %5299 = vst [vmem:[%s7164_s30 + $0x4cc] sm:$0xf] %v5298_v59  ;;  %v5302_v61 = vld [vmem:[%s7159_s29 + $0x8f4] sm:$0xf] }
  0x79   : > { %5301 = vst [vmem:[%s7164_s30 + $0x4e8] sm:$0xf] %v5300_v60  ;;  %v5304_v62 = vld [vmem:[%s7159_s29 + $0x910] sm:$0xf]  ;;  %v5306_v63 = vld [vmem:[%s7159_s29 + $0x92c] sm:$0xf] }
  0x7a   : > { %5303 = vst [vmem:[%s7164_s30 + $0x504] sm:$0xf] %v5302_v61  ;;  %5305 = vst [vmem:[%s7164_s30 + $0x520] sm:$0xf] %v5304_v62 }
  0x7b   : > { %5307 = vst [vmem:[%s7164_s30 + $0x53c] sm:$0xf] %v5306_v63 }
  0x7c PF: > { %p5308_p6 = scmp.ge.s32.totalorder %s7088_s19, 1  ;;  %p600_p7 = scmp.lt.s32.totalorder %s7088_s19, 3 }
  0x7e   : > { %p601_p8 = pnand %p5308_p6, %p600_p7 }
  0x7f   : > { %v6615_v0 = vld [vmem:[%s8894_s1 + $0x40] sm:$0xff] (!%p601_p8)   ;;  %v6619_v4 = vld [vmem:[%s8894_s1 + $0x48] sm:$0xff] (!%p601_p8)   ;;  %v6623_v8 = vld [vmem:[%s8894_s1 + $0x50] sm:$0xff] (!%p601_p8)   ;;  %s607_s13 = sand.u32 (!%p601_p8), 1, %s7072_s15   ;;  %vm656_vm0 = vcmask (!%p601_p8), 261120   ;;  %s645_s10 = smul.u32 (!%p601_p8), 12, %s7080_s17 }
  0x80   : > { %604 = sbr.rel (%p601_p8) target bundleno = 746 (0x2ea), region = 58  ;;  %v6616_v1 = vld [vmem:[%s8894_s1 + $0xc0] sm:$0xff] (!%p601_p8)   ;;  %5850 = vmatprep.subr.bf16.mxu0 (!%p601_p8), %v6615_v0  ;;  %v6620_v5 = vld [vmem:[%s8894_s1 + $0xc8] sm:$0xff] (!%p601_p8)   ;;  %v6624_v9 = vld [vmem:[%s8894_s1 + $0xd0] sm:$0xff] (!%p601_p8)  }
  0x81   : > { %v6617_v2 = vld [vmem:[%s8894_s1] sm:$0xff] (!%p601_p8)   ;;  %5902 = vmatprep.subr.bf16.mxu1 (!%p601_p8), %v6616_v1  ;;  %v6621_v6 = vld [vmem:[%s8894_s1 + $0x8] sm:$0xff] (!%p601_p8)   ;;  %v6625_v10 = vld [vmem:[%s8894_s1 + $0x10] sm:$0xff] (!%p601_p8)   ;;  %s6572_s27 = smul.u32 (!%p601_p8), 1344, %s607_s13  ;;  %p8714_p9 = scmp.lt.s32.totalorder (!%p601_p8), %s645_s10, 23 }
  0x82   : > { %v6618_v3 = vld [vmem:[%s8894_s1 + $0x80] sm:$0xff] (!%p601_p8)   ;;  %5851 = vmatpush3.bf16.msra.mxu0 (!%p601_p8), %v6617_v2  ;;  %v6622_v7 = vld [vmem:[%s8894_s1 + $0x88] sm:$0xff] (!%p601_p8)   ;;  %v6626_v11 = vld [vmem:[%s8894_s1 + $0x90] sm:$0xff] (!%p601_p8)  }
  0x83   : > { %5903 = vmatpush3.bf16.msra.mxu1 (!%p601_p8), %v6618_v3  ;;  %5852 = vmatprep.subr.bf16.mxu0 (!%p601_p8), %v6619_v4  ;;  %v6627_v12 = vld [vmem:[%s8894_s1 + $0x58] sm:$0xff] (!%p601_p8)   ;;  %v6631_v16 = vld [vmem:[%s8894_s1 + $0x60] sm:$0xff] (!%p601_p8)   ;;  %v6635_v20 = vld [vmem:[%s8894_s1 + $0x68] sm:$0xff] (!%p601_p8)   ;;  %s7646_s13 = scalar_lea.vmem (!%p601_p8), [#allocation3], %s6572_s27 }
  0x84   : > { %5904 = vmatprep.subr.bf16.mxu1 (!%p601_p8), %v6620_v5  ;;  %v6628_v13 = vld [vmem:[%s8894_s1 + $0xd8] sm:$0xff] (!%p601_p8)   ;;  %v6632_v17 = vld [vmem:[%s8894_s1 + $0xe0] sm:$0xff] (!%p601_p8)   ;;  %v6636_v21 = vld [vmem:[%s8894_s1 + $0xe8] sm:$0xff] (!%p601_p8)  }
  0x85   : > { %v6629_v14 = vld [vmem:[%s8894_s1 + $0x18] sm:$0xff] (!%p601_p8)   ;;  %v6633_v18 = vld [vmem:[%s8894_s1 + $0x20] sm:$0xff] (!%p601_p8)   ;;  %v6637_v22 = vld [vmem:[%s8894_s1 + $0x28] sm:$0xff] (!%p601_p8)  }
  0x86   : > { %5853 = vmatpush3.bf16.msra.mxu0 (!%p601_p8), %v6621_v6  ;;  %v6630_v15 = vld [vmem:[%s8894_s1 + $0x98] sm:$0xff] (!%p601_p8)   ;;  %v6634_v19 = vld [vmem:[%s8894_s1 + $0xa0] sm:$0xff] (!%p601_p8)   ;;  %v6638_v23 = vld [vmem:[%s8894_s1 + $0xa8] sm:$0xff] (!%p601_p8)  }
  0x87   : > { %5905 = vmatpush3.bf16.msra.mxu1 %v6622_v7  ;;  %5854 = vmatprep.subr.bf16.mxu0 %v6623_v8  ;;  %v6639_v24 = vld [vmem:[%s8894_s1 + $0x70] sm:$0xff]   ;;  %v6643_v28 = vld [vmem:[%s8894_s1 + $0x78] sm:$0xff]   ;;  %v6649_v33 = vld [vmem:[%s7646_s13 + $0x4] ss:$28 sps:$4 sm:$0xff]   ;;  %s8906_s10 = smov (!%p8714_p9, %s645_s10), 23 }
  0x88   : > { %5906 = vmatprep.subr.bf16.mxu1 %v6624_v9  ;;  %v6640_v25 = vld [vmem:[%s8894_s1 + $0xf0] sm:$0xff]   ;;  %v6644_v29 = vld [vmem:[%s8894_s1 + $0xf8] sm:$0xff]   ;;  %v6650_v34 = vld [vmem:[%s7646_s13 + $0x8] ss:$28 sps:$4 sm:$0xff]   ;;  %1426 = vmatprep.mubr.bf16.mxu0 %v6649_v33  ;;  %s5309_s17 = sshll.u32 %s8906_s10, 3 }
  0x89   : > { %v6641_v26 = vld [vmem:[%s8894_s1 + $0x30] sm:$0xff]   ;;  %v6645_v30 = vld [vmem:[%s8894_s1 + $0x38] sm:$0xff]   ;;  %v6652_v35 = vld [vmem:[%s7646_s13 + $0xc] ss:$28 sps:$4 sm:$0xff]   ;;  %s8780_s21 = scalar_lea.vmem %s8897_s4, %s5309_s17 }
  0x8a   : > { %5855 = vmatpush3.bf16.msra.mxu0 %v6625_v10  ;;  %v6642_v27 = vld [vmem:[%s8894_s1 + $0xb0] sm:$0xff]   ;;  %v6646_v31 = vld [vmem:[%s8894_s1 + $0xb8] sm:$0xff]   ;;  %v6653_v36 = vld [vmem:[%s8894_s1 + $0x180] sm:$0xff]   ;;  %1507 = vmatprep.mubr.bf16.mxu1 %v6652_v35 }
  0x8b   : > { %5907 = vmatpush3.bf16.msra.mxu1 %v6626_v11  ;;  %5856 = vmatprep.subr.bf16.mxu0 %v6627_v12  ;;  %v6647_v32 = vld [vmem:[%s7646_s13] ss:$28 sps:$4 sm:$0xff]   ;;  %v6658_v39 = vld [vmem:[%s7646_s13 + $0x38] ss:$28 sps:$4 sm:$0xff]   ;;  %v6668_v45 = vld [vmem:[%s8894_s1 + $0x148] sm:$0xff]  }
  0x8c   : > { %5908 = vmatprep.subr.bf16.mxu1 %v6628_v13  ;;  %v6654_v37 = vld [vmem:[%s7646_s13 + $0x3c] ss:$28 sps:$4 sm:$0xff]   ;;  %v6656_v38 = vld [vmem:[%s7646_s13 + $0x44] ss:$28 sps:$4 sm:$0xff]   ;;  %v6662_v43 = vld [vmem:[%s7646_s13 + $0x74] ss:$28 sps:$4 sm:$0xff]  }
  0x8d   : > { %v6659_v40 = vld [vmem:[%s7646_s13 + $0x40] ss:$28 sps:$4 sm:$0xff]   ;;  %v6669_v46 = vld [vmem:[%s8894_s1 + $0x108] sm:$0xff]   ;;  %v6667_v48 = vld [vmem:[%s7646_s13 + $0x78] ss:$28 sps:$4 sm:$0xff]  }
  0x8e   : > { %5857 = vmatpush3.bf16.msra.mxu0 %v6629_v14  ;;  %v6660_v41 = vld [vmem:[%s8894_s1 + $0x140] sm:$0xff]   ;;  %v6664_v44 = vld [vmem:[%s7646_s13 + $0x7c] ss:$28 sps:$4 sm:$0xff]   ;;  %v6666_v47 = vld [vmem:[%s7646_s13 + $0x70] ss:$28 sps:$4 sm:$0xff]  }
  0x8f   : > { %5909 = vmatpush3.bf16.msra.mxu1 %v6630_v15  ;;  %5858 = vmatprep.subr.bf16.mxu0 %v6631_v16  ;;  %v6661_v42 = vld [vmem:[%s8894_s1 + $0x100] sm:$0xff]   ;;  %v6674_v49 = vld [vmem:[%s8894_s1 + $0x150] sm:$0xff]   ;;  %v6670_v50 = vld [vmem:[%s7646_s13 + $0xac] ss:$28 sps:$4 sm:$0xff]  }
  0x90   : > { %5910 = vmatprep.subr.bf16.mxu1 %v6632_v17  ;;  %v6672_v51 = vld [vmem:[%s7646_s13 + $0xb4] ss:$28 sps:$4 sm:$0xff]   ;;  %v6678_v53 = vld [vmem:[%s8894_s1 + $0x188] sm:$0xff]   ;;  %v6679_v54 = vld [vmem:[%s8894_s1 + $0x158] sm:$0xff]  }
  0x91   : > { %v6677_v52 = vld [vmem:[%s8894_s1 + $0x110] sm:$0xff]   ;;  %v6680_v55 = vld [vmem:[%s8894_s1 + $0x118] sm:$0xff]   ;;  %v6675_v56 = vld [vmem:[%s7646_s13 + $0xa8] ss:$28 sps:$4 sm:$0xff]  }
  0x92   : > { %5859 = vmatpush3.bf16.msra.mxu0 %v6633_v18  ;;  %v6676_v57 = vld [vmem:[%s7646_s13 + $0xb0] ss:$28 sps:$4 sm:$0xff]   ;;  %v6681_v58 = vld [vmem:[%s7646_s13 + $0xe4] ss:$28 sps:$4 sm:$0xff]   ;;  %v6691_v3 = vld [vmem:[%s7646_s13 + $0x11c] ss:$28 sps:$4 sm:$0xff]  }
  0x93   : > { %5911 = vmatpush3.bf16.msra.mxu1 %v6634_v19  ;;  %5860 = vmatprep.subr.bf16.mxu0 %v6635_v20  ;;  %v6687_v59 = vld [vmem:[%s8894_s1 + $0x160] sm:$0xff]   ;;  %v6683_v60 = vld [vmem:[%s7646_s13 + $0xec] ss:$28 sps:$4 sm:$0xff]   ;;  %v6697_v2 = vld [vmem:[%s8894_s1 + $0x170] sm:$0xff]  }
  0x94   : > { %5912 = vmatprep.subr.bf16.mxu1 %v6636_v21  ;;  %v6688_v61 = vld [vmem:[%s8894_s1 + $0x120] sm:$0xff]   ;;  %v6689_v62 = vld [vmem:[%s8894_s1 + $0x168] sm:$0xff]   ;;  %v6698_v5 = vld [vmem:[%s8894_s1 + $0x130] sm:$0xff]  }
  0x95   : > { %v6685_v63 = vld [vmem:[%s7646_s13 + $0xe0] ss:$28 sps:$4 sm:$0xff]   ;;  %v6690_v0 = vld [vmem:[%s8894_s1 + $0x128] sm:$0xff]   ;;  %v6695_v9 = vld [vmem:[%s7646_s13 + $0x118] ss:$28 sps:$4 sm:$0xff]  }
  0x96   : > { %5861 = vmatpush3.bf16.msra.mxu0 %v6637_v22  ;;  %v6686_v1 = vld [vmem:[%s7646_s13 + $0xe8] ss:$28 sps:$4 sm:$0xff]   ;;  %v6699_v6 = vld [vmem:[%s8894_s1 + $0x178] sm:$0xff]   ;;  %v6703_v11 = vld [vmem:[%s7646_s13 + $0x14] ss:$28 sps:$4 sm:$0xff]  }
  0x97   : > { %5913 = vmatpush3.bf16.msra.mxu1 %v6638_v23  ;;  %5862 = vmatprep.subr.bf16.mxu0 %v6639_v24  ;;  %v6693_v4 = vld [vmem:[%s7646_s13 + $0x124] ss:$28 sps:$4 sm:$0xff]   ;;  %v6700_v8 = vld [vmem:[%s8894_s1 + $0x138] sm:$0xff]   ;;  %v6701_v13 = vld [vmem:[%s7646_s13 + $0x10] ss:$28 sps:$4 sm:$0xff]  }
  0x98   : > { %5914 = vmatprep.subr.bf16.mxu1 %v6640_v25  ;;  %v6705_v7 = vld [vmem:[%s8894_s1 + $0x40] sm:$0xff]   ;;  %v6704_v12 = vld [vmem:[%s7646_s13 + $0x18] ss:$28 sps:$4 sm:$0xff]   ;;  %v6706_v14 = vld [vmem:[%s7646_s13 + $0x50] ss:$28 sps:$4 sm:$0xff]  }
  0x99   : > { %v6696_v10 = vld [vmem:[%s7646_s13 + $0x120] ss:$28 sps:$4 sm:$0xff]   ;;  %v6708_v17 = vld [vmem:[%s8894_s1 + $0x48] sm:$0xff]   ;;  %v6712_v22 = vld [vmem:[%s8894_s1 + $0x50] sm:$0xff]  }
  0x9a   : > { %5863 = vmatpush3.bf16.msra.mxu0 %v6641_v26  ;;  %v6717_v15 = vld [vmem:[%s8894_s1 + $0xc0] sm:$0xff]   ;;  %v6710_v18 = vld [vmem:[%s7646_s13 + $0x4c] ss:$28 sps:$4 sm:$0xff]   ;;  %v6714_v26 = vld [vmem:[%s8894_s1 + $0x10] sm:$0xff]  }
  0x9b   : > { %5915 = vmatpush3.bf16.msra.mxu1 %v6642_v27  ;;  %5864 = vmatprep.subr.bf16.mxu0 %v6643_v28  ;;  %v6707_v16 = vld [vmem:[%s8894_s1] sm:$0xff]   ;;  %v6709_v21 = vld [vmem:[%s8894_s1 + $0x8] sm:$0xff]  }
  0x9c   : > { %5916 = vmatprep.subr.bf16.mxu1 %v6644_v29  ;;  %v6715_v19 = vld [vmem:[%s7646_s13 + $0x88] ss:$28 sps:$4 sm:$0xff]   ;;  %v6718_v27 = vld [vmem:[%s7646_s13 + $0xc0] ss:$28 sps:$4 sm:$0xff]   ;;  %v6728_v29 = vld [vmem:[%s7646_s13 + $0xf8] ss:$28 sps:$4 sm:$0xff]  }
  0x9d   : > { %v6720_v20 = vld [vmem:[%s8894_s1 + $0x80] sm:$0xff]   ;;  %v6726_v24 = vld [vmem:[%s8894_s1 + $0xc8] sm:$0xff]  }
  0x9e   : > { %5865 = vmatpush3.bf16.msra.mxu0 %v6645_v30  ;;  %v6713_v23 = vld [vmem:[%s7646_s13 + $0x48] ss:$28 sps:$4 sm:$0xff]   ;;  %v6716_v30 = vld [vmem:[%s8894_s1 + $0x58] sm:$0xff]   ;;  %v6730_v35 = vld [vmem:[%s7646_s13 + $0x130] ss:$28 sps:$4 sm:$0xff]  }
  0x9f   : > { %5917 = vmatpush3.bf16.msra.mxu1 %v6646_v31  ;;  %5954 = vmatprep.subr.bf16.mxu0 %v6660_v41  ;;  %v6727_v25 = vld [vmem:[%s8894_s1 + $0x88] sm:$0xff]   ;;  %v6721_v28 = vld [vmem:[%s7646_s13 + $0x84] ss:$28 sps:$4 sm:$0xff]   ;;  %v6719_v31 = vld [vmem:[%s8894_s1 + $0x18] sm:$0xff]  }
  0xa0   : > { %6506 = vmatprep.subr.bf16.mxu1 %v6653_v36  ;;  %v6724_v33 = vld [vmem:[%s7646_s13 + $0x80] ss:$28 sps:$4 sm:$0xff]  }
  0xa1   : > { %1427 = vmatmul.mubr.bf16.vlgmr.msra.gmra.mrb[0].mxu0 %v6647_v32  ;;  %v6723_v32 = vld [vmem:[%s8894_s1 + $0x60] sm:$0xff]   ;;  %v6741_v41 = vld [vmem:[%s8894_s1 + $0xd8] sm:$0xff]  }
  0xa2   : > { %1508 = vmatmul.mubr.bf16.vlgmr.msra.gmra.mrb[0].mxu1 %v6650_v34  ;;  %1434 = vmatprep.mubr.bf16.mxu0 %v6654_v37  ;;  %v6735_v34 = vld [vmem:[%s8894_s1 + $0xd0] sm:$0xff]  }
  0xa3   : > { %6507 = vmatpush3.bf16.msra.mxu1 %v6653_v36  ;;  %1515 = vmatprep.mubr.bf16.mxu1 %v6656_v38  ;;  %v6732_v36 = vld [vmem:[%s7646_s13 + $0xbc] ss:$28 sps:$4 sm:$0xff]   ;;  %v6738_v37 = vld [vmem:[%s8894_s1 + $0x90] sm:$0xff]   ;;  %v6725_v38 = vld [vmem:[%s8894_s1 + $0x20] sm:$0xff]  }
  0xa4   : > { %5955 = vmatpush3.bf16.msra.mxu0 %v6661_v42  ;;  %6508 = vmatprep.subr.bf16.mxu1 %v6678_v53  ;;  %v6742_v42 = vld [vmem:[%s8894_s1 + $0x98] sm:$0xff]  }
  0xa5   : > { %5956 = vmatprep.subr.bf16.mxu0 %v6668_v45  ;;  %v6736_v45 = vld [vmem:[%s7646_s13 + $0xb8] ss:$28 sps:$4 sm:$0xff]  }
  0xa7   : > { %6509 = vmatpush3.bf16.msra.mxu1 %v6678_v53  ;;  %v6754_v53 = vld [vmem:[%s8894_s1 + $0xa8] sm:$0xff]  }
  0xa8   : > { %5957 = vmatpush3.bf16.msra.mxu0 %v6669_v46  ;;  %6014 = vmatprep.subr.bf16.mxu1 %v6705_v7  ;;  %v6737_v46 = vld [vmem:[%s8894_s1 + $0x30] sm:$0xff]   ;;  %v6774_v7 = vld [vmem:[%s7646_s13 + $0x15c] ss:$28 sps:$4 sm:$0xff]  }
  0xa9   : > { %1435 = vmatmul.mubr.bf16.gmra.mrb[4].mxu0 %v6658_v39  ;;  %5958 = vmatprep.subr.bf16.mxu0 %v6674_v49  ;;  %v6729_v39 = vld [vmem:[%s8894_s1 + $0x68] sm:$0xff]   ;;  %v6739_v49 = vld [vmem:[%s8894_s1 + $0x78] sm:$0xff]  }
  0xaa   : > { %1516 = vmatmul.mubr.bf16.gmra.mrb[4].mxu1 %v6659_v40  ;;  %1442 = vmatprep.mubr.bf16.mxu0 %v6662_v43  ;;  %v6731_v40 = vld [vmem:[%s8894_s1 + $0x28] sm:$0xff]   ;;  %v6734_v43 = vld [vmem:[%s8894_s1 + $0x70] sm:$0xff]  }
  0xab   : > { %1523 = vmatprep.mubr.bf16.mxu1 %v6664_v44  ;;  %v6745_v44 = vld [vmem:[%s7646_s13 + $0x154] ss:$28 sps:$4 sm:$0xff]  }
  0xac   : > { %5959 = vmatpush3.bf16.msra.mxu0 %v6677_v52  ;;  %v6753_v52 = vld [vmem:[%s8894_s1 + $0xe8] sm:$0xff]  }
  0xad   : > { %5960 = vmatprep.subr.bf16.mxu0 %v6679_v54  ;;  %v6748_v54 = vld [vmem:[%s8894_s1 + $0x140] sm:$0xff]  }
  0xb0   : > { %5961 = vmatpush3.bf16.msra.mxu0 %v6680_v55  ;;  %v6743_v55 = vld [vmem:[%s7646_s13 + $0x150] ss:$28 sps:$4 sm:$0xff]  }
  0xb1   : > { %1443 = vmatmul.mubr.bf16.gmra.mrb[8].mxu0 %v6666_v47  ;;  %5962 = vmatprep.subr.bf16.mxu0 %v6687_v59  ;;  %v6746_v47 = vld [vmem:[%s7646_s13 + $0xf4] ss:$28 sps:$4 sm:$0xff]   ;;  %v6755_v59 = vld [vmem:[%s8894_s1 + $0x148] sm:$0xff]  }
  0xb2   : > { %1524 = vmatmul.mubr.bf16.gmra.mrb[8].mxu1 %v6667_v48  ;;  %1450 = vmatprep.mubr.bf16.mxu0 %v6670_v50  ;;  %v6750_v48 = vld [vmem:[%s8894_s1 + $0xe0] sm:$0xff]  }
  0xb3   : > { %1531 = vmatprep.mubr.bf16.mxu1 %v6672_v51  ;;  %v6752_v50 = vld [vmem:[%s8894_s1 + $0xa0] sm:$0xff]   ;;  %v6740_v51 = vld [vmem:[%s8894_s1 + $0x38] sm:$0xff]  }
  0xb4   : > { %5963 = vmatpush3.bf16.msra.mxu0 %v6688_v61  ;;  %v6763_v61 = vld [vmem:[%s8894_s1 + $0xf0] sm:$0xff]  }
  0xb5   : > { %5964 = vmatprep.subr.bf16.mxu0 %v6689_v62  ;;  %v6764_v62 = vld [vmem:[%s8894_s1 + $0xb0] sm:$0xff]  }
  0xb8   : > { %5965 = vmatpush3.bf16.msra.mxu0 %v6690_v0  ;;  %v6766_v0 = vld [vmem:[%s8894_s1 + $0xf8] sm:$0xff]  }
  0xb9   : > { %1451 = vmatmul.mubr.bf16.gmra.mrb[12].mxu0 %v6675_v56  ;;  %5966 = vmatprep.subr.bf16.mxu0 %v6697_v2  ;;  %v6749_v56 = vld [vmem:[%s7646_s13 + $0xf0] ss:$28 sps:$4 sm:$0xff]  }
  0xba   : > { %1532 = vmatmul.mubr.bf16.gmra.mrb[12].mxu1 %v6676_v57  ;;  %1458 = vmatprep.mubr.bf16.mxu0 %v6681_v58  ;;  %v6751_v57 = vld [vmem:[%s8894_s1 + $0x100] sm:$0xff]   ;;  %v6759_v58 = vld [vmem:[%s7646_s13 + $0x12c] ss:$28 sps:$4 sm:$0xff]   ;;  %v6765_v2 = vld [vmem:[%s8894_s1 + $0x150] sm:$0xff]  }
  0xbb   : > { %1539 = vmatprep.mubr.bf16.mxu1 %v6683_v60  ;;  %v6756_v60 = vld [vmem:[%s7646_s13 + $0x18c] ss:$28 sps:$4 sm:$0xff]  }
  0xbc   : > { %5967 = vmatpush3.bf16.msra.mxu0 %v6698_v5  ;;  %v6768_v5 = vld [vmem:[%s8894_s1 + $0xb8] sm:$0xff]  }
  0xbd   : > { %5968 = vmatprep.subr.bf16.mxu0 %v6699_v6  ;;  %v6769_v6 = vld [vmem:[%s7646_s13 + $0x1c4] ss:$28 sps:$4 sm:$0xff]  }
  0xc0   : > { %5969 = vmatpush3.bf16.msra.mxu0 %v6700_v8  ;;  %v6775_v8 = vld [vmem:[%s8894_s1 + $0x158] sm:$0xff]  }
  0xc1   : > { %1459 = vmatmul.mubr.bf16.gmra.mrb[16].mxu0 %v6685_v63  ;;  %6066 = vmatprep.subr.bf16.mxu0 %v6717_v15  ;;  %v6758_v63 = vld [vmem:[%s8894_s1 + $0x108] sm:$0xff]   ;;  %v6784_v15 = vld [vmem:[%s8894_s1 + $0x120] sm:$0xff]  }
  0xc2   : > { %1540 = vmatmul.mubr.bf16.gmra.mrb[16].mxu1 %v6686_v1  ;;  %1466 = vmatprep.mubr.bf16.mxu0 %v6691_v3  ;;  %v6761_v1 = vld [vmem:[%s7646_s13 + $0x188] ss:$28 sps:$4 sm:$0xff]  }
  0xc3   : > { %1547 = vmatprep.mubr.bf16.mxu1 %v6693_v4  ;;  %v6762_v3 = vld [vmem:[%s7646_s13 + $0x128] ss:$28 sps:$4 sm:$0xff]   ;;  %v6767_v4 = vld [vmem:[%s8894_s1 + $0x110] sm:$0xff]  }
  0xc9   : > { %1467 = vmatmul.mubr.bf16.gmra.mrb[20].mxu0 %v6695_v9  ;;  %v6776_v9 = vld [vmem:[%s8894_s1 + $0x118] sm:$0xff]  }
  0xca   : > { %1548 = vmatmul.mubr.bf16.gmra.mrb[20].mxu1 %v6696_v10  ;;  %1588 = vmatprep.mubr.bf16.mxu0 %v6703_v11  ;;  %v6771_v10 = vld [vmem:[%s7646_s13 + $0x1c0] ss:$28 sps:$4 sm:$0xff]   ;;  %v6772_v11 = vld [vmem:[%s7646_s13 + $0x158] ss:$28 sps:$4 sm:$0xff]  }
  0xcb   : > { %6510 = vmatprep.mubr.msk.bf16.mxu1 %vm656_vm0, %v6704_v12  ;;  %v6777_v12 = vld [vmem:[%s7646_s13 + $0x1fc] ss:$28 sps:$4 sm:$0xff]  }
  0xd1   : > { %1589 = vmatmul.mubr.bf16.vlgmr.msra.gmra.mrb[24].mxu0 %v6701_v13  ;;  %v6780_v13 = vld [vmem:[%s7646_s13 + $0x194] ss:$28 sps:$4 sm:$0xff]  }
  0xd2   : > { %6511 = vmatmul.mubr.msk.bf16.vlgmr.msra.gmra.mrb[24].mxu1 %vm656_vm0, %v6706_v14  ;;  %1596 = vmatprep.mubr.bf16.mxu0 %v6710_v18  ;;  %v6782_v14 = vld [vmem:[%s8894_s1 + $0x160] sm:$0xff]   ;;  %v6789_v18 = vld [vmem:[%s8894_s1 + $0x128] sm:$0xff]  }
  0xd3   : > { %6015 = vmatpush3.bf16.msra.mxu1 %v6707_v16  ;;  %6514 = vmatprep.mubr.msk.bf16.mxu1 %vm656_vm0, %v6715_v19  ;;  %v6785_v16 = vld [vmem:[%s8894_s1 + $0x180] sm:$0xff]   ;;  %v6779_v19 = vld [vmem:[%s7646_s13 + $0x1f8] ss:$28 sps:$4 sm:$0xff]  }
  0xd4   : > { %6016 = vmatprep.subr.bf16.mxu1 %v6708_v17  ;;  %6067 = vmatpush3.bf16.msra.mxu0 %v6720_v20  ;;  %v6786_v17 = vld [vmem:[%s8894_s1 + $0x168] sm:$0xff]  }
  0xd5   : > { %6068 = vmatprep.subr.bf16.mxu0 %v6726_v24  ;;  %v6783_v20 = vld [vmem:[%s7646_s13 + $0x190] ss:$28 sps:$4 sm:$0xff]  }
  0xd6   : > { %v6795_v24 = vld [vmem:[%s8894_s1 + $0x130] sm:$0xff]  }
  0xd7   : > { %6017 = vmatpush3.bf16.msra.mxu1 %v6709_v21  ;;  %v6794_v21 = vld [vmem:[%s8894_s1 + $0x170] sm:$0xff]  }
  0xd8   : > { %6018 = vmatprep.subr.bf16.mxu1 %v6712_v22  ;;  %6069 = vmatpush3.bf16.msra.mxu0 %v6727_v25  ;;  %v6791_v22 = vld [vmem:[%s7646_s13 + $0x1cc] ss:$28 sps:$4 sm:$0xff]   ;;  %v6802_v25 = vld [vmem:[%s8894_s1 + $0x178] sm:$0xff]  }
  0xd9   : > { %1597 = vmatmul.mubr.bf16.gmra.mrb[28].mxu0 %v6713_v23  ;;  %6070 = vmatprep.subr.bf16.mxu0 %v6735_v34  ;;  %v6787_v23 = vld [vmem:[%s7646_s13 + $0x234] ss:$28 sps:$4 sm:$0xff]   ;;  %v6801_v34 = vld [vmem:[%s7646_s13 + $0x200] ss:$28 sps:$4 sm:$0xff]  }
  0xda   : > { %6515 = vmatmul.mubr.msk.bf16.gmra.mrb[28].mxu1 %vm656_vm0, %v6718_v27  ;;  %1604 = vmatprep.mubr.bf16.mxu0 %v6721_v28  ;;  %v6790_v27 = vld [vmem:[%s7646_s13 + $0x230] ss:$28 sps:$4 sm:$0xff]   ;;  %v6793_v28 = vld [vmem:[%s7646_s13 + $0x1c8] ss:$28 sps:$4 sm:$0xff]  }
  0xdb   : > { %6019 = vmatpush3.bf16.msra.mxu1 %v6714_v26  ;;  %6518 = vmatprep.mubr.msk.bf16.mxu1 %vm656_vm0, %v6728_v29  ;;  %v6803_v26 = vld [vmem:[%s8894_s1 + $0x138] sm:$0xff]   ;;  %v6799_v29 = vld [vmem:[%s7646_s13 + $0x204] ss:$28 sps:$4 sm:$0xff]  }
  0xdc   : > { %6020 = vmatprep.subr.bf16.mxu1 %v6716_v30  ;;  %6071 = vmatpush3.bf16.msra.mxu0 %v6738_v37  ;;  %v6809_v30 = vld [vmem:[%s8894_s1 + $0xc0] sm:$0xff]  }
  0xdd   : > { %6072 = vmatprep.subr.bf16.mxu0 %v6741_v41  ;;  %v6827_v37 = vld [vmem:[%s8894_s1 + $0x40] sm:$0xff]   ;;  %v6817_v41 = vld [vmem:[%s7646_s13 + $0x274] ss:$28 sps:$4 sm:$0xff]  }
  0xdf   : > { %6021 = vmatpush3.bf16.msra.mxu1 %v6719_v31  ;;  %v6796_v31 = vld [vmem:[%s7646_s13 + $0x26c] ss:$28 sps:$4 sm:$0xff]  }
  0xe0   : > { %6022 = vmatprep.subr.bf16.mxu1 %v6723_v32  ;;  %6073 = vmatpush3.bf16.msra.mxu0 %v6742_v42  ;;  %v6812_v32 = vld [vmem:[%s8894_s1 + $0x188] sm:$0xff]   ;;  %v6814_v42 = vld [vmem:[%s7646_s13 + $0x19c] ss:$28 sps:$4 sm:$0xff]  }
  0xe1   : > { %1605 = vmatmul.mubr.bf16.gmra.mrb[32].mxu0 %v6724_v33  ;;  %6074 = vmatprep.subr.bf16.mxu0 %v6750_v48  ;;  %v6798_v33 = vld [vmem:[%s7646_s13 + $0x268] ss:$28 sps:$4 sm:$0xff]   ;;  %v6823_v48 = vld [vmem:[%s7646_s13 + $0x1d4] ss:$28 sps:$4 sm:$0xff]  }
  0xe2   : > { %6519 = vmatmul.mubr.msk.bf16.gmra.mrb[32].mxu1 %vm656_vm0, %v6730_v35  ;;  %1612 = vmatprep.mubr.bf16.mxu0 %v6732_v36  ;;  %v6807_v35 = vld [vmem:[%s7646_s13 + $0x23c] ss:$28 sps:$4 sm:$0xff]   ;;  %v6806_v36 = vld [vmem:[%s7646_s13 + $0x164] ss:$28 sps:$4 sm:$0xff]  }
  0xe3   : > { %6023 = vmatpush3.bf16.msra.mxu1 %v6725_v38  ;;  %2464 = vmatprep.mubr.bf16.mxu1 %v6745_v44  ;;  %v6804_v38 = vld [vmem:[%s7646_s13 + $0x160] ss:$28 sps:$4 sm:$0xff]   ;;  %v6816_v44 = vld [vmem:[%s8894_s1 + $0x88] sm:$0xff]  }
  0xe4   : > { %6024 = vmatprep.subr.bf16.mxu1 %v6729_v39  ;;  %6075 = vmatpush3.bf16.msra.mxu0 %v6752_v50  ;;  %v6810_v39 = vld [vmem:[%s7646_s13 + $0x238] ss:$28 sps:$4 sm:$0xff]  }
  0xe5   : > { %6076 = vmatprep.subr.bf16.mxu0 %v6753_v52  ;;  %v6822_v50 = vld [vmem:[%s8894_s1 + $0x90] sm:$0xff]   ;;  %v7090_v52 = vmov 0.0  }
  0xe6   : > { %657 = vst.msk [vmem:[#allocation2] sm:$0xff] %vm656_vm0, %v7090_v52  ;;  %658 = vst.msk [vmem:[#allocation2 + $0x8] sm:$0xff] %vm656_vm0, %v7090_v52 }
  0xe7   : > { %6025 = vmatpush3.bf16.msra.mxu1 %v6731_v40  ;;  %v6811_v40 = vld [vmem:[%s8894_s1 + $0x80] sm:$0xff]   ;;  %659 = vst.msk [vmem:[#allocation2 + $0x10] sm:$0xff] %vm656_vm0, %v7090_v52  ;;  %660 = vst.msk [vmem:[#allocation2 + $0x18] sm:$0xff] %vm656_vm0, %v7090_v52 }
  0xe8   : > { %6026 = vmatprep.subr.bf16.mxu1 %v6734_v43  ;;  %6077 = vmatpush3.bf16.msra.mxu0 %v6754_v53  ;;  %v6813_v43 = vld [vmem:[%s8894_s1 + $0xc8] sm:$0xff]   ;;  %661 = vst.msk [vmem:[#allocation2 + $0x20] sm:$0xff] %vm656_vm0, %v7090_v52  ;;  %662 = vst.msk [vmem:[#allocation2 + $0x28] sm:$0xff] %vm656_vm0, %v7090_v52  ;;  %v6828_v53 = vld [vmem:[%s7646_s13 + $0x1a0] ss:$28 sps:$4 sm:$0xff]  }
  0xe9   : > { %1613 = vmatmul.mubr.bf16.gmra.mrb[36].mxu0 %v6736_v45  ;;  %6078 = vmatprep.subr.bf16.mxu0 %v6763_v61  ;;  %v6820_v45 = vld [vmem:[%s7646_s13 + $0x270] ss:$28 sps:$4 sm:$0xff]   ;;  %663 = vst.msk [vmem:[#allocation2 + $0x30] sm:$0xff] %vm656_vm0, %v7090_v52  ;;  %664 = vst.msk [vmem:[#allocation2 + $0x38] sm:$0xff] %vm656_vm0, %v7090_v52 }
  0xea   : > { %1620 = vmatprep.mubr.bf16.mxu0 %v6746_v47  ;;  %v6821_v47 = vld [vmem:[%s8894_s1 + $0xd0] sm:$0xff]   ;;  %665 = vst.msk [vmem:[#allocation2 + $0x40] sm:$0xff] %vm656_vm0, %v7090_v52  ;;  %666 = vst.msk [vmem:[#allocation2 + $0x48] sm:$0xff] %vm656_vm0, %v7090_v52  ;;  %v6833_v61 = vld [vmem:[%s8894_s1 + $0x8] sm:$0xff]  }
  0xeb   : > { %6027 = vmatpush3.bf16.msra.mxu1 %v6737_v46  ;;  %v6819_v46 = vld [vmem:[%s7646_s13 + $0x198] ss:$28 sps:$4 sm:$0xff]   ;;  %667 = vst.msk [vmem:[#allocation2 + $0x50] sm:$0xff] %vm656_vm0, %v7090_v52  ;;  %668 = vst.msk [vmem:[#allocation2 + $0x58] sm:$0xff] %vm656_vm0, %v7090_v52 }
  0xec   : > { %6028 = vmatprep.subr.bf16.mxu1 %v6739_v49  ;;  %6079 = vmatpush3.bf16.msra.mxu0 %v6764_v62  ;;  %v6826_v49 = vld [vmem:[%s7646_s13 + $0x168] ss:$28 sps:$4 sm:$0xff]   ;;  %669 = vst.msk [vmem:[#allocation2 + $0x60] sm:$0xff] %vm656_vm0, %v7090_v52  ;;  %670 = vst.msk [vmem:[#allocation2 + $0x68] sm:$0xff] %vm656_vm0, %v7090_v52 }
  0xed   : > { %6080 = vmatprep.subr.bf16.mxu0 %v6766_v0  ;;  %671 = vst.msk [vmem:[#allocation2 + $0x70] sm:$0xff] %vm656_vm0, %v7090_v52  ;;  %672 = vst.msk [vmem:[#allocation2 + $0x78] sm:$0xff] %vm656_vm0, %v7090_v52  ;;  %v6842_v62 = vld [vmem:[%s8894_s1 + $0xa0] sm:$0xff]   ;;  %v6838_v0 = vld [vmem:[%s8894_s1 + $0x50] sm:$0xff]  }
  0xee   : > { %673 = vst.msk [vmem:[#allocation2 + $0x80] sm:$0xff] %vm656_vm0, %v7090_v52  ;;  %674 = vst.msk [vmem:[#allocation2 + $0x88] sm:$0xff] %vm656_vm0, %v7090_v52 }
  0xef   : > { %6029 = vmatpush3.bf16.msra.mxu1 %v6740_v51  ;;  %v6830_v51 = vld [vmem:[%s8894_s1 + $0xd8] sm:$0xff]   ;;  %675 = vst.msk [vmem:[#allocation2 + $0x90] sm:$0xff] %vm656_vm0, %v7090_v52  ;;  %676 = vst.msk [vmem:[#allocation2 + $0x98] sm:$0xff] %vm656_vm0, %v7090_v52 }
  0xf0   : > { %6118 = vmatprep.subr.bf16.mxu1 %v6748_v54  ;;  %6081 = vmatpush3.bf16.msra.mxu0 %v6768_v5  ;;  %677 = vst.msk [vmem:[#allocation2 + $0xa0] sm:$0xff] %vm656_vm0, %v7090_v52  ;;  %678 = vst.msk [vmem:[#allocation2 + $0xa8] sm:$0xff] %vm656_vm0, %v7090_v52  ;;  %v6831_v54 = vld [vmem:[%s8894_s1 + $0x98] sm:$0xff]   ;;  %v6855_v5 = vld [vmem:[%s8894_s1 + $0xf0] sm:$0xff]  }
  0xf1   : > { %1621 = vmatmul.mubr.bf16.gmra.mrb[40].mxu0 %v6749_v56  ;;  %6522 = vmatprep.subr.bf16.mxu0 %v6785_v16  ;;  %679 = vst.msk [vmem:[#allocation2 + $0xb0] sm:$0xff] %vm656_vm0, %v7090_v52  ;;  %680 = vst.msk [vmem:[#allocation2 + $0xb8] sm:$0xff] %vm656_vm0, %v7090_v52  ;;  %v6839_v56 = vld [vmem:[%s8894_s1 + $0xe0] sm:$0xff]  }
  0xf2   : > { %2465 = vmatmul.mubr.bf16.vlgmr.msra.gmra.mrb[36].mxu1 %v6743_v55  ;;  %1628 = vmatprep.mubr.bf16.mxu0 %v6759_v58  ;;  %681 = vst.msk [vmem:[#allocation2 + $0xc0] sm:$0xff] %vm656_vm0, %v7090_v52  ;;  %682 = vst.msk [vmem:[#allocation2 + $0xc8] sm:$0xff] %vm656_vm0, %v7090_v52  ;;  %v6825_v55 = vld [vmem:[%s7646_s13 + $0x1d0] ss:$28 sps:$4 sm:$0xff]  }
  0xf3   : > { %6119 = vmatpush3.bf16.msra.mxu1 %v6751_v57  ;;  %2472 = vmatprep.mubr.bf16.mxu1 %v6756_v60  ;;  %683 = vst.msk [vmem:[#allocation2 + $0xd0] sm:$0xff] %vm656_vm0, %v7090_v52  ;;  %684 = vst.msk [vmem:[#allocation2 + $0xd8] sm:$0xff] %vm656_vm0, %v7090_v52  ;;  %v6829_v57 = vld [vmem:[%s8894_s1] sm:$0xff]   ;;  %v6832_v58 = vld [vmem:[%s8894_s1 + $0x48] sm:$0xff]  }
  0xf4   : > { %6120 = vmatprep.subr.bf16.mxu1 %v6755_v59  ;;  %685 = vst.msk [vmem:[#allocation2 + $0xe0] sm:$0xff] %vm656_vm0, %v7090_v52  ;;  %686 = vst.msk [vmem:[#allocation2 + $0xe8] sm:$0xff] %vm656_vm0, %v7090_v52  ;;  %v6834_v59 = vld [vmem:[%s7646_s13 + $0x20c] ss:$28 sps:$4 sm:$0xff]   ;;  %v6837_v60 = vld [vmem:[%s7646_s13 + $0x1d8] ss:$28 sps:$4 sm:$0xff]  }
  0xf5   : > { %687 = vst.msk [vmem:[#allocation2 + $0xf0] sm:$0xff] %vm656_vm0, %v7090_v52  ;;  %688 = vst.msk [vmem:[#allocation2 + $0xf8] sm:$0xff] %vm656_vm0, %v7090_v52 }
  0xf6   : > { %689 = vst.msk [vmem:[#allocation2 + $0x100] sm:$0xff] %vm656_vm0, %v7090_v52  ;;  %690 = vst.msk [vmem:[#allocation2 + $0x108] sm:$0xff] %vm656_vm0, %v7090_v52 }
  0xf7   : > { %6121 = vmatpush3.bf16.msra.mxu1 %v6758_v63  ;;  %691 = vst.msk [vmem:[#allocation2 + $0x110] sm:$0xff] %vm656_vm0, %v7090_v52  ;;  %692 = vst.msk [vmem:[#allocation2 + $0x118] sm:$0xff] %vm656_vm0, %v7090_v52  ;;  %v6845_v63 = vld [vmem:[%s8894_s1 + $0xe8] sm:$0xff]  }
  0xf8   : > { %6122 = vmatprep.subr.bf16.mxu1 %v6765_v2  ;;  %693 = vst.msk [vmem:[#allocation2 + $0x120] sm:$0xff] %vm656_vm0, %v7090_v52  ;;  %694 = vst.msk [vmem:[#allocation2 + $0x128] sm:$0xff] %vm656_vm0, %v7090_v52  ;;  %v6836_v2 = vld [vmem:[%s7646_s13 + $0x208] ss:$28 sps:$4 sm:$0xff]  }
  0xf9   : > { %1629 = vmatmul.mubr.bf16.gmra.mrb[44].mxu0 %v6762_v3  ;;  %695 = vst.msk [vmem:[#allocation2 + $0x130] sm:$0xff] %vm656_vm0, %v7090_v52  ;;  %696 = vst.msk [vmem:[#allocation2 + $0x138] sm:$0xff] %vm656_vm0, %v7090_v52  ;;  %v6841_v3 = vld [vmem:[%s8894_s1 + $0x10] sm:$0xff]  }
  0xfa   : > { %2473 = vmatmul.mubr.bf16.gmra.mrb[40].mxu1 %v6761_v1  ;;  %2545 = vmatprep.mubr.bf16.mxu0 %v6774_v7  ;;  %697 = vst.msk [vmem:[#allocation2 + $0x140] sm:$0xff] %vm656_vm0, %v7090_v52  ;;  %698 = vst.msk [vmem:[#allocation2 + $0x148] sm:$0xff] %vm656_vm0, %v7090_v52  ;;  %v6840_v1 = vld [vmem:[%s7646_s13 + $0x210] ss:$28 sps:$4 sm:$0xff]   ;;  %v6846_v7 = vld [vmem:[%s7646_s13 + $0x244] ss:$28 sps:$4 sm:$0xff]  }
  0xfb   : > { %6123 = vmatpush3.bf16.msra.mxu1 %v6767_v4  ;;  %2480 = vmatprep.mubr.bf16.mxu1 %v6769_v6  ;;  %699 = vst.msk [vmem:[#allocation2 + $0x150] sm:$0xff] %vm656_vm0, %v7090_v52  ;;  %700 = vst.msk [vmem:[#allocation2 + $0x158] sm:$0xff] %vm656_vm0, %v7090_v52  ;;  %v6848_v4 = vld [vmem:[%s8894_s1 + $0xa8] sm:$0xff]   ;;  %v6843_v6 = vld [vmem:[%s8894_s1 + $0x58] sm:$0xff]  }
  0xfc   : > { %6124 = vmatprep.subr.bf16.mxu1 %v6775_v8  ;;  %701 = vst.msk [vmem:[#allocation2 + $0x160] sm:$0xff] %vm656_vm0, %v7090_v52  ;;  %702 = vst.msk [vmem:[#allocation2 + $0x168] sm:$0xff] %vm656_vm0, %v7090_v52  ;;  %v6852_v8 = vld [vmem:[%s7646_s13 + $0x248] ss:$28 sps:$4 sm:$0xff]  }
  0xfd   : > { %703 = vst.msk [vmem:[#allocation2 + $0x170] sm:$0xff] %vm656_vm0, %v7090_v52  ;;  %704 = vst.msk [vmem:[#allocation2 + $0x178] sm:$0xff] %vm656_vm0, %v7090_v52  ;;  %v6925_v52 = vld [vmem:[%s8894_s1 + $0x40] sm:$0xff]  }
  0xff   : > { %6125 = vmatpush3.bf16.msra.mxu1 %v6776_v9  ;;  %v6857_v9 = vld [vmem:[%s8894_s1 + $0xb0] sm:$0xff]  }
 0x100   : > { %6126 = vmatprep.subr.bf16.mxu1 %v6782_v14  ;;  %v6851_v14 = vld [vmem:[%s8894_s1 + $0x20] sm:$0xff]  }
 0x101   : > { %2546 = vmatmul.mubr.bf16.vlgmr.msra.gmra.mrb[48].mxu0 %v6772_v11  ;;  %v6844_v11 = vld [vmem:[%s8894_s1 + $0x18] sm:$0xff]  }
 0x102   : > { %2481 = vmatmul.mubr.bf16.gmra.mrb[44].mxu1 %v6771_v10  ;;  %2553 = vmatprep.mubr.bf16.mxu0 %v6780_v13  ;;  %v6863_v10 = vld [vmem:[%s8894_s1 + $0xf8] sm:$0xff]  }
 0x103   : > { %2488 = vmatprep.mubr.bf16.mxu1 %v6777_v12  ;;  %6127 = vmatpush3.bf16.msra.mxu1 %v6784_v15  ;;  %v6850_v12 = vld [vmem:[%s8894_s1 + $0x60] sm:$0xff]   ;;  %v6864_v15 = vld [vmem:[%s8894_s1 + $0xb8] sm:$0xff]  }
 0x104   : > { %6523 = vmatpush3.bf16.msra.mxu0 %v6785_v16  ;;  %6128 = vmatprep.subr.bf16.mxu1 %v6786_v17  ;;  %v6849_v13 = vld [vmem:[%s7646_s13 + $0x240] ss:$28 sps:$4 sm:$0xff]   ;;  %v6854_v17 = vld [vmem:[%s8894_s1 + $0x68] sm:$0xff]  }
 0x105   : > { %6524 = vmatprep.subr.bf16.mxu0 %v6812_v32  ;;  %v6853_v16 = vld [vmem:[%s7646_s13 + $0x280] ss:$28 sps:$4 sm:$0xff]  }
 0x107   : > { %6129 = vmatpush3.bf16.msra.mxu1 %v6789_v18  ;;  %v6858_v18 = vld [vmem:[%s7646_s13 + $0x27c] ss:$28 sps:$4 sm:$0xff]  }
 0x108   : > { %6130 = vmatprep.subr.bf16.mxu1 %v6794_v21  ;;  %6525 = vmatpush3.bf16.msra.mxu0 %v6812_v32  ;;  %v6856_v21 = vld [vmem:[%s8894_s1 + $0x28] sm:$0xff]   ;;  %v6876_v32 = vld [vmem:[%s7646_s13 + $0x2e4] ss:$28 sps:$4 sm:$0xff]  }
 0x109   : > { %2554 = vmatmul.mubr.bf16.gmra.mrb[52].mxu0 %v6783_v20  ;;  %6178 = vmatprep.subr.bf16.mxu0 %v6827_v37  ;;  %v6873_v20 = vld [vmem:[%s8894_s1 + $0x180] sm:$0xff]  }
 0x10a   : > { %2489 = vmatmul.mubr.bf16.gmra.mrb[48].mxu1 %v6779_v19  ;;  %2561 = vmatprep.mubr.bf16.mxu0 %v6791_v22  ;;  %v6869_v19 = vld [vmem:[%s7646_s13 + $0x2a4] ss:$28 sps:$4 sm:$0xff]   ;;  %v6861_v22 = vld [vmem:[%s8894_s1 + $0x70] sm:$0xff]  }
 0x10b   : > { %2496 = vmatprep.mubr.bf16.mxu1 %v6787_v23  ;;  %6131 = vmatpush3.bf16.msra.mxu1 %v6795_v24  ;;  %v6860_v23 = vld [vmem:[%s7646_s13 + $0x278] ss:$28 sps:$4 sm:$0xff]   ;;  %v6879_v37 = vld [vmem:[%s7646_s13 + $0x2e0] ss:$28 sps:$4 sm:$0xff]  }
 0x10c   : > { %6132 = vmatprep.subr.bf16.mxu1 %v6802_v25  ;;  %v6862_v24 = vld [vmem:[%s8894_s1 + $0x30] sm:$0xff]   ;;  %v6865_v25 = vld [vmem:[%s8894_s1 + $0x78] sm:$0xff]  }
 0x10f   : > { %6133 = vmatpush3.bf16.msra.mxu1 %v6803_v26  ;;  %v6872_v26 = vld [vmem:[%s7646_s13 + $0x2ac] ss:$28 sps:$4 sm:$0xff]  }
 0x110   : > { %6230 = vmatprep.subr.bf16.mxu1 %v6809_v30  ;;  %v6870_v30 = vld [vmem:[%s7646_s13 + $0x2a8] ss:$28 sps:$4 sm:$0xff]  }
 0x111   : > { %2562 = vmatmul.mubr.bf16.gmra.mrb[56].mxu0 %v6793_v28  ;;  %v6880_v28 = vld [vmem:[%s8894_s1 + $0x140] sm:$0xff]  }
 0x112   : > { %2497 = vmatmul.mubr.bf16.gmra.mrb[52].mxu1 %v6790_v27  ;;  %2569 = vmatprep.mubr.bf16.mxu0 %v6799_v29  ;;  %v6866_v27 = vld [vmem:[%s8894_s1 + $0x38] sm:$0xff]  }
 0x113   : > { %2504 = vmatprep.mubr.bf16.mxu1 %v6796_v31  ;;  %v6867_v29 = vld [vmem:[%s7646_s13 + $0x2a0] ss:$28 sps:$4 sm:$0xff]  }
 0x114   : > { %v6874_v31 = vld [vmem:[%s7646_s13 + $0x2dc] ss:$28 sps:$4 sm:$0xff]  }
 0x119   : > { %2570 = vmatmul.mubr.bf16.gmra.mrb[60].mxu0 %v6801_v34  ;;  %v6898_v34 = vld [vmem:[%s8894_s1 + $0x188] sm:$0xff]  }
 0x11a   : > { %2505 = vmatmul.mubr.bf16.gmra.mrb[56].mxu1 %v6798_v33  ;;  %2577 = vmatprep.mubr.bf16.mxu0 %v6807_v35  ;;  %v6881_v33 = vld [vmem:[%s8894_s1 + $0x100] sm:$0xff]   ;;  %v6888_v35 = vld [vmem:[%s8894_s1 + $0x148] sm:$0xff]  }
 0x11b   : > { %2626 = vmatprep.mubr.bf16.mxu1 %v6806_v36  ;;  %v6878_v36 = vld [vmem:[%s7646_s13 + $0x2d8] ss:$28 sps:$4 sm:$0xff]  }
 0x121   : > { %2578 = vmatmul.mubr.bf16.gmra.mrb[64].mxu0 %v6810_v39  ;;  %v6894_v39 = vld [vmem:[%s8894_s1 + $0x150] sm:$0xff]  }
 0x122   : > { %2627 = vmatmul.mubr.bf16.vlgmr.msra.gmra.mrb[60].mxu1 %v6804_v38  ;;  %2585 = vmatprep.mubr.bf16.mxu0 %v6817_v41  ;;  %v6889_v38 = vld [vmem:[%s8894_s1 + $0x108] sm:$0xff]   ;;  %v6884_v41 = vld [vmem:[%s7646_s13 + $0x31c] ss:$28 sps:$4 sm:$0xff]  }
 0x123   : > { %6231 = vmatpush3.bf16.msra.mxu1 %v6811_v40  ;;  %2634 = vmatprep.mubr.bf16.mxu1 %v6814_v42  ;;  %v6882_v40 = vld [vmem:[%s7646_s13 + $0x314] ss:$28 sps:$4 sm:$0xff]  }
 0x124   : > { %6232 = vmatprep.subr.bf16.mxu1 %v6813_v43  ;;  %v6897_v42 = vld [vmem:[%s8894_s1 + $0x110] sm:$0xff]   ;;  %v6899_v43 = vld [vmem:[%s8894_s1 + $0x158] sm:$0xff]  }
 0x127   : > { %6233 = vmatpush3.bf16.msra.mxu1 %v6816_v44  ;;  %v6886_v44 = vld [vmem:[%s7646_s13 + $0x310] ss:$28 sps:$4 sm:$0xff]  }
 0x128   : > { %6234 = vmatprep.subr.bf16.mxu1 %v6821_v47  ;;  %v6907_v47 = vld [vmem:[%s8894_s1 + $0x160] sm:$0xff]  }
 0x129   : > { %2586 = vmatmul.mubr.bf16.gmra.mrb[68].mxu0 %v6820_v45  ;;  %v6887_v45 = vld [vmem:[%s7646_s13 + $0x318] ss:$28 sps:$4 sm:$0xff]  }
 0x12a   : > { %2635 = vmatmul.mubr.bf16.gmra.mrb[64].mxu1 %v6819_v46  ;;  %6526 = vmatprep.mubr.msk.bf16.mxu0 %vm656_vm0, %v6826_v49  ;;  %v6900_v46 = vld [vmem:[%s8894_s1 + $0x118] sm:$0xff]   ;;  %v6892_v49 = vld [vmem:[%s7646_s13 + $0x354] ss:$28 sps:$4 sm:$0xff]  }
 0x12b   : > { %6235 = vmatpush3.bf16.msra.mxu1 %v6822_v50  ;;  %2642 = vmatprep.mubr.bf16.mxu1 %v6823_v48  ;;  %v6890_v48 = vld [vmem:[%s7646_s13 + $0x34c] ss:$28 sps:$4 sm:$0xff]   ;;  %v6908_v50 = vld [vmem:[%s8894_s1 + $0x120] sm:$0xff]  }
 0x12c   : > { %6236 = vmatprep.subr.bf16.mxu1 %v6830_v51  ;;  %v6909_v51 = vld [vmem:[%s8894_s1 + $0x168] sm:$0xff]  }
 0x12f   : > { %6237 = vmatpush3.bf16.msra.mxu1 %v6831_v54  ;;  %v6896_v54 = vld [vmem:[%s7646_s13 + $0x350] ss:$28 sps:$4 sm:$0xff]  }
 0x130   : > { %6238 = vmatprep.subr.bf16.mxu1 %v6839_v56  ;;  %v6917_v56 = vld [vmem:[%s8894_s1 + $0x170] sm:$0xff]  }
 0x131   : > { %6527 = vmatmul.mubr.msk.bf16.vlgmr.msra.gmra.mrb[72].mxu0 %vm656_vm0, %v6828_v53  ;;  %v6895_v53 = vld [vmem:[%s7646_s13 + $0x348] ss:$28 sps:$4 sm:$0xff]  }
 0x132   : > { %2643 = vmatmul.mubr.bf16.gmra.mrb[68].mxu1 %v6825_v55  ;;  %6179 = vmatpush3.bf16.msra.mxu0 %v6829_v57  ;;  %v6910_v55 = vld [vmem:[%s8894_s1 + $0x128] sm:$0xff]   ;;  %v6901_v57 = vld [vmem:[%s7646_s13 + $0x384] ss:$28 sps:$4 sm:$0xff]  }
 0x133   : > { %6180 = vmatprep.subr.bf16.mxu0 %v6832_v58  ;;  %2650 = vmatprep.mubr.bf16.mxu1 %v6834_v59  ;;  %v6903_v58 = vld [vmem:[%s7646_s13 + $0x38c] ss:$28 sps:$4 sm:$0xff]   ;;  %v6918_v59 = vld [vmem:[%s8894_s1 + $0x130] sm:$0xff]  }
 0x134   : > { %6530 = vmatprep.mubr.msk.bf16.mxu0 %vm656_vm0, %v6837_v60  ;;  %6239 = vmatpush3.bf16.msra.mxu1 %v6842_v62  ;;  %v6919_v60 = vld [vmem:[%s8894_s1 + $0x178] sm:$0xff]   ;;  %v6906_v62 = vld [vmem:[%s7646_s13 + $0x388] ss:$28 sps:$4 sm:$0xff]  }
 0x135   : > { %6240 = vmatprep.subr.bf16.mxu1 %v6845_v63  ;;  %v6920_v63 = vld [vmem:[%s8894_s1 + $0x138] sm:$0xff]  }
 0x136   : > { %6181 = vmatpush3.bf16.msra.mxu0 %v6833_v61  ;;  %v6905_v61 = vld [vmem:[%s7646_s13 + $0x380] ss:$28 sps:$4 sm:$0xff]  }
 0x137   : > { %6182 = vmatprep.subr.bf16.mxu0 %v6838_v0  ;;  %v6936_v0 = vld [vmem:[%s8894_s1 + $0xc0] sm:$0xff]  }
 0x138   : > { %6241 = vmatpush3.bf16.msra.mxu1 %v6848_v4 }
 0x139   : > { %6531 = vmatmul.mubr.msk.bf16.gmra.mrb[76].mxu0 %vm656_vm0, %v6840_v1  ;;  %6242 = vmatprep.subr.bf16.mxu1 %v6855_v5  ;;  %v6911_v1 = vld [vmem:[%s7646_s13 + $0x3bc] ss:$28 sps:$4 sm:$0xff]  }
 0x13a   : > { %2651 = vmatmul.mubr.bf16.gmra.mrb[72].mxu1 %v6836_v2  ;;  %6183 = vmatpush3.bf16.msra.mxu0 %v6841_v3  ;;  %v6913_v2 = vld [vmem:[%s7646_s13 + $0x3c4] ss:$28 sps:$4 sm:$0xff]   ;;  %v6915_v3 = vld [vmem:[%s7646_s13 + $0x3b8] ss:$28 sps:$4 sm:$0xff]  }
 0x13b   : > { %6184 = vmatprep.subr.bf16.mxu0 %v6843_v6  ;;  %2658 = vmatprep.mubr.bf16.mxu1 %v6846_v7  ;;  %v6916_v5 = vld [vmem:[%s7646_s13 + $0x3c0] ss:$28 sps:$4 sm:$0xff]  }
 0x13c   : > { %6534 = vmatprep.mubr.msk.bf16.mxu0 %vm656_vm0, %v6852_v8  ;;  %6243 = vmatpush3.bf16.msra.mxu1 %v6857_v9 }
 0x13d   : > { %6244 = vmatprep.subr.bf16.mxu1 %v6863_v10 }
 0x13e   : > { %6185 = vmatpush3.bf16.msra.mxu0 %v6844_v11  ;;  %v6923_v11 = vld [vmem:[%s7646_s13 + $0x2b4] ss:$28 sps:$4 sm:$0xff]  }
 0x13f   : > { %6186 = vmatprep.subr.bf16.mxu0 %v6850_v12 }
 0x140   : > { %6245 = vmatpush3.bf16.msra.mxu1 %v6864_v15  ;;  %v6924_v15 = vld [vmem:[%s7646_s13 + $0x2b8] ss:$28 sps:$4 sm:$0xff]  }
 0x141   : > { %6535 = vmatmul.mubr.msk.bf16.gmra.mrb[80].mxu0 %vm656_vm0, %v6853_v16  ;;  %6538 = vmatprep.subr.bf16.mxu1 %v6873_v20 }
 0x142   : > { %2659 = vmatmul.mubr.bf16.gmra.mrb[76].mxu1 %v6849_v13  ;;  %6187 = vmatpush3.bf16.msra.mxu0 %v6851_v14 }
 0x143   : > { %6188 = vmatprep.subr.bf16.mxu0 %v6854_v17  ;;  %2666 = vmatprep.mubr.bf16.mxu1 %v6858_v18 }
 0x144   : > { %3502 = vmatprep.mubr.bf16.mxu0 %v6869_v19 }
 0x146   : > { %6189 = vmatpush3.bf16.msra.mxu0 %v6856_v21  ;;  %v6921_v21 = vld [vmem:[%s7646_s13 + $0x2b0] ss:$28 sps:$4 sm:$0xff]  }
 0x147   : > { %6190 = vmatprep.subr.bf16.mxu0 %v6861_v22 }
 0x14a   : > { %2667 = vmatmul.mubr.bf16.gmra.mrb[80].mxu1 %v6860_v23  ;;  %6191 = vmatpush3.bf16.msra.mxu0 %v6862_v24  ;;  %v6926_v23 = vld [vmem:[%s7646_s13 + $0x2f0] ss:$28 sps:$4 sm:$0xff]  }
 0x14b   : > { %6192 = vmatprep.subr.bf16.mxu0 %v6865_v25  ;;  %3583 = vmatprep.mubr.bf16.mxu1 %v6872_v26  ;;  %v6930_v24 = vld [vmem:[%s7646_s13 + $0x2ec] ss:$28 sps:$4 sm:$0xff]  }
 0x14e   : > { %6193 = vmatpush3.bf16.msra.mxu0 %v6866_v27  ;;  %v6927_v27 = vld [vmem:[%s8894_s1] sm:$0xff]  }
 0x14f   : > { %6282 = vmatprep.subr.bf16.mxu0 %v6880_v28 }
 0x151   : > { %3503 = vmatmul.mubr.bf16.vlgmr.msra.gmra.mrb[84].mxu0 %v6867_v29 }
 0x152   : > { %3584 = vmatmul.mubr.bf16.vlgmr.msra.gmra.mrb[84].mxu1 %v6870_v30  ;;  %3510 = vmatprep.mubr.bf16.mxu0 %v6874_v31  ;;  %v6928_v31 = vld [vmem:[%s8894_s1 + $0x48] sm:$0xff]  }
 0x153   : > { %6539 = vmatpush3.bf16.msra.mxu1 %v6873_v20  ;;  %3591 = vmatprep.mubr.bf16.mxu1 %v6876_v32  ;;  %v6937_v32 = vld [vmem:[%s7646_s13 + $0x328] ss:$28 sps:$4 sm:$0xff]  }
 0x154   : > { %6283 = vmatpush3.bf16.msra.mxu0 %v6881_v33  ;;  %6540 = vmatprep.subr.bf16.mxu1 %v6898_v34 }
 0x155   : > { %6284 = vmatprep.subr.bf16.mxu0 %v6888_v35 }
 0x157   : > { %6541 = vmatpush3.bf16.msra.mxu1 %v6898_v34 }
 0x158   : > { %6285 = vmatpush3.bf16.msra.mxu0 %v6889_v38  ;;  %6342 = vmatprep.subr.bf16.mxu1 %v6925_v52  ;;  %v6939_v38 = vld [vmem:[%s8894_s1 + $0x80] sm:$0xff]   ;;  %v6934_v52 = vld [vmem:[%s8894_s1 + $0x10] sm:$0xff]  }
 0x159   : > { %3511 = vmatmul.mubr.bf16.gmra.mrb[88].mxu0 %v6878_v36  ;;  %6286 = vmatprep.subr.bf16.mxu0 %v6894_v39 }
 0x15a   : > { %3592 = vmatmul.mubr.bf16.gmra.mrb[88].mxu1 %v6879_v37  ;;  %3518 = vmatprep.mubr.bf16.mxu0 %v6882_v40 }
 0x15b   : > { %3599 = vmatprep.mubr.bf16.mxu1 %v6884_v41  ;;  %v6929_v41 = vld [vmem:[%s8894_s1 + $0x8] sm:$0xff]  }
 0x15c   : > { %6287 = vmatpush3.bf16.msra.mxu0 %v6897_v42  ;;  %v6946_v42 = vld [vmem:[%s8894_s1 + $0xc8] sm:$0xff]  }
 0x15d   : > { %6288 = vmatprep.subr.bf16.mxu0 %v6899_v43  ;;  %v6932_v43 = vld [vmem:[%s8894_s1 + $0x50] sm:$0xff]  }
 0x160   : > { %6289 = vmatpush3.bf16.msra.mxu0 %v6900_v46 }
 0x161   : > { %3519 = vmatmul.mubr.bf16.gmra.mrb[92].mxu0 %v6886_v44  ;;  %6290 = vmatprep.subr.bf16.mxu0 %v6907_v47  ;;  %v6940_v47 = vld [vmem:[%s7646_s13 + $0x360] ss:$28 sps:$4 sm:$0xff]  }
 0x162   : > { %3600 = vmatmul.mubr.bf16.gmra.mrb[92].mxu1 %v6887_v45  ;;  %3526 = vmatprep.mubr.bf16.mxu0 %v6890_v48  ;;  %v6933_v45 = vld [vmem:[%s7646_s13 + $0x2e8] ss:$28 sps:$4 sm:$0xff]  }
 0x163   : > { %3607 = vmatprep.mubr.bf16.mxu1 %v6892_v49  ;;  %v6941_v48 = vld [vmem:[%s7646_s13 + $0x324] ss:$28 sps:$4 sm:$0xff]   ;;  %v6947_v49 = vld [vmem:[%s8894_s1 + $0x88] sm:$0xff]  }
 0x164   : > { %6291 = vmatpush3.bf16.msra.mxu0 %v6908_v50 }
 0x165   : > { %6292 = vmatprep.subr.bf16.mxu0 %v6909_v51 }
 0x168   : > { %6293 = vmatpush3.bf16.msra.mxu0 %v6910_v55 }
 0x169   : > { %3527 = vmatmul.mubr.bf16.gmra.mrb[96].mxu0 %v6895_v53  ;;  %6294 = vmatprep.subr.bf16.mxu0 %v6917_v56  ;;  %v6955_v53 = vld [vmem:[%s8894_s1 + $0xd0] sm:$0xff]  }
 0x16a   : > { %3608 = vmatmul.mubr.bf16.gmra.mrb[96].mxu1 %v6896_v54  ;;  %3534 = vmatprep.mubr.bf16.mxu0 %v6901_v57 }
 0x16b   : > { %3615 = vmatprep.mubr.bf16.mxu1 %v6903_v58 }
 0x16c   : > { %6295 = vmatpush3.bf16.msra.mxu0 %v6918_v59 }
 0x16d   : > { %6296 = vmatprep.subr.bf16.mxu0 %v6919_v60  ;;  %v6935_v60 = vld [vmem:[%s8894_s1 + $0x58] sm:$0xff]  }
 0x170   : > { %6297 = vmatpush3.bf16.msra.mxu0 %v6920_v63 }
 0x171   : > { %3535 = vmatmul.mubr.bf16.gmra.mrb[100].mxu0 %v6905_v61  ;;  %6394 = vmatprep.subr.bf16.mxu0 %v6936_v0  ;;  %v6949_v61 = vld [vmem:[%s7646_s13 + $0x398] ss:$28 sps:$4 sm:$0xff]  }
 0x172   : > { %3616 = vmatmul.mubr.bf16.gmra.mrb[100].mxu1 %v6906_v62  ;;  %3542 = vmatprep.mubr.bf16.mxu0 %v6911_v1  ;;  %v6958_v62 = vld [vmem:[%s8894_s1 + $0x90] sm:$0xff]   ;;  %v6961_v1 = vld [vmem:[%s8894_s1 + $0xd8] sm:$0xff]  }
 0x173   : > { %3623 = vmatprep.mubr.bf16.mxu1 %v6913_v2 }
 0x174   : > { %v5866_v4 = vpop.f32.mrb[0].mxu0 }
 0x175   : > { %v5918_v6 = vpop.f32.mrb[0].mxu1  ;;  %v5867_v7 = vpop.f32.mrb[1].mxu0 }
 0x176   : > { %v5868_v8 = vadd.f32 %v5867_v7, %v5866_v4  ;;  %v5919_v9 = vpop.f32.mrb[1].mxu1  ;;  %v5869_v10 = vpop.f32.mrb[2].mxu0  ;;  %v6938_v4 = vld [vmem:[%s8894_s1 + $0x18] sm:$0xff]  }
 0x177   : > { %v5920_v12 = vadd.f32 %v5919_v9, %v5918_v6  ;;  %v5921_v13 = vpop.f32.mrb[2].mxu1  ;;  %v5870_v14 = vpop.f32.mrb[3].mxu0  ;;  %v6943_v6 = vld [vmem:[%s8894_s1 + $0x60] sm:$0xff]   ;;  %v6951_v9 = vld [vmem:[%s7646_s13 + $0x3d0] ss:$28 sps:$4 sm:$0xff]  }
 0x178   : > { %v5871_v16 = vadd.f32 %v5870_v14, %v5869_v10  ;;  %v5922_v17 = vpop.f32.mrb[3].mxu1  ;;  %v6944_v7 = vld [vmem:[%s7646_s13 + $0x320] ss:$28 sps:$4 sm:$0xff]  }
 0x179   : > { %v8178_v18 = vadd.f32 %v5920_v12, %v5868_v8  ;;  %v5923_v19 = vadd.f32 %v5922_v17, %v5921_v13  ;;  %3543 = vmatmul.mubr.bf16.gmra.mrb[104].mxu0 %v6915_v3  ;;  %v6952_v10 = vld [vmem:[%s7646_s13 + $0x35c] ss:$28 sps:$4 sm:$0xff]   ;;  %v6970_v12 = vld [vmem:[%s8894_s1 + $0xe0] sm:$0xff]  }
 0x17a   : > { %3624 = vmatmul.mubr.bf16.gmra.mrb[104].mxu1 %v6916_v5  ;;  %3664 = vmatprep.mubr.bf16.mxu0 %v6923_v11  ;;  %v6962_v11 = vld [vmem:[%s8894_s1 + $0x98] sm:$0xff]  }
 0x17b   : > { %v8180_v20 = vadd.f32 %v5923_v19, %v5871_v16  ;;  %6542 = vmatprep.mubr.msk.bf16.mxu1 %vm656_vm0, %v6924_v15 }
 0x17c   : > { %v5872_v22 = vpop.f32.mrb[4].mxu0 }
 0x17d   : > { %v5924_v25 = vpop.f32.mrb[4].mxu1  ;;  %v5873_v26 = vpop.f32.mrb[5].mxu0 }
 0x17e   : > { %v5874_v28 = vadd.f32 %v5873_v26, %v5872_v22  ;;  %v5925_v29 = vpop.f32.mrb[5].mxu1  ;;  %v5875_v30 = vpop.f32.mrb[6].mxu0 }
 0x17f   : > { %v5926_v33 = vadd.f32 %v5925_v29, %v5924_v25  ;;  %v5927_v34 = vpop.f32.mrb[6].mxu1  ;;  %v5876_v35 = vpop.f32.mrb[7].mxu0 }
 0x180   : > { %v5877_v36 = vadd.f32 %v5876_v35, %v5875_v30  ;;  %v5928_v37 = vpop.f32.mrb[7].mxu1  ;;  %v6956_v35 = vld [vmem:[%s7646_s13 + $0x358] ss:$28 sps:$4 sm:$0xff]  }
 0x181   : > { %v8196_v39 = vadd.f32 %v5926_v33, %v5874_v28  ;;  %v5929_v40 = vadd.f32 %v5928_v37, %v5927_v34  ;;  %3665 = vmatmul.mubr.bf16.vlgmr.msra.gmra.mrb[108].mxu0 %v6921_v21  ;;  %v6972_v28 = vld [vmem:[%s8894_s1 + $0xa0] sm:$0xff]   ;;  %v6954_v33 = vld [vmem:[%s8894_s1 + $0x70] sm:$0xff]  }
 0x182   : > { %6543 = vmatmul.mubr.msk.bf16.vlgmr.msra.gmra.mrb[108].mxu1 %vm656_vm0, %v6926_v23  ;;  %3672 = vmatprep.mubr.bf16.mxu0 %v6930_v24  ;;  %v6945_v23 = vld [vmem:[%s8894_s1 + $0x20] sm:$0xff]   ;;  %v6965_v24 = vld [vmem:[%s7646_s13 + $0x3f4] ss:$28 sps:$4 sm:$0xff]  }
 0x183   : > { %v8208_v44 = vadd.f32 %v5929_v40, %v5877_v36  ;;  %6343 = vmatpush3.bf16.msra.mxu1 %v6927_v27  ;;  %6546 = vmatprep.mubr.msk.bf16.mxu1 %vm656_vm0, %v6937_v32  ;;  %v6948_v27 = vld [vmem:[%s8894_s1 + $0x68] sm:$0xff]  }
 0x184   : > { %6344 = vmatprep.subr.bf16.mxu1 %v6928_v31  ;;  %v5878_v46 = vpop.f32.mrb[8].mxu0  ;;  %6395 = vmatpush3.bf16.msra.mxu0 %v6939_v38  ;;  %v6973_v31 = vld [vmem:[%s8894_s1 + $0xe8] sm:$0xff]   ;;  %v6982_v38 = vld [vmem:[%s8894_s1 + $0xf0] sm:$0xff]  }
 0x185   : > { %v5930_v50 = vpop.f32.mrb[8].mxu1  ;;  %v5879_v51 = vpop.f32.mrb[9].mxu0  ;;  %6396 = vmatprep.subr.bf16.mxu0 %v6946_v42  ;;  %v6950_v32 = vld [vmem:[%s8894_s1 + $0x28] sm:$0xff]   ;;  %v6957_v42 = vld [vmem:[%s8894_s1 + $0x30] sm:$0xff]  }
 0x186   : > { %v5880_v54 = vadd.f32 %v5879_v51, %v5878_v46  ;;  %v5931_v55 = vpop.f32.mrb[9].mxu1  ;;  %v5881_v56 = vpop.f32.mrb[10].mxu0  ;;  %v6974_v36 = vld [vmem:[%s8894_s1 + $0xa8] sm:$0xff]  }
 0x187   : > { %6345 = vmatpush3.bf16.msra.mxu1 %v6929_v41  ;;  %v5932_v57 = vadd.f32 %v5931_v55, %v5930_v50  ;;  %v5933_v58 = vpop.f32.mrb[10].mxu1  ;;  %v5882_v59 = vpop.f32.mrb[11].mxu0 }
 0x188   : > { %v5883_v63 = vadd.f32 %v5882_v59, %v5881_v56  ;;  %v5934_v0 = vpop.f32.mrb[11].mxu1  ;;  %6346 = vmatprep.subr.bf16.mxu1 %v6932_v43  ;;  %6397 = vmatpush3.bf16.msra.mxu0 %v6947_v49 }
 0x189   : > { %v8233_v2 = vadd.f32 %v5932_v57, %v5880_v54  ;;  %v5935_v3 = vadd.f32 %v5934_v0, %v5933_v58  ;;  %3673 = vmatmul.mubr.bf16.gmra.mrb[112].mxu0 %v6933_v45  ;;  %6398 = vmatprep.subr.bf16.mxu0 %v6955_v53  ;;  %v6959_v53 = vld [vmem:[%s8894_s1 + $0x78] sm:$0xff]   ;;  %v6983_v54 = vld [vmem:[%s8894_s1 + $0xb0] sm:$0xff]   ;;  %v6979_v0 = vld [vmem:[%s7646_s13 + $0x3cc] ss:$28 sps:$4 sm:$0xff]  }
 0x18a   : > { %6547 = vmatmul.mubr.msk.bf16.gmra.mrb[112].mxu1 %vm656_vm0, %v6940_v47  ;;  %3680 = vmatprep.mubr.bf16.mxu0 %v6941_v48  ;;  %v6966_v47 = vld [vmem:[%s7646_s13 + $0x394] ss:$28 sps:$4 sm:$0xff]   ;;  %v6985_v57 = vld [vmem:[%s8894_s1 + $0xf8] sm:$0xff]  }
 0x18b   : > { %v8239_v5 = vadd.f32 %v5935_v3, %v5883_v63  ;;  %6347 = vmatpush3.bf16.msra.mxu1 %v6934_v52  ;;  %6550 = vmatprep.mubr.msk.bf16.mxu1 %vm656_vm0, %v6949_v61  ;;  %v6960_v58 = vld [vmem:[%s8894_s1 + $0x38] sm:$0xff]   ;;  %v6969_v63 = vld [vmem:[%s7646_s13 + $0x390] ss:$28 sps:$4 sm:$0xff]  }
 0x18c   : > { %6348 = vmatprep.subr.bf16.mxu1 %v6935_v60  ;;  %v5884_v8 = vpop.f32.mrb[12].mxu0  ;;  %6399 = vmatpush3.bf16.msra.mxu0 %v6958_v62  ;;  %v6968_v60 = vld [vmem:[%s8894_s1 + $0x140] sm:$0xff]   ;;  %v6963_v62 = vld [vmem:[%s7646_s13 + $0x3f0] ss:$28 sps:$4 sm:$0xff]  }
 0x18d   : > { %v5936_v13 = vpop.f32.mrb[12].mxu1  ;;  %v5885_v14 = vpop.f32.mrb[13].mxu0  ;;  %6400 = vmatprep.subr.bf16.mxu0 %v6961_v1  ;;  %v6987_v1 = vld [vmem:[%s8894_s1 + $0xb8] sm:$0xff]  }
 0x18e   : > { %v5886_v15 = vadd.f32 %v5885_v14, %v5884_v8  ;;  %v5937_v16 = vpop.f32.mrb[13].mxu1  ;;  %v5887_v17 = vpop.f32.mrb[14].mxu0 }
 0x18f   : > { %6349 = vmatpush3.bf16.msra.mxu1 %v6938_v4  ;;  %v5938_v19 = vadd.f32 %v5937_v16, %v5936_v13  ;;  %v5939_v21 = vpop.f32.mrb[14].mxu1  ;;  %v5888_v22 = vpop.f32.mrb[15].mxu0  ;;  %v6976_v13 = vld [vmem:[%s7646_s13 + $0x42c] ss:$28 sps:$4 sm:$0xff]  }
 0x190   : > { %v5889_v25 = vadd.f32 %v5888_v22, %v5887_v17  ;;  %v5940_v26 = vpop.f32.mrb[15].mxu1  ;;  %6350 = vmatprep.subr.bf16.mxu1 %v6943_v6  ;;  %6401 = vmatpush3.bf16.msra.mxu0 %v6962_v11  ;;  %v6975_v16 = vld [vmem:[%s8894_s1 + $0x148] sm:$0xff]  }
 0x191   : > { %v8264_v29 = vadd.f32 %v5938_v19, %v5886_v15  ;;  %v5941_v30 = vadd.f32 %v5940_v26, %v5939_v21  ;;  %3681 = vmatmul.mubr.bf16.gmra.mrb[116].mxu0 %v6944_v7  ;;  %6402 = vmatprep.subr.bf16.mxu0 %v6970_v12  ;;  %v6971_v12 = vld [vmem:[%s8894_s1 + $0x100] sm:$0xff]   ;;  %v5708_v21 = vld [vmem:[%s7646_s13 + $0x428] sm:$0xff] }
 0x192   : > { %6551 = vmatmul.mubr.msk.bf16.gmra.mrb[116].mxu1 %vm656_vm0, %v6951_v9  ;;  %3688 = vmatprep.mubr.bf16.mxu0 %v6952_v10  ;;  %v5712_v22 = vld [vmem:[%s7646_s13 + $0x444] sm:$0xff] }
 0x193   : > { %v8276_v34 = vadd.f32 %v5941_v30, %v5889_v25  ;;  %6351 = vmatpush3.bf16.msra.mxu1 %v6945_v23  ;;  %4540 = vmatprep.mubr.bf16.mxu1 %v6965_v24  ;;  %v6978_v23 = vld [vmem:[%s8894_s1 + $0x108] sm:$0xff]  }
 0x194   : > { %6352 = vmatprep.subr.bf16.mxu1 %v6948_v27  ;;  %v5890_v37 = vpop.f32.mrb[16].mxu0  ;;  %6403 = vmatpush3.bf16.msra.mxu0 %v6972_v28  ;;  %v6981_v25 = vld [vmem:[%s7646_s13 + $0x3c8] ss:$28 sps:$4 sm:$0xff]   ;;  %v6984_v27 = vld [vmem:[%s8894_s1 + $0x150] sm:$0xff]  }
 0x195   : > { %v5942_v40 = vpop.f32.mrb[16].mxu1  ;;  %v5891_v41 = vpop.f32.mrb[17].mxu0  ;;  %6404 = vmatprep.subr.bf16.mxu0 %v6973_v31  ;;  %v8337_v31 = vld [vmem:[%s8894_s1 + $0x180] sm:$0xff]  }
 0x196   : > { %v5892_v43 = vadd.f32 %v5891_v41, %v5890_v37  ;;  %v5943_v45 = vpop.f32.mrb[17].mxu1  ;;  %v5893_v46 = vpop.f32.mrb[18].mxu0  ;;  %v6992_v37 = vld [vmem:[%s7646_s13 + $0x3fc] ss:$28 sps:$4 sm:$0xff]  }
 0x197   : > { %6353 = vmatpush3.bf16.msra.mxu1 %v6950_v32  ;;  %v5944_v48 = vadd.f32 %v5943_v45, %v5942_v40  ;;  %v5945_v49 = vpop.f32.mrb[18].mxu1  ;;  %v5894_v50 = vpop.f32.mrb[19].mxu0 }
 0x198   : > { %v5895_v51 = vadd.f32 %v5894_v50, %v5893_v46  ;;  %v5946_v52 = vpop.f32.mrb[19].mxu1  ;;  %6354 = vmatprep.subr.bf16.mxu1 %v6954_v33  ;;  %6405 = vmatpush3.bf16.msra.mxu0 %v6974_v36  ;;  %v5755_v36 = vcombine.low %v5708_v21, %v5712_v22  ;;  %v5716_v50 = vld [vmem:[%s7646_s13 + $0x460] sm:$0xff]  ;;  %v5728_v22 = vld [vmem:[%s7646_s13 + $0x4b4] sm:$0xff] }
 0x199   : > { %v8295_v55 = vadd.f32 %v5944_v48, %v5892_v43  ;;  %v5947_v56 = vadd.f32 %v5946_v52, %v5945_v49  ;;  %3689 = vmatmul.mubr.bf16.gmra.mrb[120].mxu0 %v6956_v35  ;;  %6406 = vmatprep.subr.bf16.mxu0 %v6982_v38  ;;  %v705_v38 = vld [vmem:[#allocation2] sm:$0xff]  ;;  %v6993_v48 = vld [vmem:[%s8894_s1 + $0x158] sm:$0xff]   ;;  %v706_v49 = vld [vmem:[#allocation2 + $0x8] sm:$0xff] }
 0x19a   : > { %3696 = vmatprep.mubr.bf16.mxu0 %v6966_v47  ;;  %v6988_v43 = vld [vmem:[%s7646_s13 + $0x464] ss:$28 sps:$4 sm:$0xff]  }
 0x19b   : > { %v8303_v59 = vadd.f32 %v5947_v56, %v5895_v51  ;;  %6355 = vmatpush3.bf16.msra.mxu1 %v6957_v42  ;;  %v6986_v42 = vld [vmem:[%s8894_s1 + $0x110] sm:$0xff]  }
 0x19c   : > { %6356 = vmatprep.subr.bf16.mxu1 %v6959_v53  ;;  %v5896_v61 = vpop.f32.mrb[20].mxu0  ;;  %6407 = vmatpush3.bf16.msra.mxu0 %v6983_v54  ;;  %v5720_v53 = vld [vmem:[%s7646_s13 + $0x47c] sm:$0xff] }
 0x19d   : > { %v5948_v3 = vpop.f32.mrb[20].mxu1  ;;  %v5897_v4 = vpop.f32.mrb[21].mxu0  ;;  %6408 = vmatprep.subr.bf16.mxu0 %v6985_v57 }
 0x19e   : > { %v5898_v6 = vadd.f32 %v5897_v4, %v5896_v61  ;;  %v5949_v7 = vpop.f32.mrb[21].mxu1  ;;  %v5899_v8 = vpop.f32.mrb[22].mxu0 }
 0x19f   : > { %6357 = vmatpush3.bf16.msra.mxu1 %v6960_v58  ;;  %v5950_v9 = vadd.f32 %v5949_v7, %v5948_v3  ;;  %v5951_v10 = vpop.f32.mrb[22].mxu1  ;;  %v5900_v11 = vpop.f32.mrb[23].mxu0  ;;  %v6999_v58 = vld [vmem:[%s8894_s1 + $0x160] sm:$0xff]   ;;  %v5762_v3 = vcombine.low %v5716_v50, %v5720_v53  ;;  %v707_v7 = vld [vmem:[#allocation2 + $0x10] sm:$0xff]  ;;  %v710_v50 = vld [vmem:[#allocation2 + $0x28] sm:$0xff] }
 0x1a0   : > { %v5901_v14 = vadd.f32 %v5900_v11, %v5899_v8  ;;  %v5952_v15 = vpop.f32.mrb[23].mxu1  ;;  %6446 = vmatprep.subr.bf16.mxu1 %v6968_v60  ;;  %6409 = vmatpush3.bf16.msra.mxu0 %v6987_v1  ;;  %v5732_v53 = vld [vmem:[%s7646_s13 + $0x4d0] sm:$0xff] }
 0x1a1   : > { %v8321_v17 = vadd.f32 %v5950_v9, %v5898_v6  ;;  %v5953_v19 = vadd.f32 %v5952_v15, %v5951_v10  ;;  %3697 = vmatmul.mubr.bf16.gmra.mrb[124].mxu0 %v6969_v63  ;;  %6554 = vmatprep.subr.bf16.mxu0 %v8337_v31  ;;  %v6997_v6 = vld [vmem:[%s7646_s13 + $0x434] ss:$28 sps:$4 sm:$0xff]   ;;  %v7001_v10 = vld [vmem:[%s8894_s1 + $0x120] sm:$0xff]   ;;  %v708_v15 = vld [vmem:[#allocation2 + $0x18] sm:$0xff] }
 0x1a2   : > { %4541 = vmatmul.mubr.bf16.vlgmr.msra.gmra.mrb[120].mxu1 %v6963_v62  ;;  %3704 = vmatprep.mubr.bf16.mxu0 %v6979_v0  ;;  %v6995_v62 = vld [vmem:[%s7646_s13 + $0x49c] ss:$28 sps:$4 sm:$0xff]  }
 0x1a3   : > { %v8328_v24 = vadd.f32 %v5953_v19, %v5901_v14  ;;  %6447 = vmatpush3.bf16.msra.mxu1 %v6971_v12  ;;  %4548 = vmatprep.mubr.bf16.mxu1 %v6976_v13  ;;  %v7003_v14 = vld [vmem:[%s8894_s1 + $0x168] sm:$0xff]  }
 0x1a4   : > { %v5970_v26 = vpop.f32.mrb[24].mxu0  ;;  %6448 = vmatprep.subr.bf16.mxu1 %v6975_v16  ;;  %v5724_v16 = vld [vmem:[%s7646_s13 + $0x498] sm:$0xff] }
 0x1a5   : > { %v6512_v28 = vpop.f32.mrb[24].mxu1  ;;  %v5971_v30 = vpop.f32.mrb[25].mxu0 }
 0x1a6   : > { %v5972_v32 = vadd.f32 %v5971_v30, %v5970_v26  ;;  %v1671_v33 = vpop.f32.mrb[25].mxu1  ;;  %v5973_v35 = vpop.f32.mrb[26].mxu0 }
 0x1a7   : > { %v6513_v40 = vpop.f32.mrb[26].mxu1  ;;  %6449 = vmatpush3.bf16.msra.mxu1 %v6978_v23  ;;  %v5974_v41 = vpop.f32.mrb[27].mxu0  ;;  %v7000_v23 = vld [vmem:[%s7646_s13 + $0x430] ss:$28 sps:$4 sm:$0xff]  }
 0x1a8   : > { %v1591_v45 = vadd.f32 %v5972_v32, %v8178_v18  ;;  %v5975_v46 = vadd.f32 %v5974_v41, %v5973_v35  ;;  %v1674_v47 = vpop.f32.mrb[27].mxu1  ;;  %6450 = vmatprep.subr.bf16.mxu1 %v6984_v27  ;;  %v6994_v18 = vld [vmem:[%s8894_s1 + $0x118] sm:$0xff]  }
 0x1a9   : > { %3705 = vmatmul.mubr.bf16.gmra.mrb[128].mxu0 %v6981_v25 }
 0x1aa   : > { %v1672_v51 = vadd.f32 %v1671_v33, %v1591_v45  ;;  %v1594_v52 = vadd.f32 %v5975_v46, %v8180_v20  ;;  %4549 = vmatmul.mubr.bf16.gmra.mrb[124].mxu1 %v5755_v36  ;;  %4621 = vmatprep.mubr.bf16.mxu0 %v6992_v37  ;;  %v6990_v20 = vld [vmem:[%s7646_s13 + $0x3f8] ss:$28 sps:$4 sm:$0xff]   ;;  %v7025_v33 = vld [vmem:[%s8894_s1 + $0x188] sm:$0xff]   ;;  %v709_v45 = vld [vmem:[#allocation2 + $0x20] sm:$0xff] }
 0x1ab   : > { %6451 = vmatpush3.bf16.msra.mxu1 %v6986_v42  ;;  %4556 = vmatprep.mubr.bf16.mxu1 %v6988_v43  ;;  %v7004_v42 = vld [vmem:[%s7646_s13 + $0x4d4] ss:$28 sps:$4 sm:$0xff]  }
 0x1ac   : > { %v1718_v54 = vadd.f32 %v1672_v51, %v705_v38  ;;  %v1675_v56 = vadd.f32 %v1674_v47, %v1594_v52  ;;  %v5976_v57 = vpop.f32.mrb[28].mxu0  ;;  %6452 = vmatprep.subr.bf16.mxu1 %v6993_v48  ;;  %v5769_v38 = vcombine.low %v5724_v16, %v5728_v22  ;;  %v7011_v43 = vld [vmem:[%s8894_s1 + $0x130] sm:$0xff]  }
 0x1ad   : > { %v5977_v60 = vpop.f32.mrb[29].mxu0  ;;  %v8359_v61 = vpop.f32.mrb[28].mxu1 }
 0x1ae   : > { %1730 = vst.msk [vmem:[#allocation2] sm:$0xff] %vm656_vm0, %v1718_v54  ;;  %v1719_v63 = vadd.f32 %v1675_v56, %v706_v49  ;;  %v5978_v0 = vadd.f32 %v5977_v60, %v5976_v57  ;;  %v5979_v1 = vpop.f32.mrb[30].mxu0  ;;  %v1687_v4 = vpop.f32.mrb[29].mxu1  ;;  %v7017_v49 = vld [vmem:[%s8894_s1 + $0x178] sm:$0xff]   ;;  %v7009_v60 = vld [vmem:[%s7646_s13 + $0x468] ss:$28 sps:$4 sm:$0xff]  }
 0x1af   : > { %v5980_v8 = vpop.f32.mrb[31].mxu0  ;;  %v8364_v9 = vpop.f32.mrb[30].mxu1  ;;  %6453 = vmatpush3.bf16.msra.mxu1 %v6994_v18  ;;  %v5736_v18 = vld [vmem:[%s7646_s13 + $0x4ec] sm:$0xff] }
 0x1b0   : > { %1731 = vst.msk [vmem:[#allocation2 + $0x8] sm:$0xff] %vm656_vm0, %v1719_v63  ;;  %v1599_v11 = vadd.f32 %v5978_v0, %v8196_v39  ;;  %v5981_v12 = vadd.f32 %v5980_v8, %v5979_v1  ;;  %v1690_v13 = vpop.f32.mrb[31].mxu1  ;;  %6454 = vmatprep.subr.bf16.mxu1 %v6999_v58  ;;  %v7006_v39 = vld [vmem:[%s8894_s1 + $0x128] sm:$0xff]   ;;  %v5776_v63 = vcombine.low %v5732_v53, %v5736_v18  ;;  %v7014_v1 = vld [vmem:[%s7646_s13 + $0x4a4] ss:$28 sps:$4 sm:$0xff]   ;;  %v712_v8 = vld [vmem:[#allocation2 + $0x38] sm:$0xff] }
 0x1b1   : > { %4622 = vmatmul.mubr.bf16.vlgmr.msra.gmra.mrb[132].mxu0 %v6990_v20  ;;  %v7012_v0 = vld [vmem:[%s7646_s13 + $0x50c] ss:$28 sps:$4 sm:$0xff]  }
 0x1b2   : > { %v1680_v19 = vadd.f32 %v6512_v28, %v1599_v11  ;;  %v1602_v21 = vadd.f32 %v5981_v12, %v8208_v44  ;;  %4557 = vmatmul.mubr.bf16.gmra.mrb[128].mxu1 %v5762_v3  ;;  %4629 = vmatprep.mubr.bf16.mxu0 %v6997_v6  ;;  %v7007_v28 = vld [vmem:[%s7646_s13 + $0x46c] ss:$28 sps:$4 sm:$0xff]   ;;  %v7010_v44 = vld [vmem:[%s8894_s1 + $0x170] sm:$0xff]  }
 0x1b3   : > { %4564 = vmatprep.mubr.bf16.mxu1 %v6995_v62  ;;  %6455 = vmatpush3.bf16.msra.mxu1 %v7001_v10  ;;  %v5740_v12 = vld [vmem:[%s7646_s13 + $0x508] sm:$0xff] }
 0x1b4   : > { %v1720_v25 = vadd.f32 %v1680_v19, %v707_v7  ;;  %v1683_v26 = vadd.f32 %v6513_v40, %v1602_v21  ;;  %v5982_v27 = vpop.f32.mrb[32].mxu0  ;;  %6555 = vmatpush3.bf16.msra.mxu0 %v8337_v31  ;;  %6456 = vmatprep.subr.bf16.mxu1 %v7003_v14  ;;  %v711_v7 = vld [vmem:[#allocation2 + $0x30] sm:$0xff]  ;;  %v7016_v21 = vld [vmem:[%s7646_s13 + $0x4a0] ss:$28 sps:$4 sm:$0xff]  }
 0x1b5   : > { %v5983_v30 = vpop.f32.mrb[33].mxu0  ;;  %v8386_v32 = vpop.f32.mrb[32].mxu1  ;;  %6556 = vmatprep.subr.bf16.mxu0 %v7025_v33 }
 0x1b6   : > { %1732 = vst.msk [vmem:[#allocation2 + $0x10] sm:$0xff] %vm656_vm0, %v1720_v25  ;;  %v1721_v35 = vadd.f32 %v1683_v26, %v708_v15  ;;  %v5984_v36 = vadd.f32 %v5983_v30, %v5982_v27  ;;  %v5985_v37 = vpop.f32.mrb[34].mxu0  ;;  %v8392_v31 = vpop.f32.mrb[33].mxu1  ;;  %v7022_v25 = vld [vmem:[%s7646_s13 + $0x4dc] ss:$28 sps:$4 sm:$0xff]  }
 0x1b7   : > { %v5986_v40 = vpop.f32.mrb[35].mxu0  ;;  %v8394_v41 = vpop.f32.mrb[34].mxu1  ;;  %6457 = vmatpush3.bf16.msra.mxu1 %v7006_v39 }
 0x1b8   : > { %1733 = vst.msk [vmem:[#allocation2 + $0x18] sm:$0xff] %vm656_vm0, %v1721_v35  ;;  %v1607_v46 = vadd.f32 %v5984_v36, %v8233_v2  ;;  %v5987_v47 = vadd.f32 %v5986_v40, %v5985_v37  ;;  %v8402_v48 = vpop.f32.mrb[35].mxu1  ;;  %6458 = vmatprep.subr.bf16.mxu1 %v7010_v44  ;;  %v7018_v2 = vld [vmem:[%s8894_s1 + $0x138] sm:$0xff]   ;;  %6557 = vmatpush3.bf16.msra.mxu0 %v7025_v33  ;;  %v7021_v44 = vld [vmem:[%s7646_s13 + $0x404] ss:$28 sps:$4 sm:$0xff]   ;;  %v714_v40 = vld [vmem:[#allocation2 + $0x48] sm:$0xff] }
 0x1b9   : > { %4630 = vmatmul.mubr.bf16.gmra.mrb[136].mxu0 %v7000_v23  ;;  %v713_v35 = vld [vmem:[#allocation2 + $0x40] sm:$0xff] }
 0x1ba   : > { %v1688_v51 = vadd.f32 %v1687_v4, %v1607_v46  ;;  %v1610_v52 = vadd.f32 %v5987_v47, %v8239_v5  ;;  %4565 = vmatmul.mubr.bf16.gmra.mrb[132].mxu1 %v5769_v38  ;;  %4637 = vmatprep.mubr.bf16.mxu0 %v7007_v28  ;;  %v7024_v47 = vld [vmem:[%s7646_s13 + $0x4d8] ss:$28 sps:$4 sm:$0xff]  }
 0x1bb   : > { %4572 = vmatprep.mubr.bf16.mxu1 %v7004_v42  ;;  %6459 = vmatpush3.bf16.msra.mxu1 %v7011_v43 }
 0x1bc   : > { %v1722_v54 = vadd.f32 %v1688_v51, %v709_v45  ;;  %v1691_v56 = vadd.f32 %v1690_v13, %v1610_v52  ;;  %v5988_v57 = vpop.f32.mrb[36].mxu0  ;;  %6460 = vmatprep.subr.bf16.mxu1 %v7017_v49  ;;  %v5744_v13 = vld [vmem:[%s7646_s13 + $0x524] sm:$0xff]  ;;  %v7019_v51 = vld [vmem:[%s7646_s13 + $0x400] ss:$28 sps:$4 sm:$0xff]   ;;  %v7028_v52 = vld [vmem:[%s7646_s13 + $0x514] ss:$28 sps:$4 sm:$0xff]  }
 0x1bd   : > { %v5989_v58 = vpop.f32.mrb[37].mxu0  ;;  %v5783_v39 = vcombine.low %v5740_v12, %v5744_v13 }
 0x1be   : > { %1734 = vst.msk [vmem:[#allocation2 + $0x20] sm:$0xff] %vm656_vm0, %v1722_v54  ;;  %v1723_v5 = vadd.f32 %v1691_v56, %v710_v50  ;;  %v5990_v20 = vadd.f32 %v5989_v58, %v5988_v57  ;;  %v5991_v62 = vpop.f32.mrb[38].mxu0  ;;  %v7026_v54 = vld [vmem:[%s7646_s13 + $0x43c] ss:$28 sps:$4 sm:$0xff]   ;;  %v715_v58 = vld [vmem:[#allocation2 + $0x50] sm:$0xff] }
 0x1bf   : > { %v5992_v3 = vpop.f32.mrb[39].mxu0  ;;  %6461 = vmatpush3.bf16.msra.mxu1 %v7018_v2 }
 0x1c0   : > { %1735 = vst.msk [vmem:[#allocation2 + $0x28] sm:$0xff] %vm656_vm0, %v1723_v5  ;;  %v1615_v4 = vadd.f32 %v5990_v20, %v8264_v29  ;;  %v5993_v6 = vadd.f32 %v5992_v3, %v5991_v62  ;;  %v716_v62 = vld [vmem:[#allocation2 + $0x58] sm:$0xff] }
 0x1c1   : > { %4638 = vmatmul.mubr.bf16.gmra.mrb[140].mxu0 %v7009_v60 }
 0x1c2   : > { %v1696_v10 = vadd.f32 %v8359_v61, %v1615_v4  ;;  %v1618_v11 = vadd.f32 %v5993_v6, %v8276_v34  ;;  %4573 = vmatmul.mubr.bf16.gmra.mrb[136].mxu1 %v5776_v63  ;;  %4645 = vmatprep.mubr.bf16.mxu0 %v7014_v1  ;;  %v7031_v4 = vld [vmem:[%s7646_s13 + $0x510] ss:$28 sps:$4 sm:$0xff]  }
 0x1c3   : > { %4580 = vmatprep.mubr.bf16.mxu1 %v7012_v0 }
 0x1c4   : > { %v1724_v14 = vadd.f32 %v1696_v10, %v711_v7  ;;  %v1699_v15 = vadd.f32 %v8364_v9, %v1618_v11  ;;  %v5994_v29 = vpop.f32.mrb[40].mxu0  ;;  %v7035_v10 = vld [vmem:[%s7646_s13 + $0x408] ss:$28 sps:$4 sm:$0xff]  }
 0x1c5   : > { %v6030_v16 = vpop.f32.mrb[36].mxu1  ;;  %v5995_v19 = vpop.f32.mrb[41].mxu0 }
 0x1c6   : > { %1736 = vst.msk [vmem:[#allocation2 + $0x30] sm:$0xff] %vm656_vm0, %v1724_v14  ;;  %v1725_v22 = vadd.f32 %v1699_v15, %v712_v8  ;;  %v6031_v61 = vpop.f32.mrb[37].mxu1  ;;  %v5996_v23 = vadd.f32 %v5995_v19, %v5994_v29  ;;  %v5997_v34 = vpop.f32.mrb[42].mxu0  ;;  %v7030_v8 = vld [vmem:[%s7646_s13 + $0x438] ss:$28 sps:$4 sm:$0xff]  }
 0x1c7   : > { %v8427_v26 = vadd.f32 %v6031_v61, %v6030_v16  ;;  %v6033_v27 = vpop.f32.mrb[38].mxu1  ;;  %v5998_v28 = vpop.f32.mrb[43].mxu0  ;;  %v7032_v14 = vld [vmem:[%s7646_s13 + $0x474] ss:$28 sps:$4 sm:$0xff]  }
 0x1c8   : > { %1737 = vst.msk [vmem:[#allocation2 + $0x38] sm:$0xff] %vm656_vm0, %v1725_v22  ;;  %v1623_v9 = vadd.f32 %v5996_v23, %v8295_v55  ;;  %v6034_v30 = vpop.f32.mrb[39].mxu1  ;;  %v5999_v33 = vadd.f32 %v5998_v28, %v5997_v34  ;;  %v7036_v23 = vld [vmem:[%s7646_s13 + $0x440] ss:$28 sps:$4 sm:$0xff]  }
 0x1c9   : > { %v6035_v36 = vadd.f32 %v6034_v30, %v6033_v27  ;;  %4646 = vmatmul.mubr.bf16.gmra.mrb[144].mxu0 %v7016_v21  ;;  %v7040_v27 = vld [vmem:[%s7646_s13 + $0x478] ss:$28 sps:$4 sm:$0xff]   ;;  %v7037_v30 = vld [vmem:[%s7646_s13 + $0x4ac] ss:$28 sps:$4 sm:$0xff]  }
 0x1ca   : > { %v1704_v37 = vadd.f32 %v8392_v31, %v1623_v9  ;;  %v1626_v38 = vadd.f32 %v5999_v33, %v8303_v59  ;;  %4581 = vmatmul.mubr.bf16.gmra.mrb[140].mxu1 %v5783_v39  ;;  %4653 = vmatprep.mubr.bf16.mxu0 %v7022_v25 }
 0x1cb   : > { %4702 = vmatprep.mubr.bf16.mxu1 %v7021_v44 }
 0x1cc   : > { %v1726_v42 = vadd.f32 %v1704_v37, %v713_v35  ;;  %v1707_v55 = vadd.f32 %v8402_v48, %v1626_v38  ;;  %v6000_v43 = vpop.f32.mrb[44].mxu0 }
 0x1cd   : > { %v6036_v45 = vpop.f32.mrb[40].mxu1  ;;  %v6001_v46 = vpop.f32.mrb[45].mxu0 }
 0x1ce   : > { %1738 = vst.msk [vmem:[#allocation2 + $0x40] sm:$0xff] %vm656_vm0, %v1726_v42  ;;  %v1727_v49 = vadd.f32 %v1707_v55, %v714_v40  ;;  %v6037_v31 = vpop.f32.mrb[41].mxu1  ;;  %v6002_v50 = vadd.f32 %v6001_v46, %v6000_v43  ;;  %v6003_v59 = vpop.f32.mrb[46].mxu0  ;;  %v7041_v43 = vld [vmem:[%s7646_s13 + $0x4b0] ss:$28 sps:$4 sm:$0xff]  }
 0x1cf   : > { %v6038_v53 = vadd.f32 %v6037_v31, %v6036_v45  ;;  %v6039_v18 = vpop.f32.mrb[42].mxu1  ;;  %v6004_v2 = vpop.f32.mrb[47].mxu0  ;;  %v7045_v31 = vld [vmem:[%s7646_s13 + $0x4e8] ss:$28 sps:$4 sm:$0xff]  }
 0x1d0   : > { %1739 = vst.msk [vmem:[#allocation2 + $0x48] sm:$0xff] %vm656_vm0, %v1727_v49  ;;  %v1631_v48 = vadd.f32 %v6002_v50, %v8321_v17  ;;  %v6040_v56 = vpop.f32.mrb[43].mxu1  ;;  %v6005_v57 = vadd.f32 %v6004_v2, %v6003_v59  ;;  %v7039_v49 = vld [vmem:[%s7646_s13 + $0x4a8] ss:$28 sps:$4 sm:$0xff]  }
 0x1d1   : > { %v6041_v60 = vadd.f32 %v6040_v56, %v6039_v18  ;;  %4654 = vmatmul.mubr.bf16.gmra.mrb[148].mxu0 %v7024_v47 }
 0x1d2   : > { %v1712_v5 = vadd.f32 %v8386_v32, %v1631_v48  ;;  %v1634_v20 = vadd.f32 %v6005_v57, %v8328_v24  ;;  %4703 = vmatmul.mubr.bf16.vlgmr.msra.gmra.mrb[144].mxu1 %v7019_v51  ;;  %4661 = vmatprep.mubr.bf16.mxu0 %v7028_v52  ;;  %v7042_v52 = vld [vmem:[%s7646_s13 + $0x4e4] ss:$28 sps:$4 sm:$0xff]  }
 0x1d3   : > { %4710 = vmatprep.mubr.bf16.mxu1 %v7026_v54 }
 0x1d4   : > { %v1728_v63 = vadd.f32 %v1712_v5, %v715_v58  ;;  %v1715_v17 = vadd.f32 %v8394_v41, %v1634_v20  ;;  %v6082_v0 = vpop.f32.mrb[48].mxu0 }
 0x1d5   : > { %v6042_v1 = vpop.f32.mrb[44].mxu1  ;;  %v6083_v3 = vpop.f32.mrb[49].mxu0 }
 0x1d6   : > { %1740 = vst.msk [vmem:[#allocation2 + $0x50] sm:$0xff] %vm656_vm0, %v1728_v63  ;;  %v1729_v6 = vadd.f32 %v1715_v17, %v716_v62  ;;  %v6043_v32 = vpop.f32.mrb[45].mxu1  ;;  %v6084_v7 = vadd.f32 %v6083_v3, %v6082_v0  ;;  %v6085_v24 = vpop.f32.mrb[50].mxu0  ;;  %v7044_v63 = vld [vmem:[%s7646_s13 + $0x4e0] ss:$28 sps:$4 sm:$0xff]  }
 0x1d7   : > { %v6044_v11 = vadd.f32 %v6043_v32, %v6042_v1  ;;  %v6045_v12 = vpop.f32.mrb[46].mxu1  ;;  %v6086_v13 = vpop.f32.mrb[51].mxu0  ;;  %v7047_v3 = vld [vmem:[%s7646_s13 + $0x51c] ss:$28 sps:$4 sm:$0xff]  }
 0x1d8   : > { %1741 = vst.msk [vmem:[#allocation2 + $0x58] sm:$0xff] %vm656_vm0, %v1729_v6  ;;  %v8452_v41 = vadd.f32 %v6084_v7, %v8427_v26  ;;  %v6046_v15 = vpop.f32.mrb[47].mxu1  ;;  %v6087_v29 = vadd.f32 %v6086_v13, %v6085_v24  ;;  %v7034_v26 = vld [vmem:[%s7646_s13 + $0x470] ss:$28 sps:$4 sm:$0xff]  }
 0x1d9   : > { %v6047_v16 = vadd.f32 %v6046_v15, %v6045_v12  ;;  %4662 = vmatmul.mubr.bf16.gmra.mrb[152].mxu0 %v7031_v4  ;;  %v7049_v15 = vld [vmem:[%s7646_s13 + $0x518] ss:$28 sps:$4 sm:$0xff]  }
 0x1da   : > { %v8454_v19 = vadd.f32 %v6087_v29, %v6035_v36  ;;  %4711 = vmatmul.mubr.bf16.gmra.mrb[148].mxu1 %v7030_v8  ;;  %6558 = vmatprep.mubr.msk.bf16.mxu0 %vm656_vm0, %v7035_v10 }
 0x1db   : > { %4718 = vmatprep.mubr.bf16.mxu1 %v7032_v14 }
 0x1dc   : > { %v6088_v21 = vpop.f32.mrb[52].mxu0 }
 0x1dd   : > { %v6048_v22 = vpop.f32.mrb[48].mxu1  ;;  %v6089_v61 = vpop.f32.mrb[53].mxu0 }
 0x1de   : > { %v6049_v34 = vpop.f32.mrb[49].mxu1  ;;  %v6090_v39 = vadd.f32 %v6089_v61, %v6088_v21  ;;  %v6091_v25 = vpop.f32.mrb[54].mxu0 }
 0x1df   : > { %v6050_v28 = vadd.f32 %v6049_v34, %v6048_v22  ;;  %v6051_v44 = vpop.f32.mrb[50].mxu1  ;;  %v6092_v9 = vpop.f32.mrb[55].mxu0 }
 0x1e0   : > { %v8461_v33 = vadd.f32 %v6090_v39, %v6038_v53  ;;  %v6052_v35 = vpop.f32.mrb[51].mxu1  ;;  %v6093_v36 = vadd.f32 %v6092_v9, %v6091_v25 }
 0x1e1   : > { %v6053_v37 = vadd.f32 %v6052_v35, %v6051_v44  ;;  %6559 = vmatmul.mubr.msk.bf16.vlgmr.msra.gmra.mrb[156].mxu0 %vm656_vm0, %v7036_v23 }
 0x1e2   : > { %v8464_v38 = vadd.f32 %v6093_v36, %v6041_v60  ;;  %4719 = vmatmul.mubr.bf16.gmra.mrb[152].mxu1 %v7034_v26  ;;  %6562 = vmatprep.mubr.msk.bf16.mxu0 %vm656_vm0, %v7040_v27  ;;  %v7046_v60 = vld [vmem:[%s7646_s13 + $0x520] ss:$28 sps:$4 sm:$0xff]  }
 0x1e3   : > { %4726 = vmatprep.mubr.bf16.mxu1 %v7037_v30 }
 0x1e4   : > { %v6094_v40 = vpop.f32.mrb[56].mxu0 }
 0x1e5   : > { %v6054_v42 = vpop.f32.mrb[52].mxu1  ;;  %v6095_v55 = vpop.f32.mrb[57].mxu0 }
 0x1e6   : > { %v6055_v45 = vpop.f32.mrb[53].mxu1  ;;  %v6096_v46 = vadd.f32 %v6095_v55, %v6094_v40  ;;  %v6097_v47 = vpop.f32.mrb[58].mxu0 }
 0x1e7   : > { %v6056_v50 = vadd.f32 %v6055_v45, %v6054_v42  ;;  %v6057_v59 = vpop.f32.mrb[54].mxu1  ;;  %v6098_v51 = vpop.f32.mrb[59].mxu0 }
 0x1e8   : > { %v8471_v53 = vadd.f32 %v6096_v46, %v6044_v11  ;;  %v6058_v18 = vpop.f32.mrb[55].mxu1  ;;  %v6099_v2 = vadd.f32 %v6098_v51, %v6097_v47  ;;  %v1745_v47 = vld [vmem:[#allocation2 + $0x70] sm:$0xff] }
 0x1e9   : > { %v6059_v54 = vadd.f32 %v6058_v18, %v6057_v59  ;;  %6563 = vmatmul.mubr.msk.bf16.gmra.mrb[160].mxu0 %vm656_vm0, %v7041_v43  ;;  %v1743_v59 = vld [vmem:[#allocation2 + $0x60] sm:$0xff] }
 0x1ea   : > { %v8474_v48 = vadd.f32 %v6099_v2, %v6047_v16  ;;  %4727 = vmatmul.mubr.bf16.gmra.mrb[156].mxu1 %v7039_v49  ;;  %6566 = vmatprep.mubr.msk.bf16.mxu0 %vm656_vm0, %v7045_v31  ;;  %v1746_v2 = vld [vmem:[#allocation2 + $0x78] sm:$0xff] }
 0x1eb   : > { %4734 = vmatprep.mubr.bf16.mxu1 %v7042_v52 }
 0x1ec   : > { %v6100_v56 = vpop.f32.mrb[60].mxu0 }
 0x1ed   : > { %v6060_v57 = vpop.f32.mrb[56].mxu1  ;;  %v6101_v58 = vpop.f32.mrb[61].mxu0 }
 0x1ee   : > { %v6061_v5 = vpop.f32.mrb[57].mxu1  ;;  %v6102_v20 = vadd.f32 %v6101_v58, %v6100_v56  ;;  %v6103_v62 = vpop.f32.mrb[62].mxu0 }
 0x1ef   : > { %v6062_v17 = vadd.f32 %v6061_v5, %v6060_v57  ;;  %v6063_v0 = vpop.f32.mrb[58].mxu1  ;;  %v6104_v1 = vpop.f32.mrb[63].mxu0  ;;  %v1744_v5 = vld [vmem:[#allocation2 + $0x68] sm:$0xff] }
 0x1f0   : > { %v8480_v4 = vadd.f32 %v6102_v20, %v6050_v28  ;;  %v6064_v6 = vpop.f32.mrb[59].mxu1  ;;  %v6105_v32 = vadd.f32 %v6104_v1, %v6103_v62 }
 0x1f1   : > { %v6065_v7 = vadd.f32 %v6064_v6, %v6063_v0  ;;  %6567 = vmatmul.mubr.msk.bf16.gmra.mrb[164].mxu0 %vm656_vm0, %v7046_v60 }
 0x1f2   : > { %v8483_v24 = vadd.f32 %v6105_v32, %v6053_v37  ;;  %4735 = vmatmul.mubr.bf16.gmra.mrb[160].mxu1 %v7044_v63 }
 0x1f3   : > { %4742 = vmatprep.mubr.bf16.mxu1 %v7047_v3 }
 0x1f4   : > { %v6106_v8 = vpop.f32.mrb[64].mxu0 }
 0x1f5   : > { %v6134_v10 = vpop.f32.mrb[60].mxu1  ;;  %v6107_v11 = vpop.f32.mrb[65].mxu0 }
 0x1f6   : > { %v6135_v12 = vpop.f32.mrb[61].mxu1  ;;  %v6108_v13 = vadd.f32 %v6107_v11, %v6106_v8  ;;  %v6109_v14 = vpop.f32.mrb[66].mxu0 }
 0x1f7   : > { %v6136_v29 = vadd.f32 %v6135_v12, %v6134_v10  ;;  %v6137_v16 = vpop.f32.mrb[62].mxu1  ;;  %v6110_v21 = vpop.f32.mrb[67].mxu0 }
 0x1f8   : > { %v8486_v22 = vadd.f32 %v6108_v13, %v6056_v50  ;;  %v6138_v61 = vpop.f32.mrb[63].mxu1  ;;  %v6111_v23 = vadd.f32 %v6110_v21, %v6109_v14 }
 0x1f9   : > { %v6139_v34 = vadd.f32 %v6138_v61, %v6137_v16  ;;  %v2629_v39 = vadd.f32 %v6136_v29, %v8452_v41 }
 0x1fa   : > { %v8489_v25 = vadd.f32 %v6111_v23, %v6059_v54  ;;  %4743 = vmatmul.mubr.bf16.gmra.mrb[164].mxu1 %v7049_v15  ;;  %v1748_v15 = vld [vmem:[#allocation2 + $0x88] sm:$0xff] }
 0x1fb   : > { %v2632_v26 = vadd.f32 %v6139_v34, %v8454_v19 }
 0x1fc   : > { %v6112_v27 = vpop.f32.mrb[68].mxu0 }
 0x1fd   : > { %v6140_v28 = vpop.f32.mrb[64].mxu1  ;;  %v6113_v44 = vpop.f32.mrb[69].mxu0 }
 0x1fe   : > { %v6141_v9 = vpop.f32.mrb[65].mxu1  ;;  %v6114_v30 = vadd.f32 %v6113_v44, %v6112_v27  ;;  %v6115_v35 = vpop.f32.mrb[70].mxu0  ;;  %v1750_v27 = vld [vmem:[#allocation2 + $0x98] sm:$0xff] }
 0x1ff   : > { %v6142_v36 = vadd.f32 %v6141_v9, %v6140_v28  ;;  %v6143_v37 = vpop.f32.mrb[66].mxu1  ;;  %v6116_v40 = vpop.f32.mrb[71].mxu0 }
 0x200   : > { %v8492_v42 = vadd.f32 %v6114_v30, %v6062_v17  ;;  %v6144_v55 = vpop.f32.mrb[67].mxu1  ;;  %v6117_v43 = vadd.f32 %v6116_v40, %v6115_v35 }
 0x201   : > { %v6145_v45 = vadd.f32 %v6144_v55, %v6143_v37  ;;  %v2637_v41 = vadd.f32 %v6142_v36, %v8461_v33 }
 0x202   : > { %v8495_v46 = vadd.f32 %v6117_v43, %v6065_v7  ;;  %v1747_v7 = vld [vmem:[#allocation2 + $0x80] sm:$0xff] }
 0x203   : > { %v2640_v19 = vadd.f32 %v6145_v45, %v8464_v38 }
 0x204   : > { %v6528_v49 = vpop.f32.mrb[72].mxu0 }
 0x205   : > { %v6146_v31 = vpop.f32.mrb[68].mxu1  ;;  %v2718_v50 = vadd.f32 %v6528_v49, %v2637_v41  ;;  %v2709_v51 = vpop.f32.mrb[73].mxu0 }
 0x206   : > { %v6147_v52 = vpop.f32.mrb[69].mxu1  ;;  %v2710_v18 = vadd.f32 %v2709_v51, %v2629_v39  ;;  %v6529_v54 = vpop.f32.mrb[74].mxu0 }
 0x207   : > { %v6148_v56 = vadd.f32 %v6147_v52, %v6146_v31  ;;  %v2758_v57 = vadd.f32 %v2718_v50, %v1745_v47  ;;  %v6149_v58 = vpop.f32.mrb[70].mxu1  ;;  %v2721_v60 = vadd.f32 %v6529_v54, %v2640_v19  ;;  %v2712_v33 = vpop.f32.mrb[75].mxu0  ;;  %v1751_v19 = vld [vmem:[#allocation2 + $0xa0] sm:$0xff]  ;;  %v1752_v31 = vld [vmem:[#allocation2 + $0xa8] sm:$0xff] }
 0x208   : > { %v2756_v20 = vadd.f32 %v2710_v18, %v1743_v59  ;;  %v6150_v62 = vpop.f32.mrb[71].mxu1  ;;  %v2713_v63 = vadd.f32 %v2712_v33, %v2632_v26 }
 0x209   : > { %2770 = vst.msk [vmem:[#allocation2 + $0x70] sm:$0xff] %vm656_vm0, %v2758_v57  ;;  %v6151_v38 = vadd.f32 %v6150_v62, %v6149_v58  ;;  %v2759_v17 = vadd.f32 %v2721_v60, %v1746_v2  ;;  %v2645_v0 = vadd.f32 %v6148_v56, %v8471_v53  ;;  %v1753_v58 = vld [vmem:[#allocation2 + $0xb0] sm:$0xff] }
 0x20a   : > { %2768 = vst.msk [vmem:[#allocation2 + $0x60] sm:$0xff] %vm656_vm0, %v2756_v20  ;;  %v2757_v1 = vadd.f32 %v2713_v63, %v1744_v5  ;;  %v1754_v5 = vld [vmem:[#allocation2 + $0xb8] sm:$0xff] }
 0x20b   : > { %2771 = vst.msk [vmem:[#allocation2 + $0x78] sm:$0xff] %vm656_vm0, %v2759_v17  ;;  %v2648_v3 = vadd.f32 %v6151_v38, %v8474_v48  ;;  %v1749_v48 = vld [vmem:[#allocation2 + $0x90] sm:$0xff] }
 0x20c   : > { %2769 = vst.msk [vmem:[#allocation2 + $0x68] sm:$0xff] %vm656_vm0, %v2757_v1  ;;  %v6532_v6 = vpop.f32.mrb[76].mxu0 }
 0x20d   : > { %v6152_v32 = vpop.f32.mrb[72].mxu1  ;;  %v2725_v8 = vpop.f32.mrb[77].mxu0 }
 0x20e   : > { %v6153_v10 = vpop.f32.mrb[73].mxu1  ;;  %v2726_v11 = vadd.f32 %v2725_v8, %v2645_v0  ;;  %v6533_v12 = vpop.f32.mrb[78].mxu0 }
 0x20f   : > { %v6154_v13 = vadd.f32 %v6153_v10, %v6152_v32  ;;  %v6155_v14 = vpop.f32.mrb[74].mxu1  ;;  %v2728_v53 = vpop.f32.mrb[79].mxu0 }
 0x210   : > { %v2760_v29 = vadd.f32 %v2726_v11, %v1747_v7  ;;  %v6156_v16 = vpop.f32.mrb[75].mxu1  ;;  %v2729_v21 = vadd.f32 %v2728_v53, %v2648_v3 }
 0x211   : > { %v2653_v61 = vadd.f32 %v6154_v13, %v8480_v4  ;;  %v6157_v23 = vadd.f32 %v6156_v16, %v6155_v14 }
 0x212   : > { %2772 = vst.msk [vmem:[#allocation2 + $0x80] sm:$0xff] %vm656_vm0, %v2760_v29  ;;  %v2761_v34 = vadd.f32 %v2729_v21, %v1748_v15 }
 0x213   : > { %v2734_v39 = vadd.f32 %v6532_v6, %v2653_v61  ;;  %v2656_v26 = vadd.f32 %v6157_v23, %v8483_v24 }
 0x214   : > { %2773 = vst.msk [vmem:[#allocation2 + $0x88] sm:$0xff] %vm656_vm0, %v2761_v34  ;;  %v6536_v28 = vpop.f32.mrb[80].mxu0 }
 0x215   : > { %v2762_v44 = vadd.f32 %v2734_v39, %v1749_v48  ;;  %v2737_v9 = vadd.f32 %v6533_v12, %v2656_v26  ;;  %v6158_v30 = vpop.f32.mrb[76].mxu1  ;;  %v2741_v35 = vpop.f32.mrb[81].mxu0 }
 0x216   : > { %v6159_v36 = vpop.f32.mrb[77].mxu1  ;;  %v6537_v37 = vpop.f32.mrb[82].mxu0 }
 0x217   : > { %2774 = vst.msk [vmem:[#allocation2 + $0x90] sm:$0xff] %vm656_vm0, %v2762_v44  ;;  %v2763_v4 = vadd.f32 %v2737_v9, %v1750_v27  ;;  %v6160_v40 = vadd.f32 %v6159_v36, %v6158_v30  ;;  %v6161_v55 = vpop.f32.mrb[78].mxu1  ;;  %v2744_v43 = vpop.f32.mrb[83].mxu0 }
 0x218   : > { %v6162_v45 = vpop.f32.mrb[79].mxu1 }
 0x219   : > { %2775 = vst.msk [vmem:[#allocation2 + $0x98] sm:$0xff] %vm656_vm0, %v2763_v4  ;;  %v6163_v24 = vadd.f32 %v6162_v45, %v6161_v55  ;;  %v2661_v41 = vadd.f32 %v6160_v40, %v8486_v22 }
 0x21b   : > { %v2742_v47 = vadd.f32 %v2741_v35, %v2661_v41  ;;  %v2664_v49 = vadd.f32 %v6163_v24, %v8489_v25 }
 0x21d   : > { %v2764_v50 = vadd.f32 %v2742_v47, %v1751_v19  ;;  %v2745_v59 = vadd.f32 %v2744_v43, %v2664_v49  ;;  %v6164_v51 = vpop.f32.mrb[80].mxu1 }
 0x21e   : > { %v6165_v52 = vpop.f32.mrb[81].mxu1 }
 0x21f   : > { %2776 = vst.msk [vmem:[#allocation2 + $0xa0] sm:$0xff] %vm656_vm0, %v2764_v50  ;;  %v2765_v18 = vadd.f32 %v2745_v59, %v1752_v31  ;;  %v6166_v2 = vadd.f32 %v6165_v52, %v6164_v51  ;;  %v6167_v54 = vpop.f32.mrb[82].mxu1 }
 0x220   : > { %v6168_v56 = vpop.f32.mrb[83].mxu1 }
 0x221   : > { %2777 = vst.msk [vmem:[#allocation2 + $0xa8] sm:$0xff] %vm656_vm0, %v2765_v18  ;;  %v2669_v57 = vadd.f32 %v6166_v2, %v8492_v42  ;;  %v6169_v22 = vadd.f32 %v6168_v56, %v6167_v54 }
 0x223   : > { %v2750_v60 = vadd.f32 %v6536_v28, %v2669_v57  ;;  %v2672_v25 = vadd.f32 %v6169_v22, %v8495_v46 }
 0x224   : > { %v6194_v33 = vpop.f32.mrb[84].mxu0 }
 0x225   : > { %v2766_v20 = vadd.f32 %v2750_v60, %v1753_v58  ;;  %v2753_v62 = vadd.f32 %v6537_v37, %v2672_v25  ;;  %v6246_v63 = vpop.f32.mrb[84].mxu1  ;;  %v6195_v38 = vpop.f32.mrb[85].mxu0 }
 0x226   : > { %v6196_v17 = vadd.f32 %v6195_v38, %v6194_v33  ;;  %v6247_v0 = vpop.f32.mrb[85].mxu1  ;;  %v6197_v1 = vpop.f32.mrb[86].mxu0 }
 0x227   : > { %2778 = vst.msk [vmem:[#allocation2 + $0xb0] sm:$0xff] %vm656_vm0, %v2766_v20  ;;  %v2767_v3 = vadd.f32 %v2753_v62, %v1754_v5  ;;  %v6248_v6 = vadd.f32 %v6247_v0, %v6246_v63  ;;  %v6249_v32 = vpop.f32.mrb[86].mxu1  ;;  %v6198_v42 = vpop.f32.mrb[87].mxu0 }
 0x228   : > { %v6199_v7 = vadd.f32 %v6198_v42, %v6197_v1  ;;  %v6250_v8 = vpop.f32.mrb[87].mxu1 }
 0x229   : > { %2779 = vst.msk [vmem:[#allocation2 + $0xb8] sm:$0xff] %vm656_vm0, %v2767_v3  ;;  %v8518_v46 = vadd.f32 %v6248_v6, %v6196_v17  ;;  %v6251_v10 = vadd.f32 %v6250_v8, %v6249_v32 }
 0x22b   : > { %v8520_v11 = vadd.f32 %v6251_v10, %v6199_v7 }
 0x22c   : > { %v6200_v12 = vpop.f32.mrb[88].mxu0 }
 0x22d   : > { %v6252_v13 = vpop.f32.mrb[88].mxu1  ;;  %v6201_v14 = vpop.f32.mrb[89].mxu0 }
 0x22e   : > { %v6202_v15 = vadd.f32 %v6201_v14, %v6200_v12  ;;  %v6253_v53 = vpop.f32.mrb[89].mxu1  ;;  %v6203_v29 = vpop.f32.mrb[90].mxu0 }
 0x22f   : > { %v6254_v16 = vadd.f32 %v6253_v53, %v6252_v13  ;;  %v6255_v21 = vpop.f32.mrb[90].mxu1  ;;  %v6204_v61 = vpop.f32.mrb[91].mxu0 }
 0x230   : > { %v6205_v23 = vadd.f32 %v6204_v61, %v6203_v29  ;;  %v6256_v48 = vpop.f32.mrb[91].mxu1 }
 0x231   : > { %v8522_v34 = vadd.f32 %v6254_v16, %v6202_v15  ;;  %v6257_v39 = vadd.f32 %v6256_v48, %v6255_v21 }
 0x233   : > { %v8524_v26 = vadd.f32 %v6257_v39, %v6205_v23 }
 0x234   : > { %v6206_v27 = vpop.f32.mrb[92].mxu0 }
 0x235   : > { %v6258_v28 = vpop.f32.mrb[92].mxu1  ;;  %v6207_v44 = vpop.f32.mrb[93].mxu0 }
 0x236   : > { %v6208_v9 = vadd.f32 %v6207_v44, %v6206_v27  ;;  %v6259_v30 = vpop.f32.mrb[93].mxu1  ;;  %v6209_v35 = vpop.f32.mrb[94].mxu0 }
 0x237   : > { %v6260_v36 = vadd.f32 %v6259_v30, %v6258_v28  ;;  %v6261_v37 = vpop.f32.mrb[94].mxu1  ;;  %v6210_v4 = vpop.f32.mrb[95].mxu0 }
 0x238   : > { %v6211_v40 = vadd.f32 %v6210_v4, %v6209_v35  ;;  %v6262_v55 = vpop.f32.mrb[95].mxu1 }
 0x239   : > { %v8526_v43 = vadd.f32 %v6260_v36, %v6208_v9  ;;  %v6263_v45 = vadd.f32 %v6262_v55, %v6261_v37  ;;  %v2781_v37 = vld [vmem:[#allocation2 + $0xc0] sm:$0xff]  ;;  %v2782_v55 = vld [vmem:[#allocation2 + $0xc8] sm:$0xff] }
 0x23b   : > { %v8528_v24 = vadd.f32 %v6263_v45, %v6211_v40 }
 0x23c   : > { %v6212_v41 = vpop.f32.mrb[96].mxu0 }
 0x23d   : > { %v6264_v19 = vpop.f32.mrb[96].mxu1  ;;  %v6213_v47 = vpop.f32.mrb[97].mxu0 }
 0x23e   : > { %v6214_v49 = vadd.f32 %v6213_v47, %v6212_v41  ;;  %v6265_v31 = vpop.f32.mrb[97].mxu1  ;;  %v6215_v50 = vpop.f32.mrb[98].mxu0 }
 0x23f   : > { %v6266_v59 = vadd.f32 %v6265_v31, %v6264_v19  ;;  %v6267_v51 = vpop.f32.mrb[98].mxu1  ;;  %v6216_v52 = vpop.f32.mrb[99].mxu0 }
 0x240   : > { %v6217_v18 = vadd.f32 %v6216_v52, %v6215_v50  ;;  %v6268_v2 = vpop.f32.mrb[99].mxu1 }
 0x241   : > { %v8530_v54 = vadd.f32 %v6266_v59, %v6214_v49  ;;  %v6269_v56 = vadd.f32 %v6268_v2, %v6267_v51 }
 0x243   : > { %v8532_v57 = vadd.f32 %v6269_v56, %v6217_v18  ;;  %v2783_v56 = vld [vmem:[#allocation2 + $0xd0] sm:$0xff] }
 0x244   : > { %v6218_v22 = vpop.f32.mrb[100].mxu0 }
 0x245   : > { %v6270_v58 = vpop.f32.mrb[100].mxu1  ;;  %v6219_v60 = vpop.f32.mrb[101].mxu0 }
 0x246   : > { %v6220_v25 = vadd.f32 %v6219_v60, %v6218_v22  ;;  %v6271_v5 = vpop.f32.mrb[101].mxu1  ;;  %v6221_v33 = vpop.f32.mrb[102].mxu0  ;;  %v2784_v60 = vld [vmem:[#allocation2 + $0xd8] sm:$0xff] }
 0x247   : > { %v6272_v20 = vadd.f32 %v6271_v5, %v6270_v58  ;;  %v6273_v62 = vpop.f32.mrb[102].mxu1  ;;  %v6222_v63 = vpop.f32.mrb[103].mxu0 }
 0x248   : > { %v6223_v38 = vadd.f32 %v6222_v63, %v6221_v33  ;;  %v6274_v17 = vpop.f32.mrb[103].mxu1 }
 0x249   : > { %v8534_v0 = vadd.f32 %v6272_v20, %v6220_v25  ;;  %v6275_v1 = vadd.f32 %v6274_v17, %v6273_v62 }
 0x24b   : > { %v8536_v3 = vadd.f32 %v6275_v1, %v6223_v38 }
 0x24c   : > { %v6224_v6 = vpop.f32.mrb[104].mxu0 }
 0x24d   : > { %v6276_v32 = vpop.f32.mrb[104].mxu1  ;;  %v6225_v42 = vpop.f32.mrb[105].mxu0 }
 0x24e   : > { %v6226_v7 = vadd.f32 %v6225_v42, %v6224_v6  ;;  %v6277_v8 = vpop.f32.mrb[105].mxu1  ;;  %v6227_v10 = vpop.f32.mrb[106].mxu0 }
 0x24f   : > { %v6278_v12 = vadd.f32 %v6277_v8, %v6276_v32  ;;  %v6279_v13 = vpop.f32.mrb[106].mxu1  ;;  %v6228_v14 = vpop.f32.mrb[107].mxu0 }
 0x250   : > { %v6229_v15 = vadd.f32 %v6228_v14, %v6227_v10  ;;  %v6280_v53 = vpop.f32.mrb[107].mxu1 }
 0x251   : > { %v8538_v29 = vadd.f32 %v6278_v12, %v6226_v7  ;;  %v6281_v16 = vadd.f32 %v6280_v53, %v6279_v13  ;;  %v2785_v7 = vld [vmem:[#allocation2 + $0xe0] sm:$0xff]  ;;  %v2786_v12 = vld [vmem:[#allocation2 + $0xe8] sm:$0xff] }
 0x253   : > { %v8540_v21 = vadd.f32 %v6281_v16, %v6229_v15 }
 0x254   : > { %v6298_v61 = vpop.f32.mrb[108].mxu0 }
 0x255   : > { %v6544_v23 = vpop.f32.mrb[108].mxu1  ;;  %v6299_v48 = vpop.f32.mrb[109].mxu0 }
 0x256   : > { %v6300_v39 = vadd.f32 %v6299_v48, %v6298_v61  ;;  %v3747_v27 = vpop.f32.mrb[109].mxu1  ;;  %v6301_v28 = vpop.f32.mrb[110].mxu0 }
 0x257   : > { %v6545_v44 = vpop.f32.mrb[110].mxu1  ;;  %v6302_v9 = vpop.f32.mrb[111].mxu0 }
 0x258   : > { %v3667_v30 = vadd.f32 %v6300_v39, %v8518_v46  ;;  %v6303_v35 = vadd.f32 %v6302_v9, %v6301_v28  ;;  %v3750_v36 = vpop.f32.mrb[111].mxu1 }
 0x25a   : > { %v3748_v4 = vadd.f32 %v3747_v27, %v3667_v30  ;;  %v3670_v40 = vadd.f32 %v6303_v35, %v8520_v11  ;;  %v2787_v27 = vld [vmem:[#allocation2 + $0xf0] sm:$0xff] }
 0x25c   : > { %v3794_v45 = vadd.f32 %v3748_v4, %v2781_v37  ;;  %v3751_v41 = vadd.f32 %v3750_v36, %v3670_v40  ;;  %v6304_v19 = vpop.f32.mrb[112].mxu0 }
 0x25d   : > { %v6305_v47 = vpop.f32.mrb[113].mxu0  ;;  %v6548_v49 = vpop.f32.mrb[112].mxu1 }
 0x25e   : > { %3806 = vst.msk [vmem:[#allocation2 + $0xc0] sm:$0xff] %vm656_vm0, %v3794_v45  ;;  %v3795_v31 = vadd.f32 %v3751_v41, %v2782_v55  ;;  %v6306_v50 = vadd.f32 %v6305_v47, %v6304_v19  ;;  %v6307_v59 = vpop.f32.mrb[114].mxu0  ;;  %v3763_v51 = vpop.f32.mrb[113].mxu1 }
 0x25f   : > { %v6308_v52 = vpop.f32.mrb[115].mxu0  ;;  %v6549_v46 = vpop.f32.mrb[114].mxu1 }
 0x260   : > { %3807 = vst.msk [vmem:[#allocation2 + $0xc8] sm:$0xff] %vm656_vm0, %v3795_v31  ;;  %v3675_v18 = vadd.f32 %v6306_v50, %v8522_v34  ;;  %v6309_v2 = vadd.f32 %v6308_v52, %v6307_v59  ;;  %v3766_v11 = vpop.f32.mrb[115].mxu1  ;;  %v2789_v31 = vld [vmem:[#allocation2 + $0x100] sm:$0xff]  ;;  %v2790_v52 = vld [vmem:[#allocation2 + $0x108] sm:$0xff] }
 0x262   : > { %v3756_v22 = vadd.f32 %v6544_v23, %v3675_v18  ;;  %v3678_v58 = vadd.f32 %v6309_v2, %v8524_v26 }
 0x264   : > { %v3796_v25 = vadd.f32 %v3756_v22, %v2783_v56  ;;  %v3759_v5 = vadd.f32 %v6545_v44, %v3678_v58  ;;  %v6310_v33 = vpop.f32.mrb[116].mxu0  ;;  %v2788_v44 = vld [vmem:[#allocation2 + $0xf8] sm:$0xff] }
 0x265   : > { %v6311_v20 = vpop.f32.mrb[117].mxu0  ;;  %v8548_v62 = vpop.f32.mrb[116].mxu1 }
 0x266   : > { %3808 = vst.msk [vmem:[#allocation2 + $0xd0] sm:$0xff] %vm656_vm0, %v3796_v25  ;;  %v3797_v63 = vadd.f32 %v3759_v5, %v2784_v60  ;;  %v6312_v38 = vadd.f32 %v6311_v20, %v6310_v33  ;;  %v6313_v17 = vpop.f32.mrb[118].mxu0  ;;  %v3779_v1 = vpop.f32.mrb[117].mxu1 }
 0x267   : > { %v6314_v34 = vpop.f32.mrb[119].mxu0  ;;  %v8551_v6 = vpop.f32.mrb[118].mxu1 }
 0x268   : > { %3809 = vst.msk [vmem:[#allocation2 + $0xd8] sm:$0xff] %vm656_vm0, %v3797_v63  ;;  %v3683_v26 = vadd.f32 %v6312_v38, %v8526_v43  ;;  %v6315_v32 = vadd.f32 %v6314_v34, %v6313_v17  ;;  %v3782_v42 = vpop.f32.mrb[119].mxu1  ;;  %v2791_v38 = vld [vmem:[#allocation2 + $0x110] sm:$0xff] }
 0x26a   : > { %v3764_v8 = vadd.f32 %v3763_v51, %v3683_v26  ;;  %v3686_v10 = vadd.f32 %v6315_v32, %v8528_v24  ;;  %v2792_v26 = vld [vmem:[#allocation2 + $0x118] sm:$0xff] }
 0x26c   : > { %v3798_v13 = vadd.f32 %v3764_v8, %v2785_v7  ;;  %v3767_v14 = vadd.f32 %v3766_v11, %v3686_v10  ;;  %v6316_v15 = vpop.f32.mrb[120].mxu0 }
 0x26d   : > { %v6317_v53 = vpop.f32.mrb[121].mxu0 }
 0x26e   : > { %3810 = vst.msk [vmem:[#allocation2 + $0xe0] sm:$0xff] %vm656_vm0, %v3798_v13  ;;  %v3799_v16 = vadd.f32 %v3767_v14, %v2786_v12  ;;  %v6318_v61 = vadd.f32 %v6317_v53, %v6316_v15  ;;  %v6319_v23 = vpop.f32.mrb[122].mxu0 }
 0x26f   : > { %v6320_v48 = vpop.f32.mrb[123].mxu0 }
 0x270   : > { %3811 = vst.msk [vmem:[#allocation2 + $0xe8] sm:$0xff] %vm656_vm0, %v3799_v16  ;;  %v3691_v43 = vadd.f32 %v6318_v61, %v8530_v54  ;;  %v6321_v39 = vadd.f32 %v6320_v48, %v6319_v23 }
 0x272   : > { %v3772_v28 = vadd.f32 %v6548_v49, %v3691_v43  ;;  %v3694_v24 = vadd.f32 %v6321_v39, %v8532_v57 }
 0x274   : > { %v3800_v9 = vadd.f32 %v3772_v28, %v2787_v27  ;;  %v3775_v30 = vadd.f32 %v6549_v46, %v3694_v24  ;;  %v6322_v35 = vpop.f32.mrb[124].mxu0 }
 0x275   : > { %v6358_v36 = vpop.f32.mrb[120].mxu1  ;;  %v6323_v37 = vpop.f32.mrb[125].mxu0 }
 0x276   : > { %3812 = vst.msk [vmem:[#allocation2 + $0xf0] sm:$0xff] %vm656_vm0, %v3800_v9  ;;  %v3801_v4 = vadd.f32 %v3775_v30, %v2788_v44  ;;  %v6359_v40 = vpop.f32.mrb[121].mxu1  ;;  %v6324_v55 = vadd.f32 %v6323_v37, %v6322_v35  ;;  %v6325_v45 = vpop.f32.mrb[126].mxu0 }
 0x277   : > { %v6360_v41 = vadd.f32 %v6359_v40, %v6358_v36  ;;  %v6361_v19 = vpop.f32.mrb[122].mxu1  ;;  %v6326_v54 = vpop.f32.mrb[127].mxu0 }
 0x278   : > { %3813 = vst.msk [vmem:[#allocation2 + $0xf8] sm:$0xff] %vm656_vm0, %v3801_v4  ;;  %v3699_v47 = vadd.f32 %v6324_v55, %v8534_v0  ;;  %v6362_v57 = vpop.f32.mrb[123].mxu1  ;;  %v6327_v49 = vadd.f32 %v6326_v54, %v6325_v45 }
 0x279   : > { %v6363_v50 = vadd.f32 %v6362_v57, %v6361_v19 }
 0x27a   : > { %v3780_v59 = vadd.f32 %v3779_v1, %v3699_v47  ;;  %v3702_v51 = vadd.f32 %v6327_v49, %v8536_v3 }
 0x27c   : > { %v3802_v46 = vadd.f32 %v3780_v59, %v2789_v31  ;;  %v3783_v18 = vadd.f32 %v3782_v42, %v3702_v51  ;;  %v6328_v2 = vpop.f32.mrb[128].mxu0 }
 0x27d   : > { %v6364_v11 = vpop.f32.mrb[124].mxu1  ;;  %v6329_v56 = vpop.f32.mrb[129].mxu0 }
 0x27e   : > { %3814 = vst.msk [vmem:[#allocation2 + $0x100] sm:$0xff] %vm656_vm0, %v3802_v46  ;;  %v3803_v22 = vadd.f32 %v3783_v18, %v2790_v52  ;;  %v6365_v58 = vpop.f32.mrb[125].mxu1  ;;  %v6330_v60 = vadd.f32 %v6329_v56, %v6328_v2  ;;  %v6331_v25 = vpop.f32.mrb[130].mxu0 }
 0x27f   : > { %v6366_v0 = vadd.f32 %v6365_v58, %v6364_v11  ;;  %v6367_v5 = vpop.f32.mrb[126].mxu1  ;;  %v6332_v33 = vpop.f32.mrb[131].mxu0 }
 0x280   : > { %3815 = vst.msk [vmem:[#allocation2 + $0x108] sm:$0xff] %vm656_vm0, %v3803_v22  ;;  %v3707_v20 = vadd.f32 %v6330_v60, %v8538_v29  ;;  %v6368_v3 = vpop.f32.mrb[127].mxu1  ;;  %v6333_v63 = vadd.f32 %v6332_v33, %v6331_v25  ;;  %v4861_v33 = vld [vmem:[#allocation2] sm:$0xff] }
 0x281   : > { %v6369_v17 = vadd.f32 %v6368_v3, %v6367_v5  ;;  %v8589_v5 = vld [vmem:[%s8895_s2] ss:$0 sm:$0xff] }
 0x282   : > { %v3788_v1 = vadd.f32 %v8548_v62, %v3707_v20  ;;  %v3710_v34 = vadd.f32 %v6333_v63, %v8540_v21 }
 0x284   : > { %v3804_v32 = vadd.f32 %v3788_v1, %v2791_v38  ;;  %v3791_v42 = vadd.f32 %v8551_v6, %v3710_v34  ;;  %v6410_v7 = vpop.f32.mrb[132].mxu0  ;;  %v4862_v38 = vld [vmem:[#allocation2 + $0x8] sm:$0xff]  ;;  %v4864_v34 = vld [vmem:[#allocation2 + $0x18] sm:$0xff] }
 0x285   : > { %v6370_v8 = vpop.f32.mrb[128].mxu1  ;;  %v6411_v10 = vpop.f32.mrb[133].mxu0 }
 0x286   : > { %3816 = vst.msk [vmem:[#allocation2 + $0x110] sm:$0xff] %vm656_vm0, %v3804_v32  ;;  %v3805_v12 = vadd.f32 %v3791_v42, %v2792_v26  ;;  %v6371_v13 = vpop.f32.mrb[129].mxu1  ;;  %v6412_v29 = vadd.f32 %v6411_v10, %v6410_v7  ;;  %v6413_v14 = vpop.f32.mrb[134].mxu0  ;;  %v4879_v32 = vmul.f32 %v8589_v5, %v4861_v33  ;;  %v8601_v42 = vld [vmem:[%s8896_s3] ss:$0 sm:$0xff]  ;;  %v4880_v7 = vmul.f32 %v8589_v5, %v4862_v38 }
 0x287   : > { %v6372_v15 = vadd.f32 %v6371_v13, %v6370_v8  ;;  %v6373_v53 = vpop.f32.mrb[130].mxu1  ;;  %v6414_v16 = vpop.f32.mrb[135].mxu0  ;;  %v4925_v33 = vld [vmem:[#allocation2 + $0x80] sm:$0xff] }
 0x288   : > { %3817 = vst.msk [vmem:[#allocation2 + $0x118] sm:$0xff] %vm656_vm0, %v3805_v12  ;;  %v8572_v62 = vadd.f32 %v6412_v29, %v6360_v41  ;;  %v6374_v21 = vpop.f32.mrb[131].mxu1  ;;  %v6415_v61 = vadd.f32 %v6414_v16, %v6413_v14  ;;  %v4882_v12 = vmul.f32 %v8589_v5, %v4864_v34  ;;  %v4865_v14 = vld [vmem:[#allocation2 + $0x20] sm:$0xff]  ;;  %v4926_v34 = vld [vmem:[#allocation2 + $0x88] sm:$0xff] }
 0x289   : > { %v6375_v23 = vadd.f32 %v6374_v21, %v6373_v53  ;;  %v8607_v21 = vadd.f32 %v8601_v42, %v4879_v32 }
 0x28a   : > { %v8574_v6 = vadd.f32 %v6415_v61, %v6363_v50  ;;  %v4866_v61 = vld [vmem:[#allocation2 + $0x28] sm:$0xff] }
 0x28c   : > { %v6416_v48 = vpop.f32.mrb[136].mxu0 }
 0x28d   : > { %v6376_v43 = vpop.f32.mrb[132].mxu1  ;;  %v6417_v39 = vpop.f32.mrb[137].mxu0 }
 0x28e   : > { %v6377_v27 = vpop.f32.mrb[133].mxu1  ;;  %v6418_v28 = vadd.f32 %v6417_v39, %v6416_v48  ;;  %v6419_v24 = vpop.f32.mrb[138].mxu0  ;;  %v4868_v48 = vld [vmem:[#allocation2 + $0x38] sm:$0xff] }
 0x28f   : > { %v6378_v44 = vadd.f32 %v6377_v27, %v6376_v43  ;;  %v6379_v9 = vpop.f32.mrb[134].mxu1  ;;  %v6420_v30 = vpop.f32.mrb[139].mxu0 }
 0x290   : > { %v8576_v35 = vadd.f32 %v6418_v28, %v6366_v0  ;;  %v6380_v36 = vpop.f32.mrb[135].mxu1  ;;  %v6421_v37 = vadd.f32 %v6420_v30, %v6419_v24  ;;  %v8610_v28 = vadd.f32 %v8601_v42, %v4880_v7 }
 0x291   : > { %v6381_v4 = vadd.f32 %v6380_v36, %v6379_v9  ;;  %v4921_v9 = vld [vmem:[#allocation2 + $0x60] sm:$0xff] }
 0x292   : > { %v8578_v40 = vadd.f32 %v6421_v37, %v6369_v17  ;;  %v4863_v17 = vld [vmem:[#allocation2 + $0x10] sm:$0xff] }
 0x293   : > { %v4881_v8 = vmul.f32 %v8589_v5, %v4863_v17 }
 0x294   : > { %v6422_v55 = vpop.f32.mrb[140].mxu0 }
 0x295   : > { %v6382_v45 = vpop.f32.mrb[136].mxu1  ;;  %v6423_v41 = vpop.f32.mrb[141].mxu0  ;;  %v8613_v24 = vadd.f32 %v8601_v42, %v4881_v8 }
 0x296   : > { %v6383_v19 = vpop.f32.mrb[137].mxu1  ;;  %v6424_v54 = vadd.f32 %v6423_v41, %v6422_v55  ;;  %v6425_v47 = vpop.f32.mrb[142].mxu0  ;;  %v4883_v55 = vmul.f32 %v8589_v5, %v4865_v14 }
 0x297   : > { %v6384_v57 = vadd.f32 %v6383_v19, %v6382_v45  ;;  %v6385_v49 = vpop.f32.mrb[138].mxu1  ;;  %v6426_v31 = vpop.f32.mrb[143].mxu0  ;;  %v4924_v45 = vld [vmem:[#allocation2 + $0x78] sm:$0xff] }
 0x298   : > { %v8580_v50 = vadd.f32 %v6424_v54, %v6372_v15  ;;  %v6386_v59 = vpop.f32.mrb[139].mxu1  ;;  %v6427_v51 = vadd.f32 %v6426_v31, %v6425_v47  ;;  %v4884_v54 = vmul.f32 %v8589_v5, %v4866_v61  ;;  %v4981_v61 = vld [vmem:[#allocation2 + $0xc0] sm:$0xff] }
 0x299   : > { %v6387_v52 = vadd.f32 %v6386_v59, %v6385_v49  ;;  %v4886_v49 = vmul.f32 %v8589_v5, %v4868_v48 }
 0x29a   : > { %v8582_v46 = vadd.f32 %v6427_v51, %v6375_v23  ;;  %v4867_v23 = vld [vmem:[#allocation2 + $0x30] sm:$0xff]  ;;  %v4933_v51 = vmul.f32 %v8589_v5, %v4921_v9 }
 0x29b   : > { %v4885_v47 = vmul.f32 %v8589_v5, %v4867_v23  ;;  %v8650_v17 = vadd.f32 %v8601_v42, %v4886_v49  ;;  %v4928_v49 = vld [vmem:[#allocation2 + $0x98] sm:$0xff] }
 0x29c   : > { %v6428_v18 = vpop.f32.mrb[144].mxu0 }
 0x29d   : > { %v6388_v2 = vpop.f32.mrb[140].mxu1  ;;  %v6429_v11 = vpop.f32.mrb[145].mxu0  ;;  %v8647_v38 = vadd.f32 %v8601_v42, %v4885_v47  ;;  %v4916_v47 = vmax.f32 %v8650_v17, 0.0 }
 0x29e   : > { %v6389_v56 = vpop.f32.mrb[141].mxu1  ;;  %v6430_v22 = vadd.f32 %v6429_v11, %v6428_v18  ;;  %v6431_v58 = vpop.f32.mrb[146].mxu0  ;;  %v4869_v11 = vld [vmem:[#allocation2 + $0x40] sm:$0xff] }
 0x29f   : > { %v8584_v60 = vadd.f32 %v6389_v56, %v6388_v2  ;;  %v6391_v25 = vpop.f32.mrb[142].mxu1  ;;  %v6432_v0 = vpop.f32.mrb[147].mxu0  ;;  %v4909_v2 = vmax.f32 %v8607_v21, 0.0  ;;  %v4936_v56 = vmul.f32 %v8589_v5, %v4924_v45 }
 0x2a0   : > { %v8591_v20 = vadd.f32 %v6430_v22, %v6378_v44  ;;  %v6392_v3 = vpop.f32.mrb[143].mxu1  ;;  %v6433_v63 = vadd.f32 %v6432_v0, %v6431_v58  ;;  %v4923_v44 = vld [vmem:[#allocation2 + $0x70] sm:$0xff]  ;;  %v8638_v58 = vadd.f32 %v8601_v42, %v4883_v55 }
 0x2a1   : > { %v8593_v1 = vadd.f32 %v6392_v3, %v6391_v25  ;;  %v4935_v59 = vmul.f32 %v8589_v5, %v4923_v44  ;;  %v4938_v44 = vmul.f32 %v8589_v5, %v4926_v34  ;;  %v4984_v34 = vld [vmem:[#allocation2 + $0xd8] sm:$0xff] }
 0x2a2   : > { %v8595_v26 = vadd.f32 %v6433_v63, %v6381_v4  ;;  %v8618_v4 = vadd.f32 %v8601_v42, %v4882_v12  ;;  %v8644_v63 = vadd.f32 %v8601_v42, %v4884_v54  ;;  %v4913_v55 = vmax.f32 %v8638_v58, 0.0  ;;  %v4927_v54 = vld [vmem:[#allocation2 + $0x90] sm:$0xff] }
 0x2a3   : > { %v8654_v12 = vadd.f32 %v8601_v42, %v4935_v59  ;;  %v4983_v59 = vld [vmem:[#allocation2 + $0xd0] sm:$0xff] }
 0x2a4   : > { %v6434_v10 = vpop.f32.mrb[148].mxu0  ;;  %v4912_v25 = vmax.f32 %v8618_v4, 0.0  ;;  %v4914_v45 = vmax.f32 %v8644_v63, 0.0  ;;  %v3824_v63 = vld [vmem:[#allocation2 + $0x148] sm:$0xff] }
 0x2a5   : > { %v6462_v13 = vpop.f32.mrb[144].mxu1  ;;  %v6435_v29 = vpop.f32.mrb[149].mxu0 }
 0x2a6   : > { %v6463_v15 = vpop.f32.mrb[145].mxu1  ;;  %v6436_v53 = vadd.f32 %v6435_v29, %v6434_v10  ;;  %v6437_v16 = vpop.f32.mrb[150].mxu0  ;;  %v4887_v10 = vmul.f32 %v8589_v5, %v4869_v11  ;;  %v4959_v11 = vmax.f32 %v8654_v12, 0.0  ;;  %v4940_v12 = vmul.f32 %v8589_v5, %v4928_v49 }
 0x2a7   : > { %v6464_v43 = vadd.f32 %v6463_v15, %v6462_v13  ;;  %v6465_v39 = vpop.f32.mrb[146].mxu1  ;;  %v6438_v27 = vpop.f32.mrb[151].mxu0  ;;  %v8657_v13 = vadd.f32 %v8601_v42, %v4933_v51 }
 0x2a8   : > { %v8615_v30 = vadd.f32 %v6436_v53, %v6384_v57  ;;  %v6466_v36 = vpop.f32.mrb[147].mxu1  ;;  %v6439_v37 = vadd.f32 %v6438_v27, %v6437_v16  ;;  %v4922_v57 = vld [vmem:[#allocation2 + $0x68] sm:$0xff]  ;;  %v8660_v53 = vadd.f32 %v8601_v42, %v4936_v56  ;;  %v4937_v16 = vmul.f32 %v8589_v5, %v4925_v33 }
 0x2a9   : > { %v6467_v41 = vadd.f32 %v6466_v36, %v6465_v39  ;;  %v8622_v19 = vadd.f32 %v6464_v43, %v8572_v62  ;;  %v4910_v62 = vmax.f32 %v8610_v28, 0.0  ;;  %v4934_v0 = vmul.f32 %v8589_v5, %v4922_v57  ;;  %v4870_v39 = vld [vmem:[#allocation2 + $0x48] sm:$0xff] }
 0x2aa   : > { %v8627_v31 = vadd.f32 %v6439_v37, %v6387_v52  ;;  %v4911_v52 = vmax.f32 %v8613_v24, 0.0  ;;  %v4915_v37 = vmax.f32 %v8647_v38, 0.0  ;;  %v4993_v57 = vmul.f32 %v8589_v5, %v4981_v61 }
 0x2ab   : > { %v8632_v18 = vadd.f32 %v6467_v41, %v8574_v6  ;;  %v8667_v27 = vadd.f32 %v8601_v42, %v4934_v0  ;;  %v8678_v41 = vadd.f32 %v8601_v42, %v4887_v10  ;;  %v4888_v51 = vmul.f32 %v8589_v5, %v4870_v39 }
 0x2ac   : > { %v6440_v22 = vpop.f32.mrb[152].mxu0  ;;  %v4957_v56 = vmax.f32 %v8657_v13, 0.0  ;;  %v4960_v33 = vmax.f32 %v8660_v53, 0.0  ;;  %v4939_v10 = vmul.f32 %v8589_v5, %v4927_v54  ;;  %v4982_v13 = vld [vmem:[#allocation2 + $0xc8] sm:$0xff]  ;;  %v3822_v53 = vld [vmem:[#allocation2 + $0x138] sm:$0xff]  ;;  %v5005_v61 = vadd.f32 %v8601_v42, %v4993_v57 }
 0x2ad   : > { %v6468_v6 = vpop.f32.mrb[148].mxu1  ;;  %v6441_v3 = vpop.f32.mrb[153].mxu0  ;;  %v4996_v54 = vmul.f32 %v8589_v5, %v4984_v34 }
 0x2ae   : > { %v6469_v32 = vpop.f32.mrb[149].mxu1  ;;  %v6442_v7 = vadd.f32 %v6441_v3, %v6440_v22  ;;  %v6443_v8 = vpop.f32.mrb[154].mxu0  ;;  %v3821_v22 = vld [vmem:[#allocation2 + $0x130] sm:$0xff]  ;;  %v4950_v3 = vadd.f32 %v8601_v42, %v4938_v44  ;;  %v3820_v44 = vld [vmem:[#allocation2 + $0x128] sm:$0xff] }
 0x2af   : > { %v6470_v29 = vadd.f32 %v6469_v32, %v6468_v6  ;;  %v6471_v14 = vpop.f32.mrb[150].mxu1  ;;  %v6444_v15 = vpop.f32.mrb[155].mxu0  ;;  %v4958_v6 = vmax.f32 %v8667_v27, 0.0 }
 0x2b0   : > { %v8664_v23 = vadd.f32 %v6442_v7, %v8584_v60  ;;  %v6472_v48 = vpop.f32.mrb[151].mxu1  ;;  %v6445_v43 = vadd.f32 %v6444_v15, %v6443_v8  ;;  %v3819_v7 = vld [vmem:[#allocation2 + $0x120] sm:$0xff] }
 0x2b1   : > { %v6473_v9 = vadd.f32 %v6472_v48, %v6471_v14  ;;  %v4713_v36 = vadd.f32 %v6470_v29, %v8576_v35  ;;  %v4995_v29 = vmul.f32 %v8589_v5, %v4983_v59 }
 0x2b2   : > { %v8675_v60 = vadd.f32 %v6445_v43, %v8593_v1  ;;  %v4949_v1 = vadd.f32 %v8601_v42, %v4937_v16 }
 0x2b3   : > { %v4716_v35 = vadd.f32 %v6473_v9, %v8578_v40 }
 0x2b4   : > { %v6560_v0 = vpop.f32.mrb[156].mxu0 }
 0x2b5   : > { %v6474_v32 = vpop.f32.mrb[152].mxu1  ;;  %v4794_v40 = vadd.f32 %v6560_v0, %v4713_v36  ;;  %v4785_v8 = vpop.f32.mrb[157].mxu0  ;;  %v4961_v36 = vmax.f32 %v4949_v1, 0.0  ;;  %v5007_v1 = vadd.f32 %v8601_v42, %v4995_v29 }
 0x2b6   : > { %v6475_v14 = vpop.f32.mrb[153].mxu1  ;;  %v4786_v15 = vadd.f32 %v4785_v8, %v8622_v19  ;;  %v6561_v16 = vpop.f32.mrb[158].mxu0  ;;  %v4994_v19 = vmul.f32 %v8589_v5, %v4982_v13  ;;  %v5017_v8 = vmax.f32 %v5005_v61, 0.0  ;;  %v5008_v13 = vadd.f32 %v8601_v42, %v4996_v54 }
 0x2b7   : > { %v6476_v48 = vadd.f32 %v6475_v14, %v6474_v32  ;;  %v4834_v43 = vadd.f32 %v4794_v40, %v3821_v22  ;;  %v6477_v39 = vpop.f32.mrb[154].mxu1  ;;  %v4797_v27 = vadd.f32 %v6561_v16, %v4716_v35  ;;  %v4788_v9 = vpop.f32.mrb[159].mxu0  ;;  %v8702_v35 = vadd.f32 %v8601_v42, %v4939_v10 }
 0x2b8   : > { %v4832_v49 = vadd.f32 %v4786_v15, %v3819_v7  ;;  %v6478_v59 = vpop.f32.mrb[155].mxu1  ;;  %v4789_v0 = vadd.f32 %v4788_v9, %v8632_v18  ;;  %v4962_v40 = vmax.f32 %v4950_v3, 0.0  ;;  %v8707_v7 = vadd.f32 %v8601_v42, %v4888_v51 }
 0x2b9   : > { %4846 = vst.msk [vmem:[#allocation2 + $0x130] sm:$0xff] %vm656_vm0, %v4834_v43  ;;  %v6479_v57 = vadd.f32 %v6478_v59, %v6477_v39  ;;  %v4835_v32 = vadd.f32 %v4797_v27, %v3822_v53  ;;  %v4721_v22 = vadd.f32 %v6476_v48, %v8580_v50  ;;  %v8710_v18 = vadd.f32 %v8601_v42, %v4940_v12  ;;  %v4929_v12 = vld [vmem:[#allocation2 + $0xa0] sm:$0xff]  ;;  %v4986_v53 = vld [vmem:[#allocation2 + $0xe8] sm:$0xff] }
 0x2ba   : > { %4844 = vst.msk [vmem:[#allocation2 + $0x120] sm:$0xff] %vm656_vm0, %v4832_v49  ;;  %v4833_v34 = vadd.f32 %v4789_v0, %v3820_v44  ;;  %v4971_v3 = vmax.f32 %v4911_v52, %v4959_v11  ;;  %v4969_v51 = vmax.f32 %v4909_v2, %v4957_v56  ;;  %v4917_v10 = vmax.f32 %v8678_v41, 0.0  ;;  %v4985_v2 = vld [vmem:[#allocation2 + $0xe0] sm:$0xff] }
 0x2bb   : > { %4847 = vst.msk [vmem:[#allocation2 + $0x138] sm:$0xff] %vm656_vm0, %v4835_v32  ;;  %v4724_v50 = vadd.f32 %v6479_v57, %v8582_v46  ;;  %v4972_v14 = vmax.f32 %v4912_v25, %v4960_v33  ;;  %v8731_v46 = vmax.f32 %v4910_v62, %v4958_v6  ;;  %v8735_v24 = vmax.f32 %v4913_v55, %v4961_v36  ;;  %v3823_v11 = vld [vmem:[#allocation2 + $0x140] sm:$0xff] }
 0x2bc   : > { %4845 = vst.msk [vmem:[#allocation2 + $0x128] sm:$0xff] %vm656_vm0, %v4833_v34  ;;  %v6564_v29 = vpop.f32.mrb[160].mxu0  ;;  %v8738_v21 = vadd.f32 %v8601_v42, %v4994_v19  ;;  %v4963_v4 = vmax.f32 %v8702_v35, 0.0  ;;  %v8743_v28 = vmax.f32 %v4914_v45, %v4962_v40  ;;  %v5019_v62 = vmax.f32 %v5007_v1, 0.0  ;;  %v3825_v40 = vld [vmem:[#allocation2 + $0x150] sm:$0xff]  ;;  %v4989_v35 = vld [vmem:[#allocation2 + $0x100] sm:$0xff] }
 0x2bd   : > { %v6480_v52 = vpop.f32.mrb[156].mxu1  ;;  %v4801_v56 = vpop.f32.mrb[161].mxu0  ;;  %v4964_v33 = vmax.f32 %v8710_v18, 0.0  ;;  %v8747_v6 = vmul.f32 %v8589_v5, %v4929_v12  ;;  %v5029_v15 = vmax.f32 %v4969_v51, %v5017_v8  ;;  %v5020_v48 = vmax.f32 %v5008_v13, 0.0  ;;  %v4987_v34 = vld [vmem:[#allocation2 + $0xf0] sm:$0xff] }
 0x2be   : > { %v6481_v25 = vpop.f32.mrb[157].mxu1  ;;  %v4802_v58 = vadd.f32 %v4801_v56, %v4721_v22  ;;  %v6565_v55 = vpop.f32.mrb[162].mxu0  ;;  %v4997_v43 = vmul.f32 %v8589_v5, %v4985_v2  ;;  %v5018_v36 = vmax.f32 %v8738_v21, 0.0  ;;  %v4998_v19 = vmul.f32 %v8589_v5, %v4986_v53  ;;  %v4988_v56 = vld [vmem:[#allocation2 + $0xf8] sm:$0xff] }
 0x2bf   : > { %v6482_v16 = vadd.f32 %v6481_v25, %v6480_v52  ;;  %v6483_v61 = vpop.f32.mrb[158].mxu1  ;;  %v4804_v45 = vpop.f32.mrb[163].mxu0  ;;  %v5031_v57 = vmax.f32 %v4971_v3, %v5019_v62  ;;  %v5032_v21 = vmax.f32 %v4972_v14, %v5020_v48  ;;  %v3826_v52 = vld [vmem:[#allocation2 + $0x158] sm:$0xff] }
 0x2c0   : > { %v5043_v39 = vld [vmem:[#allocation2 + $0x130] sm:$0xff]  ;;  %v4836_v27 = vadd.f32 %v4802_v58, %v3823_v11  ;;  %v6484_v44 = vpop.f32.mrb[159].mxu1  ;;  %v4805_v9 = vadd.f32 %v4804_v45, %v4724_v50  ;;  %v8767_v13 = vadd.f32 %v8601_v42, %v4997_v43 }
 0x2c1   : > { %v5055_v54 = vmul.f32 %v8589_v5, %v5043_v39  ;;  %v5041_v49 = vld [vmem:[#allocation2 + $0x120] sm:$0xff]  ;;  %v4729_v59 = vadd.f32 %v6482_v16, %v8591_v20  ;;  %v6485_v0 = vadd.f32 %v6484_v44, %v6483_v61  ;;  %v5010_v16 = vadd.f32 %v8601_v42, %v4998_v19 }
 0x2c2   : > { %v5053_v32 = vmul.f32 %v8589_v5, %v5041_v49  ;;  %v5044_v22 = vld [vmem:[#allocation2 + $0x138] sm:$0xff]  ;;  %4848 = vst.msk [vmem:[#allocation2 + $0x140] sm:$0xff] %vm656_vm0, %v4836_v27  ;;  %v4837_v1 = vadd.f32 %v4805_v9, %v3824_v63  ;;  %v4999_v61 = vmul.f32 %v8589_v5, %v4987_v34  ;;  %v5000_v49 = vmul.f32 %v8589_v5, %v4988_v56 }
 0x2c3   : > { %v5067_v8 = vadd.f32 %v8601_v42, %v5055_v54  ;;  %v5056_v50 = vmul.f32 %v8589_v5, %v5044_v22  ;;  %v5042_v51 = vld [vmem:[#allocation2 + $0x128] sm:$0xff]  ;;  %v4810_v12 = vadd.f32 %v6564_v29, %v4729_v59  ;;  %v4732_v20 = vadd.f32 %v6485_v0, %v8595_v26 }
 0x2c4   : > { %v5065_v3 = vadd.f32 %v8601_v42, %v5053_v32  ;;  %v5054_v2 = vmul.f32 %v8589_v5, %v5042_v51  ;;  %4849 = vst.msk [vmem:[#allocation2 + $0x148] sm:$0xff] %vm656_vm0, %v4837_v1  ;;  %v8772_v11 = vpop.f32.mrb[164].mxu0  ;;  %v5030_v54 = vmax.f32 %v8731_v46, %v5018_v36  ;;  %v5021_v32 = vmax.f32 %v8767_v13, 0.0  ;;  %v4990_v13 = vld [vmem:[#allocation2 + $0x108] sm:$0xff] }
 0x2c5   : > { %v5079_v62 = vmax.f32 %v5067_v8, 0.0  ;;  %v5068_v25 = vadd.f32 %v8601_v42, %v5056_v50  ;;  %v4838_v29 = vadd.f32 %v4810_v12, %v3825_v40  ;;  %v4813_v58 = vadd.f32 %v6565_v55, %v4732_v20  ;;  %v6486_v26 = vpop.f32.mrb[160].mxu1  ;;  %v4817_v53 = vpop.f32.mrb[165].mxu0  ;;  %v3827_v50 = vld [vmem:[#allocation2 + $0x160] sm:$0xff] }
 0x2c6   : > { %v5077_v14 = vmax.f32 %v5065_v3, 0.0  ;;  %v5066_v63 = vadd.f32 %v8601_v42, %v5054_v2  ;;  %v6487_v45 = vpop.f32.mrb[161].mxu1  ;;  %v8783_v48 = vpop.f32.mrb[166].mxu0  ;;  %v4975_v46 = vmax.f32 %v4915_v37, %v4963_v4  ;;  %v5011_v36 = vadd.f32 %v8601_v42, %v4999_v61 }
 0x2c7   : > { %v5091_v43 = vmax.f32 %v5031_v57, %v5079_v62  ;;  %v5080_v55 = vmax.f32 %v5068_v25, 0.0  ;;  %4850 = vst.msk [vmem:[#allocation2 + $0x150] sm:$0xff] %vm656_vm0, %v4838_v29  ;;  %v4839_v39 = vadd.f32 %v4813_v58, %v3826_v52  ;;  %v6488_v27 = vadd.f32 %v6487_v45, %v6486_v26  ;;  %v6489_v44 = vpop.f32.mrb[162].mxu1  ;;  %v4820_v9 = vpop.f32.mrb[167].mxu0 }
 0x2c8   : > { %v5089_v59 = vmax.f32 %v5029_v15, %v5077_v14  ;;  %v5078_v0 = vmax.f32 %v5066_v63, 0.0  ;;  %v6490_v19 = vpop.f32.mrb[163].mxu1  ;;  %v4930_v15 = vld [vmem:[#allocation2 + $0xa8] sm:$0xff]  ;;  %v5022_v51 = vmax.f32 %v5010_v16, 0.0  ;;  %v8810_v12 = vadd.f32 %v8601_v42, %v8747_v6 }
 0x2c9   : > { %5103 = vst.msk [vmem:[%s8780_s21 + $0x10] sm:$0xff] %vm656_vm0, %v5091_v43  ;;  %v5092_v57 = vmax.f32 %v5032_v21, %v5080_v55  ;;  %v5045_v22 = vld [vmem:[#allocation2 + $0x140] sm:$0xff]  ;;  %4851 = vst.msk [vmem:[#allocation2 + $0x158] sm:$0xff] %vm656_vm0, %v4839_v39  ;;  %v6491_v40 = vadd.f32 %v6490_v19, %v6489_v44  ;;  %v4737_v1 = vadd.f32 %v6488_v27, %v8615_v30  ;;  %v5023_v52 = vmax.f32 %v5011_v36, 0.0  ;;  %v4931_v39 = vld [vmem:[#allocation2 + $0xb0] sm:$0xff] }
 0x2ca   : > { %5101 = vst.msk [vmem:[%s8780_s21] sm:$0xff] %vm656_vm0, %v5089_v59  ;;  %v5090_v34 = vmax.f32 %v5030_v54, %v5078_v0  ;;  %v5057_v8 = vmul.f32 %v8589_v5, %v5045_v22  ;;  %v4976_v30 = vmax.f32 %v4916_v47, %v4964_v33  ;;  %v5012_v20 = vadd.f32 %v8601_v42, %v5000_v49  ;;  %v3828_v47 = vld [vmem:[#allocation2 + $0x168] sm:$0xff]  ;;  %v3829_v19 = vld [vmem:[#allocation2 + $0x170] sm:$0xff] }
 0x2cb   : > { %5104 = vst.msk [vmem:[%s8780_s21 + $0x18] sm:$0xff] %vm656_vm0, %v5092_v57  ;;  %v5046_v38 = vld [vmem:[#allocation2 + $0x148] sm:$0xff]  ;;  %v4818_v37 = vadd.f32 %v4817_v53, %v4737_v1  ;;  %v4740_v4 = vadd.f32 %v6491_v40, %v8627_v31  ;;  %v4942_v33 = vmul.f32 %v8589_v5, %v4930_v15  ;;  %v5033_v3 = vmax.f32 %v8735_v24, %v5021_v32  ;;  %v4871_v32 = vld [vmem:[#allocation2 + $0x50] sm:$0xff]  ;;  %v4932_v57 = vld [vmem:[#allocation2 + $0xb8] sm:$0xff] }
 0x2cc   : > { %5102 = vst.msk [vmem:[%s8780_s21 + $0x8] sm:$0xff] %vm656_vm0, %v5090_v34  ;;  %v5069_v18 = vadd.f32 %v8601_v42, %v5057_v8  ;;  %v5058_v17 = vmul.f32 %v8589_v5, %v5046_v38  ;;  %v5001_v6 = vmul.f32 %v8589_v5, %v4989_v35  ;;  %v5034_v26 = vmax.f32 %v8743_v28, %v5022_v51  ;;  %v4872_v51 = vld [vmem:[#allocation2 + $0x58] sm:$0xff] }
 0x2cd   : > { %v4840_v21 = vadd.f32 %v4818_v37, %v3827_v50  ;;  %v4821_v31 = vadd.f32 %v4820_v9, %v4740_v4  ;;  %v6492_v2 = vpop.f32.mrb[164].mxu1  ;;  %v5024_v61 = vmax.f32 %v5012_v20, 0.0  ;;  %v5002_v14 = vmul.f32 %v8589_v5, %v4990_v13  ;;  %v3830_v50 = vld [vmem:[#allocation2 + $0x178] sm:$0xff] }
 0x2ce   : > { %v5047_v56 = vld [vmem:[#allocation2 + $0x150] sm:$0xff]  ;;  %v5081_v62 = vmax.f32 %v5069_v18, 0.0  ;;  %v5070_v25 = vadd.f32 %v8601_v42, %v5058_v17  ;;  %v6493_v29 = vpop.f32.mrb[165].mxu1  ;;  %v4954_v54 = vadd.f32 %v8601_v42, %v4942_v33  ;;  %v5013_v49 = vadd.f32 %v8601_v42, %v5001_v6  ;;  %v4992_v18 = vld [vmem:[#allocation2 + $0x118] sm:$0xff] }
 0x2cf   : > { %v5059_v58 = vmul.f32 %v8589_v5, %v5047_v56  ;;  %4852 = vst.msk [vmem:[#allocation2 + $0x160] sm:$0xff] %vm656_vm0, %v4840_v21  ;;  %v4841_v53 = vadd.f32 %v4821_v31, %v3828_v47  ;;  %v6494_v16 = vadd.f32 %v6493_v29, %v6492_v2  ;;  %v6495_v24 = vpop.f32.mrb[166].mxu1  ;;  %v5035_v59 = vmax.f32 %v4975_v46, %v5023_v52  ;;  %v4991_v46 = vld [vmem:[#allocation2 + $0x110] sm:$0xff] }
 0x2d0   : > { %v5093_v63 = vmax.f32 %v5033_v3, %v5081_v62  ;;  %v5048_v45 = vld [vmem:[#allocation2 + $0x158] sm:$0xff]  ;;  %v5082_v43 = vmax.f32 %v5070_v25, 0.0  ;;  %v6496_v55 = vpop.f32.mrb[167].mxu1  ;;  %v4965_v15 = vmax.f32 %v8810_v12, 0.0  ;;  %v4943_v36 = vmul.f32 %v8589_v5, %v4931_v39 }
 0x2d1   : > { %v5071_v27 = vadd.f32 %v8601_v42, %v5059_v58  ;;  %v5060_v44 = vmul.f32 %v8589_v5, %v5048_v45  ;;  %4853 = vst.msk [vmem:[#allocation2 + $0x168] sm:$0xff] %vm656_vm0, %v4841_v53  ;;  %v4745_v28 = vadd.f32 %v6494_v16, %v8664_v23  ;;  %v6497_v9 = vadd.f32 %v6496_v55, %v6495_v24 }
 0x2d2   : > { %5105 = vst.msk [vmem:[%s8780_s21 + $0x20] sm:$0xff] %vm656_vm0, %v5093_v63  ;;  %v5094_v0 = vmax.f32 %v5034_v26, %v5082_v43  ;;  %v5014_v34 = vadd.f32 %v8601_v42, %v5002_v14  ;;  %v5036_v8 = vmax.f32 %v4976_v30, %v5024_v61  ;;  %v4966_v4 = vmax.f32 %v4954_v54, 0.0 }
 0x2d3   : > { %v5083_v22 = vmax.f32 %v5071_v27, 0.0  ;;  %v5072_v40 = vadd.f32 %v8601_v42, %v5060_v44  ;;  %v4826_v1 = vadd.f32 %v8772_v11, %v4745_v28  ;;  %v4748_v23 = vadd.f32 %v6497_v9, %v8675_v60 }
 0x2d4   : > { %5106 = vst.msk [vmem:[%s8780_s21 + $0x28] sm:$0xff] %vm656_vm0, %v5094_v0  ;;  %v4889_v60 = vmul.f32 %v8589_v5, %v4871_v32  ;;  %v4944_v12 = vmul.f32 %v8589_v5, %v4932_v57  ;;  %v5025_v20 = vmax.f32 %v5013_v49, 0.0  ;;  %v5003_v30 = vmul.f32 %v8589_v5, %v4991_v46 }
 0x2d5   : > { %v5095_v35 = vmax.f32 %v5035_v59, %v5083_v22  ;;  %v5084_v38 = vmax.f32 %v5072_v40, 0.0  ;;  %v4842_v37 = vadd.f32 %v4826_v1, %v3829_v19  ;;  %v4829_v11 = vadd.f32 %v8783_v48, %v4748_v23 }
 0x2d6   : > { %v5049_v17 = vld [vmem:[#allocation2 + $0x160] sm:$0xff]  ;;  %v4890_v48 = vmul.f32 %v8589_v5, %v4872_v51  ;;  %v4977_v3 = vmax.f32 %v4917_v10, %v4965_v15  ;;  %v4918_v21 = vmax.f32 %v8707_v7, 0.0  ;;  %v4955_v31 = vadd.f32 %v8601_v42, %v4943_v36 }
 0x2d7   : > { %5107 = vst.msk [vmem:[%s8780_s21 + $0x30] sm:$0xff] %vm656_vm0, %v5095_v35  ;;  %v5096_v47 = vmax.f32 %v5036_v8, %v5084_v38  ;;  %v5061_v33 = vmul.f32 %v8589_v5, %v5049_v17  ;;  %4854 = vst.msk [vmem:[#allocation2 + $0x170] sm:$0xff] %vm656_vm0, %v4842_v37  ;;  %v4843_v13 = vadd.f32 %v4829_v11, %v3830_v50  ;;  %v5026_v52 = vmax.f32 %v5014_v34, 0.0 }
 0x2d8   : > { %v5050_v2 = vld [vmem:[#allocation2 + $0x168] sm:$0xff]  ;;  %v5004_v6 = vmul.f32 %v8589_v5, %v4992_v18  ;;  %v4907_v25 = vadd.f32 %v8601_v42, %v4889_v60  ;;  %v4978_v41 = vmax.f32 %v4918_v21, %v4966_v4  ;;  %v4956_v7 = vadd.f32 %v8601_v42, %v4944_v12 }
 0x2d9   : > { %5108 = vst.msk [vmem:[%s8780_s21 + $0x38] sm:$0xff] %vm656_vm0, %v5096_v47  ;;  %v5073_v56 = vadd.f32 %v8601_v42, %v5061_v33  ;;  %v5062_v62 = vmul.f32 %v8589_v5, %v5050_v2  ;;  %4855 = vst.msk [vmem:[#allocation2 + $0x178] sm:$0xff] %vm656_vm0, %v4843_v13  ;;  %v5015_v10 = vadd.f32 %v8601_v42, %v5003_v30  ;;  %v4967_v16 = vmax.f32 %v4955_v31, 0.0 }
 0x2da   : > { %v5037_v29 = vmax.f32 %v4977_v3, %v5025_v20  ;;  %v4908_v53 = vadd.f32 %v8601_v42, %v4890_v48  ;;  %v5016_v24 = vadd.f32 %v8601_v42, %v5004_v6  ;;  %v5038_v14 = vmax.f32 %v4978_v41, %v5026_v52 }
 0x2db   : > { %v5085_v58 = vmax.f32 %v5073_v56, 0.0  ;;  %v5074_v26 = vadd.f32 %v8601_v42, %v5062_v62  ;;  %v4919_v45 = vmax.f32 %v4907_v25, 0.0  ;;  %v4968_v55 = vmax.f32 %v4956_v7, 0.0 }
 0x2dc   : > { %v5027_v39 = vmax.f32 %v5015_v10, 0.0  ;;  %v4920_v28 = vmax.f32 %v4908_v53, 0.0  ;;  %v5028_v49 = vmax.f32 %v5016_v24, 0.0 }
 0x2dd   : > { %v5097_v61 = vmax.f32 %v5037_v29, %v5085_v58  ;;  %v5086_v63 = vmax.f32 %v5074_v26, 0.0  ;;  %v4979_v54 = vmax.f32 %v4919_v45, %v4967_v16 }
 0x2de   : > { %v5051_v43 = vld [vmem:[#allocation2 + $0x170] sm:$0xff]  ;;  %v4980_v19 = vmax.f32 %v4920_v28, %v4968_v55 }
 0x2df   : > { %5109 = vst.msk [vmem:[%s8780_s21 + $0x40] sm:$0xff] %vm656_vm0, %v5097_v61  ;;  %v5098_v27 = vmax.f32 %v5038_v14, %v5086_v63  ;;  %v5063_v44 = vmul.f32 %v8589_v5, %v5051_v43  ;;  %v5039_v32 = vmax.f32 %v4979_v54, %v5027_v39 }
 0x2e0   : > { %v5052_v9 = vld [vmem:[#allocation2 + $0x178] sm:$0xff]  ;;  %v5040_v40 = vmax.f32 %v4980_v19, %v5028_v49 }
 0x2e1   : > { %5110 = vst.msk [vmem:[%s8780_s21 + $0x48] sm:$0xff] %vm656_vm0, %v5098_v27  ;;  %v5075_v59 = vadd.f32 %v8601_v42, %v5063_v44  ;;  %v5064_v0 = vmul.f32 %v8589_v5, %v5052_v9 }
 0x2e3   : > { %v5087_v57 = vmax.f32 %v5075_v59, 0.0  ;;  %v5076_v22 = vadd.f32 %v8601_v42, %v5064_v0 }
 0x2e5   : > { %v5099_v1 = vmax.f32 %v5039_v32, %v5087_v57  ;;  %v5088_v23 = vmax.f32 %v5076_v22, 0.0 }
 0x2e7   : > { %5111 = vst.msk [vmem:[%s8780_s21 + $0x50] sm:$0xff] %vm656_vm0, %v5099_v1  ;;  %v5100_v15 = vmax.f32 %v5040_v40, %v5088_v23 }
 0x2e9   : > { %5112 = vst.msk [vmem:[%s8780_s21 + $0x58] sm:$0xff] %vm656_vm0, %v5100_v15 }
 0x2ea PF: > { %s14_s19 = sadd.s32 1, %s7088_s19   ;;  %s8899_s15 = smov %s7076_s16 }
 0x2eb   : > { %p11_p10 = scmp.ge.s32.totalorder %s14_s19, 4   ;;  %s8900_s16 = smov %s7151_s23 }
 0x2ec   : > { %s8901_s17 = smov %s7084_s18  ;;  %s8902_s18 = smov %s8904_s20 }
 0x2ed   :  { %13 = sbr.rel (!%p11_p10) target bundleno = 3 (0x3), region = 120 }

// kernel: net_forward.7
= control target key start
LH: loop header
LB: loop body
LE: loop exit
PB: predicated region body
PF: predicated region fallthrough
CT: control target
= control target key end

     0   :  { %s1882_s15 = smov 0   ;;  %s1884_s16 = smov 0   ;;  %s2123_s0 = inlined_call_operand.vmem [shape: bf16[1,16,2048], index: 0, kind: input, shape index: {}]   ;;  %s2124_s1 = inlined_call_operand.vmem [shape: bf16[2048,256], index: 1, kind: input, shape index: {}]   ;;  %s2125_s2 = inlined_call_operand.vmem [shape: f32[1,256], index: 2, kind: input, shape index: {}]   ;;  %s2126_s3 = inlined_call_operand.vmem [shape: f32[1,256], index: 3, kind: input, shape index: {}]   ;;  %s2127_s4 = inlined_call_operand.vmem [shape: f32[16,256], index: 4, kind: output, shape index: {}]  }
   0x1   :  { %s1886_s17 = smov 0   ;;  %s1888_s18 = smov 0  }
   0x2   :  { %s1890_s19 = smov 0  }
   0x3 LB: > { %s23_s20 = sadd.s32 1, %s1850_s18  ;;  %p42_p1 = scmp.ne.s32.totalorder %s1842_s16, %s1838_s15  ;;  %s1854_s19 = sphi %s1890_s19, %s14_s19   ;;  %s1850_s18 = sphi %s1888_s18, %s2131_s18   ;;  %s1846_s17 = sphi %s1886_s17, %s2130_s17   ;;  %s1842_s16 = sphi %s1884_s16, %s2129_s16   ;;  %s1838_s15 = sphi %s1882_s15, %s2128_s15  }
   0x4   : > { %p24_p0 = scmp.ge.s32.totalorder %s23_s20, 2  ;;  %p43_p2 = scmp.eq.s32.totalorder %s1854_s19, 0 }
   0x5   : > { %s35_s22 = sadd.s32 1, %s1842_s16  ;;  %p1418_p5 = scmp.ge.s32.totalorder %s1854_s19, 2 }
   0x6   : > { %s2133_s20 = smov (%p24_p0, %s23_s20), 0  ;;  %p44_p3 = por %p43_p2, %p42_p1 }
   0x7   : > { %s31_s21 = ssub.s32 %s1850_s18, %s2133_s20  ;;  %168 = sbr.rel (%p1418_p5) target bundleno = 22 (0x16), region = 24 }
   0x8   : > { %p33_p4 = scmp.eq.s32.totalorder %s31_s21, 0 }
   0xa   : > { %s1917_s23 = scalar_select %p33_p4, %s1842_s16, %s35_s22  }
   0xe   : > { %171 = sbr.rel (!%p44_p3) target bundleno = 22 (0x16), region = 28  ;;  %s173_s24 = sand.u32 (%p44_p3), 1, %s1842_s16  }
   0xf   : > { %s1569_s25 = sshll.u32 (%p44_p3), %s1850_s18, 5  ;;  %s1419_s26 = sshll.u32 (%p44_p3), %s173_s24, 6 }
  0x10   : > { %s181_s29 = scalar_lea.vmem (%p44_p3), %s2123_s0, %s1569_s25  ;;  %s175_s30 = scalar_lea.vmem (%p44_p3), [#allocation3], %s1419_s26 }
  0x11   : > { %v194_v0 = vld [vmem:[%s181_s29] sm:$0xff] (%p44_p3)  ;;  %v196_v1 = vld [vmem:[%s181_s29 + $0x8] sm:$0xff] (%p44_p3)  ;;  %v198_v2 = vld [vmem:[%s181_s29 + $0x10] sm:$0xff] (%p44_p3) }
  0x12   : > { %195 = vst [vmem:[%s175_s30] sm:$0xff] (%p44_p3), %v194_v0  ;;  %197 = vst [vmem:[%s175_s30 + $0x8] sm:$0xff] (%p44_p3), %v196_v1  ;;  %v200_v3 = vld [vmem:[%s181_s29 + $0x18] sm:$0xff] (%p44_p3)  ;;  %v202_v4 = vld [vmem:[%s181_s29 + $0x40] sm:$0xff] (%p44_p3) }
  0x13   : > { %199 = vst [vmem:[%s175_s30 + $0x10] sm:$0xff] (%p44_p3), %v198_v2  ;;  %v204_v5 = vld [vmem:[%s181_s29 + $0x48] sm:$0xff] (%p44_p3)  ;;  %201 = vst [vmem:[%s175_s30 + $0x18] sm:$0xff] (%p44_p3), %v200_v3  ;;  %v206_v6 = vld [vmem:[%s181_s29 + $0x50] sm:$0xff] (%p44_p3) }
  0x14   : > { %203 = vst [vmem:[%s175_s30 + $0x20] sm:$0xff] (%p44_p3), %v202_v4  ;;  %205 = vst [vmem:[%s175_s30 + $0x28] sm:$0xff] (%p44_p3), %v204_v5  ;;  %v208_v7 = vld [vmem:[%s181_s29 + $0x58] sm:$0xff] (%p44_p3) }
  0x15   : > { %207 = vst [vmem:[%s175_s30 + $0x30] sm:$0xff] %v206_v6  ;;  %209 = vst [vmem:[%s175_s30 + $0x38] sm:$0xff] %v208_v7 }
  0x16 PF: > { %p1422_p6 = scmp.ge.s32.totalorder %s1854_s19, 1  ;;  %p224_p7 = scmp.lt.s32.totalorder %s1854_s19, 3 }
  0x18   : > { %p225_p8 = pnand %p1422_p6, %p224_p7 }
  0x19   : > { %s231_s5 = sand.u32 (!%p225_p8), 1, %s1838_s15   ;;  %s1424_s6 = sshll.u32 (!%p225_p8), %s1846_s17, 7 }
  0x1a   : > { %228 = sbr.rel (%p225_p8) target bundleno = 402 (0x192), region = 55  ;;  %s1423_s7 = sshll.u32 (!%p225_p8), %s231_s5, 6 }
  0x1b   : > { %p266_p9 = scmp.lt.s32.totalorder (!%p225_p8), %s1424_s6, 255  ;;  %s1934_s12 = scalar_lea.vmem (!%p225_p8), [#allocation3], %s1423_s7 }
  0x1c   : > { %p1427_p10 = scmp.ne.s32.totalorder (!%p225_p8), %s1846_s17, 0 }
  0x21   : > { %s2135_s6 = smov (!%p266_p9, %s1424_s6), 255  ;;  %282 = sbr.rel (%p1427_p10) target bundleno = 40 (0x28), region = 63 }
  0x22   : > { %s1570_s8 = sshll.u32 %s2135_s6, 3  ;;  %v1856_v8 = vmov (!%p1427_p10), 0.0  }
  0x23   : > { %s1932_s11 = scalar_lea.vmem %s2124_s1, %s1570_s8  ;;  %283 = vst [vmem:[#allocation2] sm:$0xff] (!%p1427_p10), %v1856_v8  ;;  %284 = vst [vmem:[#allocation2 + $0x8] sm:$0xff] (!%p1427_p10), %v1856_v8 }
  0x24   : > { %285 = vst [vmem:[#allocation2 + $0x10] sm:$0xff] (!%p1427_p10), %v1856_v8  ;;  %286 = vst [vmem:[#allocation2 + $0x18] sm:$0xff] (!%p1427_p10), %v1856_v8 }
  0x28 PF: > { %v1624_v9 = vld [vmem:[%s1932_s11 + $0x4] ss:$8 sps:$4 sm:$0xff]   ;;  %v1628_v11 = vld [vmem:[%s1932_s11] ss:$8 sps:$4 sm:$0xff]   ;;  %v1630_v13 = vld [vmem:[%s1932_s11 + $0x14] ss:$8 sps:$4 sm:$0xff]  }
  0x29   : > { %v1626_v10 = vld [vmem:[%s1932_s11 + $0x204] ss:$8 sps:$4 sm:$0xff]   ;;  %1107 = vmatprep.subr.bf16.mxu1 %v1624_v9  ;;  %v1629_v12 = vld [vmem:[%s1932_s11 + $0x200] ss:$8 sps:$4 sm:$0xff]   ;;  %v1632_v14 = vld [vmem:[%s1932_s11 + $0x214] ss:$8 sps:$4 sm:$0xff]  }
  0x2a   : > { %1193 = vmatprep.subr.bf16.mxu0 %v1626_v10  ;;  %1108 = vmatpush1.bf16.msra.mxu1 %v1628_v11  ;;  %v1634_v15 = vld [vmem:[%s1932_s11 + $0x10] ss:$8 sps:$4 sm:$0xff]   ;;  %v1636_v17 = vld [vmem:[%s1932_s11 + $0x24] ss:$8 sps:$4 sm:$0xff]   ;;  %v1640_v19 = vld [vmem:[%s1932_s11 + $0x20] ss:$8 sps:$4 sm:$0xff]  }
  0x2b   : > { %1194 = vmatpush1.bf16.msra.mxu0 %v1629_v12  ;;  %1109 = vmatprep.subr.bf16.mxu1 %v1630_v13  ;;  %v1635_v16 = vld [vmem:[%s1932_s11 + $0x210] ss:$8 sps:$4 sm:$0xff]   ;;  %v1638_v18 = vld [vmem:[%s1932_s11 + $0x224] ss:$8 sps:$4 sm:$0xff]   ;;  %v1641_v20 = vld [vmem:[%s1932_s11 + $0x220] ss:$8 sps:$4 sm:$0xff]  }
  0x2c   : > { %1195 = vmatprep.subr.bf16.mxu0 %v1632_v14  ;;  %v1642_v21 = vld [vmem:[%s1932_s11 + $0x34] ss:$8 sps:$4 sm:$0xff]   ;;  %v1646_v23 = vld [vmem:[%s1932_s11 + $0x30] ss:$8 sps:$4 sm:$0xff]   ;;  %v1648_v25 = vld [vmem:[%s1932_s11 + $0x44] ss:$8 sps:$4 sm:$0xff]  }
  0x2d   : > { %v1644_v22 = vld [vmem:[%s1932_s11 + $0x234] ss:$8 sps:$4 sm:$0xff]   ;;  %v1647_v24 = vld [vmem:[%s1932_s11 + $0x230] ss:$8 sps:$4 sm:$0xff]   ;;  %v1650_v26 = vld [vmem:[%s1932_s11 + $0x244] ss:$8 sps:$4 sm:$0xff]  }
  0x2e   : > { %1110 = vmatpush1.bf16.msra.mxu1 %v1634_v15  ;;  %v1652_v27 = vld [vmem:[%s1932_s11 + $0x40] ss:$8 sps:$4 sm:$0xff]   ;;  %v1654_v29 = vld [vmem:[%s1932_s11 + $0x54] ss:$8 sps:$4 sm:$0xff]   ;;  %v1658_v31 = vld [vmem:[%s1932_s11 + $0x50] ss:$8 sps:$4 sm:$0xff]  }
  0x2f   : > { %1196 = vmatpush1.bf16.msra.mxu0 %v1635_v16  ;;  %1111 = vmatprep.subr.bf16.mxu1 %v1636_v17  ;;  %v1653_v28 = vld [vmem:[%s1932_s11 + $0x240] ss:$8 sps:$4 sm:$0xff]   ;;  %v1656_v30 = vld [vmem:[%s1932_s11 + $0x254] ss:$8 sps:$4 sm:$0xff]   ;;  %v1659_v32 = vld [vmem:[%s1932_s11 + $0x250] ss:$8 sps:$4 sm:$0xff]  }
  0x30   : > { %1197 = vmatprep.subr.bf16.mxu0 %v1638_v18  ;;  %v1660_v33 = vld [vmem:[%s1932_s11 + $0x64] ss:$8 sps:$4 sm:$0xff]   ;;  %v1664_v35 = vld [vmem:[%s1932_s11 + $0x60] ss:$8 sps:$4 sm:$0xff]   ;;  %v1666_v37 = vld [vmem:[%s1932_s11 + $0x74] ss:$8 sps:$4 sm:$0xff]  }
  0x31   : > { %v1662_v34 = vld [vmem:[%s1932_s11 + $0x264] ss:$8 sps:$4 sm:$0xff]   ;;  %v1665_v36 = vld [vmem:[%s1932_s11 + $0x260] ss:$8 sps:$4 sm:$0xff]   ;;  %v1668_v38 = vld [vmem:[%s1932_s11 + $0x274] ss:$8 sps:$4 sm:$0xff]  }
  0x32   : > { %1112 = vmatpush1.bf16.msra.mxu1 %v1640_v19  ;;  %v1670_v39 = vld [vmem:[%s1932_s11 + $0x70] ss:$8 sps:$4 sm:$0xff]   ;;  %v1672_v41 = vld [vmem:[%s1932_s11 + $0x84] ss:$8 sps:$4 sm:$0xff]   ;;  %v1676_v43 = vld [vmem:[%s1932_s11 + $0x80] ss:$8 sps:$4 sm:$0xff]  }
  0x33   : > { %1198 = vmatpush1.bf16.msra.mxu0 %v1641_v20  ;;  %1113 = vmatprep.subr.bf16.mxu1 %v1642_v21  ;;  %v1671_v40 = vld [vmem:[%s1932_s11 + $0x270] ss:$8 sps:$4 sm:$0xff]   ;;  %v1674_v42 = vld [vmem:[%s1932_s11 + $0x284] ss:$8 sps:$4 sm:$0xff]   ;;  %v1677_v44 = vld [vmem:[%s1932_s11 + $0x280] ss:$8 sps:$4 sm:$0xff]  }
  0x34   : > { %1199 = vmatprep.subr.bf16.mxu0 %v1644_v22  ;;  %v1678_v45 = vld [vmem:[%s1932_s11 + $0x94] ss:$8 sps:$4 sm:$0xff]   ;;  %v1682_v47 = vld [vmem:[%s1932_s11 + $0x90] ss:$8 sps:$4 sm:$0xff]   ;;  %v1684_v49 = vld [vmem:[%s1932_s11 + $0xa4] ss:$8 sps:$4 sm:$0xff]  }
  0x35   : > { %v1680_v46 = vld [vmem:[%s1932_s11 + $0x294] ss:$8 sps:$4 sm:$0xff]   ;;  %v1683_v48 = vld [vmem:[%s1932_s11 + $0x290] ss:$8 sps:$4 sm:$0xff]   ;;  %v1686_v50 = vld [vmem:[%s1932_s11 + $0x2a4] ss:$8 sps:$4 sm:$0xff]  }
  0x36   : > { %1114 = vmatpush1.bf16.msra.mxu1 %v1646_v23  ;;  %v1688_v51 = vld [vmem:[%s1932_s11 + $0xa0] ss:$8 sps:$4 sm:$0xff]   ;;  %v1690_v53 = vld [vmem:[%s1932_s11 + $0xb4] ss:$8 sps:$4 sm:$0xff]   ;;  %v1694_v55 = vld [vmem:[%s1932_s11 + $0xb0] ss:$8 sps:$4 sm:$0xff]  }
  0x37   : > { %1200 = vmatpush1.bf16.msra.mxu0 %v1647_v24  ;;  %1115 = vmatprep.subr.bf16.mxu1 %v1648_v25  ;;  %v1689_v52 = vld [vmem:[%s1932_s11 + $0x2a0] ss:$8 sps:$4 sm:$0xff]   ;;  %v1692_v54 = vld [vmem:[%s1932_s11 + $0x2b4] ss:$8 sps:$4 sm:$0xff]   ;;  %v1695_v56 = vld [vmem:[%s1932_s11 + $0x2b0] ss:$8 sps:$4 sm:$0xff]  }
  0x38   : > { %1201 = vmatprep.subr.bf16.mxu0 %v1650_v26  ;;  %v291_v57 = vld [vmem:[%s1934_s12] sm:$0xff]  ;;  %v293_v62 = vld [vmem:[%s1934_s12 + $0x10] sm:$0xff]  ;;  %p1564_p11 = scmp.ne.s32.totalorder %s1846_s17, 1 }
  0x39   : > { %v295_v58 = vld [vmem:[%s1934_s12 + $0x20] sm:$0xff]  ;;  %v297_v63 = vld [vmem:[%s1934_s12 + $0x30] sm:$0xff] }
  0x3a   : > { %1116 = vmatpush1.bf16.msra.mxu1 %v1652_v27  ;;  %v1696_v59 = vld [vmem:[%s1932_s11 + $0xc4] ss:$8 sps:$4 sm:$0xff]   ;;  %v1429_v61 = vcombine.high %v291_v57, %v295_v58  ;;  %v1433_v0 = vcombine.high %v293_v62, %v297_v63  ;;  %v1700_v1 = vld [vmem:[%s1932_s11 + $0xc0] ss:$8 sps:$4 sm:$0xff]   ;;  %v1702_v3 = vld [vmem:[%s1932_s11 + $0xd4] ss:$8 sps:$4 sm:$0xff]   ;;  %v1428_v17 = vcombine.low %v291_v57, %v295_v58  ;;  %v1432_v19 = vcombine.low %v293_v62, %v297_v63 }
  0x3b   : > { %1202 = vmatpush1.bf16.msra.mxu0 %v1653_v28  ;;  %1117 = vmatprep.subr.bf16.mxu1 %v1654_v29  ;;  %v1698_v60 = vld [vmem:[%s1932_s11 + $0x2c4] ss:$8 sps:$4 sm:$0xff]   ;;  %v1701_v2 = vld [vmem:[%s1932_s11 + $0x2c0] ss:$8 sps:$4 sm:$0xff]   ;;  %v1704_v4 = vld [vmem:[%s1932_s11 + $0x2d4] ss:$8 sps:$4 sm:$0xff]  }
  0x3c   : > { %1203 = vmatprep.subr.bf16.mxu0 %v1656_v30  ;;  %1139 = vmatprep.mubr.bf16.mxu1 %v1429_v61  ;;  %v1706_v5 = vld [vmem:[%s1932_s11 + $0xd0] ss:$8 sps:$4 sm:$0xff]   ;;  %v1708_v7 = vld [vmem:[%s1932_s11 + $0xe4] ss:$8 sps:$4 sm:$0xff]   ;;  %v1712_v9 = vld [vmem:[%s1932_s11 + $0xe0] ss:$8 sps:$4 sm:$0xff]  }
  0x3d   : > { %1225 = vmatprep.mubr.bf16.mxu0 %v1433_v0  ;;  %v1707_v6 = vld [vmem:[%s1932_s11 + $0x2d0] ss:$8 sps:$4 sm:$0xff]   ;;  %v1710_v8 = vld [vmem:[%s1932_s11 + $0x2e4] ss:$8 sps:$4 sm:$0xff]   ;;  %v1713_v10 = vld [vmem:[%s1932_s11 + $0x2e0] ss:$8 sps:$4 sm:$0xff]  }
  0x3e   : > { %1118 = vmatpush1.bf16.msra.mxu1 %v1658_v31  ;;  %v1714_v11 = vld [vmem:[%s1932_s11 + $0xf4] ss:$8 sps:$4 sm:$0xff]   ;;  %v1718_v13 = vld [vmem:[%s1932_s11 + $0xf0] ss:$8 sps:$4 sm:$0xff]   ;;  %v1722_v15 = vld [vmem:[%s1932_s11 + $0x104] ss:$8 sps:$4 sm:$0xff]  }
  0x3f   : > { %1204 = vmatpush1.bf16.msra.mxu0 %v1659_v32  ;;  %1119 = vmatprep.subr.bf16.mxu1 %v1660_v33  ;;  %v1716_v12 = vld [vmem:[%s1932_s11 + $0x2f4] ss:$8 sps:$4 sm:$0xff]   ;;  %v1719_v14 = vld [vmem:[%s1932_s11 + $0x2f0] ss:$8 sps:$4 sm:$0xff]   ;;  %v1725_v16 = vld [vmem:[%s1932_s11 + $0x304] ss:$8 sps:$4 sm:$0xff]  }
  0x40   : > { %1205 = vmatprep.subr.bf16.mxu0 %v1662_v34  ;;  %v1720_v18 = vld [vmem:[%s1932_s11 + $0x100] ss:$8 sps:$4 sm:$0xff]   ;;  %v1728_v21 = vld [vmem:[%s1932_s11 + $0x114] ss:$8 sps:$4 sm:$0xff]   ;;  %v1726_v23 = vld [vmem:[%s1932_s11 + $0x110] ss:$8 sps:$4 sm:$0xff]  }
  0x41   : > { %v1723_v20 = vld [vmem:[%s1932_s11 + $0x300] ss:$8 sps:$4 sm:$0xff]   ;;  %v1731_v22 = vld [vmem:[%s1932_s11 + $0x314] ss:$8 sps:$4 sm:$0xff]   ;;  %v1729_v24 = vld [vmem:[%s1932_s11 + $0x310] ss:$8 sps:$4 sm:$0xff]  }
  0x42   : > { %1120 = vmatpush1.bf16.msra.mxu1 %v1664_v35  ;;  %v1734_v25 = vld [vmem:[%s1932_s11 + $0x124] ss:$8 sps:$4 sm:$0xff]   ;;  %v1732_v27 = vld [vmem:[%s1932_s11 + $0x120] ss:$8 sps:$4 sm:$0xff]   ;;  %v1740_v29 = vld [vmem:[%s1932_s11 + $0x134] ss:$8 sps:$4 sm:$0xff]  }
  0x43   : > { %1206 = vmatpush1.bf16.msra.mxu0 %v1665_v36  ;;  %1121 = vmatprep.subr.bf16.mxu1 %v1666_v37  ;;  %v1737_v26 = vld [vmem:[%s1932_s11 + $0x324] ss:$8 sps:$4 sm:$0xff]   ;;  %v1735_v28 = vld [vmem:[%s1932_s11 + $0x320] ss:$8 sps:$4 sm:$0xff]   ;;  %v1743_v30 = vld [vmem:[%s1932_s11 + $0x334] ss:$8 sps:$4 sm:$0xff]  }
  0x44   : > { %1207 = vmatprep.subr.bf16.mxu0 %v1668_v38  ;;  %v1738_v31 = vld [vmem:[%s1932_s11 + $0x130] ss:$8 sps:$4 sm:$0xff]   ;;  %v1746_v33 = vld [vmem:[%s1932_s11 + $0x144] ss:$8 sps:$4 sm:$0xff]   ;;  %v1744_v35 = vld [vmem:[%s1932_s11 + $0x140] ss:$8 sps:$4 sm:$0xff]  }
  0x45   : > { %v1741_v32 = vld [vmem:[%s1932_s11 + $0x330] ss:$8 sps:$4 sm:$0xff]   ;;  %v1749_v34 = vld [vmem:[%s1932_s11 + $0x344] ss:$8 sps:$4 sm:$0xff]   ;;  %v1747_v36 = vld [vmem:[%s1932_s11 + $0x340] ss:$8 sps:$4 sm:$0xff]  }
  0x46   : > { %1122 = vmatpush1.bf16.msra.mxu1 %v1670_v39  ;;  %v1752_v37 = vld [vmem:[%s1932_s11 + $0x154] ss:$8 sps:$4 sm:$0xff]   ;;  %v1750_v39 = vld [vmem:[%s1932_s11 + $0x150] ss:$8 sps:$4 sm:$0xff]   ;;  %v1768_v57 = vld [vmem:[%s1932_s11 + $0x180] ss:$8 sps:$4 sm:$0xff]  }
  0x47   : > { %1208 = vmatpush1.bf16.msra.mxu0 %v1671_v40  ;;  %1123 = vmatprep.subr.bf16.mxu1 %v1672_v41  ;;  %v1755_v38 = vld [vmem:[%s1932_s11 + $0x354] ss:$8 sps:$4 sm:$0xff]   ;;  %v1753_v40 = vld [vmem:[%s1932_s11 + $0x350] ss:$8 sps:$4 sm:$0xff]   ;;  %v1758_v41 = vld [vmem:[%s1932_s11 + $0x164] ss:$8 sps:$4 sm:$0xff]  }
  0x48   : > { %1209 = vmatprep.subr.bf16.mxu0 %v1674_v42  ;;  %v1761_v42 = vld [vmem:[%s1932_s11 + $0x364] ss:$8 sps:$4 sm:$0xff]   ;;  %v1771_v58 = vld [vmem:[%s1932_s11 + $0x380] ss:$8 sps:$4 sm:$0xff]   ;;  %v1774_v61 = vld [vmem:[%s1932_s11 + $0x190] ss:$8 sps:$4 sm:$0xff]  }
  0x49   : > { %v1777_v62 = vld [vmem:[%s1932_s11 + $0x390] ss:$8 sps:$4 sm:$0xff]   ;;  %v1782_v63 = vld [vmem:[%s1932_s11 + $0x1a4] ss:$8 sps:$4 sm:$0xff]  }
  0x4a   : > { %1124 = vmatpush1.bf16.msra.mxu1 %v1676_v43  ;;  %v2032_v43 = vld [vmem:[%s1934_s12 + $0x8] sm:$0xff] }
  0x4b   : > { %1210 = vmatpush1.bf16.msra.mxu0 %v1677_v44  ;;  %1125 = vmatprep.subr.bf16.mxu1 %v1678_v45  ;;  %v2035_v44 = vld [vmem:[%s1934_s12 + $0x28] sm:$0xff]  ;;  %v2038_v45 = vld [vmem:[%s1934_s12 + $0x18] sm:$0xff] }
  0x4c   : > { %1211 = vmatprep.subr.bf16.mxu0 %v1680_v46  ;;  %v2041_v46 = vld [vmem:[%s1934_s12 + $0x38] sm:$0xff]  ;;  %v1785_v0 = vld [vmem:[%s1932_s11 + $0x3a4] ss:$8 sps:$4 sm:$0xff]  }
  0x4e   : > { %1126 = vmatpush1.bf16.msra.mxu1 %v1682_v47  ;;  %v1756_v47 = vld [vmem:[%s1932_s11 + $0x160] ss:$8 sps:$4 sm:$0xff]  }
  0x4f   : > { %1212 = vmatpush1.bf16.msra.mxu0 %v1683_v48  ;;  %1127 = vmatprep.subr.bf16.mxu1 %v1684_v49  ;;  %v1759_v48 = vld [vmem:[%s1932_s11 + $0x360] ss:$8 sps:$4 sm:$0xff]   ;;  %v1431_v49 = vcombine.high %v2032_v43, %v2035_v44 }
  0x50   : > { %1213 = vmatprep.subr.bf16.mxu0 %v1686_v50  ;;  %v1764_v50 = vld [vmem:[%s1932_s11 + $0x174] ss:$8 sps:$4 sm:$0xff]  }
  0x52   : > { %1128 = vmatpush1.bf16.msra.mxu1 %v1688_v51  ;;  %v1767_v51 = vld [vmem:[%s1932_s11 + $0x374] ss:$8 sps:$4 sm:$0xff]  }
  0x53   : > { %1214 = vmatpush1.bf16.msra.mxu0 %v1689_v52  ;;  %1129 = vmatprep.subr.bf16.mxu1 %v1690_v53  ;;  %v1435_v52 = vcombine.high %v2038_v45, %v2041_v46  ;;  %v1762_v53 = vld [vmem:[%s1932_s11 + $0x170] ss:$8 sps:$4 sm:$0xff]  }
  0x54   : > { %1215 = vmatprep.subr.bf16.mxu0 %v1692_v54  ;;  %v1765_v54 = vld [vmem:[%s1932_s11 + $0x370] ss:$8 sps:$4 sm:$0xff]  }
  0x56   : > { %1130 = vmatpush1.bf16.msra.mxu1 %v1694_v55  ;;  %v1770_v55 = vld [vmem:[%s1932_s11 + $0x184] ss:$8 sps:$4 sm:$0xff]  }
  0x57   : > { %1216 = vmatpush1.bf16.msra.mxu0 %v1695_v56  ;;  %1131 = vmatprep.subr.bf16.mxu1 %v1696_v59  ;;  %v1773_v56 = vld [vmem:[%s1932_s11 + $0x384] ss:$8 sps:$4 sm:$0xff]   ;;  %v1776_v59 = vld [vmem:[%s1932_s11 + $0x194] ss:$8 sps:$4 sm:$0xff]  }
  0x58   : > { %1217 = vmatprep.subr.bf16.mxu0 %v1698_v60  ;;  %v1779_v60 = vld [vmem:[%s1932_s11 + $0x394] ss:$8 sps:$4 sm:$0xff]  }
  0x5a   : > { %1132 = vmatpush1.bf16.msra.mxu1 %v1700_v1  ;;  %v1780_v1 = vld [vmem:[%s1932_s11 + $0x1a0] ss:$8 sps:$4 sm:$0xff]  }
  0x5b   : > { %1218 = vmatpush1.bf16.msra.mxu0 %v1701_v2  ;;  %1133 = vmatprep.subr.bf16.mxu1 %v1702_v3  ;;  %v1783_v2 = vld [vmem:[%s1932_s11 + $0x3a0] ss:$8 sps:$4 sm:$0xff]   ;;  %v1788_v3 = vld [vmem:[%s1932_s11 + $0x1b4] ss:$8 sps:$4 sm:$0xff]  }
  0x5c   : > { %1219 = vmatprep.subr.bf16.mxu0 %v1704_v4  ;;  %v1791_v4 = vld [vmem:[%s1932_s11 + $0x3b4] ss:$8 sps:$4 sm:$0xff]  }
  0x5e   : > { %1134 = vmatpush1.bf16.msra.mxu1 %v1706_v5  ;;  %v1786_v5 = vld [vmem:[%s1932_s11 + $0x1b0] ss:$8 sps:$4 sm:$0xff]  }
  0x5f   : > { %1220 = vmatpush1.bf16.msra.mxu0 %v1707_v6  ;;  %1135 = vmatprep.subr.bf16.mxu1 %v1708_v7  ;;  %v1789_v6 = vld [vmem:[%s1932_s11 + $0x3b0] ss:$8 sps:$4 sm:$0xff]   ;;  %v1794_v7 = vld [vmem:[%s1932_s11 + $0x1c4] ss:$8 sps:$4 sm:$0xff]  }
  0x60   : > { %1221 = vmatprep.subr.bf16.mxu0 %v1710_v8  ;;  %v1797_v8 = vld [vmem:[%s1932_s11 + $0x3c4] ss:$8 sps:$4 sm:$0xff]  }
  0x62   : > { %1136 = vmatpush1.bf16.msra.mxu1 %v1712_v9  ;;  %v1792_v9 = vld [vmem:[%s1932_s11 + $0x1c0] ss:$8 sps:$4 sm:$0xff]  }
  0x63   : > { %1222 = vmatpush1.bf16.msra.mxu0 %v1713_v10  ;;  %1137 = vmatprep.subr.bf16.mxu1 %v1714_v11  ;;  %v1795_v10 = vld [vmem:[%s1932_s11 + $0x3c0] ss:$8 sps:$4 sm:$0xff]   ;;  %v1800_v11 = vld [vmem:[%s1932_s11 + $0x1d4] ss:$8 sps:$4 sm:$0xff]  }
  0x64   : > { %1223 = vmatprep.subr.bf16.mxu0 %v1716_v12  ;;  %v1803_v12 = vld [vmem:[%s1932_s11 + $0x3d4] ss:$8 sps:$4 sm:$0xff]  }
  0x66   : > { %1138 = vmatpush1.bf16.msra.mxu1 %v1718_v13  ;;  %v1798_v13 = vld [vmem:[%s1932_s11 + $0x1d0] ss:$8 sps:$4 sm:$0xff]  }
  0x67   : > { %1224 = vmatpush1.bf16.msra.mxu0 %v1719_v14  ;;  %1150 = vmatprep.subr.bf16.mxu1 %v1722_v15  ;;  %v1801_v14 = vld [vmem:[%s1932_s11 + $0x3d0] ss:$8 sps:$4 sm:$0xff]   ;;  %v1806_v15 = vld [vmem:[%s1932_s11 + $0x1e4] ss:$8 sps:$4 sm:$0xff]  }
  0x68   : > { %1236 = vmatprep.subr.bf16.mxu0 %v1725_v16  ;;  %v1809_v16 = vld [vmem:[%s1932_s11 + $0x3e4] ss:$8 sps:$4 sm:$0xff]  }
  0x69   : > { %1140 = vmatmul.mubr.bf16.vlgmr.msra.gmra.mrb[0].mxu1 %v1428_v17  ;;  %v1804_v17 = vld [vmem:[%s1932_s11 + $0x1e0] ss:$8 sps:$4 sm:$0xff]  }
  0x6a   : > { %1226 = vmatmul.mubr.bf16.vlgmr.msra.gmra.mrb[0].mxu0 %v1432_v19  ;;  %1151 = vmatpush1.bf16.msra.mxu1 %v1720_v18  ;;  %v1807_v18 = vld [vmem:[%s1932_s11 + $0x3e0] ss:$8 sps:$4 sm:$0xff]   ;;  %v1812_v19 = vld [vmem:[%s1932_s11 + $0x1f4] ss:$8 sps:$4 sm:$0xff]  }
  0x6b   : > { %1237 = vmatpush1.bf16.msra.mxu0 %v1723_v20  ;;  %1152 = vmatprep.subr.bf16.mxu1 %v1728_v21  ;;  %v1815_v20 = vld [vmem:[%s1932_s11 + $0x3f4] ss:$8 sps:$4 sm:$0xff]   ;;  %v1810_v21 = vld [vmem:[%s1932_s11 + $0x1f0] ss:$8 sps:$4 sm:$0xff]  }
  0x6c   : > { %1238 = vmatprep.subr.bf16.mxu0 %v1731_v22  ;;  %1182 = vmatprep.mubr.bf16.mxu1 %v1431_v49  ;;  %v1813_v22 = vld [vmem:[%s1932_s11 + $0x3f0] ss:$8 sps:$4 sm:$0xff]  }
  0x6d   : > { %1268 = vmatprep.mubr.bf16.mxu0 %v1435_v52 }
  0x6e   : > { %1153 = vmatpush1.bf16.msra.mxu1 %v1726_v23  ;;  %v1430_v23 = vcombine.low %v2032_v43, %v2035_v44 }
  0x6f   : > { %1239 = vmatpush1.bf16.msra.mxu0 %v1729_v24  ;;  %1154 = vmatprep.subr.bf16.mxu1 %v1734_v25  ;;  %v1434_v24 = vcombine.low %v2038_v45, %v2041_v46  ;;  %v1298_v45 = vlaneseq (!%p1564_p11) }
  0x70   : > { %1240 = vmatprep.subr.bf16.mxu0 %v1737_v26  ;;  %v287_v26 = vld [vmem:[#allocation2] sm:$0xff] }
  0x71   : > { %v1299_v46 = vshrl.u32 (!%p1564_p11), %v1298_v45, 7 }
  0x72   : > { %1155 = vmatpush1.bf16.msra.mxu1 %v1732_v27 }
  0x73   : > { %1241 = vmatpush1.bf16.msra.mxu0 %v1735_v28  ;;  %1156 = vmatprep.subr.bf16.mxu1 %v1740_v29 }
  0x74   : > { %1242 = vmatprep.subr.bf16.mxu0 %v1743_v30  ;;  %v288_v30 = vld [vmem:[#allocation2 + $0x8] sm:$0xff] }
  0x76   : > { %1157 = vmatpush1.bf16.msra.mxu1 %v1738_v31 }
  0x77   : > { %1243 = vmatpush1.bf16.msra.mxu0 %v1741_v32  ;;  %1158 = vmatprep.subr.bf16.mxu1 %v1746_v33 }
  0x78   : > { %1244 = vmatprep.subr.bf16.mxu0 %v1749_v34  ;;  %v289_v34 = vld [vmem:[#allocation2 + $0x10] sm:$0xff] }
  0x7a   : > { %1159 = vmatpush1.bf16.msra.mxu1 %v1744_v35 }
  0x7b   : > { %1245 = vmatpush1.bf16.msra.mxu0 %v1747_v36  ;;  %1160 = vmatprep.subr.bf16.mxu1 %v1752_v37 }
  0x7c   : > { %1246 = vmatprep.subr.bf16.mxu0 %v1755_v38 }
  0x7e   : > { %1161 = vmatpush1.bf16.msra.mxu1 %v1750_v39  ;;  %v290_v39 = vld [vmem:[#allocation2 + $0x18] sm:$0xff] }
  0x7f   : > { %1247 = vmatpush1.bf16.msra.mxu0 %v1753_v40  ;;  %1162 = vmatprep.subr.bf16.mxu1 %v1758_v41 }
  0x80   : > { %1248 = vmatprep.subr.bf16.mxu0 %v1761_v42 }
  0x82   : > { %1163 = vmatpush1.bf16.msra.mxu1 %v1756_v47  ;;  %v1291_v47 = vld [vmem:[%s2125_s2] sm:$0x3] (!%p1564_p11) }
  0x83   : > { %1249 = vmatpush1.bf16.msra.mxu0 %v1759_v48  ;;  %1164 = vmatprep.subr.bf16.mxu1 %v1764_v50  ;;  %v1292_v48 = vld [vmem:[%s2126_s3] sm:$0x3] (!%p1564_p11)  ;;  %v1300_v50 = vsub.s32 (!%p1564_p11), 0, %v1299_v46 }
  0x84   : > { %1250 = vmatprep.subr.bf16.mxu0 %v1767_v51  ;;  %v1304_v51 = vsub.s32 (!%p1564_p11), 1, %v1299_v46 }
  0x86   : > { %1165 = vmatpush1.bf16.msra.mxu1 %v1762_v53 }
  0x87   : > { %1251 = vmatpush1.bf16.msra.mxu0 %v1765_v54  ;;  %1166 = vmatprep.subr.bf16.mxu1 %v1770_v55  ;;  %v1301_v55 = vrot.slane (!%p1564_p11), %v1291_v47, %v1300_v50 }
  0x88   : > { %1252 = vmatprep.subr.bf16.mxu0 %v1773_v56  ;;  %v1316_v56 = vrot.slane (!%p1564_p11), %v1292_v48, %v1300_v50 }
  0x8a   : > { %1167 = vmatpush1.bf16.msra.mxu1 %v1768_v57  ;;  %v1305_v57 = vrot.slane (!%p1564_p11), %v1291_v47, %v1304_v51 }
  0x8b   : > { %1253 = vmatpush1.bf16.msra.mxu0 %v1771_v58  ;;  %1168 = vmatprep.subr.bf16.mxu1 %v1776_v59  ;;  %v1320_v58 = vrot.slane (!%p1564_p11), %v1292_v48, %v1304_v51 }
  0x8c   : > { %1254 = vmatprep.subr.bf16.mxu0 %v1779_v60 }
  0x8e   : > { %1169 = vmatpush1.bf16.msra.mxu1 %v1774_v61 }
  0x8f   : > { %1255 = vmatpush1.bf16.msra.mxu0 %v1777_v62  ;;  %1170 = vmatprep.subr.bf16.mxu1 %v1782_v63 }
  0x90   : > { %1256 = vmatprep.subr.bf16.mxu0 %v1785_v0 }
  0x92   : > { %1171 = vmatpush1.bf16.msra.mxu1 %v1780_v1 }
  0x93   : > { %1257 = vmatpush1.bf16.msra.mxu0 %v1783_v2  ;;  %1172 = vmatprep.subr.bf16.mxu1 %v1788_v3 }
  0x94   : > { %1258 = vmatprep.subr.bf16.mxu0 %v1791_v4 }
  0x96   : > { %1173 = vmatpush1.bf16.msra.mxu1 %v1786_v5 }
  0x97   : > { %1259 = vmatpush1.bf16.msra.mxu0 %v1789_v6  ;;  %1174 = vmatprep.subr.bf16.mxu1 %v1794_v7 }
  0x98   : > { %1260 = vmatprep.subr.bf16.mxu0 %v1797_v8 }
  0x9a   : > { %1175 = vmatpush1.bf16.msra.mxu1 %v1792_v9 }
  0x9b   : > { %1261 = vmatpush1.bf16.msra.mxu0 %v1795_v10  ;;  %1176 = vmatprep.subr.bf16.mxu1 %v1800_v11 }
  0x9c   : > { %1262 = vmatprep.subr.bf16.mxu0 %v1803_v12 }
  0x9e   : > { %1177 = vmatpush1.bf16.msra.mxu1 %v1798_v13 }
  0x9f   : > { %1263 = vmatpush1.bf16.msra.mxu0 %v1801_v14  ;;  %1178 = vmatprep.subr.bf16.mxu1 %v1806_v15 }
  0xa0   : > { %1264 = vmatprep.subr.bf16.mxu0 %v1809_v16 }
  0xa2   : > { %1179 = vmatpush1.bf16.msra.mxu1 %v1804_v17 }
  0xa3   : > { %1265 = vmatpush1.bf16.msra.mxu0 %v1807_v18  ;;  %1180 = vmatprep.subr.bf16.mxu1 %v1812_v19 }
  0xa4   : > { %1266 = vmatprep.subr.bf16.mxu0 %v1815_v20 }
  0xa6   : > { %1181 = vmatpush1.bf16.msra.mxu1 %v1810_v21 }
  0xa7   : > { %1267 = vmatpush1.bf16.msra.mxu0 %v1813_v22 }
  0xa9   : > { %1183 = vmatmul.mubr.bf16.vlgmr.msra.gmra.mrb[0].mxu1 %v1430_v23 }
  0xaa   : > { %1269 = vmatmul.mubr.bf16.vlgmr.msra.gmra.mrb[0].mxu0 %v1434_v24 }
 0x17c   : > { %v1184_v25 = vpop.f32.mrb[0].mxu1 }
 0x17d   : > { %v1270_v27 = vpop.f32.mrb[0].mxu0  ;;  %v1186_v29 = vpop.f32.mrb[1].mxu1 }
 0x17e   : > { %v1571_v28 = vadd.f32 %v1270_v27, %v1184_v25  ;;  %v1272_v31 = vpop.f32.mrb[1].mxu0  ;;  %v1188_v33 = vpop.f32.mrb[2].mxu1 }
 0x17f   : > { %v1572_v32 = vadd.f32 %v1272_v31, %v1186_v29  ;;  %v1274_v35 = vpop.f32.mrb[2].mxu0  ;;  %v1190_v38 = vpop.f32.mrb[3].mxu1  ;;  %1290 = sbr.rel (%p1564_p11) target bundleno = 402 (0x192), region = 67 }
 0x180   : > { %v1279_v36 = vadd.f32 %v1571_v28, %v287_v26  ;;  %v1573_v37 = vadd.f32 %v1274_v35, %v1188_v33  ;;  %v1276_v40 = vpop.f32.mrb[3].mxu0 }
 0x181   : > { %v1280_v41 = vadd.f32 %v1572_v32, %v288_v30  ;;  %v1574_v42 = vadd.f32 %v1276_v40, %v1190_v38 }
 0x182   : > { %1283 = vst [vmem:[#allocation2] sm:$0xff] %v1279_v36  ;;  %v1281_v43 = vadd.f32 %v1573_v37, %v289_v34 }
 0x183   : > { %1284 = vst [vmem:[#allocation2 + $0x8] sm:$0xff] %v1280_v41  ;;  %v1282_v44 = vadd.f32 %v1574_v42, %v290_v39 }
 0x184   : > { %1285 = vst [vmem:[#allocation2 + $0x10] sm:$0xff] %v1281_v43 }
 0x185   : > { %1286 = vst [vmem:[#allocation2 + $0x18] sm:$0xff] %v1282_v44 }
 0x189   : > { %v1293_v49 = vld [vmem:[#allocation2] sm:$0xff] }
 0x18a   : > { %v1294_v52 = vld [vmem:[#allocation2 + $0x8] sm:$0xff]  ;;  %v1308_v59 = vmul.f32 %v1301_v55, %v1293_v49 }
 0x18b   : > { %v1295_v53 = vld [vmem:[#allocation2 + $0x10] sm:$0xff]  ;;  %v1309_v60 = vmul.f32 %v1305_v57, %v1294_v52 }
 0x18c   : > { %v1296_v54 = vld [vmem:[#allocation2 + $0x18] sm:$0xff]  ;;  %v1310_v61 = vmul.f32 %v1301_v55, %v1295_v53  ;;  %v1323_v63 = vadd.f32 %v1316_v56, %v1308_v59 }
 0x18d   : > { %v1311_v62 = vmul.f32 %v1305_v57, %v1296_v54  ;;  %v1324_v0 = vadd.f32 %v1320_v58, %v1309_v60 }
 0x18e   : > { %v1325_v1 = vadd.f32 %v1316_v56, %v1310_v61  ;;  %1327 = vst [vmem:[%s2127_s4] sm:$0xff] %v1323_v63 }
 0x18f   : > { %v1326_v2 = vadd.f32 %v1320_v58, %v1311_v62  ;;  %1328 = vst [vmem:[%s2127_s4 + $0x8] sm:$0xff] %v1324_v0 }
 0x190   : > { %1329 = vst [vmem:[%s2127_s4 + $0x10] sm:$0xff] %v1325_v1 }
 0x191   : > { %1330 = vst [vmem:[%s2127_s4 + $0x18] sm:$0xff] %v1326_v2 }
 0x192 PF: > { %s14_s19 = sadd.s32 1, %s1854_s19   ;;  %s2128_s15 = smov %s1842_s16 }
 0x193   : > { %p11_p12 = scmp.ge.s32.totalorder %s14_s19, 4   ;;  %s2129_s16 = smov %s1917_s23 }
 0x194   : > { %s2130_s17 = smov %s1850_s18  ;;  %s2131_s18 = smov %s2133_s20 }
 0x195   :  { %13 = sbr.rel (!%p11_p12) target bundleno = 3 (0x3), region = 105 }

// kernel: net_forward.6
= control target key start
LH: loop header
LB: loop body
LE: loop exit
PB: predicated region body
PF: predicated region fallthrough
CT: control target
= control target key end

     0   :  { %s3912_s15 = smov 0   ;;  %s3914_s16 = smov 0   ;;  %s4721_s0 = inlined_call_operand.vmem [shape: bf16[4,32,800], index: 0, kind: input, shape index: {}]   ;;  %s4722_s1 = inlined_call_operand.vmem [shape: bf16[800,128], index: 1, kind: input, shape index: {}]   ;;  %s4723_s2 = inlined_call_operand.vmem [shape: f32[1,128], index: 2, kind: input, shape index: {}]   ;;  %s4724_s3 = inlined_call_operand.vmem [shape: f32[1,128], index: 3, kind: input, shape index: {}]   ;;  %s4725_s4 = inlined_call_operand.vmem [shape: f32[32,128], index: 4, kind: output, shape index: {}]  }
   0x1   :  { %s3916_s17 = smov 0   ;;  %s3918_s18 = smov 0  }
   0x2   :  { %s3920_s19 = smov 0  }
   0x3 LB: > { %s26_s20 = sadd.s32 1, %s3879_s18  ;;  %p42_p1 = scmp.ne.s32.totalorder %s3871_s16, %s3867_s15  ;;  %s3883_s19 = sphi %s3920_s19, %s14_s19   ;;  %s3879_s18 = sphi %s3918_s18, %s4729_s18   ;;  %s3875_s17 = sphi %s3916_s17, %s4728_s17   ;;  %s3871_s16 = sphi %s3914_s16, %s4727_s16   ;;  %s3867_s15 = sphi %s3912_s15, %s4726_s15  }
   0x4   : > { %p28_p0 = scmp.ge.s32.totalorder %s26_s20, 2  ;;  %p43_p2 = scmp.eq.s32.totalorder %s3883_s19, 0 }
   0x5   : > { %s35_s22 = sadd.s32 1, %s3871_s16  ;;  %p2969_p5 = scmp.ge.s32.totalorder %s3883_s19, 2 }
   0x6   : > { %s4731_s20 = smov (%p28_p0, %s26_s20), 0  ;;  %p44_p3 = por %p43_p2, %p42_p1 }
   0x7   : > { %s30_s21 = ssub.s32 %s3879_s18, %s4731_s20  ;;  %177 = sbr.rel (%p2969_p5) target bundleno = 36 (0x24), region = 28 }
   0x8   : > { %p33_p4 = scmp.eq.s32.totalorder %s30_s21, 0 }
   0xa   : > { %s3947_s23 = scalar_select %p33_p4, %s3871_s16, %s35_s22  }
   0xe   : > { %180 = sbr.rel (!%p44_p3) target bundleno = 36 (0x24), region = 32  ;;  %s182_s24 = sand.u32 (%p44_p3), 1, %s3871_s16  }
   0xf   : > { %s3561_s25 = smul.u32 (%p44_p3), 56, %s3879_s18 }
  0x10   : > { %s3560_s26 = smul.u32 (%p44_p3), 224, %s182_s24 }
  0x11   : > { %s3955_s29 = scalar_lea.vmem (%p44_p3), %s4721_s0, %s3561_s25 }
  0x12   : > { %v205_v0 = vld [vmem:[%s3955_s29] sm:$0xff] (%p44_p3)  ;;  %v207_v1 = vld [vmem:[%s3955_s29 + $0x8] sm:$0xff] (%p44_p3)  ;;  %v209_v2 = vld [vmem:[%s3955_s29 + $0x10] sm:$0xff] (%p44_p3)  ;;  %s3960_s30 = scalar_lea.vmem (%p44_p3), [#allocation3], %s3560_s26 }
  0x13   : > { %206 = vst [vmem:[%s3960_s30] sm:$0xff] (%p44_p3), %v205_v0  ;;  %208 = vst [vmem:[%s3960_s30 + $0x8] sm:$0xff] (%p44_p3), %v207_v1  ;;  %v211_v3 = vld [vmem:[%s3955_s29 + $0x1c] sm:$0xff] (%p44_p3)  ;;  %v213_v4 = vld [vmem:[%s3955_s29 + $0x24] sm:$0xff] (%p44_p3) }
  0x14   : > { %210 = vst [vmem:[%s3960_s30 + $0x10] sm:$0xff] (%p44_p3), %v209_v2  ;;  %v215_v5 = vld [vmem:[%s3955_s29 + $0x2c] sm:$0xff] (%p44_p3)  ;;  %212 = vst [vmem:[%s3960_s30 + $0x1c] sm:$0xff] (%p44_p3), %v211_v3  ;;  %v219_v7 = vld [vmem:[%s3955_s29 + $0x78] sm:$0xff] (%p44_p3) }
  0x15   : > { %214 = vst [vmem:[%s3960_s30 + $0x24] sm:$0xff] %v213_v4  ;;  %216 = vst [vmem:[%s3960_s30 + $0x2c] sm:$0xff] %v215_v5  ;;  %v217_v6 = vld [vmem:[%s3955_s29 + $0x70] sm:$0xff]  ;;  %v221_v8 = vld [vmem:[%s3955_s29 + $0x80] sm:$0xff] }
  0x16   : > { %218 = vst [vmem:[%s3960_s30 + $0x38] sm:$0xff] %v217_v6  ;;  %220 = vst [vmem:[%s3960_s30 + $0x40] sm:$0xff] %v219_v7  ;;  %v223_v9 = vld [vmem:[%s3955_s29 + $0x8c] sm:$0xff]  ;;  %v225_v10 = vld [vmem:[%s3955_s29 + $0x94] sm:$0xff] }
  0x17   : > { %222 = vst [vmem:[%s3960_s30 + $0x48] sm:$0xff] %v221_v8  ;;  %v227_v11 = vld [vmem:[%s3955_s29 + $0x9c] sm:$0xff]  ;;  %224 = vst [vmem:[%s3960_s30 + $0x54] sm:$0xff] %v223_v9  ;;  %v231_v13 = vld [vmem:[%s3955_s29 + $0xe8] sm:$0xff] }
  0x18   : > { %226 = vst [vmem:[%s3960_s30 + $0x5c] sm:$0xff] %v225_v10  ;;  %228 = vst [vmem:[%s3960_s30 + $0x64] sm:$0xff] %v227_v11  ;;  %v229_v12 = vld [vmem:[%s3955_s29 + $0xe0] sm:$0xff]  ;;  %v233_v14 = vld [vmem:[%s3955_s29 + $0xf0] sm:$0xff] }
  0x19   : > { %230 = vst [vmem:[%s3960_s30 + $0x70] sm:$0xff] %v229_v12  ;;  %232 = vst [vmem:[%s3960_s30 + $0x78] sm:$0xff] %v231_v13  ;;  %v235_v15 = vld [vmem:[%s3955_s29 + $0xfc] sm:$0xff]  ;;  %v237_v16 = vld [vmem:[%s3955_s29 + $0x104] sm:$0xff] }
  0x1a   : > { %234 = vst [vmem:[%s3960_s30 + $0x80] sm:$0xff] %v233_v14  ;;  %v239_v17 = vld [vmem:[%s3955_s29 + $0x10c] sm:$0xff]  ;;  %236 = vst [vmem:[%s3960_s30 + $0x8c] sm:$0xff] %v235_v15  ;;  %v243_v19 = vld [vmem:[%s3955_s29 + $0x158] sm:$0xff] }
  0x1b   : > { %238 = vst [vmem:[%s3960_s30 + $0x94] sm:$0xff] %v237_v16  ;;  %240 = vst [vmem:[%s3960_s30 + $0x9c] sm:$0xff] %v239_v17  ;;  %v241_v18 = vld [vmem:[%s3955_s29 + $0x150] sm:$0xff]  ;;  %v245_v20 = vld [vmem:[%s3955_s29 + $0x160] sm:$0xff] }
  0x1c   : > { %242 = vst [vmem:[%s3960_s30 + $0xa8] sm:$0xff] %v241_v18  ;;  %244 = vst [vmem:[%s3960_s30 + $0xb0] sm:$0xff] %v243_v19  ;;  %v247_v21 = vld [vmem:[%s3955_s29 + $0x16c] sm:$0xff]  ;;  %v249_v22 = vld [vmem:[%s3955_s29 + $0x174] sm:$0xff] }
  0x1d   : > { %246 = vst [vmem:[%s3960_s30 + $0xb8] sm:$0xff] %v245_v20  ;;  %v251_v23 = vld [vmem:[%s3955_s29 + $0x17c] sm:$0xff]  ;;  %248 = vst [vmem:[%s3960_s30 + $0xc4] sm:$0xff] %v247_v21  ;;  %v2973_v24 = vld [vmem:[%s3955_s29 + $0x18] sm:$0xf] }
  0x1e   : > { %250 = vst [vmem:[%s3960_s30 + $0xcc] sm:$0xff] %v249_v22  ;;  %252 = vst [vmem:[%s3960_s30 + $0xd4] sm:$0xff] %v251_v23  ;;  %v2975_v25 = vld [vmem:[%s3955_s29 + $0x34] sm:$0xf]  ;;  %v2977_v26 = vld [vmem:[%s3955_s29 + $0x88] sm:$0xf] }
  0x1f   : > { %2974 = vst [vmem:[%s3960_s30 + $0x18] sm:$0xf] %v2973_v24  ;;  %2976 = vst [vmem:[%s3960_s30 + $0x34] sm:$0xf] %v2975_v25  ;;  %v2979_v27 = vld [vmem:[%s3955_s29 + $0xa4] sm:$0xf] }
  0x20   : > { %2978 = vst [vmem:[%s3960_s30 + $0x50] sm:$0xf] %v2977_v26  ;;  %v2981_v28 = vld [vmem:[%s3955_s29 + $0xf8] sm:$0xf]  ;;  %v2983_v29 = vld [vmem:[%s3955_s29 + $0x114] sm:$0xf] }
  0x21   : > { %2980 = vst [vmem:[%s3960_s30 + $0x6c] sm:$0xf] %v2979_v27  ;;  %2982 = vst [vmem:[%s3960_s30 + $0x88] sm:$0xf] %v2981_v28  ;;  %v2985_v30 = vld [vmem:[%s3955_s29 + $0x168] sm:$0xf] }
  0x22   : > { %2984 = vst [vmem:[%s3960_s30 + $0xa4] sm:$0xf] %v2983_v29  ;;  %v2987_v31 = vld [vmem:[%s3955_s29 + $0x184] sm:$0xf]  ;;  %2986 = vst [vmem:[%s3960_s30 + $0xc0] sm:$0xf] %v2985_v30 }
  0x23   : > { %2988 = vst [vmem:[%s3960_s30 + $0xdc] sm:$0xf] %v2987_v31 }
  0x24 PF: > { %p2989_p6 = scmp.ge.s32.totalorder %s3883_s19, 1  ;;  %p280_p7 = scmp.lt.s32.totalorder %s3883_s19, 3 }
  0x26   : > { %p281_p8 = pnand %p2989_p6, %p280_p7 }
  0x27   : > { %v3605_v32 = vld [vmem:[%s4722_s1 + $0x40] sm:$0xff] (!%p281_p8)   ;;  %v3609_v36 = vld [vmem:[%s4722_s1 + $0x48] sm:$0xff] (!%p281_p8)   ;;  %v3613_v40 = vld [vmem:[%s4722_s1 + $0x50] sm:$0xff] (!%p281_p8)   ;;  %s287_s13 = sand.u32 (!%p281_p8), 1, %s3867_s15   ;;  %v3885_v4 = vmov (!%p281_p8), 0.0   ;;  %vm3886_vm0 = vmmov (!%p281_p8), 0  }
  0x28   : > { %284 = sbr.rel (%p281_p8) target bundleno = 480 (0x1e0), region = 58  ;;  %v3606_v33 = vld [vmem:[%s4722_s1 + $0xc0] sm:$0xff] (!%p281_p8)   ;;  %3252 = vmatprep.subr.bf16.mxu0 (!%p281_p8), %v3605_v32  ;;  %v3610_v37 = vld [vmem:[%s4722_s1 + $0xc8] sm:$0xff] (!%p281_p8)   ;;  %v3614_v41 = vld [vmem:[%s4722_s1 + $0xd0] sm:$0xff] (!%p281_p8)   ;;  %vm789_vm1 = vcmask (!%p281_p8), 261120   ;;  %s2990_s10 = sshll.u32 (!%p281_p8), %s3875_s17, 1 }
  0x29   : > { %v3607_v34 = vld [vmem:[%s4722_s1] sm:$0xff] (!%p281_p8)   ;;  %3274 = vmatprep.subr.bf16.mxu1 (!%p281_p8), %v3606_v33  ;;  %v3611_v38 = vld [vmem:[%s4722_s1 + $0x8] sm:$0xff] (!%p281_p8)   ;;  %v3615_v42 = vld [vmem:[%s4722_s1 + $0x10] sm:$0xff] (!%p281_p8)   ;;  %s3562_s27 = smul.u32 (!%p281_p8), 224, %s287_s13  ;;  %p326_p9 = scmp.lt.s32.totalorder (!%p281_p8), %s2990_s10, 3 }
  0x2a   : > { %v3608_v35 = vld [vmem:[%s4722_s1 + $0x80] sm:$0xff] (!%p281_p8)   ;;  %3253 = vmatpush3.bf16.msra.mxu0 (!%p281_p8), %v3607_v34  ;;  %v3612_v39 = vld [vmem:[%s4722_s1 + $0x88] sm:$0xff] (!%p281_p8)   ;;  %v3616_v43 = vld [vmem:[%s4722_s1 + $0x90] sm:$0xff] (!%p281_p8)  }
  0x2b   : > { %3275 = vmatpush3.bf16.msra.mxu1 (!%p281_p8), %v3608_v35  ;;  %3254 = vmatprep.subr.bf16.mxu0 (!%p281_p8), %v3609_v36  ;;  %v3617_v44 = vld [vmem:[%s4722_s1 + $0x58] sm:$0xff] (!%p281_p8)   ;;  %v3621_v48 = vld [vmem:[%s4722_s1 + $0x60] sm:$0xff] (!%p281_p8)   ;;  %v3625_v52 = vld [vmem:[%s4722_s1 + $0x68] sm:$0xff] (!%p281_p8)   ;;  %s4122_s13 = scalar_lea.vmem (!%p281_p8), [#allocation3], %s3562_s27 }
  0x2c   : > { %3276 = vmatprep.subr.bf16.mxu1 (!%p281_p8), %v3610_v37  ;;  %v3618_v45 = vld [vmem:[%s4722_s1 + $0xd8] sm:$0xff] (!%p281_p8)   ;;  %v3622_v49 = vld [vmem:[%s4722_s1 + $0xe0] sm:$0xff] (!%p281_p8)   ;;  %v3626_v53 = vld [vmem:[%s4722_s1 + $0xe8] sm:$0xff] (!%p281_p8)  }
  0x2d   : > { %v3619_v46 = vld [vmem:[%s4722_s1 + $0x18] sm:$0xff] (!%p281_p8)   ;;  %v3623_v50 = vld [vmem:[%s4722_s1 + $0x20] sm:$0xff] (!%p281_p8)   ;;  %v3627_v54 = vld [vmem:[%s4722_s1 + $0x28] sm:$0xff] (!%p281_p8)  }
  0x2e   : > { %3255 = vmatpush3.bf16.msra.mxu0 (!%p281_p8), %v3611_v38  ;;  %v3620_v47 = vld [vmem:[%s4722_s1 + $0x98] sm:$0xff] (!%p281_p8)   ;;  %v3624_v51 = vld [vmem:[%s4722_s1 + $0xa0] sm:$0xff] (!%p281_p8)   ;;  %v3628_v55 = vld [vmem:[%s4722_s1 + $0xa8] sm:$0xff] (!%p281_p8)  }
  0x2f   : > { %3277 = vmatpush3.bf16.msra.mxu1 %v3612_v39  ;;  %3256 = vmatprep.subr.bf16.mxu0 %v3613_v40  ;;  %v3629_v56 = vld [vmem:[%s4722_s1 + $0x70] sm:$0xff]   ;;  %v3633_v60 = vld [vmem:[%s4722_s1 + $0x78] sm:$0xff]   ;;  %v3639_v1 = vld [vmem:[%s4122_s13 + $0x4] ss:$28 sps:$4 sm:$0xff]   ;;  %s4733_s10 = smov (!%p326_p9, %s2990_s10), 3 }
  0x30   : > { %3278 = vmatprep.subr.bf16.mxu1 %v3614_v41  ;;  %v3630_v57 = vld [vmem:[%s4722_s1 + $0xf0] sm:$0xff]   ;;  %v3634_v61 = vld [vmem:[%s4722_s1 + $0xf8] sm:$0xff]   ;;  %v3640_v2 = vld [vmem:[%s4122_s13 + $0x8] ss:$28 sps:$4 sm:$0xff]   ;;  %825 = vmatprep.mubr.bf16.mxu0 %v3639_v1  ;;  %s2991_s11 = sshll.u32 %s4733_s10, 3 }
  0x31   : > { %v3631_v58 = vld [vmem:[%s4722_s1 + $0x30] sm:$0xff]   ;;  %v3635_v62 = vld [vmem:[%s4722_s1 + $0x38] sm:$0xff]   ;;  %v3642_v3 = vld [vmem:[%s4122_s13 + $0xc] ss:$28 sps:$4 sm:$0xff]   ;;  %s329_s14 = scalar_lea.vmem %s4725_s4, %s2991_s11 }
  0x32   : > { %3257 = vmatpush3.bf16.msra.mxu0 %v3615_v42  ;;  %v3632_v59 = vld [vmem:[%s4722_s1 + $0xb0] sm:$0xff]   ;;  %v3636_v63 = vld [vmem:[%s4722_s1 + $0xb8] sm:$0xff]   ;;  %v3643_v5 = vld [vmem:[%s4722_s1 + $0x140] sm:$0xff]   ;;  %866 = vmatprep.mubr.bf16.mxu1 %v3642_v3 }
  0x33   : > { %3279 = vmatpush3.bf16.msra.mxu1 %v3616_v43  ;;  %3258 = vmatprep.subr.bf16.mxu0 %v3617_v44  ;;  %v3637_v0 = vld [vmem:[%s4122_s13] ss:$28 sps:$4 sm:$0xff]   ;;  %v3646_v8 = vld [vmem:[%s4722_s1 + $0x148] sm:$0xff]   ;;  %v3649_v11 = vld [vmem:[%s4722_s1 + $0x150] sm:$0xff]  }
  0x34   : > { %3280 = vmatprep.subr.bf16.mxu1 %v3618_v45  ;;  %v3644_v6 = vld [vmem:[%s4722_s1 + $0x100] sm:$0xff]   ;;  %v3647_v9 = vld [vmem:[%s4722_s1 + $0x108] sm:$0xff]   ;;  %v3650_v12 = vld [vmem:[%s4122_s13 + $0x18] ss:$28 sps:$4 sm:$0xff]  }
  0x35   : > { %v3645_v7 = vld [vmem:[%s4722_s1 + $0x180] sm:$0xff]   ;;  %v3648_v10 = vld [vmem:[%s4722_s1 + $0x188] sm:$0xff]   ;;  %v3652_v14 = vld [vmem:[%s4722_s1 + $0x110] sm:$0xff]  }
  0x36   : > { %3259 = vmatpush3.bf16.msra.mxu0 %v3619_v46  ;;  %v3651_v13 = vld [vmem:[%s4722_s1 + $0x40] sm:$0xff]   ;;  %v3654_v16 = vld [vmem:[%s4722_s1 + $0x158] sm:$0xff]   ;;  %v3655_v17 = vld [vmem:[%s4722_s1 + $0x48] sm:$0xff]  }
  0x37   : > { %3281 = vmatpush3.bf16.msra.mxu1 %v3620_v47  ;;  %3260 = vmatprep.subr.bf16.mxu0 %v3621_v48  ;;  %v3653_v15 = vld [vmem:[%s4722_s1] sm:$0xff]   ;;  %v3656_v18 = vld [vmem:[%s4722_s1 + $0x118] sm:$0xff]   ;;  %v3657_v19 = vld [vmem:[%s4722_s1 + $0x8] sm:$0xff]  }
  0x38   : > { %3282 = vmatprep.subr.bf16.mxu1 %v3622_v49  ;;  %v3658_v20 = vld [vmem:[%s4722_s1 + $0x160] sm:$0xff]   ;;  %v3659_v21 = vld [vmem:[%s4722_s1 + $0x50] sm:$0xff]   ;;  %v3662_v24 = vld [vmem:[%s4722_s1 + $0x168] sm:$0xff]  }
  0x39   : > { %v3660_v22 = vld [vmem:[%s4722_s1 + $0x120] sm:$0xff]   ;;  %v3661_v23 = vld [vmem:[%s4722_s1 + $0x10] sm:$0xff]   ;;  %v3663_v25 = vld [vmem:[%s4722_s1 + $0x58] sm:$0xff]  }
  0x3a   : > { %3261 = vmatpush3.bf16.msra.mxu0 %v3623_v50  ;;  %v3664_v26 = vld [vmem:[%s4722_s1 + $0x128] sm:$0xff]   ;;  %v3665_v27 = vld [vmem:[%s4722_s1 + $0x18] sm:$0xff]   ;;  %v3666_v28 = vld [vmem:[%s4722_s1 + $0x170] sm:$0xff]  }
  0x3b   : > { %3283 = vmatpush3.bf16.msra.mxu1 %v3624_v51  ;;  %3262 = vmatprep.subr.bf16.mxu0 %v3625_v52  ;;  %v3667_v29 = vld [vmem:[%s4722_s1 + $0x60] sm:$0xff]   ;;  %v3668_v30 = vld [vmem:[%s4722_s1 + $0x130] sm:$0xff]   ;;  %v3670_v32 = vld [vmem:[%s4722_s1 + $0x178] sm:$0xff]  }
  0x3c   : > { %3284 = vmatprep.subr.bf16.mxu1 %v3626_v53  ;;  %v3669_v31 = vld [vmem:[%s4722_s1 + $0x20] sm:$0xff]   ;;  %v3671_v33 = vld [vmem:[%s4722_s1 + $0x68] sm:$0xff]   ;;  %v3672_v34 = vld [vmem:[%s4722_s1 + $0x138] sm:$0xff]  }
  0x3d   : > { %v3673_v35 = vld [vmem:[%s4722_s1 + $0x28] sm:$0xff]   ;;  %v3676_v37 = vld [vmem:[%s4122_s13 + $0x14] ss:$28 sps:$4 sm:$0xff]   ;;  %v3678_v39 = vld [vmem:[%s4722_s1 + $0xc0] sm:$0xff]  }
  0x3e   : > { %3263 = vmatpush3.bf16.msra.mxu0 %v3627_v54  ;;  %v3674_v36 = vld [vmem:[%s4122_s13 + $0x10] ss:$28 sps:$4 sm:$0xff]   ;;  %v3680_v41 = vld [vmem:[%s4722_s1 + $0x80] sm:$0xff]   ;;  %v3681_v42 = vld [vmem:[%s4722_s1 + $0x78] sm:$0xff]  }
  0x3f   : > { %3285 = vmatpush3.bf16.msra.mxu1 %v3628_v55  ;;  %3264 = vmatprep.subr.bf16.mxu0 %v3629_v56  ;;  %v3677_v38 = vld [vmem:[%s4722_s1 + $0x70] sm:$0xff]   ;;  %v3682_v43 = vld [vmem:[%s4722_s1 + $0xc8] sm:$0xff]   ;;  %v3683_v44 = vld [vmem:[%s4722_s1 + $0x38] sm:$0xff]  }
  0x40   : > { %3286 = vmatprep.subr.bf16.mxu1 %v3630_v57  ;;  %v3679_v40 = vld [vmem:[%s4722_s1 + $0x30] sm:$0xff]   ;;  %v3684_v45 = vld [vmem:[%s4722_s1 + $0x88] sm:$0xff]   ;;  %v3687_v47 = vld [vmem:[%s4122_s13 + $0x3c] ss:$28 sps:$4 sm:$0xff]  }
  0x41   : > { %v3685_v46 = vld [vmem:[%s4122_s13 + $0x38] ss:$28 sps:$4 sm:$0xff]   ;;  %v3689_v49 = vld [vmem:[%s4722_s1 + $0x140] sm:$0xff]   ;;  %v3693_v53 = vld [vmem:[%s4722_s1 + $0x148] sm:$0xff]  }
  0x42   : > { %3265 = vmatpush3.bf16.msra.mxu0 %v3631_v58  ;;  %v3688_v48 = vld [vmem:[%s4722_s1 + $0xd0] sm:$0xff]   ;;  %v3691_v51 = vld [vmem:[%s4722_s1 + $0x100] sm:$0xff]   ;;  %v3692_v52 = vld [vmem:[%s4722_s1 + $0xd8] sm:$0xff]  }
  0x43   : > { %3287 = vmatpush3.bf16.msra.mxu1 %v3632_v59  ;;  %3266 = vmatprep.subr.bf16.mxu0 %v3633_v60  ;;  %v3690_v50 = vld [vmem:[%s4722_s1 + $0x90] sm:$0xff]   ;;  %v3694_v54 = vld [vmem:[%s4722_s1 + $0x98] sm:$0xff]   ;;  %v3695_v55 = vld [vmem:[%s4722_s1 + $0x108] sm:$0xff]  }
  0x44   : > { %3288 = vmatprep.subr.bf16.mxu1 %v3634_v61  ;;  %v3696_v56 = vld [vmem:[%s4722_s1 + $0xe0] sm:$0xff]   ;;  %v3697_v57 = vld [vmem:[%s4722_s1 + $0x150] sm:$0xff]   ;;  %v3700_v60 = vld [vmem:[%s4722_s1 + $0xe8] sm:$0xff]  }
  0x45   : > { %v3698_v58 = vld [vmem:[%s4722_s1 + $0xa0] sm:$0xff]   ;;  %v3699_v59 = vld [vmem:[%s4722_s1 + $0x110] sm:$0xff]   ;;  %v3701_v61 = vld [vmem:[%s4722_s1 + $0x158] sm:$0xff]  }
  0x46   : > { %3267 = vmatpush3.bf16.msra.mxu0 %v3635_v62  ;;  %v3702_v62 = vld [vmem:[%s4722_s1 + $0xa8] sm:$0xff]   ;;  %v3705_v1 = vld [vmem:[%s4722_s1 + $0x160] sm:$0xff]  }
  0x47   : > { %3289 = vmatpush3.bf16.msra.mxu1 %v3636_v63  ;;  %3296 = vmatprep.subr.bf16.mxu0 %v3643_v5  ;;  %v3703_v63 = vld [vmem:[%s4722_s1 + $0x118] sm:$0xff]   ;;  %v3707_v3 = vld [vmem:[%s4722_s1 + $0x120] sm:$0xff]  }
  0x48   : > { %3528 = vmatprep.subr.bf16.mxu1 %v3885_v4  ;;  %v3708_v5 = vld [vmem:[%s4722_s1 + $0xf8] sm:$0xff]  }
  0x49   : > { %826 = vmatmul.mubr.bf16.vlgmr.msra.gmra.mrb[0].mxu0 %v3637_v0  ;;  %v3704_v0 = vld [vmem:[%s4722_s1 + $0xf0] sm:$0xff]  }
  0x4a   : > { %867 = vmatmul.mubr.bf16.vlgmr.msra.gmra.mrb[0].mxu1 %v3640_v2  ;;  %3297 = vmatpush3.bf16.msra.mxu0 %v3644_v6  ;;  %v3706_v2 = vld [vmem:[%s4722_s1 + $0xb0] sm:$0xff]   ;;  %v3709_v6 = vld [vmem:[%s4722_s1 + $0x168] sm:$0xff]  }
  0x4b   : > { %3532 = vmatprep.mubr.msk.bf16.mxu1 %vm3886_vm0, %v3885_v4  ;;  %3529 = vmatpush3.bf16.msra.mxu1 %v3645_v7  ;;  %v3710_v7 = vld [vmem:[%s4722_s1 + $0xb8] sm:$0xff]  }
  0x4c   : > { %3298 = vmatprep.subr.bf16.mxu0 %v3646_v8  ;;  %3530 = vmatprep.subr.bf16.mxu1 %v3885_v4  ;;  %v3711_v8 = vld [vmem:[%s4722_s1 + $0x128] sm:$0xff]  }
  0x4d   : > { %907 = vmatprep.mubr.bf16.mxu0 %v3676_v37  ;;  %v3742_v37 = vld [vmem:[%s4722_s1 + $0xe0] sm:$0xff]  }
  0x4e   : > { %3299 = vmatpush3.bf16.msra.mxu0 %v3647_v9  ;;  %v3712_v9 = vld [vmem:[%s4122_s13 + $0x40] ss:$28 sps:$4 sm:$0xff]  }
  0x4f   : > { %3531 = vmatpush3.bf16.msra.mxu1 %v3648_v10  ;;  %3300 = vmatprep.subr.bf16.mxu0 %v3649_v11  ;;  %v3714_v10 = vld [vmem:[%s4122_s13 + $0x44] ss:$28 sps:$4 sm:$0xff]   ;;  %v3715_v11 = vld [vmem:[%s4722_s1 + $0x170] sm:$0xff]  }
  0x50   : > { %3321 = vmatprep.subr.bf16.mxu1 %v3651_v13  ;;  %v3717_v13 = vld [vmem:[%s4722_s1 + $0x180] sm:$0xff]  }
  0x52   : > { %3533 = vmatmul.mubr.msk.bf16.vlgmr.msra.gmra.mrb[4].mxu1 %vm789_vm1, %v3650_v12  ;;  %3301 = vmatpush3.bf16.msra.mxu0 %v3652_v14  ;;  %v3716_v12 = vld [vmem:[%s4722_s1 + $0x130] sm:$0xff]   ;;  %v3718_v14 = vld [vmem:[%s4722_s1 + $0x178] sm:$0xff]  }
  0x53   : > { %3322 = vmatpush3.bf16.msra.mxu1 %v3653_v15  ;;  %3302 = vmatprep.subr.bf16.mxu0 %v3654_v16  ;;  %v3719_v15 = vld [vmem:[%s4722_s1 + $0x138] sm:$0xff]   ;;  %v3720_v16 = vld [vmem:[%s4722_s1 + $0x188] sm:$0xff]  }
  0x54   : > { %3323 = vmatprep.subr.bf16.mxu1 %v3655_v17  ;;  %1443 = vmatprep.mubr.bf16.mxu1 %v3687_v47  ;;  %v3721_v17 = vld [vmem:[%s4122_s13 + $0x48] ss:$28 sps:$4 sm:$0xff]   ;;  %v3752_v47 = vld [vmem:[%s4722_s1 + $0xb0] sm:$0xff]  }
  0x56   : > { %3303 = vmatpush3.bf16.msra.mxu0 %v3656_v18  ;;  %v3723_v18 = vld [vmem:[%s4122_s13 + $0x4c] ss:$28 sps:$4 sm:$0xff]  }
  0x57   : > { %3324 = vmatpush3.bf16.msra.mxu1 %v3657_v19  ;;  %3304 = vmatprep.subr.bf16.mxu0 %v3658_v20  ;;  %v3724_v19 = vld [vmem:[%s4722_s1 + $0x40] sm:$0xff]  }
  0x58   : > { %3325 = vmatprep.subr.bf16.mxu1 %v3659_v21  ;;  %v3725_v20 = vld [vmem:[%s4722_s1 + $0xc0] sm:$0xff]   ;;  %v3726_v21 = vld [vmem:[%s4122_s13 + $0x50] ss:$28 sps:$4 sm:$0xff]  }
  0x5a   : > { %3305 = vmatpush3.bf16.msra.mxu0 %v3660_v22  ;;  %v3727_v22 = vld [vmem:[%s4722_s1] sm:$0xff]  }
  0x5b   : > { %3326 = vmatpush3.bf16.msra.mxu1 %v3661_v23  ;;  %3306 = vmatprep.subr.bf16.mxu0 %v3662_v24  ;;  %v3728_v23 = vld [vmem:[%s4722_s1 + $0x80] sm:$0xff]   ;;  %v3729_v24 = vld [vmem:[%s4722_s1 + $0x48] sm:$0xff]  }
  0x5c   : > { %3327 = vmatprep.subr.bf16.mxu1 %v3663_v25  ;;  %v3730_v25 = vld [vmem:[%s4722_s1 + $0xc8] sm:$0xff]  }
  0x5e   : > { %3307 = vmatpush3.bf16.msra.mxu0 %v3664_v26  ;;  %v3731_v26 = vld [vmem:[%s4722_s1 + $0x8] sm:$0xff]  }
  0x5f   : > { %3328 = vmatpush3.bf16.msra.mxu1 %v3665_v27  ;;  %3308 = vmatprep.subr.bf16.mxu0 %v3666_v28  ;;  %v3732_v27 = vld [vmem:[%s4722_s1 + $0x88] sm:$0xff]   ;;  %v3733_v28 = vld [vmem:[%s4722_s1 + $0x50] sm:$0xff]  }
  0x60   : > { %3329 = vmatprep.subr.bf16.mxu1 %v3667_v29  ;;  %v3734_v29 = vld [vmem:[%s4722_s1 + $0xd0] sm:$0xff]  }
  0x62   : > { %3309 = vmatpush3.bf16.msra.mxu0 %v3668_v30  ;;  %v3735_v30 = vld [vmem:[%s4722_s1 + $0x10] sm:$0xff]  }
  0x63   : > { %3330 = vmatpush3.bf16.msra.mxu1 %v3669_v31  ;;  %3310 = vmatprep.subr.bf16.mxu0 %v3670_v32  ;;  %v3736_v31 = vld [vmem:[%s4722_s1 + $0x90] sm:$0xff]   ;;  %v3737_v32 = vld [vmem:[%s4722_s1 + $0x58] sm:$0xff]  }
  0x64   : > { %3331 = vmatprep.subr.bf16.mxu1 %v3671_v33  ;;  %v3738_v33 = vld [vmem:[%s4722_s1 + $0xd8] sm:$0xff]  }
  0x66   : > { %3311 = vmatpush3.bf16.msra.mxu0 %v3672_v34  ;;  %v3739_v34 = vld [vmem:[%s4722_s1 + $0x18] sm:$0xff]  }
  0x67   : > { %3332 = vmatpush3.bf16.msra.mxu1 %v3673_v35  ;;  %3343 = vmatprep.subr.bf16.mxu0 %v3678_v39  ;;  %v3740_v35 = vld [vmem:[%s4722_s1 + $0x98] sm:$0xff]   ;;  %v3744_v39 = vld [vmem:[%s4722_s1 + $0xa0] sm:$0xff]  }
  0x68   : > { %3333 = vmatprep.subr.bf16.mxu1 %v3677_v38  ;;  %v3743_v38 = vld [vmem:[%s4722_s1 + $0x20] sm:$0xff]  }
  0x69   : > { %908 = vmatmul.mubr.bf16.vlgmr.msra.gmra.mrb[4].mxu0 %v3674_v36  ;;  %v3741_v36 = vld [vmem:[%s4722_s1 + $0x60] sm:$0xff]  }
  0x6a   : > { %3344 = vmatpush3.bf16.msra.mxu0 %v3680_v41  ;;  %1484 = vmatprep.mubr.bf16.mxu0 %v3714_v10  ;;  %v3746_v41 = vld [vmem:[%s4722_s1 + $0xe8] sm:$0xff]   ;;  %v3780_v10 = vld [vmem:[%s4722_s1 + $0x120] sm:$0xff]  }
  0x6b   : > { %3334 = vmatpush3.bf16.msra.mxu1 %v3679_v40  ;;  %3345 = vmatprep.subr.bf16.mxu0 %v3682_v43  ;;  %v3745_v40 = vld [vmem:[%s4722_s1 + $0x68] sm:$0xff]  }
  0x6c   : > { %3335 = vmatprep.subr.bf16.mxu1 %v3681_v42  ;;  %v3747_v42 = vld [vmem:[%s4722_s1 + $0x28] sm:$0xff]  }
  0x6d   : > { %v3748_v43 = vld [vmem:[%s4722_s1 + $0xa8] sm:$0xff]  }
  0x6e   : > { %3346 = vmatpush3.bf16.msra.mxu0 %v3684_v45  ;;  %v3750_v45 = vld [vmem:[%s4722_s1 + $0xf0] sm:$0xff]  }
  0x6f   : > { %3336 = vmatpush3.bf16.msra.mxu1 %v3683_v44  ;;  %3347 = vmatprep.subr.bf16.mxu0 %v3688_v48  ;;  %v3749_v44 = vld [vmem:[%s4722_s1 + $0x70] sm:$0xff]   ;;  %v3753_v48 = vld [vmem:[%s4722_s1 + $0x78] sm:$0xff]  }
  0x70   : > { %3365 = vmatprep.subr.bf16.mxu1 %v3689_v49  ;;  %v3754_v49 = vld [vmem:[%s4722_s1 + $0xf8] sm:$0xff]  }
  0x72   : > { %1444 = vmatmul.mubr.bf16.vlgmr.msra.gmra.mrb[8].mxu1 %v3685_v46  ;;  %3348 = vmatpush3.bf16.msra.mxu0 %v3690_v50  ;;  %v3751_v46 = vld [vmem:[%s4722_s1 + $0x30] sm:$0xff]   ;;  %v3755_v50 = vld [vmem:[%s4722_s1 + $0x38] sm:$0xff]  }
  0x73   : > { %3366 = vmatpush3.bf16.msra.mxu1 %v3691_v51  ;;  %3349 = vmatprep.subr.bf16.mxu0 %v3692_v52  ;;  %v3756_v51 = vld [vmem:[%s4722_s1 + $0xb8] sm:$0xff]   ;;  %v3757_v52 = vld [vmem:[%s4122_s13 + $0x70] ss:$28 sps:$4 sm:$0xff]  }
  0x74   : > { %3367 = vmatprep.subr.bf16.mxu1 %v3693_v53  ;;  %1525 = vmatprep.mubr.bf16.mxu1 %v3723_v18  ;;  %v3759_v53 = vld [vmem:[%s4122_s13 + $0x74] ss:$28 sps:$4 sm:$0xff]  }
  0x75   : > { %v3788_v18 = vld [vmem:[%s4722_s1 + $0x130] sm:$0xff]  }
  0x76   : > { %3350 = vmatpush3.bf16.msra.mxu0 %v3694_v54  ;;  %v3760_v54 = vld [vmem:[%s4122_s13 + $0x78] ss:$28 sps:$4 sm:$0xff]  }
  0x77   : > { %3368 = vmatpush3.bf16.msra.mxu1 %v3695_v55  ;;  %3351 = vmatprep.subr.bf16.mxu0 %v3696_v56  ;;  %v3762_v55 = vld [vmem:[%s4122_s13 + $0x7c] ss:$28 sps:$4 sm:$0xff]   ;;  %v3763_v56 = vld [vmem:[%s4722_s1 + $0x140] sm:$0xff]  }
  0x78   : > { %3369 = vmatprep.subr.bf16.mxu1 %v3697_v57  ;;  %v3764_v57 = vld [vmem:[%s4722_s1 + $0x100] sm:$0xff]  }
  0x7a   : > { %3352 = vmatpush3.bf16.msra.mxu0 %v3698_v58  ;;  %v3765_v58 = vld [vmem:[%s4722_s1 + $0x180] sm:$0xff]  }
  0x7b   : > { %3370 = vmatpush3.bf16.msra.mxu1 %v3699_v59  ;;  %3353 = vmatprep.subr.bf16.mxu0 %v3700_v60  ;;  %v3766_v59 = vld [vmem:[%s4722_s1 + $0x148] sm:$0xff]  }
  0x7c   : > { %3371 = vmatprep.subr.bf16.mxu1 %v3701_v61  ;;  %v3767_v60 = vld [vmem:[%s4722_s1 + $0x108] sm:$0xff]  }
  0x7d   : > { %v3768_v61 = vld [vmem:[%s4722_s1 + $0x188] sm:$0xff]  }
  0x7e   : > { %3354 = vmatpush3.bf16.msra.mxu0 %v3702_v62  ;;  %v3769_v62 = vld [vmem:[%s4722_s1 + $0x150] sm:$0xff]  }
  0x7f   : > { %3372 = vmatpush3.bf16.msra.mxu1 %v3703_v63  ;;  %3355 = vmatprep.subr.bf16.mxu0 %v3704_v0  ;;  %v3770_v63 = vld [vmem:[%s4122_s13 + $0x88] ss:$28 sps:$4 sm:$0xff]  }
  0x80   : > { %3373 = vmatprep.subr.bf16.mxu1 %v3705_v1  ;;  %v3771_v0 = vld [vmem:[%s4722_s1 + $0x40] sm:$0xff]   ;;  %v3772_v1 = vld [vmem:[%s4722_s1 + $0x110] sm:$0xff]  }
  0x82   : > { %3356 = vmatpush3.bf16.msra.mxu0 %v3706_v2  ;;  %v3773_v2 = vld [vmem:[%s4722_s1] sm:$0xff]  }
  0x83   : > { %3374 = vmatpush3.bf16.msra.mxu1 %v3707_v3  ;;  %3357 = vmatprep.subr.bf16.mxu0 %v3708_v5  ;;  %v3774_v3 = vld [vmem:[%s4722_s1 + $0x158] sm:$0xff]   ;;  %v3775_v5 = vld [vmem:[%s4722_s1 + $0x48] sm:$0xff]  }
  0x84   : > { %3375 = vmatprep.subr.bf16.mxu1 %v3709_v6  ;;  %v3776_v6 = vld [vmem:[%s4722_s1 + $0x118] sm:$0xff]  }
  0x86   : > { %3358 = vmatpush3.bf16.msra.mxu0 %v3710_v7  ;;  %v3777_v7 = vld [vmem:[%s4722_s1 + $0x8] sm:$0xff]  }
  0x87   : > { %3376 = vmatpush3.bf16.msra.mxu1 %v3711_v8  ;;  %3536 = vmatprep.subr.bf16.mxu0 %v3885_v4  ;;  %v3778_v8 = vld [vmem:[%s4722_s1 + $0x160] sm:$0xff]  }
  0x88   : > { %3377 = vmatprep.subr.bf16.mxu1 %v3715_v11  ;;  %v3781_v11 = vld [vmem:[%s4722_s1 + $0x10] sm:$0xff]  }
  0x89   : > { %1485 = vmatmul.mubr.bf16.vlgmr.msra.gmra.mrb[8].mxu0 %v3712_v9  ;;  %v3779_v9 = vld [vmem:[%s4722_s1 + $0x50] sm:$0xff]  }
  0x8a   : > { %3540 = vmatprep.mubr.msk.bf16.mxu0 %vm3886_vm0, %v3885_v4  ;;  %3537 = vmatpush3.bf16.msra.mxu0 %v3717_v13  ;;  %v3783_v13 = vld [vmem:[%s4722_s1 + $0x58] sm:$0xff]  }
  0x8b   : > { %3378 = vmatpush3.bf16.msra.mxu1 %v3716_v12  ;;  %3538 = vmatprep.subr.bf16.mxu0 %v3885_v4  ;;  %v3782_v12 = vld [vmem:[%s4722_s1 + $0x168] sm:$0xff]  }
  0x8c   : > { %3379 = vmatprep.subr.bf16.mxu1 %v3718_v14  ;;  %v3784_v14 = vld [vmem:[%s4722_s1 + $0x128] sm:$0xff]  }
  0x8e   : > { %3539 = vmatpush3.bf16.msra.mxu0 %v3720_v16  ;;  %v3786_v16 = vld [vmem:[%s4722_s1 + $0x170] sm:$0xff]  }
  0x8f   : > { %3380 = vmatpush3.bf16.msra.mxu1 %v3719_v15  ;;  %3390 = vmatprep.subr.bf16.mxu0 %v3724_v19  ;;  %v3785_v15 = vld [vmem:[%s4722_s1 + $0x18] sm:$0xff]   ;;  %v3789_v19 = vld [vmem:[%s4722_s1 + $0x20] sm:$0xff]  }
  0x90   : > { %3412 = vmatprep.subr.bf16.mxu1 %v3725_v20  ;;  %v3790_v20 = vld [vmem:[%s4722_s1 + $0x178] sm:$0xff]  }
  0x91   : > { %3541 = vmatmul.mubr.msk.bf16.vlgmr.msra.gmra.mrb[12].mxu0 %vm789_vm1, %v3726_v21  ;;  %v3791_v21 = vld [vmem:[%s4722_s1 + $0x68] sm:$0xff]  }
  0x92   : > { %1526 = vmatmul.mubr.bf16.vlgmr.msra.gmra.mrb[12].mxu1 %v3721_v17  ;;  %3391 = vmatpush3.bf16.msra.mxu0 %v3727_v22  ;;  %v3787_v17 = vld [vmem:[%s4722_s1 + $0x60] sm:$0xff]   ;;  %v3792_v22 = vld [vmem:[%s4722_s1 + $0x138] sm:$0xff]  }
  0x93   : > { %3413 = vmatpush3.bf16.msra.mxu1 %v3728_v23  ;;  %3392 = vmatprep.subr.bf16.mxu0 %v3729_v24  ;;  %v3793_v23 = vld [vmem:[%s4722_s1 + $0x28] sm:$0xff]   ;;  %v3794_v24 = vld [vmem:[%s4122_s13 + $0x80] ss:$28 sps:$4 sm:$0xff]  }
  0x94   : > { %3414 = vmatprep.subr.bf16.mxu1 %v3730_v25  ;;  %2061 = vmatprep.mubr.bf16.mxu0 %v3759_v53  ;;  %v3796_v25 = vld [vmem:[%s4122_s13 + $0x84] ss:$28 sps:$4 sm:$0xff]  }
  0x95   : > { %2102 = vmatprep.mubr.bf16.mxu1 %v3762_v55  ;;  %v3825_v53 = vld [vmem:[%s4722_s1 + $0x160] sm:$0xff]  }
  0x96   : > { %3393 = vmatpush3.bf16.msra.mxu0 %v3731_v26  ;;  %v3797_v26 = vld [vmem:[%s4722_s1 + $0x70] sm:$0xff]   ;;  %v3827_v55 = vld [vmem:[%s4722_s1 + $0x120] sm:$0xff]  }
  0x97   : > { %3415 = vmatpush3.bf16.msra.mxu1 %v3732_v27  ;;  %3394 = vmatprep.subr.bf16.mxu0 %v3733_v28  ;;  %v3798_v27 = vld [vmem:[%s4722_s1 + $0xc0] sm:$0xff]   ;;  %v3799_v28 = vld [vmem:[%s4722_s1 + $0x30] sm:$0xff]  }
  0x98   : > { %3416 = vmatprep.subr.bf16.mxu1 %v3734_v29  ;;  %v3800_v29 = vld [vmem:[%s4722_s1 + $0x80] sm:$0xff]  }
  0x9a   : > { %3395 = vmatpush3.bf16.msra.mxu0 %v3735_v30  ;;  %v3801_v30 = vld [vmem:[%s4722_s1 + $0x78] sm:$0xff]  }
  0x9b   : > { %3417 = vmatpush3.bf16.msra.mxu1 %v3736_v31  ;;  %3396 = vmatprep.subr.bf16.mxu0 %v3737_v32  ;;  %v3802_v31 = vld [vmem:[%s4722_s1 + $0xc8] sm:$0xff]   ;;  %v3803_v32 = vld [vmem:[%s4722_s1 + $0x38] sm:$0xff]  }
  0x9c   : > { %3418 = vmatprep.subr.bf16.mxu1 %v3738_v33  ;;  %v3804_v33 = vld [vmem:[%s4722_s1 + $0x88] sm:$0xff]  }
  0x9e   : > { %3397 = vmatpush3.bf16.msra.mxu0 %v3739_v34  ;;  %v3805_v34 = vld [vmem:[%s4122_s13 + $0xa8] ss:$28 sps:$4 sm:$0xff]  }
  0x9f   : > { %3419 = vmatpush3.bf16.msra.mxu1 %v3740_v35  ;;  %3398 = vmatprep.subr.bf16.mxu0 %v3741_v36  ;;  %v3807_v35 = vld [vmem:[%s4122_s13 + $0xac] ss:$28 sps:$4 sm:$0xff]   ;;  %v3808_v36 = vld [vmem:[%s4722_s1 + $0xd0] sm:$0xff]  }
  0xa0   : > { %3420 = vmatprep.subr.bf16.mxu1 %v3742_v37  ;;  %v3809_v37 = vld [vmem:[%s4722_s1 + $0x140] sm:$0xff]  }
  0xa2   : > { %3399 = vmatpush3.bf16.msra.mxu0 %v3743_v38  ;;  %v3810_v38 = vld [vmem:[%s4722_s1 + $0x90] sm:$0xff]  }
  0xa3   : > { %3421 = vmatpush3.bf16.msra.mxu1 %v3744_v39  ;;  %3400 = vmatprep.subr.bf16.mxu0 %v3745_v40  ;;  %v3811_v39 = vld [vmem:[%s4722_s1 + $0x100] sm:$0xff]   ;;  %v3812_v40 = vld [vmem:[%s4722_s1 + $0xd8] sm:$0xff]  }
  0xa4   : > { %3422 = vmatprep.subr.bf16.mxu1 %v3746_v41  ;;  %v3813_v41 = vld [vmem:[%s4722_s1 + $0x148] sm:$0xff]  }
  0xa6   : > { %3401 = vmatpush3.bf16.msra.mxu0 %v3747_v42  ;;  %v3814_v42 = vld [vmem:[%s4722_s1 + $0x98] sm:$0xff]  }
  0xa7   : > { %3423 = vmatpush3.bf16.msra.mxu1 %v3748_v43  ;;  %3402 = vmatprep.subr.bf16.mxu0 %v3749_v44  ;;  %v3815_v43 = vld [vmem:[%s4722_s1 + $0x108] sm:$0xff]   ;;  %v3816_v44 = vld [vmem:[%s4722_s1 + $0xe0] sm:$0xff]  }
  0xa8   : > { %3424 = vmatprep.subr.bf16.mxu1 %v3750_v45  ;;  %v3817_v45 = vld [vmem:[%s4722_s1 + $0x150] sm:$0xff]  }
  0xaa   : > { %3403 = vmatpush3.bf16.msra.mxu0 %v3751_v46  ;;  %v3818_v46 = vld [vmem:[%s4722_s1 + $0xa0] sm:$0xff]  }
  0xab   : > { %3425 = vmatpush3.bf16.msra.mxu1 %v3752_v47  ;;  %3404 = vmatprep.subr.bf16.mxu0 %v3753_v48  ;;  %v3819_v47 = vld [vmem:[%s4722_s1 + $0x110] sm:$0xff]   ;;  %v3820_v48 = vld [vmem:[%s4722_s1 + $0xe8] sm:$0xff]  }
  0xac   : > { %3426 = vmatprep.subr.bf16.mxu1 %v3754_v49  ;;  %v3821_v49 = vld [vmem:[%s4722_s1 + $0x158] sm:$0xff]  }
  0xae   : > { %3405 = vmatpush3.bf16.msra.mxu0 %v3755_v50  ;;  %v3822_v50 = vld [vmem:[%s4722_s1 + $0xa8] sm:$0xff]  }
  0xaf   : > { %3427 = vmatpush3.bf16.msra.mxu1 %v3756_v51  ;;  %3434 = vmatprep.subr.bf16.mxu0 %v3763_v56  ;;  %v3823_v51 = vld [vmem:[%s4722_s1 + $0x118] sm:$0xff]  }
  0xb0   : > { %3544 = vmatprep.subr.bf16.mxu1 %v3885_v4  ;;  %v3828_v56 = vld [vmem:[%s4722_s1 + $0xf8] sm:$0xff]  }
  0xb1   : > { %2062 = vmatmul.mubr.bf16.vlgmr.msra.gmra.mrb[16].mxu0 %v3757_v52  ;;  %v3824_v52 = vld [vmem:[%s4722_s1 + $0xf0] sm:$0xff]  }
  0xb2   : > { %2103 = vmatmul.mubr.bf16.vlgmr.msra.gmra.mrb[16].mxu1 %v3760_v54  ;;  %3435 = vmatpush3.bf16.msra.mxu0 %v3764_v57  ;;  %v3826_v54 = vld [vmem:[%s4722_s1 + $0xb0] sm:$0xff]   ;;  %v3829_v57 = vld [vmem:[%s4722_s1 + $0x168] sm:$0xff]  }
  0xb3   : > { %3548 = vmatprep.mubr.msk.bf16.mxu1 %vm3886_vm0, %v3885_v4  ;;  %3545 = vmatpush3.bf16.msra.mxu1 %v3765_v58  ;;  %v3830_v58 = vld [vmem:[%s4722_s1 + $0xb8] sm:$0xff]  }
  0xb4   : > { %3436 = vmatprep.subr.bf16.mxu0 %v3766_v59  ;;  %3546 = vmatprep.subr.bf16.mxu1 %v3885_v4  ;;  %v3831_v59 = vld [vmem:[%s4722_s1 + $0x128] sm:$0xff]  }
  0xb5   : > { %2143 = vmatprep.mubr.bf16.mxu0 %v3796_v25 }
  0xb6   : > { %3437 = vmatpush3.bf16.msra.mxu0 %v3767_v60  ;;  %v3832_v60 = vld [vmem:[%s4122_s13 + $0xb0] ss:$28 sps:$4 sm:$0xff]  }
  0xb7   : > { %3547 = vmatpush3.bf16.msra.mxu1 %v3768_v61  ;;  %3438 = vmatprep.subr.bf16.mxu0 %v3769_v62  ;;  %v3834_v61 = vld [vmem:[%s4122_s13 + $0xb4] ss:$28 sps:$4 sm:$0xff]  }
  0xb8   : > { %3459 = vmatprep.subr.bf16.mxu1 %v3771_v0  ;;  %v3835_v62 = vld [vmem:[%s4722_s1 + $0x170] sm:$0xff]   ;;  %v3837_v0 = vld [vmem:[%s4722_s1 + $0x180] sm:$0xff]  }
  0xba   : > { %3549 = vmatmul.mubr.msk.bf16.vlgmr.msra.gmra.mrb[20].mxu1 %vm789_vm1, %v3770_v63  ;;  %3439 = vmatpush3.bf16.msra.mxu0 %v3772_v1  ;;  %v3836_v63 = vld [vmem:[%s4722_s1 + $0x130] sm:$0xff]   ;;  %v3838_v1 = vld [vmem:[%s4722_s1 + $0x178] sm:$0xff]  }
  0xbb   : > { %3460 = vmatpush3.bf16.msra.mxu1 %v3773_v2  ;;  %3440 = vmatprep.subr.bf16.mxu0 %v3774_v3  ;;  %v3839_v2 = vld [vmem:[%s4722_s1 + $0x138] sm:$0xff]  }
  0xbc   : > { %3461 = vmatprep.subr.bf16.mxu1 %v3775_v5  ;;  %2679 = vmatprep.mubr.bf16.mxu1 %v3807_v35  ;;  %v3840_v3 = vld [vmem:[%s4122_s13 + $0xb8] ss:$28 sps:$4 sm:$0xff]  }
  0xbd   : > { %v3842_v5 = vld [vmem:[%s4122_s13 + $0xbc] ss:$28 sps:$4 sm:$0xff]  }
  0xbe   : > { %3441 = vmatpush3.bf16.msra.mxu0 %v3776_v6  ;;  %v3843_v6 = vld [vmem:[%s4722_s1 + $0x188] sm:$0xff]  }
  0xbf   : > { %3462 = vmatpush3.bf16.msra.mxu1 %v3777_v7  ;;  %3442 = vmatprep.subr.bf16.mxu0 %v3778_v8  ;;  %v3844_v7 = vld [vmem:[%s4122_s13 + $0xc0] ss:$28 sps:$4 sm:$0xff]  }
  0xc0   : > { %3463 = vmatprep.subr.bf16.mxu1 %v3779_v9 }
  0xc2   : > { %3443 = vmatpush3.bf16.msra.mxu0 %v3780_v10 }
  0xc3   : > { %3464 = vmatpush3.bf16.msra.mxu1 %v3781_v11  ;;  %3444 = vmatprep.subr.bf16.mxu0 %v3782_v12 }
  0xc4   : > { %3465 = vmatprep.subr.bf16.mxu1 %v3783_v13 }
  0xc6   : > { %3445 = vmatpush3.bf16.msra.mxu0 %v3784_v14 }
  0xc7   : > { %3466 = vmatpush3.bf16.msra.mxu1 %v3785_v15  ;;  %3446 = vmatprep.subr.bf16.mxu0 %v3786_v16 }
  0xc8   : > { %3467 = vmatprep.subr.bf16.mxu1 %v3787_v17 }
  0xca   : > { %3447 = vmatpush3.bf16.msra.mxu0 %v3788_v18 }
  0xcb   : > { %3468 = vmatpush3.bf16.msra.mxu1 %v3789_v19  ;;  %3448 = vmatprep.subr.bf16.mxu0 %v3790_v20 }
  0xcc   : > { %3469 = vmatprep.subr.bf16.mxu1 %v3791_v21 }
  0xce   : > { %3449 = vmatpush3.bf16.msra.mxu0 %v3792_v22 }
  0xcf   : > { %3470 = vmatpush3.bf16.msra.mxu1 %v3793_v23  ;;  %3481 = vmatprep.subr.bf16.mxu0 %v3798_v27 }
  0xd0   : > { %3471 = vmatprep.subr.bf16.mxu1 %v3797_v26 }
  0xd1   : > { %2144 = vmatmul.mubr.bf16.vlgmr.msra.gmra.mrb[20].mxu0 %v3794_v24 }
  0xd2   : > { %3482 = vmatpush3.bf16.msra.mxu0 %v3800_v29  ;;  %2720 = vmatprep.mubr.bf16.mxu0 %v3834_v61 }
  0xd3   : > { %3472 = vmatpush3.bf16.msra.mxu1 %v3799_v28  ;;  %3483 = vmatprep.subr.bf16.mxu0 %v3802_v31 }
  0xd4   : > { %3473 = vmatprep.subr.bf16.mxu1 %v3801_v30 }
  0xd6   : > { %3484 = vmatpush3.bf16.msra.mxu0 %v3804_v33 }
  0xd7   : > { %3474 = vmatpush3.bf16.msra.mxu1 %v3803_v32  ;;  %3485 = vmatprep.subr.bf16.mxu0 %v3808_v36 }
  0xd8   : > { %3503 = vmatprep.subr.bf16.mxu1 %v3809_v37 }
  0xda   : > { %2680 = vmatmul.mubr.bf16.vlgmr.msra.gmra.mrb[24].mxu1 %v3805_v34  ;;  %3486 = vmatpush3.bf16.msra.mxu0 %v3810_v38 }
  0xdb   : > { %3504 = vmatpush3.bf16.msra.mxu1 %v3811_v39  ;;  %3487 = vmatprep.subr.bf16.mxu0 %v3812_v40 }
  0xdc   : > { %3505 = vmatprep.subr.bf16.mxu1 %v3813_v41  ;;  %2761 = vmatprep.mubr.bf16.mxu1 %v3842_v5 }
  0xde   : > { %3488 = vmatpush3.bf16.msra.mxu0 %v3814_v42 }
  0xdf   : > { %3506 = vmatpush3.bf16.msra.mxu1 %v3815_v43  ;;  %3489 = vmatprep.subr.bf16.mxu0 %v3816_v44 }
  0xe0   : > { %3507 = vmatprep.subr.bf16.mxu1 %v3817_v45 }
  0xe2   : > { %3490 = vmatpush3.bf16.msra.mxu0 %v3818_v46 }
  0xe3   : > { %3508 = vmatpush3.bf16.msra.mxu1 %v3819_v47  ;;  %3491 = vmatprep.subr.bf16.mxu0 %v3820_v48 }
  0xe4   : > { %3509 = vmatprep.subr.bf16.mxu1 %v3821_v49 }
  0xe6   : > { %3492 = vmatpush3.bf16.msra.mxu0 %v3822_v50 }
  0xe7   : > { %3510 = vmatpush3.bf16.msra.mxu1 %v3823_v51  ;;  %3493 = vmatprep.subr.bf16.mxu0 %v3824_v52  ;;  %v4679_v51 = vld [vmem:[%s4723_s2] ss:$0 sm:$0xff] }
  0xe8   : > { %3511 = vmatprep.subr.bf16.mxu1 %v3825_v53 }
  0xea   : > { %3494 = vmatpush3.bf16.msra.mxu0 %v3826_v54 }
  0xeb   : > { %3512 = vmatpush3.bf16.msra.mxu1 %v3827_v55  ;;  %3495 = vmatprep.subr.bf16.mxu0 %v3828_v56 }
  0xec   : > { %3513 = vmatprep.subr.bf16.mxu1 %v3829_v57 }
  0xee   : > { %3496 = vmatpush3.bf16.msra.mxu0 %v3830_v58 }
  0xef   : > { %3514 = vmatpush3.bf16.msra.mxu1 %v3831_v59  ;;  %3552 = vmatprep.subr.bf16.mxu0 %v3885_v4 }
  0xf0   : > { %3515 = vmatprep.subr.bf16.mxu1 %v3835_v62  ;;  %v4685_v62 = vld [vmem:[%s4724_s3] ss:$0 sm:$0xff] }
  0xf1   : > { %2721 = vmatmul.mubr.bf16.vlgmr.msra.gmra.mrb[24].mxu0 %v3832_v60 }
  0xf2   : > { %3556 = vmatprep.mubr.msk.bf16.mxu0 %vm3886_vm0, %v3885_v4  ;;  %3553 = vmatpush3.bf16.msra.mxu0 %v3837_v0 }
  0xf3   : > { %3516 = vmatpush3.bf16.msra.mxu1 %v3836_v63  ;;  %3554 = vmatprep.subr.bf16.mxu0 %v3885_v4 }
  0xf4   : > { %3517 = vmatprep.subr.bf16.mxu1 %v3838_v1 }
  0xf6   : > { %3555 = vmatpush3.bf16.msra.mxu0 %v3843_v6 }
  0xf7   : > { %3518 = vmatpush3.bf16.msra.mxu1 %v3839_v2 }
  0xf9   : > { %3557 = vmatmul.mubr.msk.bf16.vlgmr.msra.gmra.mrb[28].mxu0 %vm789_vm1, %v3844_v7 }
  0xfa   : > { %2762 = vmatmul.mubr.bf16.vlgmr.msra.gmra.mrb[28].mxu1 %v3840_v3 }
 0x11c   : > { %v3268_v8 = vpop.f32.mrb[0].mxu0 }
 0x11d   : > { %v3290_v9 = vpop.f32.mrb[0].mxu1  ;;  %v3269_v10 = vpop.f32.mrb[1].mxu0 }
 0x11e   : > { %v3270_v11 = vadd.f32 %v3269_v10, %v3268_v8  ;;  %v3291_v12 = vpop.f32.mrb[1].mxu1  ;;  %v3271_v13 = vpop.f32.mrb[2].mxu0 }
 0x11f   : > { %v3292_v4 = vadd.f32 %v3291_v12, %v3290_v9  ;;  %v3293_v14 = vpop.f32.mrb[2].mxu1  ;;  %v3272_v15 = vpop.f32.mrb[3].mxu0 }
 0x120   : > { %v3273_v16 = vadd.f32 %v3272_v15, %v3271_v13  ;;  %v3294_v17 = vpop.f32.mrb[3].mxu1 }
 0x121   : > { %v869_v18 = vadd.f32 %v3292_v4, %v3270_v11  ;;  %v3295_v19 = vadd.f32 %v3294_v17, %v3293_v14 }
 0x123   : > { %v872_v20 = vadd.f32 %v3295_v19, %v3273_v16 }
 0x125   : > { %v950_v21 = vpop.f32.mrb[4].mxu1 }
 0x126   : > { %v3534_v22 = vpop.f32.mrb[5].mxu1 }
 0x127   : > { %v953_v23 = vpop.f32.mrb[6].mxu1 }
 0x128   : > { %v3535_v24 = vpop.f32.mrb[7].mxu1 }
 0x13c   : > { %v3312_v25 = vpop.f32.mrb[4].mxu0 }
 0x13d   : > { %v3313_v26 = vpop.f32.mrb[5].mxu0 }
 0x13e   : > { %v3314_v27 = vadd.f32 %v3313_v26, %v3312_v25  ;;  %v3315_v28 = vpop.f32.mrb[6].mxu0 }
 0x13f   : > { %v3316_v29 = vpop.f32.mrb[7].mxu0 }
 0x140   : > { %v910_v30 = vadd.f32 %v3314_v27, %v869_v18  ;;  %v3317_v31 = vadd.f32 %v3316_v29, %v3315_v28 }
 0x142   : > { %v951_v32 = vadd.f32 %v950_v21, %v910_v30  ;;  %v913_v33 = vadd.f32 %v3317_v31, %v872_v20 }
 0x144   : > { %v954_v34 = vadd.f32 %v953_v23, %v913_v33  ;;  %v2828_v59 = vmul.f32 %v4679_v51, %v951_v32 }
 0x145   : > { %v3337_v35 = vpop.f32.mrb[8].mxu1 }
 0x146   : > { %v3338_v36 = vpop.f32.mrb[9].mxu1  ;;  %v2829_v63 = vmul.f32 %v4679_v51, %v954_v34  ;;  %v2836_v2 = vadd.f32 %v4685_v62, %v2828_v59 }
 0x147   : > { %v3339_v37 = vadd.f32 %v3338_v36, %v3337_v35  ;;  %v3340_v38 = vpop.f32.mrb[10].mxu1 }
 0x148   : > { %v3341_v39 = vpop.f32.mrb[11].mxu1  ;;  %v2837_v6 = vadd.f32 %v4685_v62, %v2829_v63  ;;  %v2838_v9 = vmax.f32 %v2836_v2, 0.0 }
 0x149   : > { %v3342_v40 = vadd.f32 %v3341_v39, %v3340_v38 }
 0x14a   : > { %v2839_v13 = vmax.f32 %v2837_v6, 0.0 }
 0x15c   : > { %v3359_v41 = vpop.f32.mrb[8].mxu0 }
 0x15d   : > { %v3360_v42 = vpop.f32.mrb[9].mxu0 }
 0x15e   : > { %v3361_v43 = vadd.f32 %v3360_v42, %v3359_v41  ;;  %v3362_v44 = vpop.f32.mrb[10].mxu0 }
 0x15f   : > { %v3363_v45 = vpop.f32.mrb[11].mxu0 }
 0x160   : > { %v1487_v46 = vadd.f32 %v3361_v43, %v3339_v37  ;;  %v3364_v47 = vadd.f32 %v3363_v45, %v3362_v44 }
 0x162   : > { %v1490_v48 = vadd.f32 %v3364_v47, %v3342_v40 }
 0x164   : > { %v1568_v50 = vpop.f32.mrb[12].mxu0 }
 0x165   : > { %v3381_v49 = vpop.f32.mrb[12].mxu1  ;;  %v3542_v53 = vpop.f32.mrb[13].mxu0 }
 0x166   : > { %v3382_v52 = vpop.f32.mrb[13].mxu1  ;;  %v1571_v56 = vpop.f32.mrb[14].mxu0 }
 0x167   : > { %v3383_v54 = vadd.f32 %v3382_v52, %v3381_v49  ;;  %v3384_v55 = vpop.f32.mrb[14].mxu1  ;;  %v3543_v58 = vpop.f32.mrb[15].mxu0 }
 0x168   : > { %v3385_v57 = vpop.f32.mrb[15].mxu1 }
 0x169   : > { %v1528_v60 = vadd.f32 %v3383_v54, %v1487_v46  ;;  %v3386_v61 = vadd.f32 %v3385_v57, %v3384_v55 }
 0x16b   : > { %v1569_v0 = vadd.f32 %v1568_v50, %v1528_v60  ;;  %v1531_v1 = vadd.f32 %v3386_v61, %v1490_v48 }
 0x16d   : > { %v2842_v3 = vmul.f32 %v4679_v51, %v1569_v0  ;;  %v1572_v5 = vadd.f32 %v1571_v56, %v1531_v1 }
 0x16f   : > { %v2844_v7 = vadd.f32 %v4685_v62, %v2842_v3  ;;  %v2843_v8 = vmul.f32 %v4679_v51, %v1572_v5 }
 0x171   : > { %v2846_v10 = vmax.f32 %v2844_v7, 0.0  ;;  %v2845_v11 = vadd.f32 %v4685_v62, %v2843_v8 }
 0x173   : > { %v2848_v12 = vmax.f32 %v2838_v9, %v2846_v10  ;;  %v2847_v4 = vmax.f32 %v2845_v11, 0.0 }
 0x175   : > { %v2849_v14 = vmax.f32 %v2839_v13, %v2847_v4 }
 0x184   : > { %v3406_v15 = vpop.f32.mrb[16].mxu0 }
 0x185   : > { %v3428_v16 = vpop.f32.mrb[16].mxu1  ;;  %v3407_v17 = vpop.f32.mrb[17].mxu0 }
 0x186   : > { %v3408_v18 = vadd.f32 %v3407_v17, %v3406_v15  ;;  %v3429_v19 = vpop.f32.mrb[17].mxu1  ;;  %v3409_v20 = vpop.f32.mrb[18].mxu0 }
 0x187   : > { %v3430_v21 = vadd.f32 %v3429_v19, %v3428_v16  ;;  %v3431_v22 = vpop.f32.mrb[18].mxu1  ;;  %v3410_v23 = vpop.f32.mrb[19].mxu0 }
 0x188   : > { %v3411_v24 = vadd.f32 %v3410_v23, %v3409_v20  ;;  %v3432_v25 = vpop.f32.mrb[19].mxu1 }
 0x189   : > { %v2105_v26 = vadd.f32 %v3430_v21, %v3408_v18  ;;  %v3433_v27 = vadd.f32 %v3432_v25, %v3431_v22 }
 0x18b   : > { %v2108_v28 = vadd.f32 %v3433_v27, %v3411_v24 }
 0x18d   : > { %v2186_v29 = vpop.f32.mrb[20].mxu1 }
 0x18e   : > { %v3550_v30 = vpop.f32.mrb[21].mxu1 }
 0x18f   : > { %v2189_v31 = vpop.f32.mrb[22].mxu1 }
 0x190   : > { %v3551_v32 = vpop.f32.mrb[23].mxu1 }
 0x1a4   : > { %v3450_v33 = vpop.f32.mrb[20].mxu0 }
 0x1a5   : > { %v3451_v34 = vpop.f32.mrb[21].mxu0 }
 0x1a6   : > { %v3452_v35 = vadd.f32 %v3451_v34, %v3450_v33  ;;  %v3453_v36 = vpop.f32.mrb[22].mxu0 }
 0x1a7   : > { %v3454_v37 = vpop.f32.mrb[23].mxu0 }
 0x1a8   : > { %v2146_v38 = vadd.f32 %v3452_v35, %v2105_v26  ;;  %v3455_v39 = vadd.f32 %v3454_v37, %v3453_v36 }
 0x1aa   : > { %v2187_v40 = vadd.f32 %v2186_v29, %v2146_v38  ;;  %v2149_v41 = vadd.f32 %v3455_v39, %v2108_v28 }
 0x1ac   : > { %v2852_v42 = vmul.f32 %v4679_v51, %v2187_v40  ;;  %v2190_v43 = vadd.f32 %v2189_v31, %v2149_v41 }
 0x1ad   : > { %v3475_v46 = vpop.f32.mrb[24].mxu1 }
 0x1ae   : > { %v2854_v44 = vadd.f32 %v4685_v62, %v2852_v42  ;;  %v2853_v45 = vmul.f32 %v4679_v51, %v2190_v43  ;;  %v3476_v47 = vpop.f32.mrb[25].mxu1 }
 0x1af   : > { %v3477_v50 = vadd.f32 %v3476_v47, %v3475_v46  ;;  %v3478_v52 = vpop.f32.mrb[26].mxu1 }
 0x1b0   : > { %v2856_v48 = vmax.f32 %v2854_v44, 0.0  ;;  %v2855_v49 = vadd.f32 %v4685_v62, %v2853_v45  ;;  %v3479_v53 = vpop.f32.mrb[27].mxu1 }
 0x1b1   : > { %v3480_v55 = vadd.f32 %v3479_v53, %v3478_v52 }
 0x1b2   : > { %v2857_v54 = vmax.f32 %v2855_v49, 0.0  ;;  %v2858_v56 = vmax.f32 %v2848_v12, %v2856_v48 }
 0x1b4   : > { %v2859_v57 = vmax.f32 %v2849_v14, %v2857_v54 }
 0x1c4   : > { %v3497_v58 = vpop.f32.mrb[24].mxu0 }
 0x1c5   : > { %v3498_v59 = vpop.f32.mrb[25].mxu0 }
 0x1c6   : > { %v3499_v60 = vadd.f32 %v3498_v59, %v3497_v58  ;;  %v3500_v61 = vpop.f32.mrb[26].mxu0 }
 0x1c7   : > { %v3501_v63 = vpop.f32.mrb[27].mxu0 }
 0x1c8   : > { %v2723_v0 = vadd.f32 %v3499_v60, %v3477_v50  ;;  %v3502_v1 = vadd.f32 %v3501_v63, %v3500_v61 }
 0x1ca   : > { %v2726_v2 = vadd.f32 %v3502_v1, %v3480_v55 }
 0x1cc   : > { %v2804_v5 = vpop.f32.mrb[28].mxu0 }
 0x1cd   : > { %v3519_v3 = vpop.f32.mrb[28].mxu1  ;;  %v3558_v7 = vpop.f32.mrb[29].mxu0 }
 0x1ce   : > { %v3520_v6 = vpop.f32.mrb[29].mxu1  ;;  %v2807_v10 = vpop.f32.mrb[30].mxu0 }
 0x1cf   : > { %v3521_v8 = vadd.f32 %v3520_v6, %v3519_v3  ;;  %v3522_v9 = vpop.f32.mrb[30].mxu1  ;;  %v3559_v12 = vpop.f32.mrb[31].mxu0 }
 0x1d0   : > { %v3523_v11 = vpop.f32.mrb[31].mxu1 }
 0x1d1   : > { %v2764_v13 = vadd.f32 %v3521_v8, %v2723_v0  ;;  %v3524_v4 = vadd.f32 %v3523_v11, %v3522_v9 }
 0x1d3   : > { %v2805_v14 = vadd.f32 %v2804_v5, %v2764_v13  ;;  %v2767_v15 = vadd.f32 %v3524_v4, %v2726_v2 }
 0x1d5   : > { %v2862_v16 = vmul.f32 %v4679_v51, %v2805_v14  ;;  %v2808_v17 = vadd.f32 %v2807_v10, %v2767_v15 }
 0x1d7   : > { %v2864_v18 = vadd.f32 %v4685_v62, %v2862_v16  ;;  %v2863_v19 = vmul.f32 %v4679_v51, %v2808_v17 }
 0x1d9   : > { %v2866_v20 = vmax.f32 %v2864_v18, 0.0  ;;  %v2865_v21 = vadd.f32 %v4685_v62, %v2863_v19 }
 0x1db   : > { %v2868_v22 = vmax.f32 %v2858_v56, %v2866_v20  ;;  %v2867_v23 = vmax.f32 %v2865_v21, 0.0 }
 0x1dd   : > { %2870 = vst [vmem:[%s329_s14] sm:$0xff] %v2868_v22  ;;  %v2869_v24 = vmax.f32 %v2859_v57, %v2867_v23 }
 0x1df   : > { %2871 = vst [vmem:[%s329_s14 + $0x8] sm:$0xff] %v2869_v24 }
 0x1e0 PF: > { %s14_s19 = sadd.s32 1, %s3883_s19   ;;  %s4726_s15 = smov %s3871_s16 }
 0x1e1   : > { %p11_p10 = scmp.ge.s32.totalorder %s14_s19, 4   ;;  %s4727_s16 = smov %s3947_s23 }
 0x1e2   : > { %s4728_s17 = smov %s3879_s18  ;;  %s4729_s18 = smov %s4731_s20 }
 0x1e3   :  { %13 = sbr.rel (!%p11_p10) target bundleno = 3 (0x3), region = 120 }

</bundles_post_ra>
